<compile_context>
chip_gen: v5e
topology: v5e:2x2
jax: 0.10.0
libtpu: 0.0.40
codegen_flags: <defaults>
</compile_context>

<pallas_src>
import functools
import math

import jax
import jax.numpy as jnp
from jax.experimental import pallas as pl
from jax.experimental.pallas import tpu as pltpu

BN_EPS = 1e-5
CP = 128            # lane-dense padded channel width for all conv outputs (Cout <= 64)
DEFAULT_TM = 512    # rows of the M = N*Ho*Wo axis per grid step

_VMEM_LIMIT = 32 * 1024 * 1024   # explicit budget: safe on v5e/v6e (128 MiB) and v7x (64 MiB)

_PARAMS_ARBITRARY = pltpu.CompilerParams(
    dimension_semantics=("arbitrary",), vmem_limit_bytes=_VMEM_LIMIT)
_PARAMS_PARALLEL = pltpu.CompilerParams(
    dimension_semantics=("parallel",), vmem_limit_bytes=_VMEM_LIMIT)

_VMEM_SPEC = pl.BlockSpec(memory_space=pltpu.MemorySpace.VMEM)


# ----------------------------- Pallas kernels ------------------------------ #

def _matmul_stats_kernel(p_ref, w_ref, g_ref, b_ref, y_ref, ss_ref, *, m_real):
    """Pass 1: y = patches @ w (bf16 MXU, f32 acc); accumulate per-channel sum and
    sum-of-squares in the resident ss block; finalize BN scale/shift on last tile."""
    t = pl.program_id(0)

    @pl.when(t == 0)
    def _init():
        ss_ref[...] = jnp.zeros_like(ss_ref)

    y = jnp.dot(p_ref[...], w_ref[...], preferred_element_type=jnp.float32)
    y_ref[...] = y
    # one-pass statistics: sum and sum-of-squares (no second traversal of y)
    ss_ref[0:1, :] += jnp.sum(y, axis=0, keepdims=True)
    ss_ref[1:2, :] += jnp.sum(y * y, axis=0, keepdims=True)

    @pl.when(t == pl.num_programs(0) - 1)
    def _finalize():
        mean = ss_ref[0:1, :] / m_real
        var = ss_ref[1:2, :] / m_real - mean * mean
        inv_std = jax.lax.rsqrt(var + BN_EPS)
        scale = g_ref[...] * inv_std
        shift = b_ref[...] - mean * scale
        ss_ref[0:1, :] = scale          # ss row 0 := gamma / sqrt(var + eps)
        ss_ref[1:2, :] = shift          # ss row 1 := beta - mean * scale


def _bn_act_kernel(y_ref, ss_ref, o_ref):
    """Pass 2: normalize + ReLU (elementwise, M axis 'parallel')."""
    o_ref[...] = jnp.maximum(y_ref[...] * ss_ref[0:1, :] + ss_ref[1:2, :], 0.0)


def _bn_add_act_kernel(y_ref, ss_ref, r_ref, o_ref):
    """Pass 2 with residual: normalize + residual add + ReLU."""
    o_ref[...] = jnp.maximum(
        y_ref[...] * ss_ref[0:1, :] + ss_ref[1:2, :] + r_ref[...], 0.0)


def _head_kernel(x_ref, w_ref, b_ref, feat_ref, logit_ref):
    """Global average pool + linear classifier (tiny, whole-array in VMEM)."""
    x = x_ref[...]
    feat = jnp.mean(x, axis=1)                                 # (N, C)
    feat_ref[...] = feat
    logit_ref[...] = (jnp.dot(feat, w_ref[...], preferred_element_type=jnp.float32)
                      + b_ref[...])


# ----------------------------- kernel wrappers ------------------------------ #

def _round_up(x, m):
    return (x + m - 1) // m * m


def conv_bn_relu(patches, w_pad, gamma, beta, residual=None):
    """Fused conv (as GEMM) + training-mode BatchNorm + optional residual + ReLU.

    patches : (M, K) f32 im2col patches (K = 9*Cin)
    w_pad   : (K, CP) bf16, zero-padded beyond the real Cout columns
    gamma/beta : (1, CP) f32, zero beyond real Cout
    residual: (M, CP) f32 or None
    returns : (M, CP) f32 (caller slices the real channels)
    """
    M, K = patches.shape
    TM = DEFAULT_TM if M >= DEFAULT_TM else _round_up(M, 16)   # bf16-friendly tile rows
    Mp = _round_up(M, TM)
    T = Mp // TM

    p = patches.astype(jnp.bfloat16)                           # halve MXU-input HBM traffic
    if Mp != M:
        p = jnp.pad(p, ((0, Mp - M), (0, 0)))                  # zero rows: no effect on stats

    # ---- pass 1: matmul + BN statistics (M axis is a reduction -> "arbitrary") ----
    y, ss = pl.pallas_call(
        functools.partial(_matmul_stats_kernel, m_real=float(M)),
        grid=(T,),
        in_specs=[
            pl.BlockSpec((TM, K), lambda t: (t, 0)),           # patch tile (pipelined)
            pl.BlockSpec((K, CP), lambda t: (0, 0)),           # weights (resident)
            pl.BlockSpec((1, CP), lambda t: (0, 0)),           # gamma
            pl.BlockSpec((1, CP), lambda t: (0, 0)),           # beta
        ],
        out_specs=(
            pl.BlockSpec((TM, CP), lambda t: (t, 0)),          # y tiles
            pl.BlockSpec((2, CP), lambda t: (0, 0)),           # stats accumulator (resident)
        ),
        out_shape=(
            jax.ShapeDtypeStruct((Mp, CP), jnp.float32),
            jax.ShapeDtypeStruct((2, CP), jnp.float32),
        ),
        compiler_params=_PARAMS_ARBITRARY,
        cost_estimate=pl.CostEstimate(
            flops=2 * Mp * K * CP,
            transcendentals=0,
            bytes_accessed=Mp * K * 2 + K * CP * 2 + Mp * CP * 4 + 4 * CP * 4),
    )(p, w_pad, gamma, beta)

    # ---- pass 2: normalize (+ residual) + ReLU (independent tiles -> "parallel") ----
    if residual is None:
        kernel = _bn_act_kernel
        extra_in = []
        extra_specs = []
    else:
        r = residual
        if Mp != M:
            r = jnp.pad(r, ((0, Mp - M), (0, 0)))
        kernel = _bn_add_act_kernel
        extra_in = [r]
        extra_specs = [pl.BlockSpec((TM, CP), lambda t: (t, 0))]   # residual tile (pipelined)

    out = pl.pallas_call(
        kernel,
        grid=(T,),
        in_specs=[
            pl.BlockSpec((TM, CP), lambda t: (t, 0)),          # y tile
            pl.BlockSpec((2, CP), lambda t: (0, 0)),           # scale/shift (resident)
        ] + extra_specs,
        out_specs=pl.BlockSpec((TM, CP), lambda t: (t, 0)),
        out_shape=jax.ShapeDtypeStruct((Mp, CP), jnp.float32),
        compiler_params=_PARAMS_PARALLEL,
        cost_estimate=pl.CostEstimate(
            flops=3 * Mp * CP,
            transcendentals=0,
            bytes_accessed=(2 + len(extra_in)) * Mp * CP * 4),
    )(y, ss, *extra_in)

    return out[:M]


def head(x_nhwc_flat, w, b):
    n, hw, c = x_nhwc_flat.shape
    nc = w.shape[1]
    return pl.pallas_call(
        _head_kernel,
        out_shape=(jax.ShapeDtypeStruct((n, c), jnp.float32),
                   jax.ShapeDtypeStruct((n, nc), jnp.float32)),
        in_specs=[_VMEM_SPEC] * 3,
        out_specs=(_VMEM_SPEC, _VMEM_SPEC),
        compiler_params=pltpu.CompilerParams(vmem_limit_bytes=_VMEM_LIMIT),
    )(x_nhwc_flat, w, b)


# ------------------------------- JAX glue ----------------------------------- #

def im2col(x, stride):
    """x: (N, H, W, C) -> patches (N*Ho*Wo, 9*C), patch ordering (kh, kw, c)."""
    N, H, W, C = x.shape
    xp = jnp.pad(x, ((0, 0), (1, 1), (1, 1), (0, 0)))
    Ho = (H + 2 - 3) // stride + 1
    Wo = (W + 2 - 3) // stride + 1
    cols = []
    for kh in range(3):
        for kw in range(3):
            cols.append(xp[:, kh:kh + (Ho - 1) * stride + 1:stride,
                           kw:kw + (Wo - 1) * stride + 1:stride, :])
    p = jnp.concatenate(cols, axis=-1)                 # (N, Ho, Wo, 9*C)
    return p.reshape(N * Ho * Wo, 9 * C), (N, Ho, Wo)


def basic_block(x, bp):
    """BasicBlock, option-A shortcut.  x: (N, H, W, Cin) NHWC."""
    stride, planes = bp['stride'], bp['planes']
    N, H, W, Cin = x.shape

    p1, (n, ho, wo) = im2col(x, stride)
    o1 = conv_bn_relu(p1, bp['w1'], bp['g1'], bp['b1'])[:, :planes]
    o1 = o1.reshape(n, ho, wo, planes)

    p2, _ = im2col(o1, 1)

    if stride != 1 or Cin != planes:
        # option 'A': subsample spatially by 2, zero-pad channels by planes//4 each side
        sc = x[:, ::2, ::2, :]
        pad = planes // 4
        sc = jnp.pad(sc, ((0, 0), (0, 0), (0, 0), (pad, pad)))
    else:
        sc = x
    sc = sc.reshape(n * ho * wo, planes)
    sc = jnp.pad(sc, ((0, 0), (0, CP - planes)))       # lane-pad residual to 128 channels

    o2 = conv_bn_relu(p2, bp['w2'], bp['g2'], bp['b2'], residual=sc)[:, :planes]
    return o2.reshape(n, ho, wo, planes)


# --------------------------- parameter construction ------------------------- #

def kaiming_conv(key, cout, cin):
    fan_in = cin * 9
    std = math.sqrt(2.0 / fan_in)
    w = jax.random.normal(key, (cout, cin, 3, 3), jnp.float32) * std   # PyTorch layout
    # reorder to match im2col patch ordering (kh, kw, cin) -> (9*cin, cout)
    w = jnp.transpose(w, (2, 3, 1, 0)).reshape(9 * cin, cout)
    w = jnp.pad(w, ((0, 0), (0, CP - cout)))                           # lane-dense Cout pad
    return w.astype(jnp.bfloat16)                                      # bf16 MXU inputs


def bn_params(cout):
    g = jnp.zeros((1, CP), jnp.float32).at[0, :cout].set(1.0)
    b = jnp.zeros((1, CP), jnp.float32)
    return g, b


def init_params(key, num_blocks, num_classes=10):
    keys = iter(jax.random.split(key, 128))
    g1, b1 = bn_params(16)
    params = {
        'conv1_w': kaiming_conv(next(keys), 16, 3),
        'bn1_g': g1,
        'bn1_b': b1,
    }
    in_planes = 16
    layers = []
    for planes, nb, stride0 in zip((16, 32, 64), num_blocks, (1, 2, 2)):
        blocks = []
        for s in [stride0] + [1] * (nb - 1):
            bg1, bb1 = bn_params(planes)
            bg2, bb2 = bn_params(planes)
            blocks.append({
                'w1': kaiming_conv(next(keys), planes, in_planes),
                'g1': bg1, 'b1': bb1,
                'w2': kaiming_conv(next(keys), planes, planes),
                'g2': bg2, 'b2': bb2,
                'stride': s, 'planes': planes,
            })
            in_planes = planes
        layers.append(blocks)
    params['layers'] = layers

    fan_in = 64
    wkey, bkey = jax.random.split(next(keys))
    fc_w = jax.random.normal(wkey, (num_classes, 64), jnp.float32) * math.sqrt(2.0 / fan_in)
    params['fc_w'] = fc_w.T                                            # (64, num_classes)
    bound = 1.0 / math.sqrt(fan_in)
    params['fc_b'] = jax.random.uniform(bkey, (1, num_classes), jnp.float32, -bound, bound)
    return params


# ------------------------------- forward ------------------------------------ #

def resnet_forward(params, x_nchw):
    """x_nchw: (N, 3, H, W) float32, PyTorch convention.  Returns (features, logits)."""
    x = jnp.transpose(x_nchw, (0, 2, 3, 1)).astype(jnp.float32)        # NCHW -> NHWC

    p, (n, ho, wo) = im2col(x, 1)
    o = conv_bn_relu(p, params['conv1_w'], params['bn1_g'], params['bn1_b'])[:, :16]
    o = o.reshape(n, ho, wo, 16)

    for blocks in params['layers']:
        for bp in blocks:
            o = basic_block(o, bp)

    N, H, W, C = o.shape
    # F.avg_pool2d(out, W) with H == W  ==  global average pool
    feats, logits = head(o.reshape(N, H * W, C), params['fc_w'], params['fc_b'])
    return feats, logits


if __name__ == "__main__":
    key = jax.random.PRNGKey(0)
    pkey, xkey = jax.random.split(key)

    # Small CIFAR-like config: ResNet-8 equivalent (num_blocks = [1, 1, 1]), 10 classes.
    params = init_params(pkey, num_blocks=[1, 1, 1], num_classes=10)

    x = jax.random.normal(xkey, (2, 3, 16, 16), jnp.float32)           # NCHW input

    fwd = jax.jit(lambda inp: resnet_forward(params, inp))
    feats, logits = fwd(x)
    jax.block_until_ready((feats, logits))

    assert feats.shape == (2, 64), feats.shape
    assert logits.shape == (2, 10), logits.shape
    assert jnp.all(jnp.isfinite(feats)) and jnp.all(jnp.isfinite(logits))
    print("KERNEL_OK")
</pallas_src>

<mosaic_0001>
module attributes {stable_mosaic.version = 11 : i64} {
  func.func @_bn_act_kernel(%arg0: i32, %arg1: memref<512x128xf32, #tpu.memory_space<vmem>>, %arg2: memref<2x128xf32, #tpu.memory_space<vmem>>, %arg3: memref<512x128xf32, #tpu.memory_space<vmem>>) attributes {dimension_semantics = [#tpu.dimension_semantics<parallel>], iteration_bounds = array<i64: 1>, scalar_prefetch = 0 : i64, scratch_operands = 0 : i64, tpu.core_type = #tpu.core_type<tc>, window_params = [{transform_indices = @transform_0, window_bounds = array<i64: 512, 128>}, {pipeline_mode = #tpu.pipeline_mode<synchronous>, transform_indices = @transform_1, window_bounds = array<i64: 2, 128>}, {transform_indices = @transform_2, window_bounds = array<i64: 512, 128>}]} {
    %c0 = arith.constant 0 : index
    %c0_0 = arith.constant 0 : index
    %0 = vector.load %arg1[%c0, %c0_0] : memref<512x128xf32, #tpu.memory_space<vmem>>, vector<512x128xf32>
    %c0_1 = arith.constant 0 : index
    %c0_2 = arith.constant 0 : index
    %1 = vector.load %arg2[%c0_1, %c0_2] : memref<2x128xf32, #tpu.memory_space<vmem>>, vector<1x128xf32>
    %2 = vector.broadcast %1 : vector<1x128xf32> to vector<512x128xf32>
    %3 = arith.mulf %0, %2 : vector<512x128xf32>
    %c1 = arith.constant 1 : index
    %c0_3 = arith.constant 0 : index
    %4 = vector.load %arg2[%c1, %c0_3] : memref<2x128xf32, #tpu.memory_space<vmem>>, vector<1x128xf32>
    %5 = vector.broadcast %4 : vector<1x128xf32> to vector<512x128xf32>
    %6 = arith.addf %3, %5 : vector<512x128xf32>
    %cst = arith.constant 0.000000e+00 : f32
    %7 = vector.broadcast %cst : f32 to vector<512x128xf32>
    %8 = arith.maximumf %6, %7 : vector<512x128xf32>
    %c0_4 = arith.constant 0 : index
    %c0_5 = arith.constant 0 : index
    %9 = vector.load %arg3[%c0_4, %c0_5] : memref<512x128xf32, #tpu.memory_space<vmem>>, vector<512x128xf32>
    tpu.vector_store %arg3[%c0_4, %c0_5], %8 {strides = array<i32>} : memref<512x128xf32, #tpu.memory_space<vmem>>, vector<512x128xf32>,
    return
  }
  func.func @transform_0(%arg0: i32) -> (i32, i32) {
    %c0_i32 = arith.constant 0 : i32
    %c0_i32_0 = arith.constant 0 : i32
    return %arg0, %c0_i32 : i32, i32
  }
  func.func @transform_1(%arg0: i32) -> (i32, i32) {
    %c0_i32 = arith.constant 0 : i32
    %c0_i32_0 = arith.constant 0 : i32
    %c0_i32_1 = arith.constant 0 : i32
    return %c0_i32, %c0_i32_0 : i32, i32
  }
  func.func @transform_2(%arg0: i32) -> (i32, i32) {
    %c0_i32 = arith.constant 0 : i32
    %c0_i32_0 = arith.constant 0 : i32
    return %arg0, %c0_i32 : i32, i32
  }
}

module attributes {stable_mosaic.version = 11 : i64} {
  func.func @_matmul_stats_kernel(%arg0: i32, %arg1: memref<512x27xbf16, #tpu.memory_space<vmem>>, %arg2: memref<27x128xbf16, #tpu.memory_space<vmem>>, %arg3: memref<1x128xf32, #tpu.memory_space<vmem>>, %arg4: memref<1x128xf32, #tpu.memory_space<vmem>>, %arg5: memref<512x128xf32, #tpu.memory_space<vmem>>, %arg6: memref<2x128xf32, #tpu.memory_space<vmem>>) attributes {dimension_semantics = [#tpu.dimension_semantics<arbitrary>], iteration_bounds = array<i64: 1>, scalar_prefetch = 0 : i64, scratch_operands = 0 : i64, tpu.core_type = #tpu.core_type<tc>, window_params = [{transform_indices = @transform_0, window_bounds = array<i64: 512, 27>}, {pipeline_mode = #tpu.pipeline_mode<synchronous>, transform_indices = @transform_1, window_bounds = array<i64: 27, 128>}, {pipeline_mode = #tpu.pipeline_mode<synchronous>, transform_indices = @transform_2, window_bounds = array<i64: 1, 128>}, {pipeline_mode = #tpu.pipeline_mode<synchronous>, transform_indices = @transform_3, window_bounds = array<i64: 1, 128>}, {transform_indices = @transform_4, window_bounds = array<i64: 512, 128>}, {pipeline_mode = #tpu.pipeline_mode<synchronous>, transform_indices = @transform_5, window_bounds = array<i64: 2, 128>}]} {
    %c0_i32 = arith.constant 0 : i32
    %0 = arith.cmpi eq, %arg0, %c0_i32 : i32
    %1 = arith.extui %0 : i1 to i32
    %c0_i32_0 = arith.constant 0 : i32
    %2 = arith.cmpi ne, %1, %c0_i32_0 : i32
    scf.if %2 {
      %cst_17 = arith.constant 0.000000e+00 : f32
      %21 = vector.broadcast %cst_17 : f32 to vector<2x128xf32>
      %c0_18 = arith.constant 0 : index
      %c0_19 = arith.constant 0 : index
      %22 = vector.load %arg6[%c0_18, %c0_19] : memref<2x128xf32, #tpu.memory_space<vmem>>, vector<2x128xf32>
      tpu.vector_store %arg6[%c0_18, %c0_19], %21 {strides = array<i32>} : memref<2x128xf32, #tpu.memory_space<vmem>>, vector<2x128xf32>,
    } else {
    }
    %c0 = arith.constant 0 : index
    %c0_1 = arith.constant 0 : index
    %3 = vector.load %arg1[%c0, %c0_1] : memref<512x27xbf16, #tpu.memory_space<vmem>>, vector<512x27xbf16>
    %c0_2 = arith.constant 0 : index
    %c0_3 = arith.constant 0 : index
    %4 = vector.load %arg2[%c0_2, %c0_3] : memref<27x128xbf16, #tpu.memory_space<vmem>>, vector<27x128xbf16>
    %cst = arith.constant dense<0.000000e+00> : vector<512x128xf32>
    %5 = tpu.matmul %3, %4, %cst {dimension_numbers = #tpu.dot_dimension_numbers<[1], [0], [0], [1], [0, 0, 1, 1], [], []>} : vector<512x27xbf16>, vector<27x128xbf16>, vector<512x128xf32> -> vector<512x128xf32>
    %c0_4 = arith.constant 0 : index
    %c0_5 = arith.constant 0 : index
    %6 = vector.load %arg5[%c0_4, %c0_5] : memref<512x128xf32, #tpu.memory_space<vmem>>, vector<512x128xf32>
    tpu.vector_store %arg5[%c0_4, %c0_5], %5 {strides = array<i32>} : memref<512x128xf32, #tpu.memory_space<vmem>>, vector<512x128xf32>,
    %c0_6 = arith.constant 0 : index
    %c0_7 = arith.constant 0 : index
    %7 = vector.load %arg6[%c0_6, %c0_7] : memref<2x128xf32, #tpu.memory_space<vmem>>, vector<1x128xf32>
    %cst_8 = arith.constant dense<0.000000e+00> : vector<128xf32>
    %8 = vector.multi_reduction <add>, %5, %cst_8 [0] : vector<512x128xf32> to vector<128xf32>
    %9 = vector.shape_cast %8 : vector<128xf32> to vector<1x128xf32>
    %10 = arith.addf %7, %9 : vector<1x128xf32>
    %c0_9 = arith.constant 0 : index
    %c0_10 = arith.constant 0 : index
    %11 = vector.load %arg6[%c0_9, %c0_10] : memref<2x128xf32, #tpu.memory_space<vmem>>, vector<1x128xf32>
    tpu.vector_store %arg6[%c0_9, %c0_10], %10 {strides = array<i32>} : memref<2x128xf32, #tpu.memory_space<vmem>>, vector<1x128xf32>,
    %c1 = arith.constant 1 : index
    %c0_11 = arith.constant 0 : index
    %12 = vector.load %arg6[%c1, %c0_11] : memref<2x128xf32, #tpu.memory_space<vmem>>, vector<1x128xf32>
    %13 = arith.mulf %5, %5 : vector<512x128xf32>
    %cst_12 = arith.constant dense<0.000000e+00> : vector<128xf32>
    %14 = vector.multi_reduction <add>, %13, %cst_12 [0] : vector<512x128xf32> to vector<128xf32>
    %15 = vector.shape_cast %14 : vector<128xf32> to vector<1x128xf32>
    %16 = arith.addf %12, %15 : vector<1x128xf32>
    %c1_13 = arith.constant 1 : index
    %c0_14 = arith.constant 0 : index
    %17 = vector.load %arg6[%c1_13, %c0_14] : memref<2x128xf32, #tpu.memory_space<vmem>>, vector<1x128xf32>
    tpu.vector_store %arg6[%c1_13, %c0_14], %16 {strides = array<i32>} : memref<2x128xf32, #tpu.memory_space<vmem>>, vector<1x128xf32>,
    %c0_i32_15 = arith.constant 0 : i32
    %18 = arith.cmpi eq, %arg0, %c0_i32_15 : i32
    %19 = arith.extui %18 : i1 to i32
    %c0_i32_16 = arith.constant 0 : i32
    %20 = arith.cmpi ne, %19, %c0_i32_16 : i32
    scf.if %20 {
      %c0_17 = arith.constant 0 : index
      %c0_18 = arith.constant 0 : index
      %21 = vector.load %arg6[%c0_17, %c0_18] : memref<2x128xf32, #tpu.memory_space<vmem>>, vector<1x128xf32>
      %cst_19 = arith.constant 5.120000e+02 : f32
      %22 = vector.broadcast %cst_19 : f32 to vector<1x128xf32>
      %23 = arith.divf %21, %22 : vector<1x128xf32>
      %c1_20 = arith.constant 1 : index
      %c0_21 = arith.constant 0 : index
      %24 = vector.load %arg6[%c1_20, %c0_21] : memref<2x128xf32, #tpu.memory_space<vmem>>, vector<1x128xf32>
      %cst_22 = arith.constant 5.120000e+02 : f32
      %25 = vector.broadcast %cst_22 : f32 to vector<1x128xf32>
      %26 = arith.divf %24, %25 : vector<1x128xf32>
      %27 = arith.mulf %23, %23 : vector<1x128xf32>
      %28 = arith.subf %26, %27 : vector<1x128xf32>
      %cst_23 = arith.constant 9.99999974E-6 : f32
      %29 = vector.broadcast %cst_23 : f32 to vector<1x128xf32>
      %30 = arith.addf %28, %29 : vector<1x128xf32>
      %31 = math.rsqrt %30 : vector<1x128xf32>
      %c0_24 = arith.constant 0 : index
      %c0_25 = arith.constant 0 : index
      %32 = vector.load %arg3[%c0_24, %c0_25] : memref<1x128xf32, #tpu.memory_space<vmem>>, vector<1x128xf32>
      %33 = arith.mulf %32, %31 : vector<1x128xf32>
      %c0_26 = arith.constant 0 : index
      %c0_27 = arith.constant 0 : index
      %34 = vector.load %arg4[%c0_26, %c0_27] : memref<1x128xf32, #tpu.memory_space<vmem>>, vector<1x128xf32>
      %35 = arith.mulf %23, %33 : vector<1x128xf32>
      %36 = arith.subf %34, %35 : vector<1x128xf32>
      %c0_28 = arith.constant 0 : index
      %c0_29 = arith.constant 0 : index
      %37 = vector.load %arg6[%c0_28, %c0_29] : memref<2x128xf32, #tpu.memory_space<vmem>>, vector<1x128xf32>
      tpu.vector_store %arg6[%c0_28, %c0_29], %33 {strides = array<i32>} : memref<2x128xf32, #tpu.memory_space<vmem>>, vector<1x128xf32>,
      %c1_30 = arith.constant 1 : index
      %c0_31 = arith.constant 0 : index
      %38 = vector.load %arg6[%c1_30, %c0_31] : memref<2x128xf32, #tpu.memory_space<vmem>>, vector<1x128xf32>
      tpu.vector_store %arg6[%c1_30, %c0_31], %36 {strides = array<i32>} : memref<2x128xf32, #tpu.memory_space<vmem>>, vector<1x128xf32>,
    } else {
    }
    return
  }
  func.func @transform_0(%arg0: i32) -> (i32, i32) {
    %c0_i32 = arith.constant 0 : i32
    %c0_i32_0 = arith.constant 0 : i32
    return %arg0, %c0_i32 : i32, i32
  }
  func.func @transform_1(%arg0: i32) -> (i32, i32) {
    %c0_i32 = arith.constant 0 : i32
    %c0_i32_0 = arith.constant 0 : i32
    %c0_i32_1 = arith.constant 0 : i32
    return %c0_i32, %c0_i32_0 : i32, i32
  }
  func.func @transform_2(%arg0: i32) -> (i32, i32) {
    %c0_i32 = arith.constant 0 : i32
    %c0_i32_0 = arith.constant 0 : i32
    %c0_i32_1 = arith.constant 0 : i32
    return %c0_i32, %c0_i32_0 : i32, i32
  }
  func.func @transform_3(%arg0: i32) -> (i32, i32) {
    %c0_i32 = arith.constant 0 : i32
    %c0_i32_0 = arith.constant 0 : i32
    %c0_i32_1 = arith.constant 0 : i32
    return %c0_i32, %c0_i32_0 : i32, i32
  }
  func.func @transform_4(%arg0: i32) -> (i32, i32) {
    %c0_i32 = arith.constant 0 : i32
    %c0_i32_0 = arith.constant 0 : i32
    return %arg0, %c0_i32 : i32, i32
  }
  func.func @transform_5(%arg0: i32) -> (i32, i32) {
    %c0_i32 = arith.constant 0 : i32
    %c0_i32_0 = arith.constant 0 : i32
    %c0_i32_1 = arith.constant 0 : i32
    return %c0_i32, %c0_i32_0 : i32, i32
  }
}

module attributes {stable_mosaic.version = 11 : i64} {
  func.func @_matmul_stats_kernel(%arg0: i32, %arg1: memref<512x144xbf16, #tpu.memory_space<vmem>>, %arg2: memref<144x128xbf16, #tpu.memory_space<vmem>>, %arg3: memref<1x128xf32, #tpu.memory_space<vmem>>, %arg4: memref<1x128xf32, #tpu.memory_space<vmem>>, %arg5: memref<512x128xf32, #tpu.memory_space<vmem>>, %arg6: memref<2x128xf32, #tpu.memory_space<vmem>>) attributes {dimension_semantics = [#tpu.dimension_semantics<arbitrary>], iteration_bounds = array<i64: 1>, scalar_prefetch = 0 : i64, scratch_operands = 0 : i64, tpu.core_type = #tpu.core_type<tc>, window_params = [{transform_indices = @transform_0, window_bounds = array<i64: 512, 144>}, {pipeline_mode = #tpu.pipeline_mode<synchronous>, transform_indices = @transform_1, window_bounds = array<i64: 144, 128>}, {pipeline_mode = #tpu.pipeline_mode<synchronous>, transform_indices = @transform_2, window_bounds = array<i64: 1, 128>}, {pipeline_mode = #tpu.pipeline_mode<synchronous>, transform_indices = @transform_3, window_bounds = array<i64: 1, 128>}, {transform_indices = @transform_4, window_bounds = array<i64: 512, 128>}, {pipeline_mode = #tpu.pipeline_mode<synchronous>, transform_indices = @transform_5, window_bounds = array<i64: 2, 128>}]} {
    %c0_i32 = arith.constant 0 : i32
    %0 = arith.cmpi eq, %arg0, %c0_i32 : i32
    %1 = arith.extui %0 : i1 to i32
    %c0_i32_0 = arith.constant 0 : i32
    %2 = arith.cmpi ne, %1, %c0_i32_0 : i32
    scf.if %2 {
      %cst_17 = arith.constant 0.000000e+00 : f32
      %21 = vector.broadcast %cst_17 : f32 to vector<2x128xf32>
      %c0_18 = arith.constant 0 : index
      %c0_19 = arith.constant 0 : index
      %22 = vector.load %arg6[%c0_18, %c0_19] : memref<2x128xf32, #tpu.memory_space<vmem>>, vector<2x128xf32>
      tpu.vector_store %arg6[%c0_18, %c0_19], %21 {strides = array<i32>} : memref<2x128xf32, #tpu.memory_space<vmem>>, vector<2x128xf32>,
    } else {
    }
    %c0 = arith.constant 0 : index
    %c0_1 = arith.constant 0 : index
    %3 = vector.load %arg1[%c0, %c0_1] : memref<512x144xbf16, #tpu.memory_space<vmem>>, vector<512x144xbf16>
    %c0_2 = arith.constant 0 : index
    %c0_3 = arith.constant 0 : index
    %4 = vector.load %arg2[%c0_2, %c0_3] : memref<144x128xbf16, #tpu.memory_space<vmem>>, vector<144x128xbf16>
    %cst = arith.constant dense<0.000000e+00> : vector<512x128xf32>
    %5 = tpu.matmul %3, %4, %cst {dimension_numbers = #tpu.dot_dimension_numbers<[1], [0], [0], [1], [0, 0, 1, 1], [], []>} : vector<512x144xbf16>, vector<144x128xbf16>, vector<512x128xf32> -> vector<512x128xf32>
    %c0_4 = arith.constant 0 : index
    %c0_5 = arith.constant 0 : index
    %6 = vector.load %arg5[%c0_4, %c0_5] : memref<512x128xf32, #tpu.memory_space<vmem>>, vector<512x128xf32>
    tpu.vector_store %arg5[%c0_4, %c0_5], %5 {strides = array<i32>} : memref<512x128xf32, #tpu.memory_space<vmem>>, vector<512x128xf32>,
    %c0_6 = arith.constant 0 : index
    %c0_7 = arith.constant 0 : index
    %7 = vector.load %arg6[%c0_6, %c0_7] : memref<2x128xf32, #tpu.memory_space<vmem>>, vector<1x128xf32>
    %cst_8 = arith.constant dense<0.000000e+00> : vector<128xf32>
    %8 = vector.multi_reduction <add>, %5, %cst_8 [0] : vector<512x128xf32> to vector<128xf32>
    %9 = vector.shape_cast %8 : vector<128xf32> to vector<1x128xf32>
    %10 = arith.addf %7, %9 : vector<1x128xf32>
    %c0_9 = arith.constant 0 : index
    %c0_10 = arith.constant 0 : index
    %11 = vector.load %arg6[%c0_9, %c0_10] : memref<2x128xf32, #tpu.memory_space<vmem>>, vector<1x128xf32>
    tpu.vector_store %arg6[%c0_9, %c0_10], %10 {strides = array<i32>} : memref<2x128xf32, #tpu.memory_space<vmem>>, vector<1x128xf32>,
    %c1 = arith.constant 1 : index
    %c0_11 = arith.constant 0 : index
    %12 = vector.load %arg6[%c1, %c0_11] : memref<2x128xf32, #tpu.memory_space<vmem>>, vector<1x128xf32>
    %13 = arith.mulf %5, %5 : vector<512x128xf32>
    %cst_12 = arith.constant dense<0.000000e+00> : vector<128xf32>
    %14 = vector.multi_reduction <add>, %13, %cst_12 [0] : vector<512x128xf32> to vector<128xf32>
    %15 = vector.shape_cast %14 : vector<128xf32> to vector<1x128xf32>
    %16 = arith.addf %12, %15 : vector<1x128xf32>
    %c1_13 = arith.constant 1 : index
    %c0_14 = arith.constant 0 : index
    %17 = vector.load %arg6[%c1_13, %c0_14] : memref<2x128xf32, #tpu.memory_space<vmem>>, vector<1x128xf32>
    tpu.vector_store %arg6[%c1_13, %c0_14], %16 {strides = array<i32>} : memref<2x128xf32, #tpu.memory_space<vmem>>, vector<1x128xf32>,
    %c0_i32_15 = arith.constant 0 : i32
    %18 = arith.cmpi eq, %arg0, %c0_i32_15 : i32
    %19 = arith.extui %18 : i1 to i32
    %c0_i32_16 = arith.constant 0 : i32
    %20 = arith.cmpi ne, %19, %c0_i32_16 : i32
    scf.if %20 {
      %c0_17 = arith.constant 0 : index
      %c0_18 = arith.constant 0 : index
      %21 = vector.load %arg6[%c0_17, %c0_18] : memref<2x128xf32, #tpu.memory_space<vmem>>, vector<1x128xf32>
      %cst_19 = arith.constant 5.120000e+02 : f32
      %22 = vector.broadcast %cst_19 : f32 to vector<1x128xf32>
      %23 = arith.divf %21, %22 : vector<1x128xf32>
      %c1_20 = arith.constant 1 : index
      %c0_21 = arith.constant 0 : index
      %24 = vector.load %arg6[%c1_20, %c0_21] : memref<2x128xf32, #tpu.memory_space<vmem>>, vector<1x128xf32>
      %cst_22 = arith.constant 5.120000e+02 : f32
      %25 = vector.broadcast %cst_22 : f32 to vector<1x128xf32>
      %26 = arith.divf %24, %25 : vector<1x128xf32>
      %27 = arith.mulf %23, %23 : vector<1x128xf32>
      %28 = arith.subf %26, %27 : vector<1x128xf32>
      %cst_23 = arith.constant 9.99999974E-6 : f32
      %29 = vector.broadcast %cst_23 : f32 to vector<1x128xf32>
      %30 = arith.addf %28, %29 : vector<1x128xf32>
      %31 = math.rsqrt %30 : vector<1x128xf32>
      %c0_24 = arith.constant 0 : index
      %c0_25 = arith.constant 0 : index
      %32 = vector.load %arg3[%c0_24, %c0_25] : memref<1x128xf32, #tpu.memory_space<vmem>>, vector<1x128xf32>
      %33 = arith.mulf %32, %31 : vector<1x128xf32>
      %c0_26 = arith.constant 0 : index
      %c0_27 = arith.constant 0 : index
      %34 = vector.load %arg4[%c0_26, %c0_27] : memref<1x128xf32, #tpu.memory_space<vmem>>, vector<1x128xf32>
      %35 = arith.mulf %23, %33 : vector<1x128xf32>
      %36 = arith.subf %34, %35 : vector<1x128xf32>
      %c0_28 = arith.constant 0 : index
      %c0_29 = arith.constant 0 : index
      %37 = vector.load %arg6[%c0_28, %c0_29] : memref<2x128xf32, #tpu.memory_space<vmem>>, vector<1x128xf32>
      tpu.vector_store %arg6[%c0_28, %c0_29], %33 {strides = array<i32>} : memref<2x128xf32, #tpu.memory_space<vmem>>, vector<1x128xf32>,
      %c1_30 = arith.constant 1 : index
      %c0_31 = arith.constant 0 : index
      %38 = vector.load %arg6[%c1_30, %c0_31] : memref<2x128xf32, #tpu.memory_space<vmem>>, vector<1x128xf32>
      tpu.vector_store %arg6[%c1_30, %c0_31], %36 {strides = array<i32>} : memref<2x128xf32, #tpu.memory_space<vmem>>, vector<1x128xf32>,
    } else {
    }
    return
  }
  func.func @transform_0(%arg0: i32) -> (i32, i32) {
    %c0_i32 = arith.constant 0 : i32
    %c0_i32_0 = arith.constant 0 : i32
    return %arg0, %c0_i32 : i32, i32
  }
  func.func @transform_1(%arg0: i32) -> (i32, i32) {
    %c0_i32 = arith.constant 0 : i32
    %c0_i32_0 = arith.constant 0 : i32
    %c0_i32_1 = arith.constant 0 : i32
    return %c0_i32, %c0_i32_0 : i32, i32
  }
  func.func @transform_2(%arg0: i32) -> (i32, i32) {
    %c0_i32 = arith.constant 0 : i32
    %c0_i32_0 = arith.constant 0 : i32
    %c0_i32_1 = arith.constant 0 : i32
    return %c0_i32, %c0_i32_0 : i32, i32
  }
  func.func @transform_3(%arg0: i32) -> (i32, i32) {
    %c0_i32 = arith.constant 0 : i32
    %c0_i32_0 = arith.constant 0 : i32
    %c0_i32_1 = arith.constant 0 : i32
    return %c0_i32, %c0_i32_0 : i32, i32
  }
  func.func @transform_4(%arg0: i32) -> (i32, i32) {
    %c0_i32 = arith.constant 0 : i32
    %c0_i32_0 = arith.constant 0 : i32
    return %arg0, %c0_i32 : i32, i32
  }
  func.func @transform_5(%arg0: i32) -> (i32, i32) {
    %c0_i32 = arith.constant 0 : i32
    %c0_i32_0 = arith.constant 0 : i32
    %c0_i32_1 = arith.constant 0 : i32
    return %c0_i32, %c0_i32_0 : i32, i32
  }
}

module attributes {stable_mosaic.version = 11 : i64} {
  func.func @_bn_add_act_kernel(%arg0: i32, %arg1: memref<512x128xf32, #tpu.memory_space<vmem>>, %arg2: memref<2x128xf32, #tpu.memory_space<vmem>>, %arg3: memref<512x128xf32, #tpu.memory_space<vmem>>, %arg4: memref<512x128xf32, #tpu.memory_space<vmem>>) attributes {dimension_semantics = [#tpu.dimension_semantics<parallel>], iteration_bounds = array<i64: 1>, scalar_prefetch = 0 : i64, scratch_operands = 0 : i64, tpu.core_type = #tpu.core_type<tc>, window_params = [{transform_indices = @transform_0, window_bounds = array<i64: 512, 128>}, {pipeline_mode = #tpu.pipeline_mode<synchronous>, transform_indices = @transform_1, window_bounds = array<i64: 2, 128>}, {transform_indices = @transform_2, window_bounds = array<i64: 512, 128>}, {transform_indices = @transform_3, window_bounds = array<i64: 512, 128>}]} {
    %c0 = arith.constant 0 : index
    %c0_0 = arith.constant 0 : index
    %0 = vector.load %arg1[%c0, %c0_0] : memref<512x128xf32, #tpu.memory_space<vmem>>, vector<512x128xf32>
    %c0_1 = arith.constant 0 : index
    %c0_2 = arith.constant 0 : index
    %1 = vector.load %arg2[%c0_1, %c0_2] : memref<2x128xf32, #tpu.memory_space<vmem>>, vector<1x128xf32>
    %2 = vector.broadcast %1 : vector<1x128xf32> to vector<512x128xf32>
    %3 = arith.mulf %0, %2 : vector<512x128xf32>
    %c1 = arith.constant 1 : index
    %c0_3 = arith.constant 0 : index
    %4 = vector.load %arg2[%c1, %c0_3] : memref<2x128xf32, #tpu.memory_space<vmem>>, vector<1x128xf32>
    %5 = vector.broadcast %4 : vector<1x128xf32> to vector<512x128xf32>
    %6 = arith.addf %3, %5 : vector<512x128xf32>
    %c0_4 = arith.constant 0 : index
    %c0_5 = arith.constant 0 : index
    %7 = vector.load %arg3[%c0_4, %c0_5] : memref<512x128xf32, #tpu.memory_space<vmem>>, vector<512x128xf32>
    %8 = arith.addf %6, %7 : vector<512x128xf32>
    %cst = arith.constant 0.000000e+00 : f32
    %9 = vector.broadcast %cst : f32 to vector<512x128xf32>
    %10 = arith.maximumf %8, %9 : vector<512x128xf32>
    %c0_6 = arith.constant 0 : index
    %c0_7 = arith.constant 0 : index
    %11 = vector.load %arg4[%c0_6, %c0_7] : memref<512x128xf32, #tpu.memory_space<vmem>>, vector<512x128xf32>
    tpu.vector_store %arg4[%c0_6, %c0_7], %10 {strides = array<i32>} : memref<512x128xf32, #tpu.memory_space<vmem>>, vector<512x128xf32>,
    return
  }
  func.func @transform_0(%arg0: i32) -> (i32, i32) {
    %c0_i32 = arith.constant 0 : i32
    %c0_i32_0 = arith.constant 0 : i32
    return %arg0, %c0_i32 : i32, i32
  }
  func.func @transform_1(%arg0: i32) -> (i32, i32) {
    %c0_i32 = arith.constant 0 : i32
    %c0_i32_0 = arith.constant 0 : i32
    %c0_i32_1 = arith.constant 0 : i32
    return %c0_i32, %c0_i32_0 : i32, i32
  }
  func.func @transform_2(%arg0: i32) -> (i32, i32) {
    %c0_i32 = arith.constant 0 : i32
    %c0_i32_0 = arith.constant 0 : i32
    return %arg0, %c0_i32 : i32, i32
  }
  func.func @transform_3(%arg0: i32) -> (i32, i32) {
    %c0_i32 = arith.constant 0 : i32
    %c0_i32_0 = arith.constant 0 : i32
    return %arg0, %c0_i32 : i32, i32
  }
}

module attributes {stable_mosaic.version = 11 : i64} {
  func.func @_matmul_stats_kernel(%arg0: i32, %arg1: memref<128x144xbf16, #tpu.memory_space<vmem>>, %arg2: memref<144x128xbf16, #tpu.memory_space<vmem>>, %arg3: memref<1x128xf32, #tpu.memory_space<vmem>>, %arg4: memref<1x128xf32, #tpu.memory_space<vmem>>, %arg5: memref<128x128xf32, #tpu.memory_space<vmem>>, %arg6: memref<2x128xf32, #tpu.memory_space<vmem>>) attributes {dimension_semantics = [#tpu.dimension_semantics<arbitrary>], iteration_bounds = array<i64: 1>, scalar_prefetch = 0 : i64, scratch_operands = 0 : i64, tpu.core_type = #tpu.core_type<tc>, window_params = [{transform_indices = @transform_0, window_bounds = array<i64: 128, 144>}, {pipeline_mode = #tpu.pipeline_mode<synchronous>, transform_indices = @transform_1, window_bounds = array<i64: 144, 128>}, {pipeline_mode = #tpu.pipeline_mode<synchronous>, transform_indices = @transform_2, window_bounds = array<i64: 1, 128>}, {pipeline_mode = #tpu.pipeline_mode<synchronous>, transform_indices = @transform_3, window_bounds = array<i64: 1, 128>}, {transform_indices = @transform_4, window_bounds = array<i64: 128, 128>}, {pipeline_mode = #tpu.pipeline_mode<synchronous>, transform_indices = @transform_5, window_bounds = array<i64: 2, 128>}]} {
    %c0_i32 = arith.constant 0 : i32
    %0 = arith.cmpi eq, %arg0, %c0_i32 : i32
    %1 = arith.extui %0 : i1 to i32
    %c0_i32_0 = arith.constant 0 : i32
    %2 = arith.cmpi ne, %1, %c0_i32_0 : i32
    scf.if %2 {
      %cst_17 = arith.constant 0.000000e+00 : f32
      %21 = vector.broadcast %cst_17 : f32 to vector<2x128xf32>
      %c0_18 = arith.constant 0 : index
      %c0_19 = arith.constant 0 : index
      %22 = vector.load %arg6[%c0_18, %c0_19] : memref<2x128xf32, #tpu.memory_space<vmem>>, vector<2x128xf32>
      tpu.vector_store %arg6[%c0_18, %c0_19], %21 {strides = array<i32>} : memref<2x128xf32, #tpu.memory_space<vmem>>, vector<2x128xf32>,
    } else {
    }
    %c0 = arith.constant 0 : index
    %c0_1 = arith.constant 0 : index
    %3 = vector.load %arg1[%c0, %c0_1] : memref<128x144xbf16, #tpu.memory_space<vmem>>, vector<128x144xbf16>
    %c0_2 = arith.constant 0 : index
    %c0_3 = arith.constant 0 : index
    %4 = vector.load %arg2[%c0_2, %c0_3] : memref<144x128xbf16, #tpu.memory_space<vmem>>, vector<144x128xbf16>
    %cst = arith.constant dense<0.000000e+00> : vector<128x128xf32>
    %5 = tpu.matmul %3, %4, %cst {dimension_numbers = #tpu.dot_dimension_numbers<[1], [0], [0], [1], [0, 0, 1, 1], [], []>} : vector<128x144xbf16>, vector<144x128xbf16>, vector<128x128xf32> -> vector<128x128xf32>
    %c0_4 = arith.constant 0 : index
    %c0_5 = arith.constant 0 : index
    %6 = vector.load %arg5[%c0_4, %c0_5] : memref<128x128xf32, #tpu.memory_space<vmem>>, vector<128x128xf32>
    tpu.vector_store %arg5[%c0_4, %c0_5], %5 {strides = array<i32>} : memref<128x128xf32, #tpu.memory_space<vmem>>, vector<128x128xf32>,
    %c0_6 = arith.constant 0 : index
    %c0_7 = arith.constant 0 : index
    %7 = vector.load %arg6[%c0_6, %c0_7] : memref<2x128xf32, #tpu.memory_space<vmem>>, vector<1x128xf32>
    %cst_8 = arith.constant dense<0.000000e+00> : vector<128xf32>
    %8 = vector.multi_reduction <add>, %5, %cst_8 [0] : vector<128x128xf32> to vector<128xf32>
    %9 = vector.shape_cast %8 : vector<128xf32> to vector<1x128xf32>
    %10 = arith.addf %7, %9 : vector<1x128xf32>
    %c0_9 = arith.constant 0 : index
    %c0_10 = arith.constant 0 : index
    %11 = vector.load %arg6[%c0_9, %c0_10] : memref<2x128xf32, #tpu.memory_space<vmem>>, vector<1x128xf32>
    tpu.vector_store %arg6[%c0_9, %c0_10], %10 {strides = array<i32>} : memref<2x128xf32, #tpu.memory_space<vmem>>, vector<1x128xf32>,
    %c1 = arith.constant 1 : index
    %c0_11 = arith.constant 0 : index
    %12 = vector.load %arg6[%c1, %c0_11] : memref<2x128xf32, #tpu.memory_space<vmem>>, vector<1x128xf32>
    %13 = arith.mulf %5, %5 : vector<128x128xf32>
    %cst_12 = arith.constant dense<0.000000e+00> : vector<128xf32>
    %14 = vector.multi_reduction <add>, %13, %cst_12 [0] : vector<128x128xf32> to vector<128xf32>
    %15 = vector.shape_cast %14 : vector<128xf32> to vector<1x128xf32>
    %16 = arith.addf %12, %15 : vector<1x128xf32>
    %c1_13 = arith.constant 1 : index
    %c0_14 = arith.constant 0 : index
    %17 = vector.load %arg6[%c1_13, %c0_14] : memref<2x128xf32, #tpu.memory_space<vmem>>, vector<1x128xf32>
    tpu.vector_store %arg6[%c1_13, %c0_14], %16 {strides = array<i32>} : memref<2x128xf32, #tpu.memory_space<vmem>>, vector<1x128xf32>,
    %c0_i32_15 = arith.constant 0 : i32
    %18 = arith.cmpi eq, %arg0, %c0_i32_15 : i32
    %19 = arith.extui %18 : i1 to i32
    %c0_i32_16 = arith.constant 0 : i32
    %20 = arith.cmpi ne, %19, %c0_i32_16 : i32
    scf.if %20 {
      %c0_17 = arith.constant 0 : index
      %c0_18 = arith.constant 0 : index
      %21 = vector.load %arg6[%c0_17, %c0_18] : memref<2x128xf32, #tpu.memory_space<vmem>>, vector<1x128xf32>
      %cst_19 = arith.constant 1.280000e+02 : f32
      %22 = vector.broadcast %cst_19 : f32 to vector<1x128xf32>
      %23 = arith.divf %21, %22 : vector<1x128xf32>
      %c1_20 = arith.constant 1 : index
      %c0_21 = arith.constant 0 : index
      %24 = vector.load %arg6[%c1_20, %c0_21] : memref<2x128xf32, #tpu.memory_space<vmem>>, vector<1x128xf32>
      %cst_22 = arith.constant 1.280000e+02 : f32
      %25 = vector.broadcast %cst_22 : f32 to vector<1x128xf32>
      %26 = arith.divf %24, %25 : vector<1x128xf32>
      %27 = arith.mulf %23, %23 : vector<1x128xf32>
      %28 = arith.subf %26, %27 : vector<1x128xf32>
      %cst_23 = arith.constant 9.99999974E-6 : f32
      %29 = vector.broadcast %cst_23 : f32 to vector<1x128xf32>
      %30 = arith.addf %28, %29 : vector<1x128xf32>
      %31 = math.rsqrt %30 : vector<1x128xf32>
      %c0_24 = arith.constant 0 : index
      %c0_25 = arith.constant 0 : index
      %32 = vector.load %arg3[%c0_24, %c0_25] : memref<1x128xf32, #tpu.memory_space<vmem>>, vector<1x128xf32>
      %33 = arith.mulf %32, %31 : vector<1x128xf32>
      %c0_26 = arith.constant 0 : index
      %c0_27 = arith.constant 0 : index
      %34 = vector.load %arg4[%c0_26, %c0_27] : memref<1x128xf32, #tpu.memory_space<vmem>>, vector<1x128xf32>
      %35 = arith.mulf %23, %33 : vector<1x128xf32>
      %36 = arith.subf %34, %35 : vector<1x128xf32>
      %c0_28 = arith.constant 0 : index
      %c0_29 = arith.constant 0 : index
      %37 = vector.load %arg6[%c0_28, %c0_29] : memref<2x128xf32, #tpu.memory_space<vmem>>, vector<1x128xf32>
      tpu.vector_store %arg6[%c0_28, %c0_29], %33 {strides = array<i32>} : memref<2x128xf32, #tpu.memory_space<vmem>>, vector<1x128xf32>,
      %c1_30 = arith.constant 1 : index
      %c0_31 = arith.constant 0 : index
      %38 = vector.load %arg6[%c1_30, %c0_31] : memref<2x128xf32, #tpu.memory_space<vmem>>, vector<1x128xf32>
      tpu.vector_store %arg6[%c1_30, %c0_31], %36 {strides = array<i32>} : memref<2x128xf32, #tpu.memory_space<vmem>>, vector<1x128xf32>,
    } else {
    }
    return
  }
  func.func @transform_0(%arg0: i32) -> (i32, i32) {
    %c0_i32 = arith.constant 0 : i32
    %c0_i32_0 = arith.constant 0 : i32
    return %arg0, %c0_i32 : i32, i32
  }
  func.func @transform_1(%arg0: i32) -> (i32, i32) {
    %c0_i32 = arith.constant 0 : i32
    %c0_i32_0 = arith.constant 0 : i32
    %c0_i32_1 = arith.constant 0 : i32
    return %c0_i32, %c0_i32_0 : i32, i32
  }
  func.func @transform_2(%arg0: i32) -> (i32, i32) {
    %c0_i32 = arith.constant 0 : i32
    %c0_i32_0 = arith.constant 0 : i32
    %c0_i32_1 = arith.constant 0 : i32
    return %c0_i32, %c0_i32_0 : i32, i32
  }
  func.func @transform_3(%arg0: i32) -> (i32, i32) {
    %c0_i32 = arith.constant 0 : i32
    %c0_i32_0 = arith.constant 0 : i32
    %c0_i32_1 = arith.constant 0 : i32
    return %c0_i32, %c0_i32_0 : i32, i32
  }
  func.func @transform_4(%arg0: i32) -> (i32, i32) {
    %c0_i32 = arith.constant 0 : i32
    %c0_i32_0 = arith.constant 0 : i32
    return %arg0, %c0_i32 : i32, i32
  }
  func.func @transform_5(%arg0: i32) -> (i32, i32) {
    %c0_i32 = arith.constant 0 : i32
    %c0_i32_0 = arith.constant 0 : i32
    %c0_i32_1 = arith.constant 0 : i32
    return %c0_i32, %c0_i32_0 : i32, i32
  }
}

module attributes {stable_mosaic.version = 11 : i64} {
  func.func @_bn_act_kernel(%arg0: i32, %arg1: memref<128x128xf32, #tpu.memory_space<vmem>>, %arg2: memref<2x128xf32, #tpu.memory_space<vmem>>, %arg3: memref<128x128xf32, #tpu.memory_space<vmem>>) attributes {dimension_semantics = [#tpu.dimension_semantics<parallel>], iteration_bounds = array<i64: 1>, scalar_prefetch = 0 : i64, scratch_operands = 0 : i64, tpu.core_type = #tpu.core_type<tc>, window_params = [{transform_indices = @transform_0, window_bounds = array<i64: 128, 128>}, {pipeline_mode = #tpu.pipeline_mode<synchronous>, transform_indices = @transform_1, window_bounds = array<i64: 2, 128>}, {transform_indices = @transform_2, window_bounds = array<i64: 128, 128>}]} {
    %c0 = arith.constant 0 : index
    %c0_0 = arith.constant 0 : index
    %0 = vector.load %arg1[%c0, %c0_0] : memref<128x128xf32, #tpu.memory_space<vmem>>, vector<128x128xf32>
    %c0_1 = arith.constant 0 : index
    %c0_2 = arith.constant 0 : index
    %1 = vector.load %arg2[%c0_1, %c0_2] : memref<2x128xf32, #tpu.memory_space<vmem>>, vector<1x128xf32>
    %2 = vector.broadcast %1 : vector<1x128xf32> to vector<128x128xf32>
    %3 = arith.mulf %0, %2 : vector<128x128xf32>
    %c1 = arith.constant 1 : index
    %c0_3 = arith.constant 0 : index
    %4 = vector.load %arg2[%c1, %c0_3] : memref<2x128xf32, #tpu.memory_space<vmem>>, vector<1x128xf32>
    %5 = vector.broadcast %4 : vector<1x128xf32> to vector<128x128xf32>
    %6 = arith.addf %3, %5 : vector<128x128xf32>
    %cst = arith.constant 0.000000e+00 : f32
    %7 = vector.broadcast %cst : f32 to vector<128x128xf32>
    %8 = arith.maximumf %6, %7 : vector<128x128xf32>
    %c0_4 = arith.constant 0 : index
    %c0_5 = arith.constant 0 : index
    %9 = vector.load %arg3[%c0_4, %c0_5] : memref<128x128xf32, #tpu.memory_space<vmem>>, vector<128x128xf32>
    tpu.vector_store %arg3[%c0_4, %c0_5], %8 {strides = array<i32>} : memref<128x128xf32, #tpu.memory_space<vmem>>, vector<128x128xf32>,
    return
  }
  func.func @transform_0(%arg0: i32) -> (i32, i32) {
    %c0_i32 = arith.constant 0 : i32
    %c0_i32_0 = arith.constant 0 : i32
    return %arg0, %c0_i32 : i32, i32
  }
  func.func @transform_1(%arg0: i32) -> (i32, i32) {
    %c0_i32 = arith.constant 0 : i32
    %c0_i32_0 = arith.constant 0 : i32
    %c0_i32_1 = arith.constant 0 : i32
    return %c0_i32, %c0_i32_0 : i32, i32
  }
  func.func @transform_2(%arg0: i32) -> (i32, i32) {
    %c0_i32 = arith.constant 0 : i32
    %c0_i32_0 = arith.constant 0 : i32
    return %arg0, %c0_i32 : i32, i32
  }
}

module attributes {stable_mosaic.version = 11 : i64} {
  func.func @_matmul_stats_kernel(%arg0: i32, %arg1: memref<128x288xbf16, #tpu.memory_space<vmem>>, %arg2: memref<288x128xbf16, #tpu.memory_space<vmem>>, %arg3: memref<1x128xf32, #tpu.memory_space<vmem>>, %arg4: memref<1x128xf32, #tpu.memory_space<vmem>>, %arg5: memref<128x128xf32, #tpu.memory_space<vmem>>, %arg6: memref<2x128xf32, #tpu.memory_space<vmem>>) attributes {dimension_semantics = [#tpu.dimension_semantics<arbitrary>], iteration_bounds = array<i64: 1>, scalar_prefetch = 0 : i64, scratch_operands = 0 : i64, tpu.core_type = #tpu.core_type<tc>, window_params = [{transform_indices = @transform_0, window_bounds = array<i64: 128, 288>}, {pipeline_mode = #tpu.pipeline_mode<synchronous>, transform_indices = @transform_1, window_bounds = array<i64: 288, 128>}, {pipeline_mode = #tpu.pipeline_mode<synchronous>, transform_indices = @transform_2, window_bounds = array<i64: 1, 128>}, {pipeline_mode = #tpu.pipeline_mode<synchronous>, transform_indices = @transform_3, window_bounds = array<i64: 1, 128>}, {transform_indices = @transform_4, window_bounds = array<i64: 128, 128>}, {pipeline_mode = #tpu.pipeline_mode<synchronous>, transform_indices = @transform_5, window_bounds = array<i64: 2, 128>}]} {
    %c0_i32 = arith.constant 0 : i32
    %0 = arith.cmpi eq, %arg0, %c0_i32 : i32
    %1 = arith.extui %0 : i1 to i32
    %c0_i32_0 = arith.constant 0 : i32
    %2 = arith.cmpi ne, %1, %c0_i32_0 : i32
    scf.if %2 {
      %cst_17 = arith.constant 0.000000e+00 : f32
      %21 = vector.broadcast %cst_17 : f32 to vector<2x128xf32>
      %c0_18 = arith.constant 0 : index
      %c0_19 = arith.constant 0 : index
      %22 = vector.load %arg6[%c0_18, %c0_19] : memref<2x128xf32, #tpu.memory_space<vmem>>, vector<2x128xf32>
      tpu.vector_store %arg6[%c0_18, %c0_19], %21 {strides = array<i32>} : memref<2x128xf32, #tpu.memory_space<vmem>>, vector<2x128xf32>,
    } else {
    }
    %c0 = arith.constant 0 : index
    %c0_1 = arith.constant 0 : index
    %3 = vector.load %arg1[%c0, %c0_1] : memref<128x288xbf16, #tpu.memory_space<vmem>>, vector<128x288xbf16>
    %c0_2 = arith.constant 0 : index
    %c0_3 = arith.constant 0 : index
    %4 = vector.load %arg2[%c0_2, %c0_3] : memref<288x128xbf16, #tpu.memory_space<vmem>>, vector<288x128xbf16>
    %cst = arith.constant dense<0.000000e+00> : vector<128x128xf32>
    %5 = tpu.matmul %3, %4, %cst {dimension_numbers = #tpu.dot_dimension_numbers<[1], [0], [0], [1], [0, 0, 1, 1], [], []>} : vector<128x288xbf16>, vector<288x128xbf16>, vector<128x128xf32> -> vector<128x128xf32>
    %c0_4 = arith.constant 0 : index
    %c0_5 = arith.constant 0 : index
    %6 = vector.load %arg5[%c0_4, %c0_5] : memref<128x128xf32, #tpu.memory_space<vmem>>, vector<128x128xf32>
    tpu.vector_store %arg5[%c0_4, %c0_5], %5 {strides = array<i32>} : memref<128x128xf32, #tpu.memory_space<vmem>>, vector<128x128xf32>,
    %c0_6 = arith.constant 0 : index
    %c0_7 = arith.constant 0 : index
    %7 = vector.load %arg6[%c0_6, %c0_7] : memref<2x128xf32, #tpu.memory_space<vmem>>, vector<1x128xf32>
    %cst_8 = arith.constant dense<0.000000e+00> : vector<128xf32>
    %8 = vector.multi_reduction <add>, %5, %cst_8 [0] : vector<128x128xf32> to vector<128xf32>
    %9 = vector.shape_cast %8 : vector<128xf32> to vector<1x128xf32>
    %10 = arith.addf %7, %9 : vector<1x128xf32>
    %c0_9 = arith.constant 0 : index
    %c0_10 = arith.constant 0 : index
    %11 = vector.load %arg6[%c0_9, %c0_10] : memref<2x128xf32, #tpu.memory_space<vmem>>, vector<1x128xf32>
    tpu.vector_store %arg6[%c0_9, %c0_10], %10 {strides = array<i32>} : memref<2x128xf32, #tpu.memory_space<vmem>>, vector<1x128xf32>,
    %c1 = arith.constant 1 : index
    %c0_11 = arith.constant 0 : index
    %12 = vector.load %arg6[%c1, %c0_11] : memref<2x128xf32, #tpu.memory_space<vmem>>, vector<1x128xf32>
    %13 = arith.mulf %5, %5 : vector<128x128xf32>
    %cst_12 = arith.constant dense<0.000000e+00> : vector<128xf32>
    %14 = vector.multi_reduction <add>, %13, %cst_12 [0] : vector<128x128xf32> to vector<128xf32>
    %15 = vector.shape_cast %14 : vector<128xf32> to vector<1x128xf32>
    %16 = arith.addf %12, %15 : vector<1x128xf32>
    %c1_13 = arith.constant 1 : index
    %c0_14 = arith.constant 0 : index
    %17 = vector.load %arg6[%c1_13, %c0_14] : memref<2x128xf32, #tpu.memory_space<vmem>>, vector<1x128xf32>
    tpu.vector_store %arg6[%c1_13, %c0_14], %16 {strides = array<i32>} : memref<2x128xf32, #tpu.memory_space<vmem>>, vector<1x128xf32>,
    %c0_i32_15 = arith.constant 0 : i32
    %18 = arith.cmpi eq, %arg0, %c0_i32_15 : i32
    %19 = arith.extui %18 : i1 to i32
    %c0_i32_16 = arith.constant 0 : i32
    %20 = arith.cmpi ne, %19, %c0_i32_16 : i32
    scf.if %20 {
      %c0_17 = arith.constant 0 : index
      %c0_18 = arith.constant 0 : index
      %21 = vector.load %arg6[%c0_17, %c0_18] : memref<2x128xf32, #tpu.memory_space<vmem>>, vector<1x128xf32>
      %cst_19 = arith.constant 1.280000e+02 : f32
      %22 = vector.broadcast %cst_19 : f32 to vector<1x128xf32>
      %23 = arith.divf %21, %22 : vector<1x128xf32>
      %c1_20 = arith.constant 1 : index
      %c0_21 = arith.constant 0 : index
      %24 = vector.load %arg6[%c1_20, %c0_21] : memref<2x128xf32, #tpu.memory_space<vmem>>, vector<1x128xf32>
      %cst_22 = arith.constant 1.280000e+02 : f32
      %25 = vector.broadcast %cst_22 : f32 to vector<1x128xf32>
      %26 = arith.divf %24, %25 : vector<1x128xf32>
      %27 = arith.mulf %23, %23 : vector<1x128xf32>
      %28 = arith.subf %26, %27 : vector<1x128xf32>
      %cst_23 = arith.constant 9.99999974E-6 : f32
      %29 = vector.broadcast %cst_23 : f32 to vector<1x128xf32>
      %30 = arith.addf %28, %29 : vector<1x128xf32>
      %31 = math.rsqrt %30 : vector<1x128xf32>
      %c0_24 = arith.constant 0 : index
      %c0_25 = arith.constant 0 : index
      %32 = vector.load %arg3[%c0_24, %c0_25] : memref<1x128xf32, #tpu.memory_space<vmem>>, vector<1x128xf32>
      %33 = arith.mulf %32, %31 : vector<1x128xf32>
      %c0_26 = arith.constant 0 : index
      %c0_27 = arith.constant 0 : index
      %34 = vector.load %arg4[%c0_26, %c0_27] : memref<1x128xf32, #tpu.memory_space<vmem>>, vector<1x128xf32>
      %35 = arith.mulf %23, %33 : vector<1x128xf32>
      %36 = arith.subf %34, %35 : vector<1x128xf32>
      %c0_28 = arith.constant 0 : index
      %c0_29 = arith.constant 0 : index
      %37 = vector.load %arg6[%c0_28, %c0_29] : memref<2x128xf32, #tpu.memory_space<vmem>>, vector<1x128xf32>
      tpu.vector_store %arg6[%c0_28, %c0_29], %33 {strides = array<i32>} : memref<2x128xf32, #tpu.memory_space<vmem>>, vector<1x128xf32>,
      %c1_30 = arith.constant 1 : index
      %c0_31 = arith.constant 0 : index
      %38 = vector.load %arg6[%c1_30, %c0_31] : memref<2x128xf32, #tpu.memory_space<vmem>>, vector<1x128xf32>
      tpu.vector_store %arg6[%c1_30, %c0_31], %36 {strides = array<i32>} : memref<2x128xf32, #tpu.memory_space<vmem>>, vector<1x128xf32>,
    } else {
    }
    return
  }
  func.func @transform_0(%arg0: i32) -> (i32, i32) {
    %c0_i32 = arith.constant 0 : i32
    %c0_i32_0 = arith.constant 0 : i32
    return %arg0, %c0_i32 : i32, i32
  }
  func.func @transform_1(%arg0: i32) -> (i32, i32) {
    %c0_i32 = arith.constant 0 : i32
    %c0_i32_0 = arith.constant 0 : i32
    %c0_i32_1 = arith.constant 0 : i32
    return %c0_i32, %c0_i32_0 : i32, i32
  }
  func.func @transform_2(%arg0: i32) -> (i32, i32) {
    %c0_i32 = arith.constant 0 : i32
    %c0_i32_0 = arith.constant 0 : i32
    %c0_i32_1 = arith.constant 0 : i32
    return %c0_i32, %c0_i32_0 : i32, i32
  }
  func.func @transform_3(%arg0: i32) -> (i32, i32) {
    %c0_i32 = arith.constant 0 : i32
    %c0_i32_0 = arith.constant 0 : i32
    %c0_i32_1 = arith.constant 0 : i32
    return %c0_i32, %c0_i32_0 : i32, i32
  }
  func.func @transform_4(%arg0: i32) -> (i32, i32) {
    %c0_i32 = arith.constant 0 : i32
    %c0_i32_0 = arith.constant 0 : i32
    return %arg0, %c0_i32 : i32, i32
  }
  func.func @transform_5(%arg0: i32) -> (i32, i32) {
    %c0_i32 = arith.constant 0 : i32
    %c0_i32_0 = arith.constant 0 : i32
    %c0_i32_1 = arith.constant 0 : i32
    return %c0_i32, %c0_i32_0 : i32, i32
  }
}

module attributes {stable_mosaic.version = 11 : i64} {
  func.func @_bn_add_act_kernel(%arg0: i32, %arg1: memref<128x128xf32, #tpu.memory_space<vmem>>, %arg2: memref<2x128xf32, #tpu.memory_space<vmem>>, %arg3: memref<128x128xf32, #tpu.memory_space<vmem>>, %arg4: memref<128x128xf32, #tpu.memory_space<vmem>>) attributes {dimension_semantics = [#tpu.dimension_semantics<parallel>], iteration_bounds = array<i64: 1>, scalar_prefetch = 0 : i64, scratch_operands = 0 : i64, tpu.core_type = #tpu.core_type<tc>, window_params = [{transform_indices = @transform_0, window_bounds = array<i64: 128, 128>}, {pipeline_mode = #tpu.pipeline_mode<synchronous>, transform_indices = @transform_1, window_bounds = array<i64: 2, 128>}, {transform_indices = @transform_2, window_bounds = array<i64: 128, 128>}, {transform_indices = @transform_3, window_bounds = array<i64: 128, 128>}]} {
    %c0 = arith.constant 0 : index
    %c0_0 = arith.constant 0 : index
    %0 = vector.load %arg1[%c0, %c0_0] : memref<128x128xf32, #tpu.memory_space<vmem>>, vector<128x128xf32>
    %c0_1 = arith.constant 0 : index
    %c0_2 = arith.constant 0 : index
    %1 = vector.load %arg2[%c0_1, %c0_2] : memref<2x128xf32, #tpu.memory_space<vmem>>, vector<1x128xf32>
    %2 = vector.broadcast %1 : vector<1x128xf32> to vector<128x128xf32>
    %3 = arith.mulf %0, %2 : vector<128x128xf32>
    %c1 = arith.constant 1 : index
    %c0_3 = arith.constant 0 : index
    %4 = vector.load %arg2[%c1, %c0_3] : memref<2x128xf32, #tpu.memory_space<vmem>>, vector<1x128xf32>
    %5 = vector.broadcast %4 : vector<1x128xf32> to vector<128x128xf32>
    %6 = arith.addf %3, %5 : vector<128x128xf32>
    %c0_4 = arith.constant 0 : index
    %c0_5 = arith.constant 0 : index
    %7 = vector.load %arg3[%c0_4, %c0_5] : memref<128x128xf32, #tpu.memory_space<vmem>>, vector<128x128xf32>
    %8 = arith.addf %6, %7 : vector<128x128xf32>
    %cst = arith.constant 0.000000e+00 : f32
    %9 = vector.broadcast %cst : f32 to vector<128x128xf32>
    %10 = arith.maximumf %8, %9 : vector<128x128xf32>
    %c0_6 = arith.constant 0 : index
    %c0_7 = arith.constant 0 : index
    %11 = vector.load %arg4[%c0_6, %c0_7] : memref<128x128xf32, #tpu.memory_space<vmem>>, vector<128x128xf32>
    tpu.vector_store %arg4[%c0_6, %c0_7], %10 {strides = array<i32>} : memref<128x128xf32, #tpu.memory_space<vmem>>, vector<128x128xf32>,
    return
  }
  func.func @transform_0(%arg0: i32) -> (i32, i32) {
    %c0_i32 = arith.constant 0 : i32
    %c0_i32_0 = arith.constant 0 : i32
    return %arg0, %c0_i32 : i32, i32
  }
  func.func @transform_1(%arg0: i32) -> (i32, i32) {
    %c0_i32 = arith.constant 0 : i32
    %c0_i32_0 = arith.constant 0 : i32
    %c0_i32_1 = arith.constant 0 : i32
    return %c0_i32, %c0_i32_0 : i32, i32
  }
  func.func @transform_2(%arg0: i32) -> (i32, i32) {
    %c0_i32 = arith.constant 0 : i32
    %c0_i32_0 = arith.constant 0 : i32
    return %arg0, %c0_i32 : i32, i32
  }
  func.func @transform_3(%arg0: i32) -> (i32, i32) {
    %c0_i32 = arith.constant 0 : i32
    %c0_i32_0 = arith.constant 0 : i32
    return %arg0, %c0_i32 : i32, i32
  }
}

module attributes {stable_mosaic.version = 11 : i64} {
  func.func @_bn_act_kernel(%arg0: i32, %arg1: memref<32x128xf32, #tpu.memory_space<vmem>>, %arg2: memref<2x128xf32, #tpu.memory_space<vmem>>, %arg3: memref<32x128xf32, #tpu.memory_space<vmem>>) attributes {dimension_semantics = [#tpu.dimension_semantics<parallel>], iteration_bounds = array<i64: 1>, scalar_prefetch = 0 : i64, scratch_operands = 0 : i64, tpu.core_type = #tpu.core_type<tc>, window_params = [{transform_indices = @transform_0, window_bounds = array<i64: 32, 128>}, {pipeline_mode = #tpu.pipeline_mode<synchronous>, transform_indices = @transform_1, window_bounds = array<i64: 2, 128>}, {transform_indices = @transform_2, window_bounds = array<i64: 32, 128>}]} {
    %c0 = arith.constant 0 : index
    %c0_0 = arith.constant 0 : index
    %0 = vector.load %arg1[%c0, %c0_0] : memref<32x128xf32, #tpu.memory_space<vmem>>, vector<32x128xf32>
    %c0_1 = arith.constant 0 : index
    %c0_2 = arith.constant 0 : index
    %1 = vector.load %arg2[%c0_1, %c0_2] : memref<2x128xf32, #tpu.memory_space<vmem>>, vector<1x128xf32>
    %2 = vector.broadcast %1 : vector<1x128xf32> to vector<32x128xf32>
    %3 = arith.mulf %0, %2 : vector<32x128xf32>
    %c1 = arith.constant 1 : index
    %c0_3 = arith.constant 0 : index
    %4 = vector.load %arg2[%c1, %c0_3] : memref<2x128xf32, #tpu.memory_space<vmem>>, vector<1x128xf32>
    %5 = vector.broadcast %4 : vector<1x128xf32> to vector<32x128xf32>
    %6 = arith.addf %3, %5 : vector<32x128xf32>
    %cst = arith.constant 0.000000e+00 : f32
    %7 = vector.broadcast %cst : f32 to vector<32x128xf32>
    %8 = arith.maximumf %6, %7 : vector<32x128xf32>
    %c0_4 = arith.constant 0 : index
    %c0_5 = arith.constant 0 : index
    %9 = vector.load %arg3[%c0_4, %c0_5] : memref<32x128xf32, #tpu.memory_space<vmem>>, vector<32x128xf32>
    tpu.vector_store %arg3[%c0_4, %c0_5], %8 {strides = array<i32>} : memref<32x128xf32, #tpu.memory_space<vmem>>, vector<32x128xf32>,
    return
  }
  func.func @transform_0(%arg0: i32) -> (i32, i32) {
    %c0_i32 = arith.constant 0 : i32
    %c0_i32_0 = arith.constant 0 : i32
    return %arg0, %c0_i32 : i32, i32
  }
  func.func @transform_1(%arg0: i32) -> (i32, i32) {
    %c0_i32 = arith.constant 0 : i32
    %c0_i32_0 = arith.constant 0 : i32
    %c0_i32_1 = arith.constant 0 : i32
    return %c0_i32, %c0_i32_0 : i32, i32
  }
  func.func @transform_2(%arg0: i32) -> (i32, i32) {
    %c0_i32 = arith.constant 0 : i32
    %c0_i32_0 = arith.constant 0 : i32
    return %arg0, %c0_i32 : i32, i32
  }
}

module attributes {stable_mosaic.version = 11 : i64} {
  func.func @_matmul_stats_kernel(%arg0: i32, %arg1: memref<32x288xbf16, #tpu.memory_space<vmem>>, %arg2: memref<288x128xbf16, #tpu.memory_space<vmem>>, %arg3: memref<1x128xf32, #tpu.memory_space<vmem>>, %arg4: memref<1x128xf32, #tpu.memory_space<vmem>>, %arg5: memref<32x128xf32, #tpu.memory_space<vmem>>, %arg6: memref<2x128xf32, #tpu.memory_space<vmem>>) attributes {dimension_semantics = [#tpu.dimension_semantics<arbitrary>], iteration_bounds = array<i64: 1>, scalar_prefetch = 0 : i64, scratch_operands = 0 : i64, tpu.core_type = #tpu.core_type<tc>, window_params = [{transform_indices = @transform_0, window_bounds = array<i64: 32, 288>}, {pipeline_mode = #tpu.pipeline_mode<synchronous>, transform_indices = @transform_1, window_bounds = array<i64: 288, 128>}, {pipeline_mode = #tpu.pipeline_mode<synchronous>, transform_indices = @transform_2, window_bounds = array<i64: 1, 128>}, {pipeline_mode = #tpu.pipeline_mode<synchronous>, transform_indices = @transform_3, window_bounds = array<i64: 1, 128>}, {transform_indices = @transform_4, window_bounds = array<i64: 32, 128>}, {pipeline_mode = #tpu.pipeline_mode<synchronous>, transform_indices = @transform_5, window_bounds = array<i64: 2, 128>}]} {
    %c0_i32 = arith.constant 0 : i32
    %0 = arith.cmpi eq, %arg0, %c0_i32 : i32
    %1 = arith.extui %0 : i1 to i32
    %c0_i32_0 = arith.constant 0 : i32
    %2 = arith.cmpi ne, %1, %c0_i32_0 : i32
    scf.if %2 {
      %cst_17 = arith.constant 0.000000e+00 : f32
      %21 = vector.broadcast %cst_17 : f32 to vector<2x128xf32>
      %c0_18 = arith.constant 0 : index
      %c0_19 = arith.constant 0 : index
      %22 = vector.load %arg6[%c0_18, %c0_19] : memref<2x128xf32, #tpu.memory_space<vmem>>, vector<2x128xf32>
      tpu.vector_store %arg6[%c0_18, %c0_19], %21 {strides = array<i32>} : memref<2x128xf32, #tpu.memory_space<vmem>>, vector<2x128xf32>,
    } else {
    }
    %c0 = arith.constant 0 : index
    %c0_1 = arith.constant 0 : index
    %3 = vector.load %arg1[%c0, %c0_1] : memref<32x288xbf16, #tpu.memory_space<vmem>>, vector<32x288xbf16>
    %c0_2 = arith.constant 0 : index
    %c0_3 = arith.constant 0 : index
    %4 = vector.load %arg2[%c0_2, %c0_3] : memref<288x128xbf16, #tpu.memory_space<vmem>>, vector<288x128xbf16>
    %cst = arith.constant dense<0.000000e+00> : vector<32x128xf32>
    %5 = tpu.matmul %3, %4, %cst {dimension_numbers = #tpu.dot_dimension_numbers<[1], [0], [0], [1], [0, 0, 1, 1], [], []>} : vector<32x288xbf16>, vector<288x128xbf16>, vector<32x128xf32> -> vector<32x128xf32>
    %c0_4 = arith.constant 0 : index
    %c0_5 = arith.constant 0 : index
    %6 = vector.load %arg5[%c0_4, %c0_5] : memref<32x128xf32, #tpu.memory_space<vmem>>, vector<32x128xf32>
    tpu.vector_store %arg5[%c0_4, %c0_5], %5 {strides = array<i32>} : memref<32x128xf32, #tpu.memory_space<vmem>>, vector<32x128xf32>,
    %c0_6 = arith.constant 0 : index
    %c0_7 = arith.constant 0 : index
    %7 = vector.load %arg6[%c0_6, %c0_7] : memref<2x128xf32, #tpu.memory_space<vmem>>, vector<1x128xf32>
    %cst_8 = arith.constant dense<0.000000e+00> : vector<128xf32>
    %8 = vector.multi_reduction <add>, %5, %cst_8 [0] : vector<32x128xf32> to vector<128xf32>
    %9 = vector.shape_cast %8 : vector<128xf32> to vector<1x128xf32>
    %10 = arith.addf %7, %9 : vector<1x128xf32>
    %c0_9 = arith.constant 0 : index
    %c0_10 = arith.constant 0 : index
    %11 = vector.load %arg6[%c0_9, %c0_10] : memref<2x128xf32, #tpu.memory_space<vmem>>, vector<1x128xf32>
    tpu.vector_store %arg6[%c0_9, %c0_10], %10 {strides = array<i32>} : memref<2x128xf32, #tpu.memory_space<vmem>>, vector<1x128xf32>,
    %c1 = arith.constant 1 : index
    %c0_11 = arith.constant 0 : index
    %12 = vector.load %arg6[%c1, %c0_11] : memref<2x128xf32, #tpu.memory_space<vmem>>, vector<1x128xf32>
    %13 = arith.mulf %5, %5 : vector<32x128xf32>
    %cst_12 = arith.constant dense<0.000000e+00> : vector<128xf32>
    %14 = vector.multi_reduction <add>, %13, %cst_12 [0] : vector<32x128xf32> to vector<128xf32>
    %15 = vector.shape_cast %14 : vector<128xf32> to vector<1x128xf32>
    %16 = arith.addf %12, %15 : vector<1x128xf32>
    %c1_13 = arith.constant 1 : index
    %c0_14 = arith.constant 0 : index
    %17 = vector.load %arg6[%c1_13, %c0_14] : memref<2x128xf32, #tpu.memory_space<vmem>>, vector<1x128xf32>
    tpu.vector_store %arg6[%c1_13, %c0_14], %16 {strides = array<i32>} : memref<2x128xf32, #tpu.memory_space<vmem>>, vector<1x128xf32>,
    %c0_i32_15 = arith.constant 0 : i32
    %18 = arith.cmpi eq, %arg0, %c0_i32_15 : i32
    %19 = arith.extui %18 : i1 to i32
    %c0_i32_16 = arith.constant 0 : i32
    %20 = arith.cmpi ne, %19, %c0_i32_16 : i32
    scf.if %20 {
      %c0_17 = arith.constant 0 : index
      %c0_18 = arith.constant 0 : index
      %21 = vector.load %arg6[%c0_17, %c0_18] : memref<2x128xf32, #tpu.memory_space<vmem>>, vector<1x128xf32>
      %cst_19 = arith.constant 3.200000e+01 : f32
      %22 = vector.broadcast %cst_19 : f32 to vector<1x128xf32>
      %23 = arith.divf %21, %22 : vector<1x128xf32>
      %c1_20 = arith.constant 1 : index
      %c0_21 = arith.constant 0 : index
      %24 = vector.load %arg6[%c1_20, %c0_21] : memref<2x128xf32, #tpu.memory_space<vmem>>, vector<1x128xf32>
      %cst_22 = arith.constant 3.200000e+01 : f32
      %25 = vector.broadcast %cst_22 : f32 to vector<1x128xf32>
      %26 = arith.divf %24, %25 : vector<1x128xf32>
      %27 = arith.mulf %23, %23 : vector<1x128xf32>
      %28 = arith.subf %26, %27 : vector<1x128xf32>
      %cst_23 = arith.constant 9.99999974E-6 : f32
      %29 = vector.broadcast %cst_23 : f32 to vector<1x128xf32>
      %30 = arith.addf %28, %29 : vector<1x128xf32>
      %31 = math.rsqrt %30 : vector<1x128xf32>
      %c0_24 = arith.constant 0 : index
      %c0_25 = arith.constant 0 : index
      %32 = vector.load %arg3[%c0_24, %c0_25] : memref<1x128xf32, #tpu.memory_space<vmem>>, vector<1x128xf32>
      %33 = arith.mulf %32, %31 : vector<1x128xf32>
      %c0_26 = arith.constant 0 : index
      %c0_27 = arith.constant 0 : index
      %34 = vector.load %arg4[%c0_26, %c0_27] : memref<1x128xf32, #tpu.memory_space<vmem>>, vector<1x128xf32>
      %35 = arith.mulf %23, %33 : vector<1x128xf32>
      %36 = arith.subf %34, %35 : vector<1x128xf32>
      %c0_28 = arith.constant 0 : index
      %c0_29 = arith.constant 0 : index
      %37 = vector.load %arg6[%c0_28, %c0_29] : memref<2x128xf32, #tpu.memory_space<vmem>>, vector<1x128xf32>
      tpu.vector_store %arg6[%c0_28, %c0_29], %33 {strides = array<i32>} : memref<2x128xf32, #tpu.memory_space<vmem>>, vector<1x128xf32>,
      %c1_30 = arith.constant 1 : index
      %c0_31 = arith.constant 0 : index
      %38 = vector.load %arg6[%c1_30, %c0_31] : memref<2x128xf32, #tpu.memory_space<vmem>>, vector<1x128xf32>
      tpu.vector_store %arg6[%c1_30, %c0_31], %36 {strides = array<i32>} : memref<2x128xf32, #tpu.memory_space<vmem>>, vector<1x128xf32>,
    } else {
    }
    return
  }
  func.func @transform_0(%arg0: i32) -> (i32, i32) {
    %c0_i32 = arith.constant 0 : i32
    %c0_i32_0 = arith.constant 0 : i32
    return %arg0, %c0_i32 : i32, i32
  }
  func.func @transform_1(%arg0: i32) -> (i32, i32) {
    %c0_i32 = arith.constant 0 : i32
    %c0_i32_0 = arith.constant 0 : i32
    %c0_i32_1 = arith.constant 0 : i32
    return %c0_i32, %c0_i32_0 : i32, i32
  }
  func.func @transform_2(%arg0: i32) -> (i32, i32) {
    %c0_i32 = arith.constant 0 : i32
    %c0_i32_0 = arith.constant 0 : i32
    %c0_i32_1 = arith.constant 0 : i32
    return %c0_i32, %c0_i32_0 : i32, i32
  }
  func.func @transform_3(%arg0: i32) -> (i32, i32) {
    %c0_i32 = arith.constant 0 : i32
    %c0_i32_0 = arith.constant 0 : i32
    %c0_i32_1 = arith.constant 0 : i32
    return %c0_i32, %c0_i32_0 : i32, i32
  }
  func.func @transform_4(%arg0: i32) -> (i32, i32) {
    %c0_i32 = arith.constant 0 : i32
    %c0_i32_0 = arith.constant 0 : i32
    return %arg0, %c0_i32 : i32, i32
  }
  func.func @transform_5(%arg0: i32) -> (i32, i32) {
    %c0_i32 = arith.constant 0 : i32
    %c0_i32_0 = arith.constant 0 : i32
    %c0_i32_1 = arith.constant 0 : i32
    return %c0_i32, %c0_i32_0 : i32, i32
  }
}

module attributes {stable_mosaic.version = 11 : i64} {
  func.func @_matmul_stats_kernel(%arg0: i32, %arg1: memref<32x576xbf16, #tpu.memory_space<vmem>>, %arg2: memref<576x128xbf16, #tpu.memory_space<vmem>>, %arg3: memref<1x128xf32, #tpu.memory_space<vmem>>, %arg4: memref<1x128xf32, #tpu.memory_space<vmem>>, %arg5: memref<32x128xf32, #tpu.memory_space<vmem>>, %arg6: memref<2x128xf32, #tpu.memory_space<vmem>>) attributes {dimension_semantics = [#tpu.dimension_semantics<arbitrary>], iteration_bounds = array<i64: 1>, scalar_prefetch = 0 : i64, scratch_operands = 0 : i64, tpu.core_type = #tpu.core_type<tc>, window_params = [{transform_indices = @transform_0, window_bounds = array<i64: 32, 576>}, {pipeline_mode = #tpu.pipeline_mode<synchronous>, transform_indices = @transform_1, window_bounds = array<i64: 576, 128>}, {pipeline_mode = #tpu.pipeline_mode<synchronous>, transform_indices = @transform_2, window_bounds = array<i64: 1, 128>}, {pipeline_mode = #tpu.pipeline_mode<synchronous>, transform_indices = @transform_3, window_bounds = array<i64: 1, 128>}, {transform_indices = @transform_4, window_bounds = array<i64: 32, 128>}, {pipeline_mode = #tpu.pipeline_mode<synchronous>, transform_indices = @transform_5, window_bounds = array<i64: 2, 128>}]} {
    %c0_i32 = arith.constant 0 : i32
    %0 = arith.cmpi eq, %arg0, %c0_i32 : i32
    %1 = arith.extui %0 : i1 to i32
    %c0_i32_0 = arith.constant 0 : i32
    %2 = arith.cmpi ne, %1, %c0_i32_0 : i32
    scf.if %2 {
      %cst_17 = arith.constant 0.000000e+00 : f32
      %21 = vector.broadcast %cst_17 : f32 to vector<2x128xf32>
      %c0_18 = arith.constant 0 : index
      %c0_19 = arith.constant 0 : index
      %22 = vector.load %arg6[%c0_18, %c0_19] : memref<2x128xf32, #tpu.memory_space<vmem>>, vector<2x128xf32>
      tpu.vector_store %arg6[%c0_18, %c0_19], %21 {strides = array<i32>} : memref<2x128xf32, #tpu.memory_space<vmem>>, vector<2x128xf32>,
    } else {
    }
    %c0 = arith.constant 0 : index
    %c0_1 = arith.constant 0 : index
    %3 = vector.load %arg1[%c0, %c0_1] : memref<32x576xbf16, #tpu.memory_space<vmem>>, vector<32x576xbf16>
    %c0_2 = arith.constant 0 : index
    %c0_3 = arith.constant 0 : index
    %4 = vector.load %arg2[%c0_2, %c0_3] : memref<576x128xbf16, #tpu.memory_space<vmem>>, vector<576x128xbf16>
    %cst = arith.constant dense<0.000000e+00> : vector<32x128xf32>
    %5 = tpu.matmul %3, %4, %cst {dimension_numbers = #tpu.dot_dimension_numbers<[1], [0], [0], [1], [0, 0, 1, 1], [], []>} : vector<32x576xbf16>, vector<576x128xbf16>, vector<32x128xf32> -> vector<32x128xf32>
    %c0_4 = arith.constant 0 : index
    %c0_5 = arith.constant 0 : index
    %6 = vector.load %arg5[%c0_4, %c0_5] : memref<32x128xf32, #tpu.memory_space<vmem>>, vector<32x128xf32>
    tpu.vector_store %arg5[%c0_4, %c0_5], %5 {strides = array<i32>} : memref<32x128xf32, #tpu.memory_space<vmem>>, vector<32x128xf32>,
    %c0_6 = arith.constant 0 : index
    %c0_7 = arith.constant 0 : index
    %7 = vector.load %arg6[%c0_6, %c0_7] : memref<2x128xf32, #tpu.memory_space<vmem>>, vector<1x128xf32>
    %cst_8 = arith.constant dense<0.000000e+00> : vector<128xf32>
    %8 = vector.multi_reduction <add>, %5, %cst_8 [0] : vector<32x128xf32> to vector<128xf32>
    %9 = vector.shape_cast %8 : vector<128xf32> to vector<1x128xf32>
    %10 = arith.addf %7, %9 : vector<1x128xf32>
    %c0_9 = arith.constant 0 : index
    %c0_10 = arith.constant 0 : index
    %11 = vector.load %arg6[%c0_9, %c0_10] : memref<2x128xf32, #tpu.memory_space<vmem>>, vector<1x128xf32>
    tpu.vector_store %arg6[%c0_9, %c0_10], %10 {strides = array<i32>} : memref<2x128xf32, #tpu.memory_space<vmem>>, vector<1x128xf32>,
    %c1 = arith.constant 1 : index
    %c0_11 = arith.constant 0 : index
    %12 = vector.load %arg6[%c1, %c0_11] : memref<2x128xf32, #tpu.memory_space<vmem>>, vector<1x128xf32>
    %13 = arith.mulf %5, %5 : vector<32x128xf32>
    %cst_12 = arith.constant dense<0.000000e+00> : vector<128xf32>
    %14 = vector.multi_reduction <add>, %13, %cst_12 [0] : vector<32x128xf32> to vector<128xf32>
    %15 = vector.shape_cast %14 : vector<128xf32> to vector<1x128xf32>
    %16 = arith.addf %12, %15 : vector<1x128xf32>
    %c1_13 = arith.constant 1 : index
    %c0_14 = arith.constant 0 : index
    %17 = vector.load %arg6[%c1_13, %c0_14] : memref<2x128xf32, #tpu.memory_space<vmem>>, vector<1x128xf32>
    tpu.vector_store %arg6[%c1_13, %c0_14], %16 {strides = array<i32>} : memref<2x128xf32, #tpu.memory_space<vmem>>, vector<1x128xf32>,
    %c0_i32_15 = arith.constant 0 : i32
    %18 = arith.cmpi eq, %arg0, %c0_i32_15 : i32
    %19 = arith.extui %18 : i1 to i32
    %c0_i32_16 = arith.constant 0 : i32
    %20 = arith.cmpi ne, %19, %c0_i32_16 : i32
    scf.if %20 {
      %c0_17 = arith.constant 0 : index
      %c0_18 = arith.constant 0 : index
      %21 = vector.load %arg6[%c0_17, %c0_18] : memref<2x128xf32, #tpu.memory_space<vmem>>, vector<1x128xf32>
      %cst_19 = arith.constant 3.200000e+01 : f32
      %22 = vector.broadcast %cst_19 : f32 to vector<1x128xf32>
      %23 = arith.divf %21, %22 : vector<1x128xf32>
      %c1_20 = arith.constant 1 : index
      %c0_21 = arith.constant 0 : index
      %24 = vector.load %arg6[%c1_20, %c0_21] : memref<2x128xf32, #tpu.memory_space<vmem>>, vector<1x128xf32>
      %cst_22 = arith.constant 3.200000e+01 : f32
      %25 = vector.broadcast %cst_22 : f32 to vector<1x128xf32>
      %26 = arith.divf %24, %25 : vector<1x128xf32>
      %27 = arith.mulf %23, %23 : vector<1x128xf32>
      %28 = arith.subf %26, %27 : vector<1x128xf32>
      %cst_23 = arith.constant 9.99999974E-6 : f32
      %29 = vector.broadcast %cst_23 : f32 to vector<1x128xf32>
      %30 = arith.addf %28, %29 : vector<1x128xf32>
      %31 = math.rsqrt %30 : vector<1x128xf32>
      %c0_24 = arith.constant 0 : index
      %c0_25 = arith.constant 0 : index
      %32 = vector.load %arg3[%c0_24, %c0_25] : memref<1x128xf32, #tpu.memory_space<vmem>>, vector<1x128xf32>
      %33 = arith.mulf %32, %31 : vector<1x128xf32>
      %c0_26 = arith.constant 0 : index
      %c0_27 = arith.constant 0 : index
      %34 = vector.load %arg4[%c0_26, %c0_27] : memref<1x128xf32, #tpu.memory_space<vmem>>, vector<1x128xf32>
      %35 = arith.mulf %23, %33 : vector<1x128xf32>
      %36 = arith.subf %34, %35 : vector<1x128xf32>
      %c0_28 = arith.constant 0 : index
      %c0_29 = arith.constant 0 : index
      %37 = vector.load %arg6[%c0_28, %c0_29] : memref<2x128xf32, #tpu.memory_space<vmem>>, vector<1x128xf32>
      tpu.vector_store %arg6[%c0_28, %c0_29], %33 {strides = array<i32>} : memref<2x128xf32, #tpu.memory_space<vmem>>, vector<1x128xf32>,
      %c1_30 = arith.constant 1 : index
      %c0_31 = arith.constant 0 : index
      %38 = vector.load %arg6[%c1_30, %c0_31] : memref<2x128xf32, #tpu.memory_space<vmem>>, vector<1x128xf32>
      tpu.vector_store %arg6[%c1_30, %c0_31], %36 {strides = array<i32>} : memref<2x128xf32, #tpu.memory_space<vmem>>, vector<1x128xf32>,
    } else {
    }
    return
  }
  func.func @transform_0(%arg0: i32) -> (i32, i32) {
    %c0_i32 = arith.constant 0 : i32
    %c0_i32_0 = arith.constant 0 : i32
    return %arg0, %c0_i32 : i32, i32
  }
  func.func @transform_1(%arg0: i32) -> (i32, i32) {
    %c0_i32 = arith.constant 0 : i32
    %c0_i32_0 = arith.constant 0 : i32
    %c0_i32_1 = arith.constant 0 : i32
    return %c0_i32, %c0_i32_0 : i32, i32
  }
  func.func @transform_2(%arg0: i32) -> (i32, i32) {
    %c0_i32 = arith.constant 0 : i32
    %c0_i32_0 = arith.constant 0 : i32
    %c0_i32_1 = arith.constant 0 : i32
    return %c0_i32, %c0_i32_0 : i32, i32
  }
  func.func @transform_3(%arg0: i32) -> (i32, i32) {
    %c0_i32 = arith.constant 0 : i32
    %c0_i32_0 = arith.constant 0 : i32
    %c0_i32_1 = arith.constant 0 : i32
    return %c0_i32, %c0_i32_0 : i32, i32
  }
  func.func @transform_4(%arg0: i32) -> (i32, i32) {
    %c0_i32 = arith.constant 0 : i32
    %c0_i32_0 = arith.constant 0 : i32
    return %arg0, %c0_i32 : i32, i32
  }
  func.func @transform_5(%arg0: i32) -> (i32, i32) {
    %c0_i32 = arith.constant 0 : i32
    %c0_i32_0 = arith.constant 0 : i32
    %c0_i32_1 = arith.constant 0 : i32
    return %c0_i32, %c0_i32_0 : i32, i32
  }
}

module attributes {stable_mosaic.version = 11 : i64} {
  func.func @_bn_add_act_kernel(%arg0: i32, %arg1: memref<32x128xf32, #tpu.memory_space<vmem>>, %arg2: memref<2x128xf32, #tpu.memory_space<vmem>>, %arg3: memref<32x128xf32, #tpu.memory_space<vmem>>, %arg4: memref<32x128xf32, #tpu.memory_space<vmem>>) attributes {dimension_semantics = [#tpu.dimension_semantics<parallel>], iteration_bounds = array<i64: 1>, scalar_prefetch = 0 : i64, scratch_operands = 0 : i64, tpu.core_type = #tpu.core_type<tc>, window_params = [{transform_indices = @transform_0, window_bounds = array<i64: 32, 128>}, {pipeline_mode = #tpu.pipeline_mode<synchronous>, transform_indices = @transform_1, window_bounds = array<i64: 2, 128>}, {transform_indices = @transform_2, window_bounds = array<i64: 32, 128>}, {transform_indices = @transform_3, window_bounds = array<i64: 32, 128>}]} {
    %c0 = arith.constant 0 : index
    %c0_0 = arith.constant 0 : index
    %0 = vector.load %arg1[%c0, %c0_0] : memref<32x128xf32, #tpu.memory_space<vmem>>, vector<32x128xf32>
    %c0_1 = arith.constant 0 : index
    %c0_2 = arith.constant 0 : index
    %1 = vector.load %arg2[%c0_1, %c0_2] : memref<2x128xf32, #tpu.memory_space<vmem>>, vector<1x128xf32>
    %2 = vector.broadcast %1 : vector<1x128xf32> to vector<32x128xf32>
    %3 = arith.mulf %0, %2 : vector<32x128xf32>
    %c1 = arith.constant 1 : index
    %c0_3 = arith.constant 0 : index
    %4 = vector.load %arg2[%c1, %c0_3] : memref<2x128xf32, #tpu.memory_space<vmem>>, vector<1x128xf32>
    %5 = vector.broadcast %4 : vector<1x128xf32> to vector<32x128xf32>
    %6 = arith.addf %3, %5 : vector<32x128xf32>
    %c0_4 = arith.constant 0 : index
    %c0_5 = arith.constant 0 : index
    %7 = vector.load %arg3[%c0_4, %c0_5] : memref<32x128xf32, #tpu.memory_space<vmem>>, vector<32x128xf32>
    %8 = arith.addf %6, %7 : vector<32x128xf32>
    %cst = arith.constant 0.000000e+00 : f32
    %9 = vector.broadcast %cst : f32 to vector<32x128xf32>
    %10 = arith.maximumf %8, %9 : vector<32x128xf32>
    %c0_6 = arith.constant 0 : index
    %c0_7 = arith.constant 0 : index
    %11 = vector.load %arg4[%c0_6, %c0_7] : memref<32x128xf32, #tpu.memory_space<vmem>>, vector<32x128xf32>
    tpu.vector_store %arg4[%c0_6, %c0_7], %10 {strides = array<i32>} : memref<32x128xf32, #tpu.memory_space<vmem>>, vector<32x128xf32>,
    return
  }
  func.func @transform_0(%arg0: i32) -> (i32, i32) {
    %c0_i32 = arith.constant 0 : i32
    %c0_i32_0 = arith.constant 0 : i32
    return %arg0, %c0_i32 : i32, i32
  }
  func.func @transform_1(%arg0: i32) -> (i32, i32) {
    %c0_i32 = arith.constant 0 : i32
    %c0_i32_0 = arith.constant 0 : i32
    %c0_i32_1 = arith.constant 0 : i32
    return %c0_i32, %c0_i32_0 : i32, i32
  }
  func.func @transform_2(%arg0: i32) -> (i32, i32) {
    %c0_i32 = arith.constant 0 : i32
    %c0_i32_0 = arith.constant 0 : i32
    return %arg0, %c0_i32 : i32, i32
  }
  func.func @transform_3(%arg0: i32) -> (i32, i32) {
    %c0_i32 = arith.constant 0 : i32
    %c0_i32_0 = arith.constant 0 : i32
    return %arg0, %c0_i32 : i32, i32
  }
}

module attributes {stable_mosaic.version = 11 : i64} {
  func.func @_head_kernel(%arg0: memref<2x16x64xf32, #tpu.memory_space<vmem>>, %arg1: memref<64x10xf32, #tpu.memory_space<vmem>>, %arg2: memref<1x10xf32, #tpu.memory_space<vmem>>, %arg3: memref<2x64xf32, #tpu.memory_space<vmem>>, %arg4: memref<2x10xf32, #tpu.memory_space<vmem>>) attributes {dimension_semantics = [], scalar_prefetch = 0 : i64, scratch_operands = 0 : i64, tpu.core_type = #tpu.core_type<tc>} {
    %c0 = arith.constant 0 : index
    %c0_0 = arith.constant 0 : index
    %c0_1 = arith.constant 0 : index
    %0 = vector.load %arg0[%c0, %c0_0, %c0_1] : memref<2x16x64xf32, #tpu.memory_space<vmem>>, vector<2x16x64xf32>
    %cst = arith.constant dense<0.000000e+00> : vector<2x64xf32>
    %1 = vector.multi_reduction <add>, %0, %cst [1] : vector<2x16x64xf32> to vector<2x64xf32>
    %cst_2 = arith.constant 1.600000e+01 : f32
    %2 = vector.broadcast %cst_2 : f32 to vector<2x64xf32>
    %3 = arith.divf %1, %2 : vector<2x64xf32>
    %c0_3 = arith.constant 0 : index
    %c0_4 = arith.constant 0 : index
    %4 = vector.load %arg3[%c0_3, %c0_4] : memref<2x64xf32, #tpu.memory_space<vmem>>, vector<2x64xf32>
    tpu.vector_store %arg3[%c0_3, %c0_4], %3 {strides = array<i32>} : memref<2x64xf32, #tpu.memory_space<vmem>>, vector<2x64xf32>,
    %c0_5 = arith.constant 0 : index
    %c0_6 = arith.constant 0 : index
    %5 = vector.load %arg1[%c0_5, %c0_6] : memref<64x10xf32, #tpu.memory_space<vmem>>, vector<64x10xf32>
    %cst_7 = arith.constant dense<0.000000e+00> : vector<2x10xf32>
    %6 = tpu.matmul %3, %5, %cst_7 {dimension_numbers = #tpu.dot_dimension_numbers<[1], [0], [0], [1], [0, 0, 1, 1], [], []>} : vector<2x64xf32>, vector<64x10xf32>, vector<2x10xf32> -> vector<2x10xf32>
    %c0_8 = arith.constant 0 : index
    %c0_9 = arith.constant 0 : index
    %7 = vector.load %arg2[%c0_8, %c0_9] : memref<1x10xf32, #tpu.memory_space<vmem>>, vector<1x10xf32>
    %8 = vector.broadcast %7 : vector<1x10xf32> to vector<2x10xf32>
    %9 = arith.addf %6, %8 : vector<2x10xf32>
    %c0_10 = arith.constant 0 : index
    %c0_11 = arith.constant 0 : index
    %10 = vector.load %arg4[%c0_10, %c0_11] : memref<2x10xf32, #tpu.memory_space<vmem>>, vector<2x10xf32>
    tpu.vector_store %arg4[%c0_10, %c0_11], %9 {strides = array<i32>} : memref<2x10xf32, #tpu.memory_space<vmem>>, vector<2x10xf32>,
    return
  }
}

</mosaic_0001>

<bundles_post_ra>
// kernel: _lambda_.16
= control target key start
LH: loop header
LB: loop body
LE: loop exit
PB: predicated region body
PF: predicated region fallthrough
CT: control target
= control target key end

     0   :  { %s881_s0 = inlined_call_operand.vmem [shape: f32[512,128], index: 0, kind: input, shape index: {}]   ;;  %s882_s1 = inlined_call_operand.vmem [shape: f32[2,128], index: 1, kind: input, shape index: {}]   ;;  %s883_s2 = inlined_call_operand.vmem [shape: f32[512,128], index: 2, kind: output, shape index: {}]  }
   0x1   :  { %v11_v0 = vld [vmem:[%s881_s0] sm:$0xff]  ;;  %v12_v3 = vld [vmem:[%s881_s0 + $0x8] sm:$0xff]  ;;  %v13_v6 = vld [vmem:[%s881_s0 + $0x10] sm:$0xff] }
   0x2   :  { %v362_v1 = vld [vmem:[%s882_s1] ss:$0 sm:$0xff]  ;;  %v367_v2 = vld [vmem:[%s882_s1 + $0x1] ss:$0 sm:$0xff]  ;;  %v14_v7 = vld [vmem:[%s881_s0 + $0x18] sm:$0xff] }
   0x3   :  { %v77_v4 = vmul.f32 %v362_v1, %v11_v0  ;;  %v78_v5 = vmul.f32 %v362_v1, %v12_v3  ;;  %v15_v8 = vld [vmem:[%s881_s0 + $0x20] sm:$0xff]  ;;  %v79_v9 = vmul.f32 %v362_v1, %v13_v6  ;;  %v80_v10 = vmul.f32 %v362_v1, %v14_v7  ;;  %v16_v12 = vld [vmem:[%s881_s0 + $0x28] sm:$0xff]  ;;  %v17_v13 = vld [vmem:[%s881_s0 + $0x30] sm:$0xff] }
   0x4   :  { %v81_v11 = vmul.f32 %v362_v1, %v15_v8  ;;  %v18_v14 = vld [vmem:[%s881_s0 + $0x38] sm:$0xff]  ;;  %v82_v17 = vmul.f32 %v362_v1, %v16_v12  ;;  %v83_v18 = vmul.f32 %v362_v1, %v17_v13  ;;  %v19_v23 = vld [vmem:[%s881_s0 + $0x40] sm:$0xff]  ;;  %v20_v24 = vld [vmem:[%s881_s0 + $0x48] sm:$0xff] }
   0x5   :  { %v143_v15 = vadd.f32 %v367_v2, %v77_v4  ;;  %v144_v16 = vadd.f32 %v367_v2, %v78_v5  ;;  %v145_v19 = vadd.f32 %v367_v2, %v79_v9  ;;  %v146_v20 = vadd.f32 %v367_v2, %v80_v10  ;;  %v21_v29 = vld [vmem:[%s881_s0 + $0x50] sm:$0xff]  ;;  %v22_v30 = vld [vmem:[%s881_s0 + $0x58] sm:$0xff]  ;;  %v23_v31 = vld [vmem:[%s881_s0 + $0x60] sm:$0xff] }
   0x6   :  { %v147_v21 = vadd.f32 %v367_v2, %v81_v11  ;;  %v84_v22 = vmul.f32 %v362_v1, %v18_v14  ;;  %v148_v27 = vadd.f32 %v367_v2, %v82_v17  ;;  %v149_v28 = vadd.f32 %v367_v2, %v83_v18  ;;  %v24_v35 = vld [vmem:[%s881_s0 + $0x68] sm:$0xff]  ;;  %v25_v36 = vld [vmem:[%s881_s0 + $0x70] sm:$0xff]  ;;  %v26_v41 = vld [vmem:[%s881_s0 + $0x78] sm:$0xff] }
   0x7   :  { %v207_v25 = vmax.f32 %v143_v15, 0.0  ;;  %v208_v26 = vmax.f32 %v144_v16, 0.0  ;;  %v209_v32 = vmax.f32 %v145_v19, 0.0  ;;  %v210_v33 = vmax.f32 %v146_v20, 0.0  ;;  %v27_v54 = vld [vmem:[%s881_s0 + $0x80] sm:$0xff]  ;;  %v28_v55 = vld [vmem:[%s881_s0 + $0x88] sm:$0xff] }
   0x8   :  { %v150_v34 = vadd.f32 %v367_v2, %v84_v22  ;;  %v211_v37 = vmax.f32 %v147_v21, 0.0  ;;  %v212_v38 = vmax.f32 %v148_v27, 0.0  ;;  %v85_v39 = vmul.f32 %v362_v1, %v19_v23  ;;  %v29_v58 = vld [vmem:[%s881_s0 + $0x90] sm:$0xff]  ;;  %v30_v59 = vld [vmem:[%s881_s0 + $0x98] sm:$0xff]  ;;  %v31_v62 = vld [vmem:[%s881_s0 + $0xa0] sm:$0xff] }
   0x9   :  { %271 = vst [vmem:[%s883_s2] sm:$0xff] %v207_v25  ;;  %v86_v40 = vmul.f32 %v362_v1, %v20_v24  ;;  %v213_v42 = vmax.f32 %v149_v28, 0.0  ;;  %v87_v43 = vmul.f32 %v362_v1, %v21_v29  ;;  %v88_v44 = vmul.f32 %v362_v1, %v22_v30  ;;  %v32_v5 = vld [vmem:[%s881_s0 + $0xa8] sm:$0xff]  ;;  %v33_v10 = vld [vmem:[%s881_s0 + $0xb0] sm:$0xff]  ;;  %v34_v14 = vld [vmem:[%s881_s0 + $0xb8] sm:$0xff] }
   0xa   :  { %272 = vst [vmem:[%s883_s2 + $0x8] sm:$0xff] %v208_v26  ;;  %v89_v45 = vmul.f32 %v362_v1, %v23_v31  ;;  %v151_v46 = vadd.f32 %v367_v2, %v85_v39  ;;  %v90_v48 = vmul.f32 %v362_v1, %v24_v35  ;;  %v91_v49 = vmul.f32 %v362_v1, %v25_v36  ;;  %v35_v18 = vld [vmem:[%s881_s0 + $0xc0] sm:$0xff]  ;;  %v36_v22 = vld [vmem:[%s881_s0 + $0xc8] sm:$0xff]  ;;  %v37_v26 = vld [vmem:[%s881_s0 + $0xd0] sm:$0xff] }
   0xb   :  { %273 = vst [vmem:[%s883_s2 + $0x10] sm:$0xff] %v209_v32  ;;  %v152_v47 = vadd.f32 %v367_v2, %v86_v40  ;;  %v214_v50 = vmax.f32 %v150_v34, 0.0  ;;  %v153_v51 = vadd.f32 %v367_v2, %v87_v43  ;;  %v154_v52 = vadd.f32 %v367_v2, %v88_v44  ;;  %v38_v30 = vld [vmem:[%s881_s0 + $0xd8] sm:$0xff]  ;;  %v39_v34 = vld [vmem:[%s881_s0 + $0xe0] sm:$0xff] }
   0xc   :  { %274 = vst [vmem:[%s883_s2 + $0x18] sm:$0xff] %v210_v33  ;;  %v92_v53 = vmul.f32 %v362_v1, %v26_v41  ;;  %v215_v56 = vmax.f32 %v151_v46, 0.0  ;;  %v155_v57 = vadd.f32 %v367_v2, %v89_v45  ;;  %v156_v61 = vadd.f32 %v367_v2, %v90_v48  ;;  %v42_v46 = vld [vmem:[%s881_s0 + $0xf8] sm:$0xff] }
   0xd   :  { %275 = vst [vmem:[%s883_s2 + $0x20] sm:$0xff] %v211_v37  ;;  %v216_v60 = vmax.f32 %v152_v47, 0.0  ;;  %v217_v63 = vmax.f32 %v153_v51, 0.0  ;;  %v157_v0 = vadd.f32 %v367_v2, %v91_v49  ;;  %v93_v3 = vmul.f32 %v362_v1, %v27_v54  ;;  %v44_v54 = vld [vmem:[%s881_s0 + $0x108] sm:$0xff] }
   0xe   :  { %276 = vst [vmem:[%s883_s2 + $0x28] sm:$0xff] %v212_v38  ;;  %v94_v4 = vmul.f32 %v362_v1, %v28_v55  ;;  %v218_v6 = vmax.f32 %v154_v52, 0.0  ;;  %v158_v7 = vadd.f32 %v367_v2, %v92_v53  ;;  %v95_v8 = vmul.f32 %v362_v1, %v29_v58  ;;  %v40_v38 = vld [vmem:[%s881_s0 + $0xe8] sm:$0xff]  ;;  %v45_v58 = vld [vmem:[%s881_s0 + $0x110] sm:$0xff] }
   0xf   :  { %277 = vst [vmem:[%s883_s2 + $0x30] sm:$0xff] %v213_v42  ;;  %v96_v9 = vmul.f32 %v362_v1, %v30_v59  ;;  %v219_v11 = vmax.f32 %v155_v57, 0.0  ;;  %v159_v12 = vadd.f32 %v367_v2, %v93_v3  ;;  %v97_v13 = vmul.f32 %v362_v1, %v31_v62  ;;  %v41_v42 = vld [vmem:[%s881_s0 + $0xf0] sm:$0xff]  ;;  %v46_v62 = vld [vmem:[%s881_s0 + $0x118] sm:$0xff] }
  0x10   :  { %278 = vst [vmem:[%s883_s2 + $0x38] sm:$0xff] %v214_v50  ;;  %v220_v15 = vmax.f32 %v156_v61, 0.0  ;;  %v160_v16 = vadd.f32 %v367_v2, %v94_v4  ;;  %v98_v17 = vmul.f32 %v362_v1, %v32_v5  ;;  %v221_v19 = vmax.f32 %v157_v0, 0.0  ;;  %v43_v50 = vld [vmem:[%s881_s0 + $0x100] sm:$0xff] }
  0x11   :  { %279 = vst [vmem:[%s883_s2 + $0x40] sm:$0xff] %v215_v56  ;;  %v161_v20 = vadd.f32 %v367_v2, %v95_v8  ;;  %v99_v21 = vmul.f32 %v362_v1, %v33_v10  ;;  %v222_v23 = vmax.f32 %v158_v7, 0.0  ;;  %v162_v24 = vadd.f32 %v367_v2, %v96_v9  ;;  %v47_v4 = vld [vmem:[%s881_s0 + $0x120] sm:$0xff]  ;;  %v48_v8 = vld [vmem:[%s881_s0 + $0x128] sm:$0xff] }
  0x12   :  { %280 = vst [vmem:[%s883_s2 + $0x48] sm:$0xff] %v216_v60  ;;  %v100_v25 = vmul.f32 %v362_v1, %v34_v14  ;;  %v223_v27 = vmax.f32 %v159_v12, 0.0  ;;  %v163_v28 = vadd.f32 %v367_v2, %v97_v13  ;;  %v101_v29 = vmul.f32 %v362_v1, %v35_v18  ;;  %v49_v12 = vld [vmem:[%s881_s0 + $0x130] sm:$0xff] }
  0x13   :  { %281 = vst [vmem:[%s883_s2 + $0x50] sm:$0xff] %v217_v63  ;;  %v224_v31 = vmax.f32 %v160_v16, 0.0  ;;  %v164_v32 = vadd.f32 %v367_v2, %v98_v17  ;;  %v102_v33 = vmul.f32 %v362_v1, %v36_v22  ;;  %v225_v35 = vmax.f32 %v161_v20, 0.0  ;;  %v50_v16 = vld [vmem:[%s881_s0 + $0x138] sm:$0xff]  ;;  %v51_v20 = vld [vmem:[%s881_s0 + $0x140] sm:$0xff] }
  0x14   :  { %282 = vst [vmem:[%s883_s2 + $0x58] sm:$0xff] %v218_v6  ;;  %v165_v36 = vadd.f32 %v367_v2, %v99_v21  ;;  %v103_v37 = vmul.f32 %v362_v1, %v37_v26  ;;  %v226_v39 = vmax.f32 %v162_v24, 0.0  ;;  %v166_v40 = vadd.f32 %v367_v2, %v100_v25  ;;  %v52_v24 = vld [vmem:[%s881_s0 + $0x148] sm:$0xff] }
  0x15   :  { %283 = vst [vmem:[%s883_s2 + $0x60] sm:$0xff] %v219_v11  ;;  %v104_v41 = vmul.f32 %v362_v1, %v38_v30  ;;  %v227_v43 = vmax.f32 %v163_v28, 0.0  ;;  %v167_v44 = vadd.f32 %v367_v2, %v101_v29  ;;  %v105_v45 = vmul.f32 %v362_v1, %v39_v34  ;;  %v53_v28 = vld [vmem:[%s881_s0 + $0x150] sm:$0xff] }
  0x16   :  { %284 = vst [vmem:[%s883_s2 + $0x68] sm:$0xff] %v220_v15  ;;  %v228_v47 = vmax.f32 %v164_v32, 0.0  ;;  %v168_v48 = vadd.f32 %v367_v2, %v102_v33  ;;  %v106_v49 = vmul.f32 %v362_v1, %v40_v38  ;;  %v229_v51 = vmax.f32 %v165_v36, 0.0  ;;  %v54_v32 = vld [vmem:[%s881_s0 + $0x158] sm:$0xff]  ;;  %v55_v36 = vld [vmem:[%s881_s0 + $0x160] sm:$0xff] }
  0x17   :  { %285 = vst [vmem:[%s883_s2 + $0x70] sm:$0xff] %v221_v19  ;;  %v169_v52 = vadd.f32 %v367_v2, %v103_v37  ;;  %v107_v53 = vmul.f32 %v362_v1, %v41_v42  ;;  %v230_v55 = vmax.f32 %v166_v40, 0.0  ;;  %v170_v56 = vadd.f32 %v367_v2, %v104_v41  ;;  %v56_v40 = vld [vmem:[%s881_s0 + $0x168] sm:$0xff] }
  0x18   :  { %286 = vst [vmem:[%s883_s2 + $0x78] sm:$0xff] %v222_v23  ;;  %v108_v57 = vmul.f32 %v362_v1, %v42_v46  ;;  %v231_v59 = vmax.f32 %v167_v44, 0.0  ;;  %v171_v60 = vadd.f32 %v367_v2, %v105_v45  ;;  %v109_v61 = vmul.f32 %v362_v1, %v43_v50  ;;  %v57_v44 = vld [vmem:[%s881_s0 + $0x170] sm:$0xff] }
  0x19   :  { %287 = vst [vmem:[%s883_s2 + $0x80] sm:$0xff] %v223_v27  ;;  %v232_v63 = vmax.f32 %v168_v48, 0.0  ;;  %v172_v0 = vadd.f32 %v367_v2, %v106_v49  ;;  %v110_v3 = vmul.f32 %v362_v1, %v44_v54  ;;  %v233_v5 = vmax.f32 %v169_v52, 0.0  ;;  %v58_v48 = vld [vmem:[%s881_s0 + $0x178] sm:$0xff]  ;;  %v59_v52 = vld [vmem:[%s881_s0 + $0x180] sm:$0xff] }
  0x1a   :  { %288 = vst [vmem:[%s883_s2 + $0x88] sm:$0xff] %v224_v31  ;;  %v173_v6 = vadd.f32 %v367_v2, %v107_v53  ;;  %v111_v7 = vmul.f32 %v362_v1, %v45_v58  ;;  %v234_v9 = vmax.f32 %v170_v56, 0.0  ;;  %v174_v10 = vadd.f32 %v367_v2, %v108_v57  ;;  %v60_v56 = vld [vmem:[%s881_s0 + $0x188] sm:$0xff] }
  0x1b   :  { %289 = vst [vmem:[%s883_s2 + $0x90] sm:$0xff] %v225_v35  ;;  %v112_v11 = vmul.f32 %v362_v1, %v46_v62  ;;  %v235_v13 = vmax.f32 %v171_v60, 0.0  ;;  %v175_v14 = vadd.f32 %v367_v2, %v109_v61  ;;  %v113_v15 = vmul.f32 %v362_v1, %v47_v4  ;;  %v61_v60 = vld [vmem:[%s881_s0 + $0x190] sm:$0xff] }
  0x1c   :  { %290 = vst [vmem:[%s883_s2 + $0x98] sm:$0xff] %v226_v39  ;;  %v236_v17 = vmax.f32 %v172_v0, 0.0  ;;  %v176_v18 = vadd.f32 %v367_v2, %v110_v3  ;;  %v114_v19 = vmul.f32 %v362_v1, %v48_v8  ;;  %v237_v21 = vmax.f32 %v173_v6, 0.0  ;;  %v62_v0 = vld [vmem:[%s881_s0 + $0x198] sm:$0xff] }
  0x1d   :  { %291 = vst [vmem:[%s883_s2 + $0xa0] sm:$0xff] %v227_v43  ;;  %v177_v22 = vadd.f32 %v367_v2, %v111_v7  ;;  %v115_v23 = vmul.f32 %v362_v1, %v49_v12  ;;  %v238_v25 = vmax.f32 %v174_v10, 0.0  ;;  %v178_v26 = vadd.f32 %v367_v2, %v112_v11  ;;  %v74_v3 = vld [vmem:[%s881_s0 + $0x1f8] sm:$0xff]  ;;  %v63_v7 = vld [vmem:[%s881_s0 + $0x1a0] sm:$0xff]  ;;  %v64_v11 = vld [vmem:[%s881_s0 + $0x1a8] sm:$0xff] }
  0x1e   :  { %292 = vst [vmem:[%s883_s2 + $0xa8] sm:$0xff] %v228_v47  ;;  %v116_v27 = vmul.f32 %v362_v1, %v50_v16  ;;  %v239_v29 = vmax.f32 %v175_v14, 0.0  ;;  %v179_v30 = vadd.f32 %v367_v2, %v113_v15  ;;  %v117_v31 = vmul.f32 %v362_v1, %v51_v20  ;;  %v65_v15 = vld [vmem:[%s881_s0 + $0x1b0] sm:$0xff]  ;;  %v66_v20 = vld [vmem:[%s881_s0 + $0x1b8] sm:$0xff] }
  0x1f   :  { %293 = vst [vmem:[%s883_s2 + $0xb0] sm:$0xff] %v229_v51  ;;  %v240_v33 = vmax.f32 %v176_v18, 0.0  ;;  %v180_v34 = vadd.f32 %v367_v2, %v114_v19  ;;  %v118_v35 = vmul.f32 %v362_v1, %v52_v24  ;;  %v241_v37 = vmax.f32 %v177_v22, 0.0  ;;  %v67_v24 = vld [vmem:[%s881_s0 + $0x1c0] sm:$0xff] }
  0x20   :  { %294 = vst [vmem:[%s883_s2 + $0xb8] sm:$0xff] %v230_v55  ;;  %v181_v38 = vadd.f32 %v367_v2, %v115_v23  ;;  %v119_v39 = vmul.f32 %v362_v1, %v53_v28  ;;  %v242_v41 = vmax.f32 %v178_v26, 0.0  ;;  %v182_v42 = vadd.f32 %v367_v2, %v116_v27 }
  0x21   :  { %295 = vst [vmem:[%s883_s2 + $0xc0] sm:$0xff] %v231_v59  ;;  %v120_v43 = vmul.f32 %v362_v1, %v54_v32  ;;  %v243_v45 = vmax.f32 %v179_v30, 0.0  ;;  %v183_v46 = vadd.f32 %v367_v2, %v117_v31  ;;  %v121_v47 = vmul.f32 %v362_v1, %v55_v36 }
  0x22   :  { %296 = vst [vmem:[%s883_s2 + $0xc8] sm:$0xff] %v232_v63  ;;  %v244_v49 = vmax.f32 %v180_v34, 0.0  ;;  %v184_v50 = vadd.f32 %v367_v2, %v118_v35  ;;  %v122_v51 = vmul.f32 %v362_v1, %v56_v40  ;;  %v245_v53 = vmax.f32 %v181_v38, 0.0 }
  0x23   :  { %297 = vst [vmem:[%s883_s2 + $0xd0] sm:$0xff] %v233_v5  ;;  %v185_v54 = vadd.f32 %v367_v2, %v119_v39  ;;  %v123_v55 = vmul.f32 %v362_v1, %v57_v44  ;;  %v246_v57 = vmax.f32 %v182_v42, 0.0  ;;  %v186_v58 = vadd.f32 %v367_v2, %v120_v43 }
  0x24   :  { %298 = vst [vmem:[%s883_s2 + $0xd8] sm:$0xff] %v234_v9  ;;  %v124_v59 = vmul.f32 %v362_v1, %v58_v48  ;;  %v247_v61 = vmax.f32 %v183_v46, 0.0  ;;  %v187_v62 = vadd.f32 %v367_v2, %v121_v47  ;;  %v125_v63 = vmul.f32 %v362_v1, %v59_v52 }
  0x25   :  { %299 = vst [vmem:[%s883_s2 + $0xe0] sm:$0xff] %v235_v13  ;;  %v248_v4 = vmax.f32 %v184_v50, 0.0  ;;  %v188_v5 = vadd.f32 %v367_v2, %v122_v51  ;;  %v126_v6 = vmul.f32 %v362_v1, %v60_v56  ;;  %v249_v8 = vmax.f32 %v185_v54, 0.0 }
  0x26   :  { %300 = vst [vmem:[%s883_s2 + $0xe8] sm:$0xff] %v236_v17  ;;  %v189_v9 = vadd.f32 %v367_v2, %v123_v55  ;;  %v127_v10 = vmul.f32 %v362_v1, %v61_v60  ;;  %v250_v12 = vmax.f32 %v186_v58, 0.0  ;;  %v190_v13 = vadd.f32 %v367_v2, %v124_v59 }
  0x27   :  { %301 = vst [vmem:[%s883_s2 + $0xf0] sm:$0xff] %v237_v21  ;;  %v128_v14 = vmul.f32 %v362_v1, %v62_v0  ;;  %v140_v16 = vmul.f32 %v362_v1, %v74_v3  ;;  %v251_v17 = vmax.f32 %v187_v62, 0.0  ;;  %v191_v18 = vadd.f32 %v367_v2, %v125_v63 }
  0x28   :  { %302 = vst [vmem:[%s883_s2 + $0xf8] sm:$0xff] %v238_v25  ;;  %v129_v19 = vmul.f32 %v362_v1, %v63_v7  ;;  %v252_v21 = vmax.f32 %v188_v5, 0.0  ;;  %v192_v22 = vadd.f32 %v367_v2, %v126_v6  ;;  %v130_v23 = vmul.f32 %v362_v1, %v64_v11 }
  0x29   :  { %303 = vst [vmem:[%s883_s2 + $0x100] sm:$0xff] %v239_v29  ;;  %v772_v25 = vadd.f32 %v367_v2, %v140_v16  ;;  %v253_v26 = vmax.f32 %v189_v9, 0.0  ;;  %v193_v27 = vadd.f32 %v367_v2, %v127_v10  ;;  %v131_v28 = vmul.f32 %v362_v1, %v65_v15  ;;  %v68_v29 = vld [vmem:[%s881_s0 + $0x1c8] sm:$0xff] }
  0x2a   :  { %304 = vst [vmem:[%s883_s2 + $0x108] sm:$0xff] %v240_v33  ;;  %v254_v30 = vmax.f32 %v190_v13, 0.0  ;;  %v194_v31 = vadd.f32 %v367_v2, %v128_v14  ;;  %v132_v32 = vmul.f32 %v362_v1, %v66_v20  ;;  %v69_v33 = vld [vmem:[%s881_s0 + $0x1d0] sm:$0xff]  ;;  %v255_v34 = vmax.f32 %v191_v18, 0.0 }
  0x2b   :  { %305 = vst [vmem:[%s883_s2 + $0x110] sm:$0xff] %v241_v37  ;;  %v195_v35 = vadd.f32 %v367_v2, %v129_v19  ;;  %v133_v36 = vmul.f32 %v362_v1, %v67_v24  ;;  %v70_v37 = vld [vmem:[%s881_s0 + $0x1d8] sm:$0xff]  ;;  %v256_v38 = vmax.f32 %v192_v22, 0.0  ;;  %v196_v39 = vadd.f32 %v367_v2, %v130_v23 }
  0x2c   :  { %306 = vst [vmem:[%s883_s2 + $0x118] sm:$0xff] %v242_v41  ;;  %v134_v40 = vmul.f32 %v362_v1, %v68_v29  ;;  %v71_v41 = vld [vmem:[%s881_s0 + $0x1e0] sm:$0xff]  ;;  %v257_v42 = vmax.f32 %v193_v27, 0.0  ;;  %v197_v43 = vadd.f32 %v367_v2, %v131_v28  ;;  %v135_v44 = vmul.f32 %v362_v1, %v69_v33 }
  0x2d   :  { %307 = vst [vmem:[%s883_s2 + $0x120] sm:$0xff] %v243_v45  ;;  %v72_v45 = vld [vmem:[%s881_s0 + $0x1e8] sm:$0xff]  ;;  %v258_v46 = vmax.f32 %v194_v31, 0.0  ;;  %v198_v47 = vadd.f32 %v367_v2, %v132_v32  ;;  %v136_v48 = vmul.f32 %v362_v1, %v70_v37  ;;  %v259_v50 = vmax.f32 %v195_v35, 0.0 }
  0x2e   :  { %308 = vst [vmem:[%s883_s2 + $0x128] sm:$0xff] %v244_v49  ;;  %v73_v49 = vld [vmem:[%s881_s0 + $0x1f0] sm:$0xff]  ;;  %v199_v51 = vadd.f32 %v367_v2, %v133_v36  ;;  %v137_v52 = vmul.f32 %v362_v1, %v71_v41  ;;  %v200_v54 = vadd.f32 %v367_v2, %v134_v40  ;;  %v138_v55 = vmul.f32 %v362_v1, %v72_v45 }
  0x2f   :  { %309 = vst [vmem:[%s883_s2 + $0x130] sm:$0xff] %v245_v53  ;;  %v260_v53 = vmax.f32 %v196_v39, 0.0  ;;  %v261_v56 = vmax.f32 %v197_v43, 0.0  ;;  %v139_v58 = vmul.f32 %v362_v1, %v73_v49  ;;  %v262_v59 = vmax.f32 %v198_v47, 0.0 }
  0x30   :  { %310 = vst [vmem:[%s883_s2 + $0x138] sm:$0xff] %v246_v57  ;;  %v201_v57 = vadd.f32 %v367_v2, %v135_v44  ;;  %v202_v60 = vadd.f32 %v367_v2, %v136_v48  ;;  %v203_v62 = vadd.f32 %v367_v2, %v137_v52  ;;  %v264_v63 = vmax.f32 %v200_v54, 0.0 }
  0x31   :  { %311 = vst [vmem:[%s883_s2 + $0x140] sm:$0xff] %v247_v61  ;;  %v263_v61 = vmax.f32 %v199_v51, 0.0  ;;  %v204_v1 = vadd.f32 %v367_v2, %v138_v55  ;;  %v205_v3 = vadd.f32 %v367_v2, %v139_v58  ;;  %v270_v7 = vmax.f32 %v772_v25, 0.0 }
  0x32   :  { %312 = vst [vmem:[%s883_s2 + $0x148] sm:$0xff] %v248_v4  ;;  %v265_v0 = vmax.f32 %v201_v57, 0.0  ;;  %v266_v4 = vmax.f32 %v202_v60, 0.0  ;;  %v267_v5 = vmax.f32 %v203_v62, 0.0 }
  0x33   :  { %313 = vst [vmem:[%s883_s2 + $0x150] sm:$0xff] %v249_v8  ;;  %v268_v6 = vmax.f32 %v204_v1, 0.0  ;;  %v269_v2 = vmax.f32 %v205_v3, 0.0 }
  0x34   :  { %314 = vst [vmem:[%s883_s2 + $0x158] sm:$0xff] %v250_v12 }
  0x35   :  { %315 = vst [vmem:[%s883_s2 + $0x160] sm:$0xff] %v251_v17 }
  0x36   :  { %316 = vst [vmem:[%s883_s2 + $0x168] sm:$0xff] %v252_v21 }
  0x37   :  { %317 = vst [vmem:[%s883_s2 + $0x170] sm:$0xff] %v253_v26 }
  0x38   :  { %318 = vst [vmem:[%s883_s2 + $0x178] sm:$0xff] %v254_v30 }
  0x39   :  { %319 = vst [vmem:[%s883_s2 + $0x180] sm:$0xff] %v255_v34 }
  0x3a   :  { %320 = vst [vmem:[%s883_s2 + $0x188] sm:$0xff] %v256_v38 }
  0x3b   :  { %321 = vst [vmem:[%s883_s2 + $0x190] sm:$0xff] %v257_v42 }
  0x3c   :  { %322 = vst [vmem:[%s883_s2 + $0x198] sm:$0xff] %v258_v46 }
  0x3d   :  { %323 = vst [vmem:[%s883_s2 + $0x1a0] sm:$0xff] %v259_v50 }
  0x3e   :  { %324 = vst [vmem:[%s883_s2 + $0x1a8] sm:$0xff] %v260_v53 }
  0x3f   :  { %325 = vst [vmem:[%s883_s2 + $0x1b0] sm:$0xff] %v261_v56 }
  0x40   :  { %326 = vst [vmem:[%s883_s2 + $0x1b8] sm:$0xff] %v262_v59 }
  0x41   :  { %327 = vst [vmem:[%s883_s2 + $0x1c0] sm:$0xff] %v263_v61 }
  0x42   :  { %328 = vst [vmem:[%s883_s2 + $0x1c8] sm:$0xff] %v264_v63 }
  0x43   :  { %329 = vst [vmem:[%s883_s2 + $0x1d0] sm:$0xff] %v265_v0 }
  0x44   :  { %330 = vst [vmem:[%s883_s2 + $0x1d8] sm:$0xff] %v266_v4 }
  0x45   :  { %331 = vst [vmem:[%s883_s2 + $0x1e0] sm:$0xff] %v267_v5 }
  0x46   :  { %332 = vst [vmem:[%s883_s2 + $0x1e8] sm:$0xff] %v268_v6 }
  0x47   :  { %333 = vst [vmem:[%s883_s2 + $0x1f0] sm:$0xff] %v269_v2 }
  0x48   :  { %334 = vst [vmem:[%s883_s2 + $0x1f8] sm:$0xff] %v270_v7 }

// kernel: _lambda_.15
= control target key start
LH: loop header
LB: loop body
LE: loop exit
PB: predicated region body
PF: predicated region fallthrough
CT: control target
= control target key end

     0   :  { %vm361_vm0 = vcmask 1044480   ;;  %vm362_vm1 = vcmask 1045504   ;;  %v1066_v2 = vmov 65535   ;;  %vm264_vm2 = vcmask 220160   ;;  %s1755_s1 = inlined_call_operand.vmem [shape: bf16[27,128], index: 1, kind: input, shape index: {}]   ;;  %s1756_s0 = inlined_call_operand.vmem [shape: bf16[512,27], index: 0, kind: input, shape index: {}]   ;;  %s1757_s4 = inlined_call_operand.vmem [shape: f32[512,128], index: 4, kind: output, shape index: {0}]   ;;  %s1758_s5 = inlined_call_operand.vmem [shape: f32[2,128], index: 5, kind: output, shape index: {1}]   ;;  %s1759_s2 = inlined_call_operand.vmem [shape: f32[1,128], index: 2, kind: input, shape index: {}]   ;;  %s1760_s3 = inlined_call_operand.vmem [shape: f32[1,128], index: 3, kind: input, shape index: {}]  }
   0x1   :  { %v985_v0 = vld [vmem:[%s1755_s1 + $0x8] sm:$0xf]  ;;  %v1052_v1 = vld [vmem:[%s1755_s1 + $0x8] sm:$0x30]  ;;  %v363_v3 = vsel %vm361_vm0, 4294967295, %v1066_v2  ;;  %v1051_v7 = vld [vmem:[%s1755_s1] sm:$0xff] }
   0x2   :  { %v986_v4 = vor.u32 %v1052_v1, %v985_v0  ;;  %v364_v5 = vsel %vm362_vm1, %v363_v3, 0  ;;  %v1019_v8 = vld [vmem:[%s1756_s0] sm:$0xff]  ;;  %v1020_v10 = vld [vmem:[%s1756_s0 + $0x8] sm:$0xff]  ;;  %v1021_v13 = vld [vmem:[%s1756_s0 + $0x10] sm:$0xff] }
   0x3   :  { %v1027_v9 = vld [vmem:[%s1756_s0 + $0x40] sm:$0xff]  ;;  %v1028_v11 = vld [vmem:[%s1756_s0 + $0x48] sm:$0xff]  ;;  %v1029_v14 = vld [vmem:[%s1756_s0 + $0x50] sm:$0xff] }
   0x4   :  { %v366_v6 = vand.u32 %v986_v4, %v364_v5  ;;  %v1035_v12 = vld [vmem:[%s1756_s0 + $0x80] sm:$0xff]  ;;  %v1036_v15 = vld [vmem:[%s1756_s0 + $0x88] sm:$0xff]  ;;  %v1022_v16 = vld [vmem:[%s1756_s0 + $0x18] sm:$0xff] }
   0x5   :  { %v1030_v17 = vld [vmem:[%s1756_s0 + $0x58] sm:$0xff]  ;;  %v1037_v18 = vld [vmem:[%s1756_s0 + $0x90] sm:$0xff]  ;;  %v1043_v19 = vld [vmem:[%s1756_s0 + $0xc0] sm:$0xff] }
   0x6   :  { %374 = vmatpush.bf16.msra.mxu0 %v366_v6  ;;  %1053 = vmatpush.bf16.msra.mxu1 %v366_v6  ;;  %v1023_v20 = vld [vmem:[%s1756_s0 + $0x20] sm:$0xff]  ;;  %v1038_v22 = vld [vmem:[%s1756_s0 + $0x98] sm:$0xff]  ;;  %v1044_v23 = vld [vmem:[%s1756_s0 + $0xc8] sm:$0xff] }
   0x7   :  { %1054 = vmatpush.bf16.msra.mxu2 %v366_v6  ;;  %1055 = vmatpush.bf16.msra.mxu3 %v366_v6  ;;  %v1031_v21 = vld [vmem:[%s1756_s0 + $0x60] sm:$0xff]  ;;  %v1024_v24 = vld [vmem:[%s1756_s0 + $0x28] sm:$0xff]  ;;  %v1045_v27 = vld [vmem:[%s1756_s0 + $0xd0] sm:$0xff] }
   0x8   :  { %v1032_v25 = vld [vmem:[%s1756_s0 + $0x68] sm:$0xff]  ;;  %v1039_v26 = vld [vmem:[%s1756_s0 + $0xa0] sm:$0xff]  ;;  %v1025_v28 = vld [vmem:[%s1756_s0 + $0x30] sm:$0xff] }
   0x9   :  { %v1033_v29 = vld [vmem:[%s1756_s0 + $0x70] sm:$0xff]  ;;  %v1040_v30 = vld [vmem:[%s1756_s0 + $0xa8] sm:$0xff]  ;;  %v1046_v31 = vld [vmem:[%s1756_s0 + $0xd8] sm:$0xff] }
   0xa   :  { %375 = vmatpush.bf16.msra.mxu0 %v1051_v7  ;;  %1056 = vmatpush.bf16.msra.mxu1 %v1051_v7  ;;  %v1026_v32 = vld [vmem:[%s1756_s0 + $0x38] sm:$0xff]  ;;  %v1041_v34 = vld [vmem:[%s1756_s0 + $0xb0] sm:$0xff]  ;;  %v1047_v35 = vld [vmem:[%s1756_s0 + $0xe0] sm:$0xff] }
   0xb   :  { %1057 = vmatpush.bf16.msra.mxu2 %v1051_v7  ;;  %1058 = vmatpush.bf16.msra.mxu3 %v1051_v7  ;;  %v1034_v33 = vld [vmem:[%s1756_s0 + $0x78] sm:$0xff]  ;;  %v1048_v39 = vld [vmem:[%s1756_s0 + $0xe8] sm:$0xff]  ;;  %v1049_v51 = vld [vmem:[%s1756_s0 + $0xf0] sm:$0xff] }
   0xc   :  { %v1042_v38 = vld [vmem:[%s1756_s0 + $0xb8] sm:$0xff] }
   0xd   :  { %987 = vmatmul.msk.bf16.vlgmr.msra.gmra.mxu0 %vm264_vm2, %v1019_v8  ;;  %995 = vmatmul.msk.bf16.vlgmr.msra.gmra.mxu1 %vm264_vm2, %v1027_v9  ;;  %v1050_v0 = vld [vmem:[%s1756_s0 + $0xf8] sm:$0xff] }
   0xe   :  { %1003 = vmatmul.msk.bf16.vlgmr.msra.gmra.mxu2 %vm264_vm2, %v1035_v12  ;;  %1011 = vmatmul.msk.bf16.vlgmr.msra.gmra.mxu3 %vm264_vm2, %v1043_v19 }
  0x1d   :  { %988 = vmatmul.msk.bf16.gmra.mxu0 %vm264_vm2, %v1020_v10  ;;  %996 = vmatmul.msk.bf16.gmra.mxu1 %vm264_vm2, %v1028_v11 }
  0x1e   :  { %1004 = vmatmul.msk.bf16.gmra.mxu2 %vm264_vm2, %v1036_v15  ;;  %1012 = vmatmul.msk.bf16.gmra.mxu3 %vm264_vm2, %v1044_v23 }
  0x2d   :  { %989 = vmatmul.msk.bf16.gmra.mxu0 %vm264_vm2, %v1021_v13  ;;  %997 = vmatmul.msk.bf16.gmra.mxu1 %vm264_vm2, %v1029_v14 }
  0x2e   :  { %1005 = vmatmul.msk.bf16.gmra.mxu2 %vm264_vm2, %v1037_v18  ;;  %1013 = vmatmul.msk.bf16.gmra.mxu3 %vm264_vm2, %v1045_v27 }
  0x3d   :  { %990 = vmatmul.msk.bf16.gmra.mxu0 %vm264_vm2, %v1022_v16  ;;  %998 = vmatmul.msk.bf16.gmra.mxu1 %vm264_vm2, %v1030_v17 }
  0x3e   :  { %1006 = vmatmul.msk.bf16.gmra.mxu2 %vm264_vm2, %v1038_v22  ;;  %1014 = vmatmul.msk.bf16.gmra.mxu3 %vm264_vm2, %v1046_v31 }
  0x4d   :  { %991 = vmatmul.msk.bf16.gmra.mxu0 %vm264_vm2, %v1023_v20  ;;  %999 = vmatmul.msk.bf16.gmra.mxu1 %vm264_vm2, %v1031_v21 }
  0x4e   :  { %1007 = vmatmul.msk.bf16.gmra.mxu2 %vm264_vm2, %v1039_v26  ;;  %1015 = vmatmul.msk.bf16.gmra.mxu3 %vm264_vm2, %v1047_v35 }
  0x5d   :  { %992 = vmatmul.msk.bf16.gmra.mxu0 %vm264_vm2, %v1024_v24  ;;  %1000 = vmatmul.msk.bf16.gmra.mxu1 %vm264_vm2, %v1032_v25 }
  0x5e   :  { %1008 = vmatmul.msk.bf16.gmra.mxu2 %vm264_vm2, %v1040_v30  ;;  %1016 = vmatmul.msk.bf16.gmra.mxu3 %vm264_vm2, %v1048_v39 }
  0x6d   :  { %993 = vmatmul.msk.bf16.gmra.mxu0 %vm264_vm2, %v1025_v28  ;;  %1001 = vmatmul.msk.bf16.gmra.mxu1 %vm264_vm2, %v1033_v29 }
  0x6e   :  { %1009 = vmatmul.msk.bf16.gmra.mxu2 %vm264_vm2, %v1041_v34  ;;  %1017 = vmatmul.msk.bf16.gmra.mxu3 %vm264_vm2, %v1049_v51 }
  0x7d   :  { %994 = vmatmul.msk.bf16.gmra.mxu0 %vm264_vm2, %v1026_v32  ;;  %1002 = vmatmul.msk.bf16.gmra.mxu1 %vm264_vm2, %v1034_v33 }
  0x7e   :  { %1010 = vmatmul.msk.bf16.gmra.mxu2 %vm264_vm2, %v1042_v38  ;;  %1018 = vmatmul.msk.bf16.gmra.mxu3 %vm264_vm2, %v1050_v0 }
  0x8a   :  { %v377_v36 = vpop.f32.mrf.mxu0  ;;  %v1220_v37 = vpop.f32.mrf.mxu1 }
  0x8b   :  { %537 = vst [vmem:[%s1757_s4] sm:$0xff] %v377_v36  ;;  %v674_v42 = vmul.f32 %v377_v36, %v377_v36 }
  0x8c   :  { %553 = vst [vmem:[%s1757_s4 + $0x80] sm:$0xff] %v1220_v37 }
  0x91   :  { %v1264_v56 = vpop.f32.mrf.mxu2  ;;  %v1334_v10 = vpop.f32.mrf.mxu3 }
  0x92   :  { %v379_v40 = vpop.f32.mrf.mxu0  ;;  %v1237_v41 = vpop.f32.mrf.mxu1  ;;  %569 = vst [vmem:[%s1757_s4 + $0x100] sm:$0xff] %v1264_v56 }
  0x93   :  { %538 = vst [vmem:[%s1757_s4 + $0x8] sm:$0xff] %v379_v40  ;;  %v602_v43 = vadd.f32 %v379_v40, %v377_v36  ;;  %v675_v44 = vmul.f32 %v379_v40, %v379_v40 }
  0x94   :  { %554 = vst [vmem:[%s1757_s4 + $0x88] sm:$0xff] %v1237_v41 }
  0x95   :  { %v738_v45 = vadd.f32 %v675_v44, %v674_v42  ;;  %585 = vst [vmem:[%s1757_s4 + $0x180] sm:$0xff] %v1334_v10 }
  0x99   :  { %v1281_v62 = vpop.f32.mrf.mxu2  ;;  %v1355_v14 = vpop.f32.mrf.mxu3 }
  0x9a   :  { %v382_v46 = vpop.f32.mrf.mxu0  ;;  %v1246_v47 = vpop.f32.mrf.mxu1  ;;  %570 = vst [vmem:[%s1757_s4 + $0x108] sm:$0xff] %v1281_v62 }
  0x9b   :  { %539 = vst [vmem:[%s1757_s4 + $0x10] sm:$0xff] %v382_v46  ;;  %v603_v48 = vadd.f32 %v602_v43, %v382_v46  ;;  %v676_v49 = vmul.f32 %v382_v46, %v382_v46 }
  0x9c   :  { %555 = vst [vmem:[%s1757_s4 + $0x90] sm:$0xff] %v1246_v47 }
  0x9d   :  { %v739_v50 = vadd.f32 %v738_v45, %v676_v49  ;;  %586 = vst [vmem:[%s1757_s4 + $0x188] sm:$0xff] %v1355_v14 }
  0xa1   :  { %v1302_v3 = vpop.f32.mrf.mxu2  ;;  %v1376_v18 = vpop.f32.mrf.mxu3 }
  0xa2   :  { %v384_v52 = vpop.f32.mrf.mxu0  ;;  %v1259_v53 = vpop.f32.mrf.mxu1  ;;  %571 = vst [vmem:[%s1757_s4 + $0x110] sm:$0xff] %v1302_v3 }
  0xa3   :  { %540 = vst [vmem:[%s1757_s4 + $0x18] sm:$0xff] %v384_v52  ;;  %v604_v54 = vadd.f32 %v603_v48, %v384_v52  ;;  %v677_v55 = vmul.f32 %v384_v52, %v384_v52 }
  0xa4   :  { %556 = vst [vmem:[%s1757_s4 + $0x98] sm:$0xff] %v1259_v53 }
  0xa5   :  { %v740_v57 = vadd.f32 %v739_v50, %v677_v55  ;;  %587 = vst [vmem:[%s1757_s4 + $0x190] sm:$0xff] %v1376_v18 }
  0xa9   :  { %v1317_v6 = vpop.f32.mrf.mxu2  ;;  %v1397_v22 = vpop.f32.mrf.mxu3 }
  0xaa   :  { %v387_v58 = vpop.f32.mrf.mxu0  ;;  %v1274_v59 = vpop.f32.mrf.mxu1  ;;  %572 = vst [vmem:[%s1757_s4 + $0x118] sm:$0xff] %v1317_v6 }
  0xab   :  { %541 = vst [vmem:[%s1757_s4 + $0x20] sm:$0xff] %v387_v58  ;;  %v1279_v60 = vadd.f32 %v604_v54, %v387_v58  ;;  %v678_v61 = vmul.f32 %v387_v58, %v387_v58 }
  0xac   :  { %557 = vst [vmem:[%s1757_s4 + $0xa0] sm:$0xff] %v1274_v59 }
  0xad   :  { %v1287_v63 = vadd.f32 %v740_v57, %v678_v61  ;;  %588 = vst [vmem:[%s1757_s4 + $0x198] sm:$0xff] %v1397_v22 }
  0xb1   :  { %v1332_v9 = vpop.f32.mrf.mxu2  ;;  %v1418_v26 = vpop.f32.mrf.mxu3 }
  0xb2   :  { %v389_v1 = vpop.f32.mrf.mxu0  ;;  %v1297_v2 = vpop.f32.mrf.mxu1  ;;  %573 = vst [vmem:[%s1757_s4 + $0x120] sm:$0xff] %v1332_v9 }
  0xb3   :  { %542 = vst [vmem:[%s1757_s4 + $0x28] sm:$0xff] %v389_v1  ;;  %v679_v31 = vmul.f32 %v389_v1, %v389_v1  ;;  %v606_v32 = vadd.f32 %v1279_v60, %v389_v1 }
  0xb4   :  { %558 = vst [vmem:[%s1757_s4 + $0xa8] sm:$0xff] %v1297_v2 }
  0xb5   :  { %589 = vst [vmem:[%s1757_s4 + $0x1a0] sm:$0xff] %v1418_v26  ;;  %v742_v34 = vadd.f32 %v1287_v63, %v679_v31 }
  0xb9   :  { %v1353_v13 = vpop.f32.mrf.mxu2  ;;  %v1439_v30 = vpop.f32.mrf.mxu3 }
  0xba   :  { %v392_v4 = vpop.f32.mrf.mxu0  ;;  %v1312_v5 = vpop.f32.mrf.mxu1  ;;  %574 = vst [vmem:[%s1757_s4 + $0x128] sm:$0xff] %v1353_v13 }
  0xbb   :  { %543 = vst [vmem:[%s1757_s4 + $0x30] sm:$0xff] %v392_v4  ;;  %v680_v33 = vmul.f32 %v392_v4, %v392_v4  ;;  %v607_v35 = vadd.f32 %v606_v32, %v392_v4 }
  0xbc   :  { %559 = vst [vmem:[%s1757_s4 + $0xb0] sm:$0xff] %v1312_v5 }
  0xbd   :  { %590 = vst [vmem:[%s1757_s4 + $0x1a8] sm:$0xff] %v1439_v30  ;;  %v743_v40 = vadd.f32 %v742_v34, %v680_v33 }
  0xc1   :  { %v1374_v17 = vpop.f32.mrf.mxu2  ;;  %v1462_v45 = vpop.f32.mrf.mxu3 }
  0xc2   :  { %v394_v7 = vpop.f32.mrf.mxu0  ;;  %v1327_v8 = vpop.f32.mrf.mxu1  ;;  %575 = vst [vmem:[%s1757_s4 + $0x130] sm:$0xff] %v1374_v17 }
  0xc3   :  { %544 = vst [vmem:[%s1757_s4 + $0x38] sm:$0xff] %v394_v7  ;;  %v681_v36 = vmul.f32 %v394_v7, %v394_v7  ;;  %v608_v42 = vadd.f32 %v607_v35, %v394_v7 }
  0xc4   :  { %560 = vst [vmem:[%s1757_s4 + $0xb8] sm:$0xff] %v1327_v8 }
  0xc5   :  { %v744_v46 = vadd.f32 %v743_v40, %v681_v36  ;;  %591 = vst [vmem:[%s1757_s4 + $0x1b0] sm:$0xff] %v1462_v45 }
  0xc9   :  { %v1395_v21 = vpop.f32.mrf.mxu2  ;;  %v1483_v4 = vpop.f32.mrf.mxu3 }
  0xca   :  { %v397_v11 = vpop.f32.mrf.mxu0  ;;  %v1348_v12 = vpop.f32.mrf.mxu1  ;;  %576 = vst [vmem:[%s1757_s4 + $0x138] sm:$0xff] %v1395_v21 }
  0xcb   :  { %545 = vst [vmem:[%s1757_s4 + $0x40] sm:$0xff] %v397_v11  ;;  %v682_v43 = vmul.f32 %v397_v11, %v397_v11  ;;  %v609_v48 = vadd.f32 %v608_v42, %v397_v11 }
  0xcc   :  { %561 = vst [vmem:[%s1757_s4 + $0xc0] sm:$0xff] %v1348_v12 }
  0xcd   :  { %v745_v50 = vadd.f32 %v744_v46, %v682_v43  ;;  %592 = vst [vmem:[%s1757_s4 + $0x1b8] sm:$0xff] %v1483_v4 }
  0xd1   :  { %v1416_v25 = vpop.f32.mrf.mxu2  ;;  %v1504_v43 = vpop.f32.mrf.mxu3 }
  0xd2   :  { %v399_v15 = vpop.f32.mrf.mxu0  ;;  %v1369_v16 = vpop.f32.mrf.mxu1  ;;  %577 = vst [vmem:[%s1757_s4 + $0x140] sm:$0xff] %v1416_v25 }
  0xd3   :  { %546 = vst [vmem:[%s1757_s4 + $0x48] sm:$0xff] %v399_v15  ;;  %v683_v49 = vmul.f32 %v399_v15, %v399_v15  ;;  %v610_v51 = vadd.f32 %v609_v48, %v399_v15 }
  0xd4   :  { %562 = vst [vmem:[%s1757_s4 + $0xc8] sm:$0xff] %v1369_v16 }
  0xd5   :  { %v746_v54 = vadd.f32 %v745_v50, %v683_v49  ;;  %593 = vst [vmem:[%s1757_s4 + $0x1c0] sm:$0xff] %v1504_v43  ;;  %v691_v49 = vmul.f32 %v1237_v41, %v1237_v41 }
  0xd9   :  { %v1437_v29 = vpop.f32.mrf.mxu2 }
  0xda   :  { %v402_v19 = vpop.f32.mrf.mxu0  ;;  %v1390_v20 = vpop.f32.mrf.mxu1  ;;  %578 = vst [vmem:[%s1757_s4 + $0x148] sm:$0xff] %v1437_v29 }
  0xdb   :  { %547 = vst [vmem:[%s1757_s4 + $0x50] sm:$0xff] %v402_v19  ;;  %v684_v52 = vmul.f32 %v402_v19, %v402_v19  ;;  %v611_v55 = vadd.f32 %v610_v51, %v402_v19 }
  0xdc   :  { %563 = vst [vmem:[%s1757_s4 + $0xd0] sm:$0xff] %v1390_v20 }
  0xdd   :  { %v747_v61 = vadd.f32 %v746_v54, %v684_v52 }
  0xe1   :  { %v1460_v44 = vpop.f32.mrf.mxu2 }
  0xe2   :  { %v404_v23 = vpop.f32.mrf.mxu0  ;;  %v1411_v24 = vpop.f32.mrf.mxu1  ;;  %579 = vst [vmem:[%s1757_s4 + $0x150] sm:$0xff] %v1460_v44 }
  0xe3   :  { %548 = vst [vmem:[%s1757_s4 + $0x58] sm:$0xff] %v404_v23  ;;  %v685_v57 = vmul.f32 %v404_v23, %v404_v23  ;;  %v612_v63 = vadd.f32 %v611_v55, %v404_v23  ;;  %v693_v55 = vmul.f32 %v1259_v53, %v1259_v53 }
  0xe4   :  { %564 = vst [vmem:[%s1757_s4 + $0xd8] sm:$0xff] %v1411_v24 }
  0xe5   :  { %v748_v7 = vadd.f32 %v747_v61, %v685_v57 }
  0xe9   :  { %v1481_v1 = vpop.f32.mrf.mxu2 }
  0xea   :  { %v407_v27 = vpop.f32.mrf.mxu0  ;;  %v1432_v28 = vpop.f32.mrf.mxu1  ;;  %580 = vst [vmem:[%s1757_s4 + $0x158] sm:$0xff] %v1481_v1 }
  0xeb   :  { %549 = vst [vmem:[%s1757_s4 + $0x60] sm:$0xff] %v407_v27  ;;  %v686_v0 = vmul.f32 %v407_v27, %v407_v27  ;;  %v613_v11 = vadd.f32 %v612_v63, %v407_v27  ;;  %v1532_v63 = vpop.f32.mrf.mxu3 }
  0xec   :  { %565 = vst [vmem:[%s1757_s4 + $0xe0] sm:$0xff] %v1432_v28 }
  0xed   :  { %v749_v19 = vadd.f32 %v748_v7, %v686_v0  ;;  %594 = vst [vmem:[%s1757_s4 + $0x1c8] sm:$0xff] %v1532_v63 }
  0xf1   :  { %v1502_v42 = vpop.f32.mrf.mxu2 }
  0xf2   :  { %v409_v38 = vpop.f32.mrf.mxu0  ;;  %v1455_v39 = vpop.f32.mrf.mxu1  ;;  %581 = vst [vmem:[%s1757_s4 + $0x160] sm:$0xff] %v1502_v42 }
  0xf3   :  { %550 = vst [vmem:[%s1757_s4 + $0x68] sm:$0xff] %v409_v38  ;;  %v687_v15 = vmul.f32 %v409_v38, %v409_v38  ;;  %v614_v23 = vadd.f32 %v613_v11, %v409_v38  ;;  %v690_v38 = vmul.f32 %v1220_v37, %v1220_v37 }
  0xf4   :  { %566 = vst [vmem:[%s1757_s4 + $0xe8] sm:$0xff] %v1455_v39 }
  0xf5   :  { %v750_v32 = vadd.f32 %v749_v19, %v687_v15  ;;  %v696_v15 = vmul.f32 %v1312_v5, %v1312_v5 }
  0xf9   :  { %v1530_v61 = vpop.f32.mrf.mxu2 }
  0xfa   :  { %v412_v58 = vpop.f32.mrf.mxu0  ;;  %v1476_v60 = vpop.f32.mrf.mxu1  ;;  %582 = vst [vmem:[%s1757_s4 + $0x168] sm:$0xff] %v1530_v61 }
  0xfb   :  { %551 = vst [vmem:[%s1757_s4 + $0x70] sm:$0xff] %v412_v58  ;;  %v688_v31 = vmul.f32 %v412_v58, %v412_v58  ;;  %v615_v33 = vadd.f32 %v614_v23, %v412_v58 }
  0xfc   :  { %567 = vst [vmem:[%s1757_s4 + $0xf0] sm:$0xff] %v1476_v60 }
  0xfd   :  { %v751_v27 = vadd.f32 %v750_v32, %v688_v31 }
 0x102   :  { %v414_v34 = vpop.f32.mrf.mxu0  ;;  %v1497_v35 = vpop.f32.mrf.mxu1 }
 0x103   :  { %552 = vst [vmem:[%s1757_s4 + $0x78] sm:$0xff] %v414_v34  ;;  %v616_v36 = vadd.f32 %v615_v33, %v414_v34  ;;  %v689_v40 = vmul.f32 %v414_v34, %v414_v34  ;;  %v1554_v33 = vpop.f32.mrf.mxu2  ;;  %v1556_v34 = vpop.f32.mrf.mxu3 }
 0x104   :  { %568 = vst [vmem:[%s1757_s4 + $0xf8] sm:$0xff] %v1497_v35 }
 0x105   :  { %v617_v46 = vadd.f32 %v616_v36, %v1220_v37  ;;  %v752_v48 = vadd.f32 %v751_v27, %v689_v40  ;;  %v692_v37 = vmul.f32 %v1246_v47, %v1246_v47  ;;  %583 = vst [vmem:[%s1757_s4 + $0x170] sm:$0xff] %v1554_v33 }
 0x106   :  { %595 = vst [vmem:[%s1757_s4 + $0x1d0] sm:$0xff] %v1556_v34 }
 0x107   :  { %v618_v50 = vadd.f32 %v617_v46, %v1237_v41  ;;  %v753_v51 = vadd.f32 %v752_v48, %v690_v38  ;;  %v694_v41 = vmul.f32 %v1274_v59, %v1274_v59  ;;  %v700_v38 = vmul.f32 %v1390_v20, %v1390_v20 }
 0x109   :  { %v619_v52 = vadd.f32 %v618_v50, %v1246_v47  ;;  %v754_v54 = vadd.f32 %v753_v51, %v691_v49 }
 0x10b   :  { %v620_v57 = vadd.f32 %v619_v52, %v1259_v53  ;;  %v755_v58 = vadd.f32 %v754_v54, %v692_v37  ;;  %v695_v53 = vmul.f32 %v1297_v2, %v1297_v2  ;;  %v1578_v51 = vpop.f32.mrf.mxu2  ;;  %v1580_v37 = vpop.f32.mrf.mxu3 }
 0x10c   :  { %584 = vst [vmem:[%s1757_s4 + $0x178] sm:$0xff] %v1578_v51 }
 0x10d   :  { %v621_v47 = vadd.f32 %v620_v57, %v1274_v59  ;;  %v756_v0 = vadd.f32 %v755_v58, %v693_v55  ;;  %v697_v59 = vmul.f32 %v1327_v8, %v1327_v8  ;;  %596 = vst [vmem:[%s1757_s4 + $0x1d8] sm:$0xff] %v1580_v37  ;;  %v703_v55 = vmul.f32 %v1455_v39, %v1455_v39 }
 0x10f   :  { %v622_v7 = vadd.f32 %v621_v47, %v1297_v2  ;;  %v757_v11 = vadd.f32 %v756_v0, %v694_v41  ;;  %v698_v2 = vmul.f32 %v1348_v12, %v1348_v12  ;;  %v704_v41 = vmul.f32 %v1476_v60, %v1476_v60 }
 0x110   :  { %v705_v0 = vmul.f32 %v1497_v35, %v1497_v35 }
 0x111   :  { %v758_v19 = vadd.f32 %v757_v11, %v695_v53  ;;  %v623_v23 = vadd.f32 %v622_v7, %v1312_v5 }
 0x113   :  { %v624_v31 = vadd.f32 %v623_v23, %v1327_v8  ;;  %v759_v32 = vadd.f32 %v758_v19, %v696_v15  ;;  %v699_v8 = vmul.f32 %v1369_v16, %v1369_v16  ;;  %v1602_v53 = vpop.f32.mrf.mxu3 }
 0x114   :  { %597 = vst [vmem:[%s1757_s4 + $0x1e0] sm:$0xff] %v1602_v53 }
 0x115   :  { %v625_v5 = vadd.f32 %v624_v31, %v1348_v12  ;;  %v760_v27 = vadd.f32 %v759_v32, %v697_v59  ;;  %v701_v12 = vmul.f32 %v1411_v24, %v1411_v24  ;;  %v709_v31 = vmul.f32 %v1317_v6, %v1317_v6 }
 0x117   :  { %v626_v36 = vadd.f32 %v625_v5, %v1369_v16  ;;  %v761_v40 = vadd.f32 %v760_v27, %v698_v2  ;;  %v711_v27 = vmul.f32 %v1353_v13, %v1353_v13 }
 0x119   :  { %v627_v46 = vadd.f32 %v626_v36, %v1390_v20  ;;  %v762_v48 = vadd.f32 %v761_v40, %v699_v8  ;;  %v702_v20 = vmul.f32 %v1432_v28, %v1432_v28  ;;  %v712_v36 = vmul.f32 %v1374_v17, %v1374_v17 }
 0x11b   :  { %v628_v49 = vadd.f32 %v627_v46, %v1411_v24  ;;  %v763_v50 = vadd.f32 %v762_v48, %v700_v38  ;;  %v713_v46 = vmul.f32 %v1395_v21, %v1395_v21 }
 0x11d   :  { %v629_v16 = vadd.f32 %v628_v49, %v1432_v28  ;;  %v764_v52 = vadd.f32 %v763_v50, %v701_v12 }
 0x11f   :  { %v765_v24 = vadd.f32 %v764_v52, %v702_v20  ;;  %v630_v54 = vadd.f32 %v629_v16, %v1455_v39  ;;  %v706_v39 = vmul.f32 %v1264_v56, %v1264_v56  ;;  %v716_v20 = vmul.f32 %v1460_v44, %v1460_v44 }
 0x121   :  { %v766_v57 = vadd.f32 %v765_v24, %v703_v55  ;;  %v631_v58 = vadd.f32 %v630_v54, %v1476_v60  ;;  %v707_v60 = vmul.f32 %v1281_v62, %v1281_v62  ;;  %v717_v55 = vmul.f32 %v1481_v1, %v1481_v1 }
 0x123   :  { %v767_v47 = vadd.f32 %v766_v57, %v704_v41  ;;  %v632_v28 = vadd.f32 %v631_v58, %v1497_v35  ;;  %v708_v35 = vmul.f32 %v1302_v3, %v1302_v3 }
 0x125   :  { %v633_v7 = vadd.f32 %v632_v28, %v1264_v56  ;;  %v768_v11 = vadd.f32 %v767_v47, %v705_v0  ;;  %v1620_v56 = vpop.f32.mrf.mxu3 }
 0x126   :  { %598 = vst [vmem:[%s1757_s4 + $0x1e8] sm:$0xff] %v1620_v56 }
 0x127   :  { %v634_v15 = vadd.f32 %v633_v7, %v1281_v62  ;;  %v769_v19 = vadd.f32 %v768_v11, %v706_v39  ;;  %v710_v62 = vmul.f32 %v1332_v9, %v1332_v9  ;;  %v720_v39 = vmul.f32 %v1554_v33, %v1554_v33 }
 0x129   :  { %v635_v23 = vadd.f32 %v634_v15, %v1302_v3  ;;  %v770_v59 = vadd.f32 %v769_v19, %v707_v60  ;;  %v721_v60 = vmul.f32 %v1578_v51, %v1578_v51  ;;  %v1067_v15 = vmov 0.0  }
 0x12a   :  { %24 = vst [vmem:[%s1758_s5] sm:$0x3] %v1067_v15 }
 0x12b   :  { %v636_v32 = vadd.f32 %v635_v23, %v1317_v6  ;;  %v771_v2 = vadd.f32 %v770_v59, %v708_v35 }
 0x12d   :  { %v637_v5 = vadd.f32 %v636_v32, %v1332_v9  ;;  %v772_v3 = vadd.f32 %v771_v2, %v709_v31  ;;  %v1638_v9 = vpop.f32.mrf.mxu3  ;;  %v725_v32 = vmul.f32 %v1397_v22, %v1397_v22 }
 0x12e   :  { %599 = vst [vmem:[%s1757_s4 + $0x1f0] sm:$0xff] %v1638_v9 }
 0x12f   :  { %v638_v8 = vadd.f32 %v637_v5, %v1353_v13  ;;  %v773_v6 = vadd.f32 %v772_v3, %v710_v62  ;;  %v714_v13 = vmul.f32 %v1416_v25, %v1416_v25 }
 0x131   :  { %v774_v40 = vadd.f32 %v773_v6, %v711_v27  ;;  %v639_v38 = vadd.f32 %v638_v8, %v1374_v17  ;;  %v715_v17 = vmul.f32 %v1437_v29, %v1437_v29 }
 0x133   :  { %v640_v48 = vadd.f32 %v639_v38, %v1395_v21  ;;  %v775_v12 = vadd.f32 %v774_v40, %v712_v36 }
 0x135   :  { %v641_v49 = vadd.f32 %v640_v48, %v1416_v25  ;;  %v776_v50 = vadd.f32 %v775_v12, %v713_v46  ;;  %v1656_v25 = vpop.f32.mrf.mxu3 }
 0x136   :  { %600 = vst [vmem:[%s1757_s4 + $0x1f8] sm:$0xff] %v1656_v25 }
 0x137   :  { %v642_v16 = vadd.f32 %v641_v49, %v1437_v29  ;;  %v777_v21 = vadd.f32 %v776_v50, %v714_v13 }
 0x139   :  { %v643_v52 = vadd.f32 %v642_v16, %v1460_v44  ;;  %v778_v24 = vadd.f32 %v777_v21, %v715_v17  ;;  %v718_v44 = vmul.f32 %v1502_v42, %v1502_v42  ;;  %v733_v17 = vmul.f32 %v1580_v37, %v1580_v37 }
 0x13b   :  { %v644_v54 = vadd.f32 %v643_v52, %v1481_v1  ;;  %v779_v57 = vadd.f32 %v778_v24, %v716_v20  ;;  %v719_v1 = vmul.f32 %v1530_v61, %v1530_v61  ;;  %v734_v20 = vmul.f32 %v1602_v53, %v1602_v53 }
 0x13c   :  { %v735_v24 = vmul.f32 %v1620_v56, %v1620_v56 }
 0x13d   :  { %v780_v29 = vadd.f32 %v779_v57, %v717_v55  ;;  %v645_v58 = vadd.f32 %v644_v54, %v1502_v42  ;;  %v722_v42 = vmul.f32 %v1334_v10, %v1334_v10 }
 0x13f   :  { %v781_v41 = vadd.f32 %v780_v29, %v718_v44  ;;  %v646_v47 = vadd.f32 %v645_v58, %v1530_v61 }
 0x141   :  { %v782_v28 = vadd.f32 %v781_v41, %v719_v1  ;;  %v647_v0 = vadd.f32 %v646_v47, %v1554_v33  ;;  %v723_v33 = vmul.f32 %v1355_v14, %v1355_v14 }
 0x143   :  { %v783_v7 = vadd.f32 %v782_v28, %v720_v39  ;;  %v648_v11 = vadd.f32 %v647_v0, %v1578_v51  ;;  %v724_v51 = vmul.f32 %v1376_v18, %v1376_v18 }
 0x145   :  { %v649_v61 = vadd.f32 %v648_v11, %v1334_v10  ;;  %v784_v19 = vadd.f32 %v783_v7, %v721_v60  ;;  %v726_v10 = vmul.f32 %v1418_v26, %v1418_v26 }
 0x147   :  { %v650_v35 = vadd.f32 %v649_v61, %v1355_v14  ;;  %v785_v23 = vadd.f32 %v784_v19, %v722_v42  ;;  %v727_v14 = vmul.f32 %v1439_v30, %v1439_v30 }
 0x149   :  { %v651_v59 = vadd.f32 %v650_v35, %v1376_v18  ;;  %v786_v31 = vadd.f32 %v785_v23, %v723_v33  ;;  %v728_v18 = vmul.f32 %v1462_v45, %v1462_v45 }
 0x14b   :  { %v652_v2 = vadd.f32 %v651_v59, %v1397_v22  ;;  %v787_v62 = vadd.f32 %v786_v31, %v724_v51  ;;  %v729_v22 = vmul.f32 %v1483_v4, %v1483_v4 }
 0x14d   :  { %v653_v5 = vadd.f32 %v652_v2, %v1418_v26  ;;  %v788_v3 = vadd.f32 %v787_v62, %v725_v32  ;;  %v730_v26 = vmul.f32 %v1504_v43, %v1504_v43 }
 0x14f   :  { %v654_v27 = vadd.f32 %v653_v5, %v1439_v30  ;;  %v789_v8 = vadd.f32 %v788_v3, %v726_v10  ;;  %v731_v30 = vmul.f32 %v1532_v63, %v1532_v63 }
 0x151   :  { %v790_v6 = vadd.f32 %v789_v8, %v727_v14  ;;  %v655_v36 = vadd.f32 %v654_v27, %v1462_v45  ;;  %v732_v45 = vmul.f32 %v1556_v34, %v1556_v34 }
 0x153   :  { %v656_v40 = vadd.f32 %v655_v36, %v1483_v4  ;;  %v791_v38 = vadd.f32 %v790_v6, %v728_v18 }
 0x155   :  { %v657_v46 = vadd.f32 %v656_v40, %v1504_v43  ;;  %v792_v48 = vadd.f32 %v791_v38, %v729_v22  ;;  %v836_v22 = vld [vmem:[%s1759_s2] sm:$0x1] }
 0x157   :  { %v658_v12 = vadd.f32 %v657_v46, %v1532_v63  ;;  %v793_v13 = vadd.f32 %v792_v48, %v730_v26  ;;  %v838_v26 = vld [vmem:[%s1760_s3] sm:$0x1] }
 0x159   :  { %v659_v49 = vadd.f32 %v658_v12, %v1556_v34  ;;  %v794_v50 = vadd.f32 %v793_v13, %v731_v30  ;;  %v1068_v34 = vmov 512.0  }
 0x15a   :  { %1062 = vrcp.f32 %v1068_v34 }
 0x15b   :  { %v660_v4 = vadd.f32 %v659_v49, %v1580_v37  ;;  %v795_v16 = vadd.f32 %v794_v50, %v732_v45  ;;  %v736_v37 = vmul.f32 %v1638_v9, %v1638_v9 }
 0x15d   :  { %v796_v43 = vadd.f32 %v795_v16, %v733_v17  ;;  %v661_v21 = vadd.f32 %v660_v4, %v1602_v53  ;;  %v737_v53 = vmul.f32 %v1656_v25, %v1656_v25 }
 0x15f   :  { %v797_v63 = vadd.f32 %v796_v43, %v734_v20  ;;  %v662_v52 = vadd.f32 %v661_v21, %v1620_v56 }
 0x160   :  { %v1063_v58 = vpop.eup %1062 }
 0x161   :  { %v798_v54 = vadd.f32 %v797_v63, %v735_v24  ;;  %v663_v55 = vadd.f32 %v662_v52, %v1638_v9  ;;  %v814_v56 = vmul.f32 512.0, %v1063_v58  ;;  %v601_v9 = vld [vmem:[%s1758_s5] sm:$0x1]  ;;  %vm818_vm3 = vweird.f32 %v1063_v58 }
 0x163   :  { %v799_v57 = vadd.f32 %v798_v54, %v736_v37  ;;  %v664_v29 = vadd.f32 %v663_v55, %v1656_v25  ;;  %v815_v11 = vsub.f32 1.0, %v814_v56  ;;  %v673_v25 = vld [vmem:[%s1758_s5 + $0x1] sm:$0x1] }
 0x165   :  { %v665_v44 = vrot.slane %v664_v29, 4  ;;  %v800_v41 = vadd.f32 %v799_v57, %v737_v53  ;;  %v816_v19 = vmul.f32 %v1063_v58, %v815_v11 }
 0x167   :  { %v666_v47 = vadd.f32 %v665_v44, %v664_v29  ;;  %v801_v1 = vrot.slane %v800_v41, 4  ;;  %v817_v51 = vadd.f32 %v1063_v58, %v816_v19 }
 0x169   :  { %v667_v28 = vrot.slane %v666_v47, 2  ;;  %v802_v0 = vadd.f32 %v801_v1, %v800_v41  ;;  %v819_v59 = vsel %vm818_vm3, %v1063_v58, %v817_v51 }
 0x16b   :  { %v668_v39 = vadd.f32 %v667_v28, %v666_v47  ;;  %v803_v7 = vrot.slane %v802_v0, 2 }
 0x16d   :  { %v669_v60 = vrot.slane %v668_v39, 1  ;;  %v804_v15 = vadd.f32 %v803_v7, %v802_v0 }
 0x16f   :  { %v670_v42 = vadd.f32 %v669_v60, %v668_v39  ;;  %v805_v61 = vrot.slane %v804_v15, 1 }
 0x171   :  { %v671_v33 = vadd.f32 %v670_v42, %v601_v9  ;;  %v806_v35 = vadd.f32 %v805_v61, %v804_v15 }
 0x173   :  { %672 = vst [vmem:[%s1758_s5] sm:$0x1] %v671_v33  ;;  %v807_v23 = vadd.f32 %v806_v35, %v673_v25 }
 0x175   :  { %808 = vst [vmem:[%s1758_s5 + $0x1] sm:$0x1] %v807_v23 }
 0x17a   :  { %v812_v31 = vld [vmem:[%s1758_s5] sm:$0x1] }
 0x17b   :  { %v820_v32 = vmul.f32 %v819_v59, %v812_v31 }
 0x17c   :  { %v821_v2 = vld [vmem:[%s1758_s5 + $0x1] sm:$0x1] }
 0x17d   :  { %v822_v62 = vmul.f32 %v821_v2, %v819_v59  ;;  %v823_v10 = vmul.f32 %v820_v32, %v820_v32 }
 0x17f   :  { %v824_v5 = vsub.f32 %v822_v62, %v823_v10 }
 0x181   :  { %v825_v3 = vadd.f32 1e-05, %v824_v5 }
 0x183   :  { %1064 = vrsqrt.f32 %v825_v3  ;;  %vm832_vm5 = vweird.f32 %v825_v3 }
 0x189   :  { %v1065_v14 = vpop.eup %1064 }
 0x18a   :  { %v827_v27 = vmul.f32 %v1065_v14, %v825_v3  ;;  %vm833_vm4 = vweird.f32 %v1065_v14 }
 0x18b   :  { %vm834_vm6 = vmor %vm832_vm5, %vm833_vm4 }
 0x18c   :  { %v828_v8 = vmul.f32 %v1065_v14, %v827_v27 }
 0x18e   :  { %v829_v18 = vmul.f32 0.5, %v828_v8 }
 0x190   :  { %v830_v6 = vsub.f32 1.5, %v829_v18 }
 0x192   :  { %v831_v36 = vmul.f32 %v1065_v14, %v830_v6 }
 0x194   :  { %v835_v40 = vsel %vm834_vm6, %v1065_v14, %v831_v36 }
 0x195   :  { %v837_v38 = vmul.f32 %v836_v22, %v835_v40 }
 0x197   :  { %v839_v46 = vmul.f32 %v837_v38, %v820_v32  ;;  %841 = vst [vmem:[%s1758_s5] sm:$0x1] %v837_v38 }
 0x199   :  { %v840_v48 = vsub.f32 %v838_v26, %v839_v46 }
 0x19b   :  { %842 = vst [vmem:[%s1758_s5 + $0x1] sm:$0x1] %v840_v48 }

// kernel: _lambda_.20
= control target key start
LH: loop header
LB: loop body
LE: loop exit
PB: predicated region body
PF: predicated region fallthrough
CT: control target
= control target key end

     0   :  { %s1206_s0 = inlined_call_operand.vmem [shape: f32[512,128], index: 0, kind: input, shape index: {}]   ;;  %s1207_s1 = inlined_call_operand.vmem [shape: f32[2,128], index: 1, kind: input, shape index: {}]   ;;  %s1208_s2 = inlined_call_operand.vmem [shape: f32[512,128], index: 2, kind: input, shape index: {}]   ;;  %s1209_s3 = inlined_call_operand.vmem [shape: f32[512,128], index: 3, kind: output, shape index: {}]  }
   0x1   :  { %v14_v0 = vld [vmem:[%s1206_s0] sm:$0xff]  ;;  %v15_v4 = vld [vmem:[%s1206_s0 + $0x8] sm:$0xff]  ;;  %v16_v5 = vld [vmem:[%s1206_s0 + $0x10] sm:$0xff] }
   0x2   :  { %v498_v1 = vld [vmem:[%s1207_s1] ss:$0 sm:$0xff]  ;;  %v503_v2 = vld [vmem:[%s1207_s1 + $0x1] ss:$0 sm:$0xff]  ;;  %v211_v8 = vld [vmem:[%s1208_s2 + $0x8] sm:$0xff] }
   0x3   :  { %v80_v3 = vmul.f32 %v498_v1, %v14_v0  ;;  %v210_v6 = vld [vmem:[%s1208_s2] sm:$0xff]  ;;  %v81_v7 = vmul.f32 %v498_v1, %v15_v4  ;;  %v82_v9 = vmul.f32 %v498_v1, %v16_v5  ;;  %v17_v10 = vld [vmem:[%s1206_s0 + $0x18] sm:$0xff]  ;;  %v212_v12 = vld [vmem:[%s1208_s2 + $0x10] sm:$0xff] }
   0x4   :  { %v83_v13 = vmul.f32 %v498_v1, %v17_v10  ;;  %v18_v14 = vld [vmem:[%s1206_s0 + $0x20] sm:$0xff]  ;;  %v19_v15 = vld [vmem:[%s1206_s0 + $0x28] sm:$0xff]  ;;  %v213_v18 = vld [vmem:[%s1208_s2 + $0x18] sm:$0xff] }
   0x5   :  { %v146_v11 = vadd.f32 %v503_v2, %v80_v3  ;;  %v147_v16 = vadd.f32 %v503_v2, %v81_v7  ;;  %v148_v17 = vadd.f32 %v503_v2, %v82_v9  ;;  %v84_v19 = vmul.f32 %v498_v1, %v18_v14  ;;  %v20_v21 = vld [vmem:[%s1206_s0 + $0x30] sm:$0xff]  ;;  %v214_v24 = vld [vmem:[%s1208_s2 + $0x20] sm:$0xff]  ;;  %v215_v25 = vld [vmem:[%s1208_s2 + $0x28] sm:$0xff] }
   0x6   :  { %v85_v20 = vmul.f32 %v498_v1, %v19_v15  ;;  %v149_v23 = vadd.f32 %v503_v2, %v83_v13  ;;  %v86_v26 = vmul.f32 %v498_v1, %v20_v21  ;;  %v21_v27 = vld [vmem:[%s1206_s0 + $0x38] sm:$0xff]  ;;  %v216_v32 = vld [vmem:[%s1208_s2 + $0x30] sm:$0xff]  ;;  %v22_v33 = vld [vmem:[%s1206_s0 + $0x40] sm:$0xff] }
   0x7   :  { %v274_v22 = vadd.f32 %v210_v6, %v146_v11  ;;  %v275_v28 = vadd.f32 %v211_v8, %v147_v16  ;;  %v276_v29 = vadd.f32 %v212_v12, %v148_v17  ;;  %v150_v30 = vadd.f32 %v503_v2, %v84_v19  ;;  %v23_v38 = vld [vmem:[%s1206_s0 + $0x48] sm:$0xff]  ;;  %v24_v39 = vld [vmem:[%s1206_s0 + $0x50] sm:$0xff]  ;;  %v217_v44 = vld [vmem:[%s1208_s2 + $0x38] sm:$0xff] }
   0x8   :  { %v151_v31 = vadd.f32 %v503_v2, %v85_v20  ;;  %v277_v35 = vadd.f32 %v213_v18, %v149_v23  ;;  %v152_v36 = vadd.f32 %v503_v2, %v86_v26  ;;  %v87_v37 = vmul.f32 %v498_v1, %v21_v27  ;;  %v25_v45 = vld [vmem:[%s1206_s0 + $0x58] sm:$0xff]  ;;  %v26_v50 = vld [vmem:[%s1206_s0 + $0x60] sm:$0xff]  ;;  %v27_v51 = vld [vmem:[%s1206_s0 + $0x68] sm:$0xff] }
   0x9   :  { %v338_v34 = vmax.f32 %v274_v22, 0.0  ;;  %v339_v40 = vmax.f32 %v275_v28, 0.0  ;;  %v340_v41 = vmax.f32 %v276_v29, 0.0  ;;  %v278_v42 = vadd.f32 %v214_v24, %v150_v30  ;;  %v218_v54 = vld [vmem:[%s1208_s2 + $0x40] sm:$0xff]  ;;  %v28_v57 = vld [vmem:[%s1206_s0 + $0x70] sm:$0xff]  ;;  %v219_v61 = vld [vmem:[%s1208_s2 + $0x48] sm:$0xff] }
   0xa   :  { %v279_v43 = vadd.f32 %v215_v25, %v151_v31  ;;  %v341_v46 = vmax.f32 %v277_v35, 0.0  ;;  %v280_v47 = vadd.f32 %v216_v32, %v152_v36  ;;  %v153_v48 = vadd.f32 %v503_v2, %v87_v37  ;;  %v220_v62 = vld [vmem:[%s1208_s2 + $0x50] sm:$0xff]  ;;  %v221_v4 = vld [vmem:[%s1208_s2 + $0x58] sm:$0xff]  ;;  %v222_v11 = vld [vmem:[%s1208_s2 + $0x60] sm:$0xff] }
   0xb   :  { %402 = vst [vmem:[%s1209_s3] sm:$0xff] %v338_v34  ;;  %v88_v49 = vmul.f32 %v498_v1, %v22_v33  ;;  %v342_v52 = vmax.f32 %v278_v42, 0.0  ;;  %v89_v55 = vmul.f32 %v498_v1, %v23_v38  ;;  %v90_v56 = vmul.f32 %v498_v1, %v24_v39  ;;  %v29_v7 = vld [vmem:[%s1206_s0 + $0x78] sm:$0xff]  ;;  %v223_v12 = vld [vmem:[%s1208_s2 + $0x68] sm:$0xff]  ;;  %v224_v18 = vld [vmem:[%s1208_s2 + $0x70] sm:$0xff] }
   0xc   :  { %403 = vst [vmem:[%s1209_s3 + $0x8] sm:$0xff] %v339_v40  ;;  %v343_v53 = vmax.f32 %v279_v43, 0.0  ;;  %v344_v58 = vmax.f32 %v280_v47, 0.0  ;;  %v281_v59 = vadd.f32 %v217_v44, %v153_v48  ;;  %v91_v63 = vmul.f32 %v498_v1, %v25_v45  ;;  %v30_v19 = vld [vmem:[%s1206_s0 + $0x80] sm:$0xff]  ;;  %v31_v24 = vld [vmem:[%s1206_s0 + $0x88] sm:$0xff]  ;;  %v32_v25 = vld [vmem:[%s1206_s0 + $0x90] sm:$0xff] }
   0xd   :  { %404 = vst [vmem:[%s1209_s3 + $0x10] sm:$0xff] %v340_v41  ;;  %v154_v60 = vadd.f32 %v503_v2, %v88_v49  ;;  %v155_v0 = vadd.f32 %v503_v2, %v89_v55  ;;  %v156_v3 = vadd.f32 %v503_v2, %v90_v56  ;;  %v92_v5 = vmul.f32 %v498_v1, %v26_v50  ;;  %v225_v30 = vld [vmem:[%s1208_s2 + $0x78] sm:$0xff]  ;;  %v34_v36 = vld [vmem:[%s1206_s0 + $0xa0] sm:$0xff]  ;;  %v35_v37 = vld [vmem:[%s1206_s0 + $0xa8] sm:$0xff] }
   0xe   :  { %405 = vst [vmem:[%s1209_s3 + $0x18] sm:$0xff] %v341_v46  ;;  %v93_v6 = vmul.f32 %v498_v1, %v27_v51  ;;  %v345_v8 = vmax.f32 %v281_v59, 0.0  ;;  %v157_v10 = vadd.f32 %v503_v2, %v91_v63  ;;  %v94_v13 = vmul.f32 %v498_v1, %v28_v57  ;;  %v33_v31 = vld [vmem:[%s1206_s0 + $0x98] sm:$0xff]  ;;  %v226_v40 = vld [vmem:[%s1208_s2 + $0x80] sm:$0xff]  ;;  %v36_v43 = vld [vmem:[%s1206_s0 + $0xb0] sm:$0xff] }
   0xf   :  { %406 = vst [vmem:[%s1209_s3 + $0x20] sm:$0xff] %v342_v52  ;;  %v282_v9 = vadd.f32 %v218_v54, %v154_v60  ;;  %v283_v14 = vadd.f32 %v219_v61, %v155_v0  ;;  %v284_v15 = vadd.f32 %v220_v62, %v156_v3  ;;  %v158_v16 = vadd.f32 %v503_v2, %v92_v5  ;;  %v227_v47 = vld [vmem:[%s1208_s2 + $0x88] sm:$0xff]  ;;  %v228_v48 = vld [vmem:[%s1208_s2 + $0x90] sm:$0xff]  ;;  %v229_v52 = vld [vmem:[%s1208_s2 + $0x98] sm:$0xff] }
  0x10   :  { %407 = vst [vmem:[%s1209_s3 + $0x28] sm:$0xff] %v343_v53  ;;  %v159_v17 = vadd.f32 %v503_v2, %v93_v6  ;;  %v285_v21 = vadd.f32 %v221_v4, %v157_v10  ;;  %v160_v22 = vadd.f32 %v503_v2, %v94_v13  ;;  %v95_v23 = vmul.f32 %v498_v1, %v29_v7  ;;  %v37_v55 = vld [vmem:[%s1206_s0 + $0xb8] sm:$0xff]  ;;  %v230_v59 = vld [vmem:[%s1208_s2 + $0xa0] sm:$0xff]  ;;  %v231_v60 = vld [vmem:[%s1208_s2 + $0xa8] sm:$0xff] }
  0x11   :  { %408 = vst [vmem:[%s1209_s3 + $0x30] sm:$0xff] %v344_v58  ;;  %v346_v20 = vmax.f32 %v282_v9, 0.0  ;;  %v347_v26 = vmax.f32 %v283_v14, 0.0  ;;  %v348_v27 = vmax.f32 %v284_v15, 0.0  ;;  %v286_v28 = vadd.f32 %v222_v11, %v158_v16  ;;  %v232_v4 = vld [vmem:[%s1208_s2 + $0xb0] sm:$0xff]  ;;  %v38_v5 = vld [vmem:[%s1206_s0 + $0xc0] sm:$0xff] }
  0x12   :  { %409 = vst [vmem:[%s1209_s3 + $0x38] sm:$0xff] %v345_v8  ;;  %v287_v29 = vadd.f32 %v223_v12, %v159_v17  ;;  %v349_v32 = vmax.f32 %v285_v21, 0.0  ;;  %v288_v33 = vadd.f32 %v224_v18, %v160_v22  ;;  %v161_v34 = vadd.f32 %v503_v2, %v95_v23  ;;  %v39_v10 = vld [vmem:[%s1206_s0 + $0xc8] sm:$0xff]  ;;  %v40_v11 = vld [vmem:[%s1206_s0 + $0xd0] sm:$0xff]  ;;  %v233_v16 = vld [vmem:[%s1208_s2 + $0xb8] sm:$0xff] }
  0x13   :  { %410 = vst [vmem:[%s1209_s3 + $0x40] sm:$0xff] %v346_v20  ;;  %v96_v35 = vmul.f32 %v498_v1, %v30_v19  ;;  %v350_v38 = vmax.f32 %v286_v28, 0.0  ;;  %v97_v41 = vmul.f32 %v498_v1, %v31_v24  ;;  %v98_v42 = vmul.f32 %v498_v1, %v32_v25  ;;  %v41_v17 = vld [vmem:[%s1206_s0 + $0xd8] sm:$0xff]  ;;  %v42_v22 = vld [vmem:[%s1206_s0 + $0xe0] sm:$0xff]  ;;  %v43_v23 = vld [vmem:[%s1206_s0 + $0xe8] sm:$0xff] }
  0x14   :  { %411 = vst [vmem:[%s1209_s3 + $0x48] sm:$0xff] %v347_v26  ;;  %v351_v39 = vmax.f32 %v287_v29, 0.0  ;;  %v352_v44 = vmax.f32 %v288_v33, 0.0  ;;  %v289_v45 = vadd.f32 %v225_v30, %v161_v34  ;;  %v99_v49 = vmul.f32 %v498_v1, %v33_v31  ;;  %v234_v26 = vld [vmem:[%s1208_s2 + $0xc0] sm:$0xff]  ;;  %v44_v29 = vld [vmem:[%s1206_s0 + $0xf0] sm:$0xff]  ;;  %v235_v33 = vld [vmem:[%s1208_s2 + $0xc8] sm:$0xff] }
  0x15   :  { %412 = vst [vmem:[%s1209_s3 + $0x50] sm:$0xff] %v348_v27  ;;  %v162_v46 = vadd.f32 %v503_v2, %v96_v35  ;;  %v163_v50 = vadd.f32 %v503_v2, %v97_v41  ;;  %v164_v51 = vadd.f32 %v503_v2, %v98_v42  ;;  %v100_v53 = vmul.f32 %v498_v1, %v34_v36  ;;  %v236_v34 = vld [vmem:[%s1208_s2 + $0xd0] sm:$0xff]  ;;  %v45_v41 = vld [vmem:[%s1206_s0 + $0xf8] sm:$0xff] }
  0x16   :  { %413 = vst [vmem:[%s1209_s3 + $0x58] sm:$0xff] %v349_v32  ;;  %v101_v54 = vmul.f32 %v498_v1, %v35_v37  ;;  %v353_v56 = vmax.f32 %v289_v45, 0.0  ;;  %v165_v58 = vadd.f32 %v503_v2, %v99_v49  ;;  %v102_v61 = vmul.f32 %v498_v1, %v36_v43  ;;  %v238_v45 = vld [vmem:[%s1208_s2 + $0xe0] sm:$0xff] }
  0x17   :  { %414 = vst [vmem:[%s1209_s3 + $0x60] sm:$0xff] %v350_v38  ;;  %v290_v57 = vadd.f32 %v226_v40, %v162_v46  ;;  %v291_v62 = vadd.f32 %v227_v47, %v163_v50  ;;  %v292_v63 = vadd.f32 %v228_v48, %v164_v51  ;;  %v166_v0 = vadd.f32 %v503_v2, %v100_v53  ;;  %v237_v38 = vld [vmem:[%s1208_s2 + $0xd8] sm:$0xff]  ;;  %v239_v46 = vld [vmem:[%s1208_s2 + $0xe8] sm:$0xff]  ;;  %v46_v53 = vld [vmem:[%s1206_s0 + $0x100] sm:$0xff] }
  0x18   :  { %415 = vst [vmem:[%s1209_s3 + $0x68] sm:$0xff] %v351_v39  ;;  %v167_v3 = vadd.f32 %v503_v2, %v101_v54  ;;  %v293_v7 = vadd.f32 %v229_v52, %v165_v58  ;;  %v168_v8 = vadd.f32 %v503_v2, %v102_v61  ;;  %v103_v9 = vmul.f32 %v498_v1, %v37_v55  ;;  %v240_v52 = vld [vmem:[%s1208_s2 + $0xf0] sm:$0xff]  ;;  %v47_v58 = vld [vmem:[%s1206_s0 + $0x108] sm:$0xff] }
  0x19   :  { %416 = vst [vmem:[%s1209_s3 + $0x70] sm:$0xff] %v352_v44  ;;  %v354_v6 = vmax.f32 %v290_v57, 0.0  ;;  %v355_v12 = vmax.f32 %v291_v62, 0.0  ;;  %v356_v13 = vmax.f32 %v292_v63, 0.0  ;;  %v294_v14 = vadd.f32 %v230_v59, %v166_v0  ;;  %v48_v59 = vld [vmem:[%s1206_s0 + $0x110] sm:$0xff]  ;;  %v241_v0 = vld [vmem:[%s1208_s2 + $0xf8] sm:$0xff] }
  0x1a   :  { %417 = vst [vmem:[%s1209_s3 + $0x78] sm:$0xff] %v353_v56  ;;  %v295_v15 = vadd.f32 %v231_v60, %v167_v3  ;;  %v357_v18 = vmax.f32 %v293_v7, 0.0  ;;  %v296_v19 = vadd.f32 %v232_v4, %v168_v8  ;;  %v169_v20 = vadd.f32 %v503_v2, %v103_v9  ;;  %v49_v3 = vld [vmem:[%s1206_s0 + $0x118] sm:$0xff]  ;;  %v50_v8 = vld [vmem:[%s1206_s0 + $0x120] sm:$0xff]  ;;  %v51_v9 = vld [vmem:[%s1206_s0 + $0x128] sm:$0xff] }
  0x1b   :  { %418 = vst [vmem:[%s1209_s3 + $0x80] sm:$0xff] %v354_v6  ;;  %v104_v21 = vmul.f32 %v498_v1, %v38_v5  ;;  %v358_v24 = vmax.f32 %v294_v14, 0.0  ;;  %v105_v27 = vmul.f32 %v498_v1, %v39_v10  ;;  %v106_v28 = vmul.f32 %v498_v1, %v40_v11 }
  0x1c   :  { %419 = vst [vmem:[%s1209_s3 + $0x88] sm:$0xff] %v355_v12  ;;  %v359_v25 = vmax.f32 %v295_v15, 0.0  ;;  %v360_v30 = vmax.f32 %v296_v19, 0.0  ;;  %v297_v31 = vadd.f32 %v233_v16, %v169_v20  ;;  %v107_v35 = vmul.f32 %v498_v1, %v41_v17  ;;  %v242_v12 = vld [vmem:[%s1208_s2 + $0x100] sm:$0xff]  ;;  %v52_v15 = vld [vmem:[%s1206_s0 + $0x130] sm:$0xff]  ;;  %v243_v19 = vld [vmem:[%s1208_s2 + $0x108] sm:$0xff] }
  0x1d   :  { %420 = vst [vmem:[%s1209_s3 + $0x90] sm:$0xff] %v356_v13  ;;  %v170_v32 = vadd.f32 %v503_v2, %v104_v21  ;;  %v171_v36 = vadd.f32 %v503_v2, %v105_v27  ;;  %v172_v37 = vadd.f32 %v503_v2, %v106_v28  ;;  %v108_v39 = vmul.f32 %v498_v1, %v42_v22  ;;  %v244_v20 = vld [vmem:[%s1208_s2 + $0x110] sm:$0xff]  ;;  %v53_v27 = vld [vmem:[%s1206_s0 + $0x138] sm:$0xff] }
  0x1e   :  { %421 = vst [vmem:[%s1209_s3 + $0x98] sm:$0xff] %v357_v18  ;;  %v109_v40 = vmul.f32 %v498_v1, %v43_v23  ;;  %v361_v42 = vmax.f32 %v297_v31, 0.0  ;;  %v173_v44 = vadd.f32 %v503_v2, %v107_v35  ;;  %v110_v47 = vmul.f32 %v498_v1, %v44_v29  ;;  %v246_v31 = vld [vmem:[%s1208_s2 + $0x120] sm:$0xff] }
  0x1f   :  { %422 = vst [vmem:[%s1209_s3 + $0xa0] sm:$0xff] %v358_v24  ;;  %v298_v43 = vadd.f32 %v234_v26, %v170_v32  ;;  %v299_v48 = vadd.f32 %v235_v33, %v171_v36  ;;  %v300_v49 = vadd.f32 %v236_v34, %v172_v37  ;;  %v174_v50 = vadd.f32 %v503_v2, %v108_v39  ;;  %v245_v24 = vld [vmem:[%s1208_s2 + $0x118] sm:$0xff]  ;;  %v247_v32 = vld [vmem:[%s1208_s2 + $0x128] sm:$0xff]  ;;  %v54_v39 = vld [vmem:[%s1206_s0 + $0x140] sm:$0xff] }
  0x20   :  { %423 = vst [vmem:[%s1209_s3 + $0xa8] sm:$0xff] %v359_v25  ;;  %v175_v51 = vadd.f32 %v503_v2, %v109_v40  ;;  %v301_v55 = vadd.f32 %v237_v38, %v173_v44  ;;  %v176_v56 = vadd.f32 %v503_v2, %v110_v47  ;;  %v111_v57 = vmul.f32 %v498_v1, %v45_v41  ;;  %v248_v38 = vld [vmem:[%s1208_s2 + $0x130] sm:$0xff]  ;;  %v55_v44 = vld [vmem:[%s1206_s0 + $0x148] sm:$0xff] }
  0x21   :  { %424 = vst [vmem:[%s1209_s3 + $0xb0] sm:$0xff] %v360_v30  ;;  %v362_v54 = vmax.f32 %v298_v43, 0.0  ;;  %v363_v60 = vmax.f32 %v299_v48, 0.0  ;;  %v364_v61 = vmax.f32 %v300_v49, 0.0  ;;  %v302_v62 = vadd.f32 %v238_v45, %v174_v50  ;;  %v56_v45 = vld [vmem:[%s1206_s0 + $0x150] sm:$0xff]  ;;  %v249_v50 = vld [vmem:[%s1208_s2 + $0x138] sm:$0xff] }
  0x22   :  { %425 = vst [vmem:[%s1209_s3 + $0xb8] sm:$0xff] %v361_v42  ;;  %v303_v63 = vadd.f32 %v239_v46, %v175_v51  ;;  %v365_v4 = vmax.f32 %v301_v55, 0.0  ;;  %v304_v5 = vadd.f32 %v240_v52, %v176_v56  ;;  %v177_v6 = vadd.f32 %v503_v2, %v111_v57  ;;  %v57_v51 = vld [vmem:[%s1206_s0 + $0x158] sm:$0xff]  ;;  %v58_v56 = vld [vmem:[%s1206_s0 + $0x160] sm:$0xff]  ;;  %v59_v57 = vld [vmem:[%s1206_s0 + $0x168] sm:$0xff] }
  0x23   :  { %426 = vst [vmem:[%s1209_s3 + $0xc0] sm:$0xff] %v362_v54  ;;  %v112_v7 = vmul.f32 %v498_v1, %v46_v53  ;;  %v366_v10 = vmax.f32 %v302_v62, 0.0  ;;  %v113_v13 = vmul.f32 %v498_v1, %v47_v58  ;;  %v114_v14 = vmul.f32 %v498_v1, %v48_v59 }
  0x24   :  { %427 = vst [vmem:[%s1209_s3 + $0xc8] sm:$0xff] %v363_v60  ;;  %v367_v11 = vmax.f32 %v303_v63, 0.0  ;;  %v368_v16 = vmax.f32 %v304_v5, 0.0  ;;  %v305_v17 = vadd.f32 %v241_v0, %v177_v6  ;;  %v115_v21 = vmul.f32 %v498_v1, %v49_v3  ;;  %v250_v60 = vld [vmem:[%s1208_s2 + $0x140] sm:$0xff]  ;;  %v60_v63 = vld [vmem:[%s1206_s0 + $0x170] sm:$0xff]  ;;  %v251_v5 = vld [vmem:[%s1208_s2 + $0x148] sm:$0xff] }
  0x25   :  { %428 = vst [vmem:[%s1209_s3 + $0xd0] sm:$0xff] %v364_v61  ;;  %v178_v18 = vadd.f32 %v503_v2, %v112_v7  ;;  %v179_v22 = vadd.f32 %v503_v2, %v113_v13  ;;  %v180_v23 = vadd.f32 %v503_v2, %v114_v14  ;;  %v116_v25 = vmul.f32 %v498_v1, %v50_v8  ;;  %v252_v6 = vld [vmem:[%s1208_s2 + $0x150] sm:$0xff]  ;;  %v61_v13 = vld [vmem:[%s1206_s0 + $0x178] sm:$0xff] }
  0x26   :  { %429 = vst [vmem:[%s1209_s3 + $0xd8] sm:$0xff] %v365_v4  ;;  %v117_v26 = vmul.f32 %v498_v1, %v51_v9  ;;  %v369_v28 = vmax.f32 %v305_v17, 0.0  ;;  %v181_v30 = vadd.f32 %v503_v2, %v115_v21  ;;  %v118_v33 = vmul.f32 %v498_v1, %v52_v15  ;;  %v254_v17 = vld [vmem:[%s1208_s2 + $0x160] sm:$0xff] }
  0x27   :  { %430 = vst [vmem:[%s1209_s3 + $0xe0] sm:$0xff] %v366_v10  ;;  %v306_v29 = vadd.f32 %v242_v12, %v178_v18  ;;  %v307_v34 = vadd.f32 %v243_v19, %v179_v22  ;;  %v308_v35 = vadd.f32 %v244_v20, %v180_v23  ;;  %v182_v36 = vadd.f32 %v503_v2, %v116_v25  ;;  %v253_v10 = vld [vmem:[%s1208_s2 + $0x158] sm:$0xff]  ;;  %v255_v18 = vld [vmem:[%s1208_s2 + $0x168] sm:$0xff]  ;;  %v62_v25 = vld [vmem:[%s1206_s0 + $0x180] sm:$0xff] }
  0x28   :  { %431 = vst [vmem:[%s1209_s3 + $0xe8] sm:$0xff] %v367_v11  ;;  %v183_v37 = vadd.f32 %v503_v2, %v117_v26  ;;  %v309_v41 = vadd.f32 %v245_v24, %v181_v30  ;;  %v184_v42 = vadd.f32 %v503_v2, %v118_v33  ;;  %v119_v43 = vmul.f32 %v498_v1, %v53_v27  ;;  %v256_v24 = vld [vmem:[%s1208_s2 + $0x170] sm:$0xff]  ;;  %v63_v30 = vld [vmem:[%s1206_s0 + $0x188] sm:$0xff] }
  0x29   :  { %432 = vst [vmem:[%s1209_s3 + $0xf0] sm:$0xff] %v368_v16  ;;  %v370_v40 = vmax.f32 %v306_v29, 0.0  ;;  %v371_v46 = vmax.f32 %v307_v34, 0.0  ;;  %v372_v47 = vmax.f32 %v308_v35, 0.0  ;;  %v310_v48 = vadd.f32 %v246_v31, %v182_v36  ;;  %v64_v31 = vld [vmem:[%s1206_s0 + $0x190] sm:$0xff]  ;;  %v257_v36 = vld [vmem:[%s1208_s2 + $0x178] sm:$0xff] }
  0x2a   :  { %433 = vst [vmem:[%s1209_s3 + $0xf8] sm:$0xff] %v369_v28  ;;  %v311_v49 = vadd.f32 %v247_v32, %v183_v37  ;;  %v373_v52 = vmax.f32 %v309_v41, 0.0  ;;  %v312_v53 = vadd.f32 %v248_v38, %v184_v42  ;;  %v185_v54 = vadd.f32 %v503_v2, %v119_v43  ;;  %v65_v37 = vld [vmem:[%s1206_s0 + $0x198] sm:$0xff]  ;;  %v66_v42 = vld [vmem:[%s1206_s0 + $0x1a0] sm:$0xff]  ;;  %v67_v43 = vld [vmem:[%s1206_s0 + $0x1a8] sm:$0xff] }
  0x2b   :  { %434 = vst [vmem:[%s1209_s3 + $0x100] sm:$0xff] %v370_v40  ;;  %v120_v55 = vmul.f32 %v498_v1, %v54_v39  ;;  %v374_v58 = vmax.f32 %v310_v48, 0.0  ;;  %v121_v61 = vmul.f32 %v498_v1, %v55_v44  ;;  %v122_v62 = vmul.f32 %v498_v1, %v56_v45 }
  0x2c   :  { %435 = vst [vmem:[%s1209_s3 + $0x108] sm:$0xff] %v371_v46  ;;  %v375_v59 = vmax.f32 %v311_v49, 0.0  ;;  %v376_v0 = vmax.f32 %v312_v53, 0.0  ;;  %v313_v3 = vadd.f32 %v249_v50, %v185_v54  ;;  %v123_v7 = vmul.f32 %v498_v1, %v57_v51  ;;  %v258_v46 = vld [vmem:[%s1208_s2 + $0x180] sm:$0xff]  ;;  %v68_v49 = vld [vmem:[%s1206_s0 + $0x1b0] sm:$0xff]  ;;  %v259_v53 = vld [vmem:[%s1208_s2 + $0x188] sm:$0xff] }
  0x2d   :  { %436 = vst [vmem:[%s1209_s3 + $0x110] sm:$0xff] %v372_v47  ;;  %v186_v4 = vadd.f32 %v503_v2, %v120_v55  ;;  %v187_v8 = vadd.f32 %v503_v2, %v121_v61  ;;  %v188_v9 = vadd.f32 %v503_v2, %v122_v62  ;;  %v124_v11 = vmul.f32 %v498_v1, %v58_v56  ;;  %v260_v54 = vld [vmem:[%s1208_s2 + $0x190] sm:$0xff]  ;;  %v69_v61 = vld [vmem:[%s1206_s0 + $0x1b8] sm:$0xff] }
  0x2e   :  { %437 = vst [vmem:[%s1209_s3 + $0x118] sm:$0xff] %v373_v52  ;;  %v125_v12 = vmul.f32 %v498_v1, %v59_v57  ;;  %v377_v14 = vmax.f32 %v313_v3, 0.0  ;;  %v189_v16 = vadd.f32 %v503_v2, %v123_v7  ;;  %v126_v19 = vmul.f32 %v498_v1, %v60_v63  ;;  %v262_v3 = vld [vmem:[%s1208_s2 + $0x1a0] sm:$0xff] }
  0x2f   :  { %438 = vst [vmem:[%s1209_s3 + $0x120] sm:$0xff] %v374_v58  ;;  %v314_v15 = vadd.f32 %v250_v60, %v186_v4  ;;  %v315_v20 = vadd.f32 %v251_v5, %v187_v8  ;;  %v316_v21 = vadd.f32 %v252_v6, %v188_v9  ;;  %v190_v22 = vadd.f32 %v503_v2, %v124_v11  ;;  %v261_v58 = vld [vmem:[%s1208_s2 + $0x198] sm:$0xff]  ;;  %v263_v4 = vld [vmem:[%s1208_s2 + $0x1a8] sm:$0xff]  ;;  %v70_v11 = vld [vmem:[%s1206_s0 + $0x1c0] sm:$0xff] }
  0x30   :  { %439 = vst [vmem:[%s1209_s3 + $0x128] sm:$0xff] %v375_v59  ;;  %v191_v23 = vadd.f32 %v503_v2, %v125_v12  ;;  %v317_v27 = vadd.f32 %v253_v10, %v189_v16  ;;  %v192_v28 = vadd.f32 %v503_v2, %v126_v19  ;;  %v127_v29 = vmul.f32 %v498_v1, %v61_v13  ;;  %v264_v10 = vld [vmem:[%s1208_s2 + $0x1b0] sm:$0xff]  ;;  %v71_v16 = vld [vmem:[%s1206_s0 + $0x1c8] sm:$0xff] }
  0x31   :  { %440 = vst [vmem:[%s1209_s3 + $0x130] sm:$0xff] %v376_v0  ;;  %v378_v26 = vmax.f32 %v314_v15, 0.0  ;;  %v379_v32 = vmax.f32 %v315_v20, 0.0  ;;  %v380_v33 = vmax.f32 %v316_v21, 0.0  ;;  %v318_v34 = vadd.f32 %v254_v17, %v190_v22  ;;  %v72_v17 = vld [vmem:[%s1206_s0 + $0x1d0] sm:$0xff]  ;;  %v265_v22 = vld [vmem:[%s1208_s2 + $0x1b8] sm:$0xff] }
  0x32   :  { %441 = vst [vmem:[%s1209_s3 + $0x138] sm:$0xff] %v377_v14  ;;  %v319_v35 = vadd.f32 %v255_v18, %v191_v23  ;;  %v381_v38 = vmax.f32 %v317_v27, 0.0  ;;  %v320_v39 = vadd.f32 %v256_v24, %v192_v28  ;;  %v193_v40 = vadd.f32 %v503_v2, %v127_v29  ;;  %v73_v23 = vld [vmem:[%s1206_s0 + $0x1d8] sm:$0xff]  ;;  %v74_v28 = vld [vmem:[%s1206_s0 + $0x1e0] sm:$0xff]  ;;  %v75_v29 = vld [vmem:[%s1206_s0 + $0x1e8] sm:$0xff] }
  0x33   :  { %442 = vst [vmem:[%s1209_s3 + $0x140] sm:$0xff] %v378_v26  ;;  %v128_v41 = vmul.f32 %v498_v1, %v62_v25  ;;  %v382_v44 = vmax.f32 %v318_v34, 0.0  ;;  %v129_v47 = vmul.f32 %v498_v1, %v63_v30  ;;  %v130_v48 = vmul.f32 %v498_v1, %v64_v31 }
  0x34   :  { %443 = vst [vmem:[%s1209_s3 + $0x148] sm:$0xff] %v379_v32  ;;  %v383_v45 = vmax.f32 %v319_v35, 0.0  ;;  %v384_v50 = vmax.f32 %v320_v39, 0.0  ;;  %v321_v51 = vadd.f32 %v257_v36, %v193_v40  ;;  %v131_v55 = vmul.f32 %v498_v1, %v65_v37  ;;  %v266_v32 = vld [vmem:[%s1208_s2 + $0x1c0] sm:$0xff]  ;;  %v76_v35 = vld [vmem:[%s1206_s0 + $0x1f0] sm:$0xff]  ;;  %v267_v39 = vld [vmem:[%s1208_s2 + $0x1c8] sm:$0xff] }
  0x35   :  { %444 = vst [vmem:[%s1209_s3 + $0x150] sm:$0xff] %v380_v33  ;;  %v194_v52 = vadd.f32 %v503_v2, %v128_v41  ;;  %v195_v56 = vadd.f32 %v503_v2, %v129_v47  ;;  %v196_v57 = vadd.f32 %v503_v2, %v130_v48  ;;  %v132_v59 = vmul.f32 %v498_v1, %v66_v42  ;;  %v268_v40 = vld [vmem:[%s1208_s2 + $0x1d0] sm:$0xff]  ;;  %v77_v47 = vld [vmem:[%s1206_s0 + $0x1f8] sm:$0xff] }
  0x36   :  { %445 = vst [vmem:[%s1209_s3 + $0x158] sm:$0xff] %v381_v38  ;;  %v133_v60 = vmul.f32 %v498_v1, %v67_v43  ;;  %v385_v62 = vmax.f32 %v321_v51, 0.0  ;;  %v197_v0 = vadd.f32 %v503_v2, %v131_v55  ;;  %v134_v5 = vmul.f32 %v498_v1, %v68_v49  ;;  %v270_v51 = vld [vmem:[%s1208_s2 + $0x1e0] sm:$0xff] }
  0x37   :  { %446 = vst [vmem:[%s1209_s3 + $0x160] sm:$0xff] %v382_v44  ;;  %v322_v63 = vadd.f32 %v258_v46, %v194_v52  ;;  %v323_v6 = vadd.f32 %v259_v53, %v195_v56  ;;  %v324_v7 = vadd.f32 %v260_v54, %v196_v57  ;;  %v198_v8 = vadd.f32 %v503_v2, %v132_v59  ;;  %v269_v44 = vld [vmem:[%s1208_s2 + $0x1d8] sm:$0xff]  ;;  %v271_v52 = vld [vmem:[%s1208_s2 + $0x1e8] sm:$0xff] }
  0x38   :  { %447 = vst [vmem:[%s1209_s3 + $0x168] sm:$0xff] %v383_v45  ;;  %v199_v9 = vadd.f32 %v503_v2, %v133_v60  ;;  %v325_v13 = vadd.f32 %v261_v58, %v197_v0  ;;  %v200_v14 = vadd.f32 %v503_v2, %v134_v5  ;;  %v135_v15 = vmul.f32 %v498_v1, %v69_v61  ;;  %v272_v58 = vld [vmem:[%s1208_s2 + $0x1f0] sm:$0xff]  ;;  %v273_v5 = vld [vmem:[%s1208_s2 + $0x1f8] sm:$0xff] }
  0x39   :  { %448 = vst [vmem:[%s1209_s3 + $0x170] sm:$0xff] %v384_v50  ;;  %v386_v12 = vmax.f32 %v322_v63, 0.0  ;;  %v387_v18 = vmax.f32 %v323_v6, 0.0  ;;  %v388_v19 = vmax.f32 %v324_v7, 0.0  ;;  %v326_v20 = vadd.f32 %v262_v3, %v198_v8 }
  0x3a   :  { %449 = vst [vmem:[%s1209_s3 + $0x178] sm:$0xff] %v385_v62  ;;  %v327_v21 = vadd.f32 %v263_v4, %v199_v9  ;;  %v389_v24 = vmax.f32 %v325_v13, 0.0  ;;  %v328_v25 = vadd.f32 %v264_v10, %v200_v14  ;;  %v201_v26 = vadd.f32 %v503_v2, %v135_v15 }
  0x3b   :  { %450 = vst [vmem:[%s1209_s3 + $0x180] sm:$0xff] %v386_v12  ;;  %v136_v27 = vmul.f32 %v498_v1, %v70_v11  ;;  %v390_v30 = vmax.f32 %v326_v20, 0.0  ;;  %v137_v33 = vmul.f32 %v498_v1, %v71_v16  ;;  %v138_v34 = vmul.f32 %v498_v1, %v72_v17 }
  0x3c   :  { %451 = vst [vmem:[%s1209_s3 + $0x188] sm:$0xff] %v387_v18  ;;  %v391_v31 = vmax.f32 %v327_v21, 0.0  ;;  %v392_v36 = vmax.f32 %v328_v25, 0.0  ;;  %v329_v37 = vadd.f32 %v265_v22, %v201_v26  ;;  %v139_v41 = vmul.f32 %v498_v1, %v73_v23 }
  0x3d   :  { %452 = vst [vmem:[%s1209_s3 + $0x190] sm:$0xff] %v388_v19  ;;  %v202_v38 = vadd.f32 %v503_v2, %v136_v27  ;;  %v203_v42 = vadd.f32 %v503_v2, %v137_v33  ;;  %v204_v43 = vadd.f32 %v503_v2, %v138_v34  ;;  %v140_v45 = vmul.f32 %v498_v1, %v74_v28 }
  0x3e   :  { %453 = vst [vmem:[%s1209_s3 + $0x198] sm:$0xff] %v389_v24  ;;  %v141_v46 = vmul.f32 %v498_v1, %v75_v29  ;;  %v393_v48 = vmax.f32 %v329_v37, 0.0  ;;  %v205_v50 = vadd.f32 %v503_v2, %v139_v41  ;;  %v142_v53 = vmul.f32 %v498_v1, %v76_v35 }
  0x3f   :  { %454 = vst [vmem:[%s1209_s3 + $0x1a0] sm:$0xff] %v390_v30  ;;  %v330_v49 = vadd.f32 %v266_v32, %v202_v38  ;;  %v331_v54 = vadd.f32 %v267_v39, %v203_v42  ;;  %v332_v55 = vadd.f32 %v268_v40, %v204_v43  ;;  %v206_v56 = vadd.f32 %v503_v2, %v140_v45 }
  0x40   :  { %455 = vst [vmem:[%s1209_s3 + $0x1a8] sm:$0xff] %v391_v31  ;;  %v207_v57 = vadd.f32 %v503_v2, %v141_v46  ;;  %v333_v60 = vadd.f32 %v269_v44, %v205_v50  ;;  %v208_v61 = vadd.f32 %v503_v2, %v142_v53  ;;  %v143_v62 = vmul.f32 %v498_v1, %v77_v47 }
  0x41   :  { %456 = vst [vmem:[%s1209_s3 + $0x1b0] sm:$0xff] %v392_v36  ;;  %v394_v59 = vmax.f32 %v330_v49, 0.0  ;;  %v395_v63 = vmax.f32 %v331_v54, 0.0  ;;  %v396_v0 = vmax.f32 %v332_v55, 0.0  ;;  %v334_v3 = vadd.f32 %v270_v51, %v206_v56 }
  0x42   :  { %457 = vst [vmem:[%s1209_s3 + $0x1b8] sm:$0xff] %v393_v48  ;;  %v335_v4 = vadd.f32 %v271_v52, %v207_v57  ;;  %v397_v6 = vmax.f32 %v333_v60, 0.0  ;;  %v336_v7 = vadd.f32 %v272_v58, %v208_v61  ;;  %v209_v1 = vadd.f32 %v503_v2, %v143_v62 }
  0x43   :  { %458 = vst [vmem:[%s1209_s3 + $0x1c0] sm:$0xff] %v394_v59  ;;  %v398_v8 = vmax.f32 %v334_v3, 0.0 }
  0x44   :  { %459 = vst [vmem:[%s1209_s3 + $0x1c8] sm:$0xff] %v395_v63  ;;  %v399_v9 = vmax.f32 %v335_v4, 0.0  ;;  %v400_v10 = vmax.f32 %v336_v7, 0.0  ;;  %v337_v11 = vadd.f32 %v273_v5, %v209_v1 }
  0x45   :  { %460 = vst [vmem:[%s1209_s3 + $0x1d0] sm:$0xff] %v396_v0 }
  0x46   :  { %461 = vst [vmem:[%s1209_s3 + $0x1d8] sm:$0xff] %v397_v6  ;;  %v401_v2 = vmax.f32 %v337_v11, 0.0 }
  0x47   :  { %462 = vst [vmem:[%s1209_s3 + $0x1e0] sm:$0xff] %v398_v8 }
  0x48   :  { %463 = vst [vmem:[%s1209_s3 + $0x1e8] sm:$0xff] %v399_v9 }
  0x49   :  { %464 = vst [vmem:[%s1209_s3 + $0x1f0] sm:$0xff] %v400_v10 }
  0x4a   :  { %465 = vst [vmem:[%s1209_s3 + $0x1f8] sm:$0xff] %v401_v2 }

// kernel: _lambda_.17
= control target key start
LH: loop header
LB: loop body
LE: loop exit
PB: predicated region body
PF: predicated region fallthrough
CT: control target
= control target key end

     0   :  { %vm449_vm0 = vcmask 130048   ;;  %s2535_s1 = inlined_call_operand.vmem [shape: bf16[144,128], index: 1, kind: input, shape index: {}]   ;;  %s2536_s0 = inlined_call_operand.vmem [shape: bf16[512,144], index: 0, kind: input, shape index: {}]   ;;  %s2537_s4 = inlined_call_operand.vmem [shape: f32[512,128], index: 4, kind: output, shape index: {0}]   ;;  %s2538_s5 = inlined_call_operand.vmem [shape: f32[2,128], index: 5, kind: output, shape index: {1}]   ;;  %s2539_s2 = inlined_call_operand.vmem [shape: f32[1,128], index: 2, kind: input, shape index: {}]   ;;  %s2540_s3 = inlined_call_operand.vmem [shape: f32[1,128], index: 3, kind: input, shape index: {}]  }
   0x1   :  { %v1593_v0 = vld [vmem:[%s2535_s1 + $0x38] sm:$0xff]  ;;  %v1594_v1 = vld [vmem:[%s2535_s1 + $0x40] sm:$0xff]  ;;  %v1202_v3 = vld [vmem:[%s2536_s0 + $0x8] sm:$0xf0] }
   0x2   :  { %v1522_v2 = vld [vmem:[%s2536_s0 + $0x4] sm:$0xf]  ;;  %546 = vmatpush.bf16.msra.mxu0 %v1593_v0  ;;  %722 = vmatpush.bf16.msra.mxu1 %v1594_v1  ;;  %v1592_v5 = vld [vmem:[%s2535_s1 + $0x30] sm:$0xff]  ;;  %v1591_v6 = vld [vmem:[%s2535_s1 + $0x28] sm:$0xff] }
   0x3   :  { %v1205_v4 = vor.u32 %v1522_v2, %v1202_v3  ;;  %1595 = vmatpush.bf16.msra.mxu2 %v1593_v0  ;;  %1603 = vmatpush.bf16.msra.mxu3 %v1594_v1  ;;  %v1590_v7 = vld [vmem:[%s2535_s1 + $0x20] sm:$0xff]  ;;  %v1589_v8 = vld [vmem:[%s2535_s1 + $0x18] sm:$0xff]  ;;  %v1524_v9 = vld [vmem:[%s2536_s0 + $0x14] sm:$0xf] }
   0x4   :  { %v1210_v10 = vld [vmem:[%s2536_s0 + $0x18] sm:$0xf0]  ;;  %v1588_v12 = vld [vmem:[%s2535_s1 + $0x10] sm:$0xff]  ;;  %v1587_v13 = vld [vmem:[%s2535_s1 + $0x8] sm:$0xff] }
   0x5   :  { %1490 = vmatmul.msk.bf16.vlgmr.msra.gmra.mxu1 %vm449_vm0, %v1205_v4  ;;  %v1213_v11 = vor.u32 %v1524_v9, %v1210_v10  ;;  %v1586_v14 = vld [vmem:[%s2535_s1] sm:$0xff]  ;;  %v1523_v16 = vld [vmem:[%s2536_s0 + $0x4] sm:$0xf0]  ;;  %v1218_v19 = vld [vmem:[%s2536_s0 + $0x28] sm:$0xf0] }
   0x6   :  { %547 = vmatpush.bf16.msra.mxu0 %v1592_v5  ;;  %v1200_v15 = vld [vmem:[%s2536_s0] sm:$0xf]  ;;  %v1526_v18 = vld [vmem:[%s2536_s0 + $0x24] sm:$0xf]  ;;  %v1208_v21 = vld [vmem:[%s2536_s0 + $0x10] sm:$0xf] }
   0x7   :  { %1596 = vmatpush.bf16.msra.mxu2 %v1592_v5  ;;  %v1201_v17 = vor.u32 %v1523_v16, %v1200_v15  ;;  %v1221_v20 = vor.u32 %v1526_v18, %v1218_v19  ;;  %v1525_v22 = vld [vmem:[%s2536_s0 + $0x14] sm:$0xf0]  ;;  %v1528_v24 = vld [vmem:[%s2536_s0 + $0x34] sm:$0xf]  ;;  %v1226_v25 = vld [vmem:[%s2536_s0 + $0x38] sm:$0xf0] }
   0x8   :  { %v1209_v23 = vor.u32 %v1525_v22, %v1208_v21  ;;  %v1328_v26 = vld [vmem:[%s2536_s0 + $0x100] sm:$0xf]  ;;  %v1555_v27 = vld [vmem:[%s2536_s0 + $0x104] sm:$0xf0]  ;;  %v1229_v28 = vor.u32 %v1528_v24, %v1226_v25  ;;  %v1530_v33 = vld [vmem:[%s2536_s0 + $0x44] sm:$0xf] }
   0x9   :  { %v1329_v29 = vor.u32 %v1555_v27, %v1328_v26  ;;  %v1216_v30 = vld [vmem:[%s2536_s0 + $0x20] sm:$0xf]  ;;  %v1527_v31 = vld [vmem:[%s2536_s0 + $0x24] sm:$0xf0]  ;;  %v1234_v34 = vld [vmem:[%s2536_s0 + $0x48] sm:$0xf0] }
   0xa   :  { %548 = vmatpush.bf16.msra.mxu0 %v1591_v6  ;;  %v1217_v32 = vor.u32 %v1527_v31, %v1216_v30  ;;  %v1336_v35 = vld [vmem:[%s2536_s0 + $0x110] sm:$0xf]  ;;  %v1557_v36 = vld [vmem:[%s2536_s0 + $0x114] sm:$0xf0]  ;;  %v1556_v37 = vld [vmem:[%s2536_s0 + $0x114] sm:$0xf]  ;;  %v1237_v38 = vor.u32 %v1530_v33, %v1234_v34 }
   0xb   :  { %1597 = vmatpush.bf16.msra.mxu2 %v1591_v6  ;;  %v1337_v39 = vor.u32 %v1557_v36, %v1336_v35  ;;  %v1338_v40 = vld [vmem:[%s2536_s0 + $0x118] sm:$0xf0]  ;;  %v1224_v42 = vld [vmem:[%s2536_s0 + $0x30] sm:$0xf]  ;;  %v1529_v43 = vld [vmem:[%s2536_s0 + $0x34] sm:$0xf0] }
   0xc   :  { %v1341_v41 = vor.u32 %v1556_v37, %v1338_v40  ;;  %v1225_v44 = vor.u32 %v1529_v43, %v1224_v42  ;;  %v1532_v45 = vld [vmem:[%s2536_s0 + $0x54] sm:$0xf]  ;;  %v1242_v46 = vld [vmem:[%s2536_s0 + $0x58] sm:$0xf0]  ;;  %v1344_v47 = vld [vmem:[%s2536_s0 + $0x120] sm:$0xf] }
   0xd   :  { %v1559_v48 = vld [vmem:[%s2536_s0 + $0x124] sm:$0xf0]  ;;  %v1558_v49 = vld [vmem:[%s2536_s0 + $0x124] sm:$0xf]  ;;  %v1245_v50 = vor.u32 %v1532_v45, %v1242_v46  ;;  %v1346_v52 = vld [vmem:[%s2536_s0 + $0x128] sm:$0xf0] }
   0xe   :  { %549 = vmatpush.bf16.msra.mxu0 %v1590_v7  ;;  %1507 = vmatmul.msk.bf16.vlgmr.msra.gmra.mxu3 %vm449_vm0, %v1341_v41  ;;  %v1345_v51 = vor.u32 %v1559_v48, %v1344_v47  ;;  %v1349_v53 = vor.u32 %v1558_v49, %v1346_v52  ;;  %v1232_v54 = vld [vmem:[%s2536_s0 + $0x40] sm:$0xf]  ;;  %v1531_v55 = vld [vmem:[%s2536_s0 + $0x44] sm:$0xf0]  ;;  %v1534_v57 = vld [vmem:[%s2536_s0 + $0x64] sm:$0xf] }
   0xf   :  { %1598 = vmatpush.bf16.msra.mxu2 %v1590_v7  ;;  %v1233_v56 = vor.u32 %v1531_v55, %v1232_v54  ;;  %v1250_v58 = vld [vmem:[%s2536_s0 + $0x68] sm:$0xf0]  ;;  %v1352_v59 = vld [vmem:[%s2536_s0 + $0x130] sm:$0xf]  ;;  %v1561_v60 = vld [vmem:[%s2536_s0 + $0x134] sm:$0xf0] }
  0x10   :  { %v1560_v61 = vld [vmem:[%s2536_s0 + $0x134] sm:$0xf]  ;;  %v1253_v62 = vor.u32 %v1534_v57, %v1250_v58  ;;  %v1353_v63 = vor.u32 %v1561_v60, %v1352_v59  ;;  %v1354_v0 = vld [vmem:[%s2536_s0 + $0x138] sm:$0xf0]  ;;  %v1240_v2 = vld [vmem:[%s2536_s0 + $0x50] sm:$0xf] }
  0x11   :  { %v1357_v1 = vor.u32 %v1560_v61, %v1354_v0  ;;  %v1533_v3 = vld [vmem:[%s2536_s0 + $0x54] sm:$0xf0]  ;;  %v1536_v5 = vld [vmem:[%s2536_s0 + $0x74] sm:$0xf]  ;;  %v1258_v6 = vld [vmem:[%s2536_s0 + $0x78] sm:$0xf0] }
  0x12   :  { %550 = vmatpush.bf16.msra.mxu0 %v1589_v8  ;;  %v1241_v4 = vor.u32 %v1533_v3, %v1240_v2  ;;  %v1360_v7 = vld [vmem:[%s2536_s0 + $0x140] sm:$0xf]  ;;  %v1562_v9 = vld [vmem:[%s2536_s0 + $0x144] sm:$0xf]  ;;  %v1261_v10 = vor.u32 %v1536_v5, %v1258_v6  ;;  %v1535_v15 = vld [vmem:[%s2536_s0 + $0x64] sm:$0xf0] }
  0x13   :  { %1599 = vmatpush.bf16.msra.mxu2 %v1589_v8  ;;  %v1563_v8 = vld [vmem:[%s2536_s0 + $0x144] sm:$0xf0]  ;;  %v1266_v18 = vld [vmem:[%s2536_s0 + $0x88] sm:$0xf0]  ;;  %v1368_v19 = vld [vmem:[%s2536_s0 + $0x150] sm:$0xf] }
  0x14   :  { %v1564_v21 = vld [vmem:[%s2536_s0 + $0x154] sm:$0xf]  ;;  %v1370_v24 = vld [vmem:[%s2536_s0 + $0x158] sm:$0xf0]  ;;  %v1376_v33 = vld [vmem:[%s2536_s0 + $0x160] sm:$0xf] }
  0x15   :  { %1491 = vmatmul.msk.bf16.gmra.mxu1 %vm449_vm0, %v1213_v11  ;;  %v1361_v11 = vor.u32 %v1563_v8, %v1360_v7  ;;  %v1373_v26 = vor.u32 %v1564_v21, %v1370_v24  ;;  %v1540_v31 = vld [vmem:[%s2536_s0 + $0x94] sm:$0xf]  ;;  %v1567_v34 = vld [vmem:[%s2536_s0 + $0x164] sm:$0xf0]  ;;  %v1566_v35 = vld [vmem:[%s2536_s0 + $0x164] sm:$0xf] }
  0x16   :  { %551 = vmatpush.bf16.msra.mxu0 %v1588_v12  ;;  %v1377_v37 = vor.u32 %v1567_v34, %v1376_v33  ;;  %v1264_v42 = vld [vmem:[%s2536_s0 + $0x80] sm:$0xf]  ;;  %v1539_v43 = vld [vmem:[%s2536_s0 + $0x84] sm:$0xf0]  ;;  %v1542_v46 = vld [vmem:[%s2536_s0 + $0xa4] sm:$0xf] }
  0x17   :  { %1600 = vmatpush.bf16.msra.mxu2 %v1588_v12  ;;  %v1362_v12 = vld [vmem:[%s2536_s0 + $0x148] sm:$0xf0]  ;;  %v1384_v49 = vld [vmem:[%s2536_s0 + $0x170] sm:$0xf]  ;;  %v1386_v54 = vld [vmem:[%s2536_s0 + $0x178] sm:$0xf0] }
  0x18   :  { %v1282_v47 = vld [vmem:[%s2536_s0 + $0xa8] sm:$0xf0]  ;;  %v1541_v0 = vld [vmem:[%s2536_s0 + $0x94] sm:$0xf0]  ;;  %v1544_v3 = vld [vmem:[%s2536_s0 + $0xb4] sm:$0xf] }
  0x19   :  { %v1285_v52 = vor.u32 %v1542_v46, %v1282_v47  ;;  %v1392_v8 = vld [vmem:[%s2536_s0 + $0x180] sm:$0xf]  ;;  %v1400_v34 = vld [vmem:[%s2536_s0 + $0x190] sm:$0xf] }
  0x1a   :  { %552 = vmatpush.bf16.msra.mxu0 %v1587_v13  ;;  %v1280_v24 = vld [vmem:[%s2536_s0 + $0xa0] sm:$0xf] }
  0x1b   :  { %1601 = vmatpush.bf16.msra.mxu2 %v1587_v13  ;;  %v1365_v13 = vor.u32 %v1562_v9, %v1362_v12  ;;  %v1571_v9 = vld [vmem:[%s2536_s0 + $0x184] sm:$0xf0] }
  0x1e   :  { %553 = vmatpush.bf16.msra.mxu0 %v1586_v14  ;;  %1508 = vmatmul.msk.bf16.gmra.mxu3 %vm449_vm0, %v1349_v53 }
  0x1f   :  { %1602 = vmatpush.bf16.msra.mxu2 %v1586_v14  ;;  %v1248_v14 = vld [vmem:[%s2536_s0 + $0x60] sm:$0xf] }
  0x20   :  { %v1249_v16 = vor.u32 %v1535_v15, %v1248_v14  ;;  %v1394_v14 = vld [vmem:[%s2536_s0 + $0x188] sm:$0xf0] }
  0x21   :  { %554 = vmatmul.bf16.vlgmr.msra.gmra.mxu0 %v1201_v17  ;;  %v1538_v17 = vld [vmem:[%s2536_s0 + $0x84] sm:$0xf] }
  0x22   :  { %634 = vmatmul.bf16.vlgmr.msra.gmra.mxu2 %v1329_v29  ;;  %v1269_v22 = vor.u32 %v1538_v17, %v1266_v18  ;;  %v1537_v29 = vld [vmem:[%s2536_s0 + $0x74] sm:$0xf0] }
  0x25   :  { %1492 = vmatmul.msk.bf16.gmra.mxu1 %vm449_vm0, %v1221_v20  ;;  %v1565_v20 = vld [vmem:[%s2536_s0 + $0x154] sm:$0xf0] }
  0x2e   :  { %1509 = vmatmul.msk.bf16.gmra.mxu3 %vm449_vm0, %v1357_v1 }
  0x31   :  { %559 = vmatmul.bf16.gmra.mxu0 %v1209_v23  ;;  %v1369_v23 = vor.u32 %v1565_v20, %v1368_v19 }
  0x32   :  { %639 = vmatmul.bf16.gmra.mxu2 %v1337_v39 }
  0x35   :  { %1493 = vmatmul.msk.bf16.gmra.mxu1 %vm449_vm0, %v1229_v28  ;;  %v1256_v28 = vld [vmem:[%s2536_s0 + $0x70] sm:$0xf] }
  0x36   :  { %v1257_v30 = vor.u32 %v1537_v29, %v1256_v28  ;;  %v1546_v28 = vld [vmem:[%s2536_s0 + $0xc4] sm:$0xf]  ;;  %v1298_v29 = vld [vmem:[%s2536_s0 + $0xc8] sm:$0xf0] }
  0x37   :  { %v1301_v33 = vor.u32 %v1546_v28, %v1298_v29 }
  0x3e   :  { %1510 = vmatmul.msk.bf16.gmra.mxu3 %vm449_vm0, %v1365_v13  ;;  %v1393_v13 = vor.u32 %v1571_v9, %v1392_v8 }
  0x41   :  { %564 = vmatmul.bf16.gmra.mxu0 %v1217_v32  ;;  %v1274_v32 = vld [vmem:[%s2536_s0 + $0x98] sm:$0xf0] }
  0x42   :  { %644 = vmatmul.bf16.gmra.mxu2 %v1345_v51  ;;  %v1277_v36 = vor.u32 %v1540_v31, %v1274_v32  ;;  %v1568_v51 = vld [vmem:[%s2536_s0 + $0x174] sm:$0xf] }
  0x45   :  { %1494 = vmatmul.msk.bf16.gmra.mxu1 %vm449_vm0, %v1237_v38  ;;  %v1378_v38 = vld [vmem:[%s2536_s0 + $0x168] sm:$0xf0] }
  0x46   :  { %v1381_v40 = vor.u32 %v1566_v35, %v1378_v38  ;;  %v1573_v35 = vld [vmem:[%s2536_s0 + $0x194] sm:$0xf0] }
  0x4e   :  { %1511 = vmatmul.msk.bf16.gmra.mxu3 %vm449_vm0, %v1373_v26 }
  0x51   :  { %569 = vmatmul.bf16.gmra.mxu0 %v1225_v44  ;;  %v1265_v44 = vor.u32 %v1539_v43, %v1264_v42 }
  0x52   :  { %649 = vmatmul.bf16.gmra.mxu2 %v1353_v63  ;;  %v1272_v63 = vld [vmem:[%s2536_s0 + $0x90] sm:$0xf] }
  0x53   :  { %v1273_v2 = vor.u32 %v1541_v0, %v1272_v63  ;;  %v1408_v0 = vld [vmem:[%s2536_s0 + $0x1a0] sm:$0xf] }
  0x55   :  { %1495 = vmatmul.msk.bf16.gmra.mxu1 %vm449_vm0, %v1245_v50  ;;  %v1569_v50 = vld [vmem:[%s2536_s0 + $0x174] sm:$0xf0] }
  0x56   :  { %v1385_v53 = vor.u32 %v1569_v50, %v1384_v49 }
  0x5e   :  { %1512 = vmatmul.msk.bf16.gmra.mxu3 %vm449_vm0, %v1381_v40  ;;  %v1402_v40 = vld [vmem:[%s2536_s0 + $0x198] sm:$0xf0] }
  0x61   :  { %574 = vmatmul.bf16.gmra.mxu0 %v1233_v56  ;;  %v1389_v56 = vor.u32 %v1568_v51, %v1386_v54  ;;  %v1288_v51 = vld [vmem:[%s2536_s0 + $0xb0] sm:$0xf] }
  0x62   :  { %654 = vmatmul.bf16.gmra.mxu2 %v1361_v11 }
  0x65   :  { %1496 = vmatmul.msk.bf16.gmra.mxu1 %vm449_vm0, %v1253_v62 }
  0x6e   :  { %1513 = vmatmul.msk.bf16.gmra.mxu3 %vm449_vm0, %v1389_v56  ;;  %v1548_v56 = vld [vmem:[%s2536_s0 + $0xd4] sm:$0xf] }
  0x71   :  { %579 = vmatmul.bf16.gmra.mxu0 %v1241_v4  ;;  %v1290_v4 = vld [vmem:[%s2536_s0 + $0xb8] sm:$0xf0] }
  0x72   :  { %659 = vmatmul.bf16.gmra.mxu2 %v1369_v23  ;;  %v1293_v7 = vor.u32 %v1544_v3, %v1290_v4 }
  0x75   :  { %1497 = vmatmul.msk.bf16.gmra.mxu1 %vm449_vm0, %v1261_v10  ;;  %v1570_v10 = vld [vmem:[%s2536_s0 + $0x184] sm:$0xf] }
  0x81   :  { %584 = vmatmul.bf16.gmra.mxu0 %v1249_v16  ;;  %v1397_v16 = vor.u32 %v1570_v10, %v1394_v14 }
  0x82   :  { %v724_v25 = vpop.f32.mrf.mxu1  ;;  %664 = vmatmul.bf16.gmra.mxu2 %v1377_v37 }
  0x83   :  { %1514 = vmatmul.msk.bf16.gmra.mxu3 %vm449_vm0, %v1397_v16 }
  0x85   :  { %1498 = vmatmul.msk.bf16.gmra.mxu1 %vm449_vm0, %v1269_v22 }
  0x8a   :  { %v726_v27 = vpop.f32.mrf.mxu1 }
  0x91   :  { %589 = vmatmul.bf16.gmra.mxu0 %v1257_v30  ;;  %v809_v47 = vpop.f32.mrf.mxu3 }
  0x92   :  { %v729_v39 = vpop.f32.mrf.mxu1  ;;  %669 = vmatmul.bf16.gmra.mxu2 %v1385_v53 }
  0x95   :  { %1499 = vmatmul.msk.bf16.gmra.mxu1 %vm449_vm0, %v1277_v36  ;;  %v1572_v36 = vld [vmem:[%s2536_s0 + $0x194] sm:$0xf] }
  0x96   :  { %v1405_v42 = vor.u32 %v1572_v36, %v1402_v40 }
  0x98   :  { %1515 = vmatmul.msk.bf16.gmra.mxu3 %vm449_vm0, %v1405_v42 }
  0x9a   :  { %v731_v41 = vpop.f32.mrf.mxu1 }
  0x9e   :  { %v555_v45 = vpop.f32.mrf.mxu0 }
  0x9f   :  { %v725_v48 = vadd.f32 %v724_v25, %v555_v45  ;;  %v1543_v25 = vld [vmem:[%s2536_s0 + $0xa4] sm:$0xf0] }
  0xa1   :  { %884 = vst [vmem:[%s2537_s4] sm:$0xff] %v725_v48  ;;  %594 = vmatmul.bf16.gmra.mxu0 %v1265_v44  ;;  %v1021_v59 = vmul.f32 %v725_v48, %v725_v48 }
  0xa2   :  { %v734_v55 = vpop.f32.mrf.mxu1  ;;  %674 = vmatmul.bf16.gmra.mxu2 %v1393_v13 }
  0xa5   :  { %1500 = vmatmul.msk.bf16.gmra.mxu1 %vm449_vm0, %v1285_v52  ;;  %v1932_v19 = vpop.f32.mrf.mxu2  ;;  %v1545_v52 = vld [vmem:[%s2536_s0 + $0xb4] sm:$0xf0] }
  0xa6   :  { %v557_v57 = vpop.f32.mrf.mxu0 }
  0xa7   :  { %v727_v58 = vadd.f32 %v726_v27, %v557_v57  ;;  %v1281_v27 = vor.u32 %v1543_v25, %v1280_v24  ;;  %v1306_v57 = vld [vmem:[%s2536_s0 + $0xd8] sm:$0xf0]  ;;  %v1314_v24 = vld [vmem:[%s2536_s0 + $0xe8] sm:$0xf0] }
  0xa9   :  { %885 = vst [vmem:[%s2537_s4 + $0x8] sm:$0xff] %v727_v58  ;;  %v949_v60 = vadd.f32 %v727_v58, %v725_v48  ;;  %v1022_v61 = vmul.f32 %v727_v58, %v727_v58 }
  0xaa   :  { %v736_v62 = vpop.f32.mrf.mxu1 }
  0xab   :  { %v1085_v1 = vadd.f32 %v1022_v61, %v1021_v59  ;;  %v811_v61 = vpop.f32.mrf.mxu3 }
  0xad   :  { %v1951_v31 = vpop.f32.mrf.mxu2 }
  0xae   :  { %v560_v5 = vpop.f32.mrf.mxu0 }
  0xaf   :  { %v730_v6 = vadd.f32 %v729_v39, %v560_v5  ;;  %v1401_v39 = vor.u32 %v1573_v35, %v1400_v34  ;;  %v1576_v34 = vld [vmem:[%s2536_s0 + $0x1b4] sm:$0xf] }
  0xb1   :  { %886 = vst [vmem:[%s2537_s4 + $0x10] sm:$0xff] %v730_v6  ;;  %v950_v11 = vadd.f32 %v949_v60, %v730_v6  ;;  %v1023_v12 = vmul.f32 %v730_v6, %v730_v6  ;;  %599 = vmatmul.bf16.gmra.mxu0 %v1273_v2  ;;  %v1574_v2 = vld [vmem:[%s2536_s0 + $0x1a4] sm:$0xf]  ;;  %v1410_v6 = vld [vmem:[%s2536_s0 + $0x1a8] sm:$0xf0] }
  0xb2   :  { %v739_v15 = vpop.f32.mrf.mxu1  ;;  %679 = vmatmul.bf16.gmra.mxu2 %v1401_v39  ;;  %v1413_v8 = vor.u32 %v1574_v2, %v1410_v6  ;;  %v1578_v2 = vld [vmem:[%s2536_s0 + $0x1c4] sm:$0xf]  ;;  %v1426_v6 = vld [vmem:[%s2536_s0 + $0x1c8] sm:$0xf0] }
  0xb3   :  { %v1086_v17 = vadd.f32 %v1085_v1, %v1023_v12  ;;  %v1575_v1 = vld [vmem:[%s2536_s0 + $0x1a4] sm:$0xf0]  ;;  %v814_v13 = vpop.f32.mrf.mxu3 }
  0xb4   :  { %v1409_v5 = vor.u32 %v1575_v1, %v1408_v0  ;;  %1516 = vmatmul.msk.bf16.gmra.mxu3 %vm449_vm0, %v1413_v8  ;;  %v1424_v0 = vld [vmem:[%s2536_s0 + $0x1c0] sm:$0xf]  ;;  %v1579_v1 = vld [vmem:[%s2536_s0 + $0x1c4] sm:$0xf0]  ;;  %v1429_v8 = vor.u32 %v1578_v2, %v1426_v6 }
  0xb5   :  { %1501 = vmatmul.msk.bf16.gmra.mxu1 %vm449_vm0, %v1293_v7  ;;  %v640_v45 = vpop.f32.mrf.mxu2  ;;  %v1583_v2 = vld [vmem:[%s2536_s0 + $0x1e4] sm:$0xf0] }
  0xb6   :  { %v562_v18 = vpop.f32.mrf.mxu0  ;;  %v1981_v54 = vadd.f32 %v809_v47, %v640_v45 }
  0xb7   :  { %v732_v20 = vadd.f32 %v731_v41, %v562_v18  ;;  %v1547_v18 = vld [vmem:[%s2536_s0 + $0xc4] sm:$0xf0] }
  0xb8   :  { %918 = vst [vmem:[%s2537_s4 + $0x110] sm:$0xff] %v1981_v54 }
  0xb9   :  { %887 = vst [vmem:[%s2537_s4 + $0x18] sm:$0xff] %v732_v20  ;;  %v951_v21 = vadd.f32 %v950_v11, %v732_v20  ;;  %v1024_v22 = vmul.f32 %v732_v20, %v732_v20 }
  0xba   :  { %v1937_v23 = vpop.f32.mrf.mxu1 }
  0xbb   :  { %v1087_v26 = vadd.f32 %v1086_v17, %v1024_v22  ;;  %v1296_v17 = vld [vmem:[%s2536_s0 + $0xc0] sm:$0xf]  ;;  %v816_v28 = vpop.f32.mrf.mxu3 }
  0xbc   :  { %v1297_v22 = vor.u32 %v1547_v18, %v1296_v17  ;;  %v1312_v18 = vld [vmem:[%s2536_s0 + $0xe0] sm:$0xf] }
  0xbd   :  { %v642_v59 = vpop.f32.mrf.mxu2 }
  0xbe   :  { %v565_v30 = vpop.f32.mrf.mxu0  ;;  %v1993_v63 = vadd.f32 %v811_v61, %v642_v59 }
  0xbf   :  { %v735_v32 = vadd.f32 %v734_v55, %v565_v30  ;;  %v1289_v55 = vor.u32 %v1545_v52, %v1288_v51  ;;  %v1549_v51 = vld [vmem:[%s2536_s0 + $0xd4] sm:$0xf0] }
  0xc0   :  { %919 = vst [vmem:[%s2537_s4 + $0x118] sm:$0xff] %v1993_v63 }
  0xc1   :  { %888 = vst [vmem:[%s2537_s4 + $0x20] sm:$0xff] %v735_v32  ;;  %v952_v37 = vadd.f32 %v951_v21, %v735_v32  ;;  %v1025_v38 = vmul.f32 %v735_v32, %v735_v32  ;;  %604 = vmatmul.bf16.gmra.mxu0 %v1281_v27  ;;  %v1416_v32 = vld [vmem:[%s2536_s0 + $0x1b0] sm:$0xf] }
  0xc2   :  { %v744_v41 = vpop.f32.mrf.mxu1  ;;  %684 = vmatmul.bf16.gmra.mxu2 %v1409_v5  ;;  %v1425_v5 = vor.u32 %v1579_v1, %v1424_v0  ;;  %v1440_v1 = vld [vmem:[%s2536_s0 + $0x1e0] sm:$0xf] }
  0xc3   :  { %v1088_v43 = vadd.f32 %v1087_v26, %v1025_v38  ;;  %v1418_v38 = vld [vmem:[%s2536_s0 + $0x1b8] sm:$0xf0]  ;;  %v819_v45 = vpop.f32.mrf.mxu3  ;;  %v1441_v6 = vor.u32 %v1583_v2, %v1440_v1 }
  0xc4   :  { %v1421_v40 = vor.u32 %v1576_v34, %v1418_v38  ;;  %v1432_v34 = vld [vmem:[%s2536_s0 + $0x1d0] sm:$0xf] }
  0xc5   :  { %1502 = vmatmul.msk.bf16.gmra.mxu1 %vm449_vm0, %v1301_v33  ;;  %v645_v11 = vpop.f32.mrf.mxu2  ;;  %v1577_v33 = vld [vmem:[%s2536_s0 + $0x1b4] sm:$0xf0] }
  0xc6   :  { %v567_v44 = vpop.f32.mrf.mxu0  ;;  %v2030_v21 = vadd.f32 %v814_v13, %v645_v11  ;;  %1517 = vmatmul.msk.bf16.gmra.mxu3 %vm449_vm0, %v1421_v40  ;;  %v1434_v40 = vld [vmem:[%s2536_s0 + $0x1d8] sm:$0xf0] }
  0xc7   :  { %v737_v46 = vadd.f32 %v736_v62, %v567_v44  ;;  %v1309_v62 = vor.u32 %v1548_v56, %v1306_v57  ;;  %v1322_v56 = vld [vmem:[%s2536_s0 + $0xf8] sm:$0xf0] }
  0xc8   :  { %920 = vst [vmem:[%s2537_s4 + $0x120] sm:$0xff] %v2030_v21 }
  0xc9   :  { %889 = vst [vmem:[%s2537_s4 + $0x28] sm:$0xff] %v737_v46  ;;  %v953_v48 = vadd.f32 %v952_v37, %v737_v46  ;;  %v1026_v49 = vmul.f32 %v737_v46, %v737_v46  ;;  %v1417_v37 = vor.u32 %v1577_v33, %v1416_v32 }
  0xca   :  { %v1973_v50 = vpop.f32.mrf.mxu1 }
  0xcb   :  { %v1089_v53 = vadd.f32 %v1088_v43, %v1026_v49  ;;  %v1304_v49 = vld [vmem:[%s2536_s0 + $0xd0] sm:$0xf] }
  0xcd   :  { %v647_v26 = vpop.f32.mrf.mxu2 }
  0xce   :  { %v570_v58 = vpop.f32.mrf.mxu0  ;;  %v2042_v30 = vadd.f32 %v816_v28, %v647_v26 }
  0xcf   :  { %v740_v60 = vadd.f32 %v739_v15, %v570_v58 }
  0xd0   :  { %921 = vst [vmem:[%s2537_s4 + $0x128] sm:$0xff] %v2042_v30 }
  0xd1   :  { %890 = vst [vmem:[%s2537_s4 + $0x30] sm:$0xff] %v740_v60  ;;  %v954_v3 = vadd.f32 %v953_v48, %v740_v60  ;;  %v1027_v4 = vmul.f32 %v740_v60, %v740_v60  ;;  %609 = vmatmul.bf16.gmra.mxu0 %v1289_v55  ;;  %v1552_v55 = vld [vmem:[%s2536_s0 + $0xf4] sm:$0xf]  ;;  %v821_v60 = vpop.f32.mrf.mxu3 }
  0xd2   :  { %v2010_v7 = vpop.f32.mrf.mxu1  ;;  %689 = vmatmul.bf16.gmra.mxu2 %v1417_v37  ;;  %v1325_v61 = vor.u32 %v1552_v55, %v1322_v56  ;;  %v1553_v55 = vld [vmem:[%s2536_s0 + $0xf4] sm:$0xf0] }
  0xd3   :  { %v1090_v9 = vadd.f32 %v1089_v53, %v1027_v4 }
  0xd5   :  { %1503 = vmatmul.msk.bf16.gmra.mxu1 %vm449_vm0, %v1309_v62  ;;  %v650_v43 = vpop.f32.mrf.mxu2 }
  0xd6   :  { %v572_v10 = vpop.f32.mrf.mxu0  ;;  %v2079_v53 = vadd.f32 %v819_v45, %v650_v43  ;;  %1518 = vmatmul.msk.bf16.gmra.mxu3 %vm449_vm0, %v1429_v8 }
  0xd7   :  { %v742_v12 = vadd.f32 %v1937_v23, %v572_v10  ;;  %v1550_v23 = vld [vmem:[%s2536_s0 + $0xe4] sm:$0xf] }
  0xd8   :  { %v1317_v29 = vor.u32 %v1550_v23, %v1314_v24  ;;  %922 = vst [vmem:[%s2537_s4 + $0x130] sm:$0xff] %v2079_v53  ;;  %v1554_v24 = vld [vmem:[%s2536_s0 + $0x104] sm:$0xf] }
  0xd9   :  { %891 = vst [vmem:[%s2537_s4 + $0x38] sm:$0xff] %v742_v12  ;;  %v955_v14 = vadd.f32 %v954_v3, %v742_v12  ;;  %v1028_v15 = vmul.f32 %v742_v12, %v742_v12  ;;  %v824_v13 = vpop.f32.mrf.mxu3 }
  0xda   :  { %v2022_v16 = vpop.f32.mrf.mxu1 }
  0xdb   :  { %v1091_v20 = vadd.f32 %v1090_v9, %v1028_v15 }
  0xdd   :  { %v652_v58 = vpop.f32.mrf.mxu2 }
  0xde   :  { %v575_v25 = vpop.f32.mrf.mxu0  ;;  %v2092_v62 = vadd.f32 %v821_v60, %v652_v58 }
  0xdf   :  { %v745_v27 = vadd.f32 %v744_v41, %v575_v25  ;;  %v1330_v25 = vld [vmem:[%s2536_s0 + $0x108] sm:$0xf0] }
  0xe0   :  { %923 = vst [vmem:[%s2537_s4 + $0x138] sm:$0xff] %v2092_v62  ;;  %v1333_v32 = vor.u32 %v1554_v24, %v1330_v25 }
  0xe1   :  { %892 = vst [vmem:[%s2537_s4 + $0x40] sm:$0xff] %v745_v27  ;;  %v956_v35 = vadd.f32 %v955_v14, %v745_v27  ;;  %v1029_v36 = vmul.f32 %v745_v27, %v745_v27  ;;  %614 = vmatmul.bf16.gmra.mxu0 %v1297_v22 }
  0xe2   :  { %v2059_v39 = vpop.f32.mrf.mxu1  ;;  %694 = vmatmul.bf16.gmra.mxu2 %v1425_v5 }
  0xe3   :  { %v1092_v41 = vadd.f32 %v1091_v20, %v1029_v36  ;;  %v1551_v20 = vld [vmem:[%s2536_s0 + $0xe4] sm:$0xf0]  ;;  %v1580_v36 = vld [vmem:[%s2536_s0 + $0x1d4] sm:$0xf] }
  0xe5   :  { %1504 = vmatmul.msk.bf16.gmra.mxu1 %vm449_vm0, %v1317_v29  ;;  %v655_v11 = vpop.f32.mrf.mxu2  ;;  %v826_v29 = vpop.f32.mrf.mxu3 }
  0xe6   :  { %v577_v42 = vpop.f32.mrf.mxu0  ;;  %v2127_v23 = vadd.f32 %v824_v13, %v655_v11 }
  0xe7   :  { %v747_v44 = vadd.f32 %v1973_v50, %v577_v42  ;;  %v1305_v50 = vor.u32 %v1549_v51, %v1304_v49  ;;  %v1437_v42 = vor.u32 %v1580_v36, %v1434_v40 }
  0xe8   :  { %924 = vst [vmem:[%s2537_s4 + $0x140] sm:$0xff] %v2127_v23 }
  0xe9   :  { %893 = vst [vmem:[%s2537_s4 + $0x48] sm:$0xff] %v747_v44  ;;  %v957_v46 = vadd.f32 %v956_v35, %v747_v44  ;;  %v1030_v47 = vmul.f32 %v747_v44, %v747_v44  ;;  %v1581_v35 = vld [vmem:[%s2536_s0 + $0x1d4] sm:$0xf0]  ;;  %1519 = vmatmul.msk.bf16.gmra.mxu3 %vm449_vm0, %v1437_v42 }
  0xea   :  { %v2071_v48 = vpop.f32.mrf.mxu1 }
  0xeb   :  { %v1093_v52 = vadd.f32 %v1092_v41, %v1030_v47 }
  0xed   :  { %v657_v27 = vpop.f32.mrf.mxu2  ;;  %v829_v47 = vpop.f32.mrf.mxu3 }
  0xee   :  { %v580_v57 = vpop.f32.mrf.mxu0  ;;  %v2140_v33 = vadd.f32 %v826_v29, %v657_v27  ;;  %v1585_v29 = vld [vmem:[%s2536_s0 + $0x1f4] sm:$0xf0] }
  0xef   :  { %v750_v59 = vadd.f32 %v2010_v7, %v580_v57 }
  0xf0   :  { %925 = vst [vmem:[%s2537_s4 + $0x148] sm:$0xff] %v2140_v33 }
  0xf1   :  { %894 = vst [vmem:[%s2537_s4 + $0x50] sm:$0xff] %v750_v59  ;;  %v958_v3 = vadd.f32 %v957_v46, %v750_v59  ;;  %v1031_v4 = vmul.f32 %v750_v59, %v750_v59  ;;  %619 = vmatmul.bf16.gmra.mxu0 %v1305_v50  ;;  %v1320_v50 = vld [vmem:[%s2536_s0 + $0xf0] sm:$0xf] }
  0xf2   :  { %v759_v7 = vpop.f32.mrf.mxu1 }
  0xf3   :  { %v1094_v9 = vadd.f32 %v1093_v52, %v1031_v4 }
  0xf5   :  { %1505 = vmatmul.msk.bf16.gmra.mxu1 %vm449_vm0, %v1325_v61  ;;  %v660_v45 = vpop.f32.mrf.mxu2  ;;  %v831_v61 = vpop.f32.mrf.mxu3 }
  0xf6   :  { %v582_v10 = vpop.f32.mrf.mxu0  ;;  %v2173_v57 = vadd.f32 %v829_v47, %v660_v45 }
  0xf7   :  { %v752_v12 = vadd.f32 %v2022_v16, %v582_v10  ;;  %v1313_v16 = vor.u32 %v1551_v20, %v1312_v18 }
  0xf8   :  { %926 = vst [vmem:[%s2537_s4 + $0x150] sm:$0xff] %v2173_v57 }
  0xf9   :  { %895 = vst [vmem:[%s2537_s4 + $0x58] sm:$0xff] %v752_v12  ;;  %v959_v14 = vadd.f32 %v958_v3, %v752_v12  ;;  %v1032_v15 = vmul.f32 %v752_v12, %v752_v12  ;;  %v1582_v3 = vld [vmem:[%s2536_s0 + $0x1e4] sm:$0xf] }
  0xfa   :  { %v2119_v17 = vpop.f32.mrf.mxu1 }
  0xfb   :  { %v1095_v22 = vadd.f32 %v1094_v9, %v1032_v15 }
  0xfd   :  { %v662_v59 = vpop.f32.mrf.mxu2 }
  0xfe   :  { %v585_v26 = vpop.f32.mrf.mxu0  ;;  %v2179_v0 = vadd.f32 %v831_v61, %v662_v59 }
  0xff   :  { %v755_v28 = vadd.f32 %v2059_v39, %v585_v26  ;;  %v1433_v39 = vor.u32 %v1581_v35, %v1432_v34 }
 0x100   :  { %927 = vst [vmem:[%s2537_s4 + $0x158] sm:$0xff] %v2179_v0 }
 0x101   :  { %896 = vst [vmem:[%s2537_s4 + $0x60] sm:$0xff] %v755_v28  ;;  %v960_v37 = vadd.f32 %v959_v14, %v755_v28  ;;  %v1033_v38 = vmul.f32 %v755_v28, %v755_v28  ;;  %624 = vmatmul.bf16.gmra.mxu0 %v1313_v16  ;;  %699 = vmatmul.bf16.gmra.mxu2 %v1433_v39  ;;  %v834_v14 = vpop.f32.mrf.mxu3  ;;  %v1448_v28 = vld [vmem:[%s2536_s0 + $0x1f0] sm:$0xf] }
 0x102   :  { %v764_v41 = vpop.f32.mrf.mxu1  ;;  %v1449_v36 = vor.u32 %v1585_v29, %v1448_v28 }
 0x103   :  { %v1096_v43 = vadd.f32 %v1095_v22, %v1033_v38 }
 0x105   :  { %1506 = vmatmul.msk.bf16.gmra.mxu1 %vm449_vm0, %v1333_v32  ;;  %v665_v12 = vpop.f32.mrf.mxu2  ;;  %v1584_v32 = vld [vmem:[%s2536_s0 + $0x1f4] sm:$0xf] }
 0x106   :  { %v587_v44 = vpop.f32.mrf.mxu0  ;;  %v2205_v16 = vadd.f32 %v834_v14, %v665_v12 }
 0x107   :  { %v757_v46 = vadd.f32 %v2071_v48, %v587_v44  ;;  %v1321_v48 = vor.u32 %v1553_v55, %v1320_v50 }
 0x108   :  { %928 = vst [vmem:[%s2537_s4 + $0x160] sm:$0xff] %v2205_v16 }
 0x109   :  { %897 = vst [vmem:[%s2537_s4 + $0x68] sm:$0xff] %v757_v46  ;;  %v961_v49 = vadd.f32 %v960_v37, %v757_v46  ;;  %v1034_v51 = vmul.f32 %v757_v46, %v757_v46  ;;  %v1450_v37 = vld [vmem:[%s2536_s0 + $0x1f8] sm:$0xf0] }
 0x10a   :  { %v766_v52 = vpop.f32.mrf.mxu1  ;;  %v1453_v39 = vor.u32 %v1584_v32, %v1450_v37 }
 0x10b   :  { %v1097_v56 = vadd.f32 %v1096_v43, %v1034_v51 }
 0x10d   :  { %v667_v25 = vpop.f32.mrf.mxu2 }
 0x10e   :  { %v590_v58 = vpop.f32.mrf.mxu0 }
 0x10f   :  { %v760_v60 = vadd.f32 %v759_v7, %v590_v58  ;;  %v1442_v7 = vld [vmem:[%s2536_s0 + $0x1e8] sm:$0xf0] }
 0x110   :  { %v1445_v9 = vor.u32 %v1582_v3, %v1442_v7 }
 0x111   :  { %898 = vst [vmem:[%s2537_s4 + $0x70] sm:$0xff] %v760_v60  ;;  %v962_v4 = vadd.f32 %v961_v49, %v760_v60  ;;  %v1035_v5 = vmul.f32 %v760_v60, %v760_v60  ;;  %629 = vmatmul.bf16.gmra.mxu0 %v1321_v48  ;;  %704 = vmatmul.bf16.gmra.mxu2 %v1441_v6 }
 0x112   :  { %v769_v8 = vpop.f32.mrf.mxu1  ;;  %1520 = vmatmul.msk.bf16.gmra.mxu3 %vm449_vm0, %v1445_v9 }
 0x113   :  { %v1098_v10 = vadd.f32 %v1097_v56, %v1035_v5 }
 0x115   :  { %v670_v42 = vpop.f32.mrf.mxu2 }
 0x116   :  { %v592_v11 = vpop.f32.mrf.mxu0 }
 0x117   :  { %v762_v13 = vadd.f32 %v2119_v17, %v592_v11  ;;  %v836_v17 = vpop.f32.mrf.mxu3 }
 0x118   :  { %v2211_v27 = vadd.f32 %v836_v17, %v667_v25 }
 0x119   :  { %899 = vst [vmem:[%s2537_s4 + $0x78] sm:$0xff] %v762_v13  ;;  %v963_v15 = vadd.f32 %v962_v4, %v762_v13  ;;  %v1036_v18 = vmul.f32 %v762_v13, %v762_v13 }
 0x11a   :  { %v771_v20 = vpop.f32.mrf.mxu1  ;;  %929 = vst [vmem:[%s2537_s4 + $0x168] sm:$0xff] %v2211_v27 }
 0x11b   :  { %v1099_v22 = vadd.f32 %v1098_v10, %v1036_v18 }
 0x11d   :  { %v672_v55 = vpop.f32.mrf.mxu2 }
 0x11e   :  { %v595_v24 = vpop.f32.mrf.mxu0 }
 0x11f   :  { %v765_v26 = vadd.f32 %v764_v41, %v595_v24  ;;  %v839_v44 = vpop.f32.mrf.mxu3 }
 0x120   :  { %v2236_v51 = vadd.f32 %v839_v44, %v670_v42 }
 0x121   :  { %900 = vst [vmem:[%s2537_s4 + $0x80] sm:$0xff] %v765_v26  ;;  %v964_v34 = vadd.f32 %v963_v15, %v765_v26  ;;  %v1037_v35 = vmul.f32 %v765_v26, %v765_v26  ;;  %709 = vmatmul.bf16.gmra.mxu2 %v1449_v36 }
 0x122   :  { %v774_v38 = vpop.f32.mrf.mxu1  ;;  %1521 = vmatmul.msk.bf16.gmra.mxu3 %vm449_vm0, %v1453_v39  ;;  %930 = vst [vmem:[%s2537_s4 + $0x170] sm:$0xff] %v2236_v51 }
 0x123   :  { %v1100_v40 = vadd.f32 %v1099_v22, %v1037_v35 }
 0x125   :  { %v675_v2 = vpop.f32.mrf.mxu2 }
 0x126   :  { %v597_v41 = vpop.f32.mrf.mxu0 }
 0x127   :  { %v767_v43 = vadd.f32 %v766_v52, %v597_v41  ;;  %v841_v52 = vpop.f32.mrf.mxu3 }
 0x128   :  { %v2242_v48 = vadd.f32 %v841_v52, %v672_v55 }
 0x129   :  { %901 = vst [vmem:[%s2537_s4 + $0x88] sm:$0xff] %v767_v43  ;;  %v965_v45 = vadd.f32 %v964_v34, %v767_v43  ;;  %v1038_v46 = vmul.f32 %v767_v43, %v767_v43 }
 0x12a   :  { %v776_v47 = vpop.f32.mrf.mxu1  ;;  %931 = vst [vmem:[%s2537_s4 + $0x178] sm:$0xff] %v2242_v48 }
 0x12b   :  { %v1101_v49 = vadd.f32 %v1100_v40, %v1038_v46 }
 0x12d   :  { %v677_v11 = vpop.f32.mrf.mxu2 }
 0x12e   :  { %v600_v50 = vpop.f32.mrf.mxu0 }
 0x12f   :  { %v770_v56 = vadd.f32 %v769_v8, %v600_v50  ;;  %v844_v4 = vpop.f32.mrf.mxu3 }
 0x130   :  { %v2254_v9 = vadd.f32 %v844_v4, %v675_v2 }
 0x131   :  { %902 = vst [vmem:[%s2537_s4 + $0x90] sm:$0xff] %v770_v56  ;;  %v966_v58 = vadd.f32 %v965_v45, %v770_v56  ;;  %v1039_v59 = vmul.f32 %v770_v56, %v770_v56 }
 0x132   :  { %v779_v60 = vpop.f32.mrf.mxu1  ;;  %932 = vst [vmem:[%s2537_s4 + $0x180] sm:$0xff] %v2254_v9 }
 0x133   :  { %v1102_v61 = vadd.f32 %v1101_v49, %v1039_v59 }
 0x135   :  { %v680_v25 = vpop.f32.mrf.mxu2 }
 0x136   :  { %v602_v1 = vpop.f32.mrf.mxu0 }
 0x137   :  { %v772_v3 = vadd.f32 %v771_v20, %v602_v1  ;;  %v846_v13 = vpop.f32.mrf.mxu3 }
 0x138   :  { %v2260_v14 = vadd.f32 %v846_v13, %v677_v11 }
 0x139   :  { %903 = vst [vmem:[%s2537_s4 + $0x98] sm:$0xff] %v772_v3  ;;  %v967_v5 = vadd.f32 %v966_v58, %v772_v3  ;;  %v1040_v6 = vmul.f32 %v772_v3, %v772_v3 }
 0x13a   :  { %v781_v7 = vpop.f32.mrf.mxu1  ;;  %933 = vst [vmem:[%s2537_s4 + $0x188] sm:$0xff] %v2260_v14 }
 0x13b   :  { %v1103_v8 = vadd.f32 %v1102_v61, %v1040_v6 }
 0x13d   :  { %v682_v34 = vpop.f32.mrf.mxu2 }
 0x13e   :  { %v605_v10 = vpop.f32.mrf.mxu0 }
 0x13f   :  { %v775_v12 = vadd.f32 %v774_v38, %v605_v10  ;;  %v849_v17 = vpop.f32.mrf.mxu3 }
 0x140   :  { %v2279_v29 = vadd.f32 %v849_v17, %v680_v25 }
 0x141   :  { %904 = vst [vmem:[%s2537_s4 + $0xa0] sm:$0xff] %v775_v12  ;;  %v2265_v15 = vadd.f32 %v967_v5, %v775_v12  ;;  %v1041_v18 = vmul.f32 %v775_v12, %v775_v12 }
 0x142   :  { %v784_v20 = vpop.f32.mrf.mxu1  ;;  %934 = vst [vmem:[%s2537_s4 + $0x190] sm:$0xff] %v2279_v29 }
 0x143   :  { %v2271_v22 = vadd.f32 %v1103_v8, %v1041_v18 }
 0x145   :  { %v685_v40 = vpop.f32.mrf.mxu2 }
 0x146   :  { %v607_v24 = vpop.f32.mrf.mxu0 }
 0x147   :  { %v2273_v26 = vadd.f32 %v776_v47, %v607_v24  ;;  %v851_v36 = vpop.f32.mrf.mxu3 }
 0x148   :  { %v2287_v37 = vadd.f32 %v851_v36, %v682_v34 }
 0x149   :  { %905 = vst [vmem:[%s2537_s4 + $0xa8] sm:$0xff] %v2273_v26 }
 0x14a   :  { %v786_v28 = vpop.f32.mrf.mxu1  ;;  %935 = vst [vmem:[%s2537_s4 + $0x198] sm:$0xff] %v2287_v37 }
 0x14d   :  { %v687_v46 = vpop.f32.mrf.mxu2 }
 0x14e   :  { %v610_v32 = vpop.f32.mrf.mxu0 }
 0x14f   :  { %v2285_v35 = vadd.f32 %v779_v60, %v610_v32  ;;  %v854_v42 = vpop.f32.mrf.mxu3 }
 0x150   :  { %v2300_v44 = vadd.f32 %v854_v42, %v685_v40 }
 0x151   :  { %906 = vst [vmem:[%s2537_s4 + $0xb0] sm:$0xff] %v2285_v35  ;;  %v1043_v36 = vmul.f32 %v2285_v35, %v2285_v35 }
 0x152   :  { %v789_v38 = vpop.f32.mrf.mxu1  ;;  %936 = vst [vmem:[%s2537_s4 + $0x1a0] sm:$0xff] %v2300_v44 }
 0x155   :  { %v690_v52 = vpop.f32.mrf.mxu2 }
 0x156   :  { %v612_v39 = vpop.f32.mrf.mxu0 }
 0x157   :  { %v782_v41 = vadd.f32 %v781_v7, %v612_v39  ;;  %v856_v49 = vpop.f32.mrf.mxu3 }
 0x158   :  { %v2306_v50 = vadd.f32 %v856_v49, %v687_v46 }
 0x159   :  { %907 = vst [vmem:[%s2537_s4 + $0xb8] sm:$0xff] %v782_v41  ;;  %v1044_v40 = vmul.f32 %v782_v41, %v782_v41 }
 0x15a   :  { %v791_v43 = vpop.f32.mrf.mxu1  ;;  %937 = vst [vmem:[%s2537_s4 + $0x1a8] sm:$0xff] %v2306_v50 }
 0x15d   :  { %v692_v2 = vpop.f32.mrf.mxu2 }
 0x15e   :  { %v615_v45 = vpop.f32.mrf.mxu0 }
 0x15f   :  { %v785_v47 = vadd.f32 %v784_v20, %v615_v45  ;;  %v859_v59 = vpop.f32.mrf.mxu3 }
 0x160   :  { %v2318_v61 = vadd.f32 %v859_v59, %v690_v52 }
 0x161   :  { %908 = vst [vmem:[%s2537_s4 + $0xc0] sm:$0xff] %v785_v47 }
 0x162   :  { %v794_v55 = vpop.f32.mrf.mxu1  ;;  %938 = vst [vmem:[%s2537_s4 + $0x1b0] sm:$0xff] %v2318_v61 }
 0x165   :  { %v695_v8 = vpop.f32.mrf.mxu2 }
 0x166   :  { %v617_v56 = vpop.f32.mrf.mxu0 }
 0x167   :  { %v787_v58 = vadd.f32 %v786_v28, %v617_v56  ;;  %v861_v4 = vpop.f32.mrf.mxu3  ;;  %v1042_v28 = vmul.f32 %v2273_v26, %v2273_v26 }
 0x168   :  { %v2324_v5 = vadd.f32 %v861_v4, %v692_v2 }
 0x169   :  { %909 = vst [vmem:[%s2537_s4 + $0xc8] sm:$0xff] %v787_v58  ;;  %v1105_v39 = vadd.f32 %v2271_v22, %v1042_v28 }
 0x16a   :  { %v796_v60 = vpop.f32.mrf.mxu1  ;;  %939 = vst [vmem:[%s2537_s4 + $0x1b8] sm:$0xff] %v2324_v5 }
 0x16b   :  { %v1106_v49 = vadd.f32 %v1105_v39, %v1043_v36 }
 0x16d   :  { %v697_v18 = vpop.f32.mrf.mxu2 }
 0x16e   :  { %v620_v1 = vpop.f32.mrf.mxu0 }
 0x16f   :  { %v790_v3 = vadd.f32 %v789_v38, %v620_v1  ;;  %v864_v11 = vpop.f32.mrf.mxu3  ;;  %v969_v38 = vadd.f32 %v2265_v15, %v2273_v26  ;;  %v1107_v15 = vadd.f32 %v1106_v49, %v1044_v40  ;;  %v1046_v26 = vmul.f32 %v787_v58, %v787_v58 }
 0x170   :  { %v2336_v24 = vadd.f32 %v864_v11, %v695_v8 }
 0x171   :  { %910 = vst [vmem:[%s2537_s4 + $0xd0] sm:$0xff] %v790_v3  ;;  %v1047_v4 = vmul.f32 %v790_v3, %v790_v3 }
 0x172   :  { %v799_v6 = vpop.f32.mrf.mxu1  ;;  %940 = vst [vmem:[%s2537_s4 + $0x1c0] sm:$0xff] %v2336_v24 }
 0x176   :  { %v622_v7 = vpop.f32.mrf.mxu0 }
 0x177   :  { %v792_v10 = vadd.f32 %v791_v43, %v622_v7  ;;  %v866_v25 = vpop.f32.mrf.mxu3  ;;  %v970_v43 = vadd.f32 %v969_v38, %v2285_v35 }
 0x178   :  { %v2338_v17 = vadd.f32 %v866_v25, %v697_v18 }
 0x179   :  { %911 = vst [vmem:[%s2537_s4 + $0xd8] sm:$0xff] %v792_v10  ;;  %v971_v56 = vadd.f32 %v970_v43, %v782_v41  ;;  %v1048_v8 = vmul.f32 %v792_v10, %v792_v10 }
 0x17a   :  { %v801_v12 = vpop.f32.mrf.mxu1  ;;  %941 = vst [vmem:[%s2537_s4 + $0x1c8] sm:$0xff] %v2338_v17 }
 0x17b   :  { %v972_v59 = vadd.f32 %v971_v56, %v785_v47 }
 0x17d   :  { %v973_v2 = vadd.f32 %v972_v59, %v787_v58 }
 0x17e   :  { %v625_v13 = vpop.f32.mrf.mxu0 }
 0x17f   :  { %v795_v20 = vadd.f32 %v794_v55, %v625_v13  ;;  %v869_v46 = vpop.f32.mrf.mxu3  ;;  %v1045_v55 = vmul.f32 %v785_v47, %v785_v47  ;;  %v974_v7 = vadd.f32 %v973_v2, %v790_v3 }
 0x181   :  { %912 = vst [vmem:[%s2537_s4 + $0xe0] sm:$0xff] %v795_v20  ;;  %v1108_v1 = vadd.f32 %v1107_v15, %v1045_v55  ;;  %v1049_v28 = vmul.f32 %v795_v20, %v795_v20 }
 0x182   :  { %v804_v32 = vpop.f32.mrf.mxu1 }
 0x183   :  { %v805_v34 = vadd.f32 %v804_v32, %v1932_v19  ;;  %v1109_v35 = vadd.f32 %v1108_v1, %v1046_v26  ;;  %v1055_v1 = vmul.f32 %v1981_v54, %v1981_v54 }
 0x184   :  { %v700_v19 = vpop.f32.mrf.mxu2 }
 0x185   :  { %916 = vst [vmem:[%s2537_s4 + $0x100] sm:$0xff] %v805_v34  ;;  %v2370_v13 = vadd.f32 %v869_v46, %v700_v19  ;;  %v1110_v47 = vadd.f32 %v1109_v35, %v1047_v4  ;;  %v1053_v55 = vmul.f32 %v805_v34, %v805_v34 }
 0x186   :  { %v627_v42 = vpop.f32.mrf.mxu0 }
 0x187   :  { %v797_v45 = vadd.f32 %v796_v60, %v627_v42  ;;  %v871_v18 = vpop.f32.mrf.mxu3  ;;  %942 = vst [vmem:[%s2537_s4 + $0x1d0] sm:$0xff] %v2370_v13  ;;  %v1111_v58 = vadd.f32 %v1110_v47, %v1048_v8 }
 0x189   :  { %913 = vst [vmem:[%s2537_s4 + $0xe8] sm:$0xff] %v797_v45  ;;  %v1112_v32 = vadd.f32 %v1111_v58, %v1049_v28 }
 0x18a   :  { %v806_v52 = vpop.f32.mrf.mxu1 }
 0x18b   :  { %v807_v22 = vadd.f32 %v806_v52, %v1951_v31  ;;  %v975_v31 = vadd.f32 %v974_v7, %v792_v10 }
 0x18c   :  { %v702_v41 = vpop.f32.mrf.mxu2 }
 0x18d   :  { %917 = vst [vmem:[%s2537_s4 + $0x108] sm:$0xff] %v807_v22  ;;  %v2372_v25 = vadd.f32 %v871_v18, %v702_v41  ;;  %v976_v3 = vadd.f32 %v975_v31, %v795_v20  ;;  %v1054_v26 = vmul.f32 %v807_v22, %v807_v22  ;;  %v1056_v41 = vmul.f32 %v1993_v63, %v1993_v63 }
 0x18e   :  { %v630_v60 = vpop.f32.mrf.mxu0  ;;  %v1059_v31 = vmul.f32 %v2079_v53, %v2079_v53 }
 0x18f   :  { %v800_v11 = vadd.f32 %v799_v6, %v630_v60  ;;  %v1050_v6 = vmul.f32 %v797_v45, %v797_v45  ;;  %943 = vst [vmem:[%s2537_s4 + $0x1d8] sm:$0xff] %v2372_v25  ;;  %v977_v10 = vadd.f32 %v976_v3, %v797_v45 }
 0x191   :  { %914 = vst [vmem:[%s2537_s4 + $0xf0] sm:$0xff] %v800_v11  ;;  %v1051_v36 = vmul.f32 %v800_v11, %v800_v11  ;;  %v1113_v40 = vadd.f32 %v1112_v32, %v1050_v6  ;;  %v978_v42 = vadd.f32 %v977_v10, %v800_v11  ;;  %v1060_v6 = vmul.f32 %v2092_v62, %v2092_v62 }
 0x192   :  { %v1061_v10 = vmul.f32 %v2127_v23, %v2127_v23 }
 0x193   :  { %v1114_v46 = vadd.f32 %v1113_v40, %v1051_v36 }
 0x194   :  { %v705_v39 = vpop.f32.mrf.mxu2 }
 0x195   :  { %v874_v43 = vpop.f32.mrf.mxu3 }
 0x196   :  { %v632_v38 = vpop.f32.mrf.mxu0  ;;  %v2391_v4 = vadd.f32 %v874_v43, %v705_v39 }
 0x197   :  { %v802_v19 = vadd.f32 %v801_v12, %v632_v38  ;;  %v1062_v38 = vmul.f32 %v2140_v33, %v2140_v33 }
 0x198   :  { %944 = vst [vmem:[%s2537_s4 + $0x1e0] sm:$0xff] %v2391_v4 }
 0x199   :  { %915 = vst [vmem:[%s2537_s4 + $0xf8] sm:$0xff] %v802_v19  ;;  %v979_v20 = vadd.f32 %v978_v42, %v802_v19  ;;  %v1052_v49 = vmul.f32 %v802_v19, %v802_v19  ;;  %v1063_v42 = vmul.f32 %v2173_v57, %v2173_v57 }
 0x19b   :  { %v980_v56 = vadd.f32 %v979_v20, %v805_v34  ;;  %v1115_v15 = vadd.f32 %v1114_v46, %v1052_v49 }
 0x19c   :  { %v707_v59 = vpop.f32.mrf.mxu2 }
 0x19d   :  { %v981_v52 = vadd.f32 %v980_v56, %v807_v22  ;;  %v1116_v45 = vadd.f32 %v1115_v15, %v1053_v55  ;;  %v876_v35 = vpop.f32.mrf.mxu3 }
 0x19e   :  { %v2393_v60 = vadd.f32 %v876_v35, %v707_v59  ;;  %v1610_v35 = vmov 0.0  }
 0x19f   :  { %v982_v12 = vadd.f32 %v981_v52, %v1981_v54  ;;  %v1117_v2 = vadd.f32 %v1116_v45, %v1054_v26  ;;  %v1057_v54 = vmul.f32 %v2030_v21, %v2030_v21  ;;  %v1067_v52 = vmul.f32 %v2236_v51, %v2236_v51  ;;  %24 = vst [vmem:[%s2538_s5] sm:$0x3] %v1610_v35 }
 0x1a0   :  { %945 = vst [vmem:[%s2537_s4 + $0x1e8] sm:$0xff] %v2393_v60 }
 0x1a1   :  { %v983_v34 = vadd.f32 %v982_v12, %v1993_v63  ;;  %v1118_v7 = vadd.f32 %v1117_v2, %v1055_v1  ;;  %v1058_v63 = vmul.f32 %v2042_v30, %v2042_v30  ;;  %v1068_v1 = vmul.f32 %v2242_v48, %v2242_v48 }
 0x1a3   :  { %v984_v22 = vadd.f32 %v983_v34, %v2030_v21  ;;  %v1119_v8 = vadd.f32 %v1118_v7, %v1056_v41 }
 0x1a4   :  { %v710_v47 = vpop.f32.mrf.mxu2 }
 0x1a5   :  { %v985_v11 = vadd.f32 %v984_v22, %v2042_v30  ;;  %v1120_v18 = vadd.f32 %v1119_v8, %v1057_v54  ;;  %v879_v3 = vpop.f32.mrf.mxu3  ;;  %v1072_v8 = vmul.f32 %v2287_v37, %v2287_v37 }
 0x1a6   :  { %v2427_v43 = vadd.f32 %v879_v3, %v710_v47 }
 0x1a7   :  { %v986_v28 = vadd.f32 %v985_v11, %v2079_v53  ;;  %v1121_v58 = vadd.f32 %v1120_v18, %v1058_v63 }
 0x1a8   :  { %946 = vst [vmem:[%s2537_s4 + $0x1f0] sm:$0xff] %v2427_v43 }
 0x1a9   :  { %v987_v21 = vadd.f32 %v986_v28, %v2092_v62  ;;  %v1122_v32 = vadd.f32 %v1121_v58, %v1059_v31 }
 0x1ab   :  { %v988_v30 = vadd.f32 %v987_v21, %v2127_v23  ;;  %v1123_v36 = vadd.f32 %v1122_v32, %v1060_v6  ;;  %v1064_v23 = vmul.f32 %v2179_v0, %v2179_v0  ;;  %v1077_v32 = vmul.f32 %v2336_v24, %v2336_v24 }
 0x1ac   :  { %v712_v40 = vpop.f32.mrf.mxu2 }
 0x1ad   :  { %v989_v39 = vadd.f32 %v988_v30, %v2140_v33  ;;  %v1124_v53 = vadd.f32 %v1123_v36, %v1061_v10  ;;  %v881_v46 = vpop.f32.mrf.mxu3  ;;  %v1065_v33 = vmul.f32 %v2205_v16, %v2205_v16  ;;  %v1078_v36 = vmul.f32 %v2338_v17, %v2338_v17 }
 0x1ae   :  { %v2429_v20 = vadd.f32 %v881_v46, %v712_v40  ;;  %v1080_v40 = vmul.f32 %v2372_v25, %v2372_v25  ;;  %v1082_v46 = vmul.f32 %v2393_v60, %v2393_v60 }
 0x1af   :  { %v990_v19 = vadd.f32 %v989_v39, %v2173_v57  ;;  %v1125_v62 = vadd.f32 %v1124_v53, %v1062_v38  ;;  %v1079_v39 = vmul.f32 %v2370_v13, %v2370_v13 }
 0x1b0   :  { %947 = vst [vmem:[%s2537_s4 + $0x1f8] sm:$0xff] %v2429_v20 }
 0x1b1   :  { %v991_v49 = vadd.f32 %v990_v19, %v2179_v0  ;;  %v1126_v55 = vadd.f32 %v1125_v62, %v1063_v42  ;;  %v1066_v0 = vmul.f32 %v2211_v27, %v2211_v27  ;;  %v1081_v19 = vmul.f32 %v2391_v4, %v2391_v4 }
 0x1b3   :  { %v1127_v57 = vadd.f32 %v1126_v55, %v1064_v23  ;;  %v992_v56 = vadd.f32 %v991_v49, %v2205_v16  ;;  %v1069_v16 = vmul.f32 %v2254_v9, %v2254_v9  ;;  %v1611_v23 = vmov 512.0  }
 0x1b4   :  { %1606 = vrcp.f32 %v1611_v23 }
 0x1b5   :  { %v993_v15 = vadd.f32 %v992_v56, %v2211_v27  ;;  %v1128_v26 = vadd.f32 %v1127_v57, %v1065_v33 }
 0x1b7   :  { %v994_v45 = vadd.f32 %v993_v15, %v2236_v51  ;;  %v1129_v59 = vadd.f32 %v1128_v26, %v1066_v0  ;;  %v1070_v51 = vmul.f32 %v2260_v14, %v2260_v14 }
 0x1b9   :  { %v995_v12 = vadd.f32 %v994_v45, %v2242_v48  ;;  %v1130_v2 = vadd.f32 %v1129_v59, %v1067_v52  ;;  %v1071_v48 = vmul.f32 %v2279_v29, %v2279_v29 }
 0x1ba   :  { %v1607_v57 = vpop.eup %1606 }
 0x1bb   :  { %v996_v27 = vadd.f32 %v995_v12, %v2254_v9  ;;  %v1131_v41 = vadd.f32 %v1130_v2, %v1068_v1  ;;  %v1073_v9 = vmul.f32 %v2300_v44, %v2300_v44  ;;  %vm1165_vm1 = vweird.f32 %v1607_v57 }
 0x1bd   :  { %v997_v34 = vadd.f32 %v996_v27, %v2260_v14  ;;  %v1132_v7 = vadd.f32 %v1131_v41, %v1069_v16  ;;  %v1074_v14 = vmul.f32 %v2306_v50, %v2306_v50 }
 0x1bf   :  { %v998_v54 = vadd.f32 %v997_v34, %v2279_v29  ;;  %v1133_v22 = vadd.f32 %v1132_v7, %v1070_v51  ;;  %v1075_v29 = vmul.f32 %v2318_v61, %v2318_v61 }
 0x1c1   :  { %v999_v63 = vadd.f32 %v998_v54, %v2287_v37  ;;  %v1134_v11 = vadd.f32 %v1133_v22, %v1071_v48  ;;  %v1076_v37 = vmul.f32 %v2324_v5, %v2324_v5 }
 0x1c3   :  { %v1000_v18 = vadd.f32 %v999_v63, %v2300_v44  ;;  %v1135_v47 = vadd.f32 %v1134_v11, %v1072_v8 }
 0x1c5   :  { %v1001_v31 = vadd.f32 %v1000_v18, %v2306_v50  ;;  %v1136_v28 = vadd.f32 %v1135_v47, %v1073_v9 }
 0x1c7   :  { %v1002_v58 = vadd.f32 %v1001_v31, %v2318_v61  ;;  %v1137_v3 = vadd.f32 %v1136_v28, %v1074_v14 }
 0x1c9   :  { %v1003_v6 = vadd.f32 %v1002_v58, %v2324_v5  ;;  %v1138_v21 = vadd.f32 %v1137_v3, %v1075_v29 }
 0x1cb   :  { %v1004_v44 = vadd.f32 %v1003_v6, %v2336_v24  ;;  %v1139_v10 = vadd.f32 %v1138_v21, %v1076_v37  ;;  %v1183_v37 = vld [vmem:[%s2539_s2] sm:$0x1] }
 0x1cd   :  { %v1140_v50 = vadd.f32 %v1139_v10, %v1077_v32  ;;  %v1005_v30 = vadd.f32 %v1004_v44, %v2338_v17  ;;  %v1185_v44 = vld [vmem:[%s2540_s3] sm:$0x1] }
 0x1cf   :  { %v1141_v61 = vadd.f32 %v1140_v50, %v1078_v36  ;;  %v1006_v38 = vadd.f32 %v1005_v30, %v2370_v13 }
 0x1d1   :  { %v1142_v5 = vadd.f32 %v1141_v61, %v1079_v39  ;;  %v1007_v53 = vadd.f32 %v1006_v38, %v2372_v25  ;;  %v1083_v25 = vmul.f32 %v2427_v43, %v2427_v43 }
 0x1d3   :  { %v1143_v24 = vadd.f32 %v1142_v5, %v1080_v40  ;;  %v1008_v42 = vadd.f32 %v1007_v53, %v2391_v4  ;;  %v1084_v4 = vmul.f32 %v2429_v20, %v2429_v20 }
 0x1d5   :  { %v1144_v62 = vadd.f32 %v1143_v24, %v1081_v19  ;;  %v1009_v17 = vadd.f32 %v1008_v42, %v2393_v60  ;;  %v1161_v60 = vmul.f32 512.0, %v1607_v57 }
 0x1d7   :  { %v1145_v13 = vadd.f32 %v1144_v62, %v1082_v46  ;;  %v1010_v49 = vadd.f32 %v1009_v17, %v2427_v43  ;;  %v1162_v12 = vsub.f32 1.0, %v1161_v60  ;;  %v948_v43 = vld [vmem:[%s2538_s5] sm:$0x1] }
 0x1d9   :  { %v1146_v55 = vadd.f32 %v1145_v13, %v1083_v25  ;;  %v1011_v33 = vadd.f32 %v1010_v49, %v2429_v20  ;;  %v1020_v20 = vld [vmem:[%s2538_s5 + $0x1] sm:$0x1]  ;;  %v1163_v41 = vmul.f32 %v1607_v57, %v1162_v12 }
 0x1db   :  { %v1012_v56 = vrot.slane %v1011_v33, 4  ;;  %v1147_v0 = vadd.f32 %v1146_v55, %v1084_v4  ;;  %v1164_v48 = vadd.f32 %v1607_v57, %v1163_v41 }
 0x1dd   :  { %v1013_v15 = vadd.f32 %v1012_v56, %v1011_v33  ;;  %v1148_v26 = vrot.slane %v1147_v0, 4  ;;  %v1166_v54 = vsel %vm1165_vm1, %v1607_v57, %v1164_v48 }
 0x1df   :  { %v1014_v52 = vrot.slane %v1013_v15, 2  ;;  %v1149_v45 = vadd.f32 %v1148_v26, %v1147_v0 }
 0x1e1   :  { %v1015_v59 = vadd.f32 %v1014_v52, %v1013_v15  ;;  %v1150_v1 = vrot.slane %v1149_v45, 2 }
 0x1e3   :  { %v1016_v2 = vrot.slane %v1015_v59, 1  ;;  %v1151_v35 = vadd.f32 %v1150_v1, %v1149_v45 }
 0x1e5   :  { %v1017_v16 = vadd.f32 %v1016_v2, %v1015_v59  ;;  %v1152_v27 = vrot.slane %v1151_v35, 1 }
 0x1e7   :  { %v1018_v51 = vadd.f32 %v1017_v16, %v948_v43  ;;  %v1153_v34 = vadd.f32 %v1152_v27, %v1151_v35 }
 0x1e9   :  { %1019 = vst [vmem:[%s2538_s5] sm:$0x1] %v1018_v51  ;;  %v1154_v7 = vadd.f32 %v1153_v34, %v1020_v20 }
 0x1eb   :  { %1155 = vst [vmem:[%s2538_s5 + $0x1] sm:$0x1] %v1154_v7 }
 0x1f0   :  { %v1159_v22 = vld [vmem:[%s2538_s5] sm:$0x1] }
 0x1f1   :  { %v1167_v8 = vmul.f32 %v1166_v54, %v1159_v22 }
 0x1f2   :  { %v1168_v63 = vld [vmem:[%s2538_s5 + $0x1] sm:$0x1] }
 0x1f3   :  { %v1169_v11 = vmul.f32 %v1168_v63, %v1166_v54  ;;  %v1170_v9 = vmul.f32 %v1167_v8, %v1167_v8 }
 0x1f5   :  { %v1171_v18 = vsub.f32 %v1169_v11, %v1170_v9 }
 0x1f7   :  { %v1172_v47 = vadd.f32 1e-05, %v1171_v18 }
 0x1f9   :  { %1608 = vrsqrt.f32 %v1172_v47  ;;  %vm1179_vm3 = vweird.f32 %v1172_v47 }
 0x1ff   :  { %v1609_v14 = vpop.eup %1608 }
 0x200   :  { %v1174_v31 = vmul.f32 %v1609_v14, %v1172_v47  ;;  %vm1180_vm2 = vweird.f32 %v1609_v14 }
 0x201   :  { %vm1181_vm4 = vmor %vm1179_vm3, %vm1180_vm2 }
 0x202   :  { %v1175_v28 = vmul.f32 %v1609_v14, %v1174_v31 }
 0x204   :  { %v1176_v29 = vmul.f32 0.5, %v1175_v28 }
 0x206   :  { %v1177_v58 = vsub.f32 1.5, %v1176_v29 }
 0x208   :  { %v1178_v3 = vmul.f32 %v1609_v14, %v1177_v58 }
 0x20a   :  { %v1182_v6 = vsel %vm1181_vm4, %v1609_v14, %v1178_v3 }
 0x20b   :  { %v1184_v21 = vmul.f32 %v1183_v37, %v1182_v6 }
 0x20d   :  { %v1186_v32 = vmul.f32 %v1184_v21, %v1167_v8  ;;  %1188 = vst [vmem:[%s2538_s5] sm:$0x1] %v1184_v21 }
 0x20f   :  { %v1187_v10 = vsub.f32 %v1185_v44, %v1186_v32 }
 0x211   :  { %1189 = vst [vmem:[%s2538_s5 + $0x1] sm:$0x1] %v1187_v10 }

// kernel: _lambda_.22
= control target key start
LH: loop header
LB: loop body
LE: loop exit
PB: predicated region body
PF: predicated region fallthrough
CT: control target
= control target key end

     0   :  { %s236_s0 = inlined_call_operand.vmem [shape: f32[128,128], index: 0, kind: input, shape index: {}]   ;;  %s237_s1 = inlined_call_operand.vmem [shape: f32[2,128], index: 1, kind: input, shape index: {}]   ;;  %s238_s2 = inlined_call_operand.vmem [shape: f32[128,128], index: 2, kind: output, shape index: {}]  }
   0x1   :  { %v11_v0 = vld [vmem:[%s236_s0] sm:$0xff]  ;;  %v12_v3 = vld [vmem:[%s236_s0 + $0x8] sm:$0xff]  ;;  %v13_v6 = vld [vmem:[%s236_s0 + $0x10] sm:$0xff] }
   0x2   :  { %v99_v1 = vld [vmem:[%s237_s1] ss:$0 sm:$0xff]  ;;  %v125_v2 = vld [vmem:[%s237_s1 + $0x1] ss:$0 sm:$0xff]  ;;  %v14_v7 = vld [vmem:[%s236_s0 + $0x18] sm:$0xff] }
   0x3   :  { %v29_v4 = vmul.f32 %v99_v1, %v11_v0  ;;  %v30_v5 = vmul.f32 %v99_v1, %v12_v3  ;;  %v15_v8 = vld [vmem:[%s236_s0 + $0x20] sm:$0xff]  ;;  %v31_v9 = vmul.f32 %v99_v1, %v13_v6  ;;  %v32_v10 = vmul.f32 %v99_v1, %v14_v7  ;;  %v16_v12 = vld [vmem:[%s236_s0 + $0x28] sm:$0xff]  ;;  %v17_v13 = vld [vmem:[%s236_s0 + $0x30] sm:$0xff] }
   0x4   :  { %v33_v11 = vmul.f32 %v99_v1, %v15_v8  ;;  %v18_v14 = vld [vmem:[%s236_s0 + $0x38] sm:$0xff]  ;;  %v34_v17 = vmul.f32 %v99_v1, %v16_v12  ;;  %v35_v18 = vmul.f32 %v99_v1, %v17_v13  ;;  %v19_v23 = vld [vmem:[%s236_s0 + $0x40] sm:$0xff]  ;;  %v20_v24 = vld [vmem:[%s236_s0 + $0x48] sm:$0xff] }
   0x5   :  { %v47_v15 = vadd.f32 %v125_v2, %v29_v4  ;;  %v48_v16 = vadd.f32 %v125_v2, %v30_v5  ;;  %v49_v19 = vadd.f32 %v125_v2, %v31_v9  ;;  %v50_v20 = vadd.f32 %v125_v2, %v32_v10  ;;  %v21_v29 = vld [vmem:[%s236_s0 + $0x50] sm:$0xff]  ;;  %v22_v30 = vld [vmem:[%s236_s0 + $0x58] sm:$0xff]  ;;  %v23_v31 = vld [vmem:[%s236_s0 + $0x60] sm:$0xff] }
   0x6   :  { %v51_v21 = vadd.f32 %v125_v2, %v33_v11  ;;  %v36_v22 = vmul.f32 %v99_v1, %v18_v14  ;;  %v52_v27 = vadd.f32 %v125_v2, %v34_v17  ;;  %v53_v28 = vadd.f32 %v125_v2, %v35_v18  ;;  %v24_v35 = vld [vmem:[%s236_s0 + $0x68] sm:$0xff]  ;;  %v25_v36 = vld [vmem:[%s236_s0 + $0x70] sm:$0xff]  ;;  %v26_v41 = vld [vmem:[%s236_s0 + $0x78] sm:$0xff] }
   0x7   :  { %v63_v25 = vmax.f32 %v47_v15, 0.0  ;;  %v64_v26 = vmax.f32 %v48_v16, 0.0  ;;  %v65_v32 = vmax.f32 %v49_v19, 0.0  ;;  %v66_v33 = vmax.f32 %v50_v20, 0.0 }
   0x8   :  { %v54_v34 = vadd.f32 %v125_v2, %v36_v22  ;;  %v67_v37 = vmax.f32 %v51_v21, 0.0  ;;  %v68_v38 = vmax.f32 %v52_v27, 0.0  ;;  %v37_v39 = vmul.f32 %v99_v1, %v19_v23 }
   0x9   :  { %79 = vst [vmem:[%s238_s2] sm:$0xff] %v63_v25  ;;  %v38_v40 = vmul.f32 %v99_v1, %v20_v24  ;;  %v69_v42 = vmax.f32 %v53_v28, 0.0  ;;  %v39_v43 = vmul.f32 %v99_v1, %v21_v29  ;;  %v40_v44 = vmul.f32 %v99_v1, %v22_v30 }
   0xa   :  { %80 = vst [vmem:[%s238_s2 + $0x8] sm:$0xff] %v64_v26  ;;  %v41_v45 = vmul.f32 %v99_v1, %v23_v31  ;;  %v55_v46 = vadd.f32 %v125_v2, %v37_v39  ;;  %v42_v48 = vmul.f32 %v99_v1, %v24_v35  ;;  %v43_v49 = vmul.f32 %v99_v1, %v25_v36 }
   0xb   :  { %81 = vst [vmem:[%s238_s2 + $0x10] sm:$0xff] %v65_v32  ;;  %v56_v47 = vadd.f32 %v125_v2, %v38_v40  ;;  %v70_v50 = vmax.f32 %v54_v34, 0.0  ;;  %v57_v51 = vadd.f32 %v125_v2, %v39_v43  ;;  %v58_v52 = vadd.f32 %v125_v2, %v40_v44 }
   0xc   :  { %82 = vst [vmem:[%s238_s2 + $0x18] sm:$0xff] %v66_v33  ;;  %v44_v53 = vmul.f32 %v99_v1, %v26_v41  ;;  %v71_v54 = vmax.f32 %v55_v46, 0.0  ;;  %v59_v55 = vadd.f32 %v125_v2, %v41_v45  ;;  %v60_v57 = vadd.f32 %v125_v2, %v42_v48 }
   0xd   :  { %83 = vst [vmem:[%s238_s2 + $0x20] sm:$0xff] %v67_v37  ;;  %v72_v56 = vmax.f32 %v56_v47, 0.0  ;;  %v73_v58 = vmax.f32 %v57_v51, 0.0  ;;  %v61_v59 = vadd.f32 %v125_v2, %v43_v49  ;;  %v74_v60 = vmax.f32 %v58_v52, 0.0 }
   0xe   :  { %84 = vst [vmem:[%s238_s2 + $0x28] sm:$0xff] %v68_v38  ;;  %v62_v61 = vadd.f32 %v125_v2, %v44_v53  ;;  %v75_v62 = vmax.f32 %v59_v55, 0.0  ;;  %v76_v63 = vmax.f32 %v60_v57, 0.0 }
   0xf   :  { %85 = vst [vmem:[%s238_s2 + $0x30] sm:$0xff] %v69_v42  ;;  %v77_v0 = vmax.f32 %v61_v59, 0.0 }
  0x10   :  { %86 = vst [vmem:[%s238_s2 + $0x38] sm:$0xff] %v70_v50  ;;  %v78_v1 = vmax.f32 %v62_v61, 0.0 }
  0x11   :  { %87 = vst [vmem:[%s238_s2 + $0x40] sm:$0xff] %v71_v54 }
  0x12   :  { %88 = vst [vmem:[%s238_s2 + $0x48] sm:$0xff] %v72_v56 }
  0x13   :  { %89 = vst [vmem:[%s238_s2 + $0x50] sm:$0xff] %v73_v58 }
  0x14   :  { %90 = vst [vmem:[%s238_s2 + $0x58] sm:$0xff] %v74_v60 }
  0x15   :  { %91 = vst [vmem:[%s238_s2 + $0x60] sm:$0xff] %v75_v62 }
  0x16   :  { %92 = vst [vmem:[%s238_s2 + $0x68] sm:$0xff] %v76_v63 }
  0x17   :  { %93 = vst [vmem:[%s238_s2 + $0x70] sm:$0xff] %v77_v0 }
  0x18   :  { %94 = vst [vmem:[%s238_s2 + $0x78] sm:$0xff] %v78_v1 }

// kernel: _lambda_.21
= control target key start
LH: loop header
LB: loop body
LE: loop exit
PB: predicated region body
PF: predicated region fallthrough
CT: control target
= control target key end

     0   :  { %vm185_vm0 = vcmask 130048   ;;  %s834_s1 = inlined_call_operand.vmem [shape: bf16[144,128], index: 1, kind: input, shape index: {}]   ;;  %s835_s0 = inlined_call_operand.vmem [shape: bf16[128,144], index: 0, kind: input, shape index: {}]   ;;  %s836_s4 = inlined_call_operand.vmem [shape: f32[128,128], index: 4, kind: output, shape index: {0}]   ;;  %s837_s5 = inlined_call_operand.vmem [shape: f32[2,128], index: 5, kind: output, shape index: {1}]   ;;  %s838_s2 = inlined_call_operand.vmem [shape: f32[1,128], index: 2, kind: input, shape index: {}]   ;;  %s839_s3 = inlined_call_operand.vmem [shape: f32[1,128], index: 3, kind: input, shape index: {}]  }
   0x1   :  { %v561_v0 = vld [vmem:[%s834_s1 + $0x38] sm:$0xff]  ;;  %v562_v1 = vld [vmem:[%s834_s1 + $0x40] sm:$0xff]  ;;  %v434_v3 = vld [vmem:[%s835_s0 + $0x8] sm:$0xf0] }
   0x2   :  { %v538_v2 = vld [vmem:[%s835_s0 + $0x4] sm:$0xf]  ;;  %210 = vmatpush.bf16.msra.mxu0 %v561_v0  ;;  %266 = vmatpush.bf16.msra.mxu1 %v562_v1  ;;  %v560_v5 = vld [vmem:[%s834_s1 + $0x30] sm:$0xff]  ;;  %v559_v6 = vld [vmem:[%s834_s1 + $0x28] sm:$0xff] }
   0x3   :  { %v437_v4 = vor.u32 %v538_v2, %v434_v3  ;;  %563 = vmatpush.bf16.msra.mxu2 %v561_v0  ;;  %571 = vmatpush.bf16.msra.mxu3 %v562_v1  ;;  %v558_v7 = vld [vmem:[%s834_s1 + $0x20] sm:$0xff]  ;;  %v557_v8 = vld [vmem:[%s834_s1 + $0x18] sm:$0xff]  ;;  %v540_v9 = vld [vmem:[%s835_s0 + $0x14] sm:$0xf] }
   0x4   :  { %v442_v10 = vld [vmem:[%s835_s0 + $0x18] sm:$0xf0]  ;;  %v548_v11 = vld [vmem:[%s835_s0 + $0x54] sm:$0xf]  ;;  %v555_v16 = vld [vmem:[%s834_s1 + $0x8] sm:$0xff] }
   0x5   :  { %530 = vmatmul.msk.bf16.vlgmr.msra.gmra.mxu1 %vm185_vm0, %v437_v4  ;;  %v445_v12 = vor.u32 %v540_v9, %v442_v10  ;;  %v474_v13 = vld [vmem:[%s835_s0 + $0x58] sm:$0xf0]  ;;  %v556_v14 = vld [vmem:[%s834_s1 + $0x10] sm:$0xff]  ;;  %v554_v17 = vld [vmem:[%s834_s1] sm:$0xff] }
   0x6   :  { %211 = vmatpush.bf16.msra.mxu0 %v560_v5  ;;  %v477_v15 = vor.u32 %v548_v11, %v474_v13  ;;  %v432_v18 = vld [vmem:[%s835_s0] sm:$0xf]  ;;  %v539_v19 = vld [vmem:[%s835_s0 + $0x4] sm:$0xf0]  ;;  %v542_v24 = vld [vmem:[%s835_s0 + $0x24] sm:$0xf] }
   0x7   :  { %564 = vmatpush.bf16.msra.mxu2 %v560_v5  ;;  %v464_v20 = vld [vmem:[%s835_s0 + $0x40] sm:$0xf]  ;;  %v547_v21 = vld [vmem:[%s835_s0 + $0x44] sm:$0xf0]  ;;  %v433_v22 = vor.u32 %v539_v19, %v432_v18  ;;  %v450_v25 = vld [vmem:[%s835_s0 + $0x28] sm:$0xf0] }
   0x8   :  { %535 = vmatmul.msk.bf16.vlgmr.msra.gmra.mxu3 %vm185_vm0, %v477_v15  ;;  %v465_v23 = vor.u32 %v547_v21, %v464_v20  ;;  %v550_v26 = vld [vmem:[%s835_s0 + $0x64] sm:$0xf]  ;;  %v453_v27 = vor.u32 %v542_v24, %v450_v25  ;;  %v482_v28 = vld [vmem:[%s835_s0 + $0x68] sm:$0xf0]  ;;  %v440_v30 = vld [vmem:[%s835_s0 + $0x10] sm:$0xf] }
   0x9   :  { %v485_v29 = vor.u32 %v550_v26, %v482_v28  ;;  %v541_v31 = vld [vmem:[%s835_s0 + $0x14] sm:$0xf0]  ;;  %v472_v32 = vld [vmem:[%s835_s0 + $0x50] sm:$0xf]  ;;  %v544_v36 = vld [vmem:[%s835_s0 + $0x34] sm:$0xf] }
   0xa   :  { %212 = vmatpush.bf16.msra.mxu0 %v559_v6  ;;  %v549_v33 = vld [vmem:[%s835_s0 + $0x54] sm:$0xf0]  ;;  %v441_v34 = vor.u32 %v541_v31, %v440_v30  ;;  %v458_v37 = vld [vmem:[%s835_s0 + $0x38] sm:$0xf0]  ;;  %v552_v38 = vld [vmem:[%s835_s0 + $0x74] sm:$0xf] }
   0xb   :  { %565 = vmatpush.bf16.msra.mxu2 %v559_v6  ;;  %v473_v35 = vor.u32 %v549_v33, %v472_v32  ;;  %v461_v39 = vor.u32 %v544_v36, %v458_v37  ;;  %v490_v40 = vld [vmem:[%s835_s0 + $0x78] sm:$0xf0]  ;;  %v448_v42 = vld [vmem:[%s835_s0 + $0x20] sm:$0xf]  ;;  %v543_v43 = vld [vmem:[%s835_s0 + $0x24] sm:$0xf0] }
   0xc   :  { %v493_v41 = vor.u32 %v552_v38, %v490_v40  ;;  %v480_v44 = vld [vmem:[%s835_s0 + $0x60] sm:$0xf]  ;;  %v551_v45 = vld [vmem:[%s835_s0 + $0x64] sm:$0xf0]  ;;  %v449_v46 = vor.u32 %v543_v43, %v448_v42  ;;  %v546_v48 = vld [vmem:[%s835_s0 + $0x44] sm:$0xf] }
   0xd   :  { %v481_v47 = vor.u32 %v551_v45, %v480_v44  ;;  %v466_v49 = vld [vmem:[%s835_s0 + $0x48] sm:$0xf0]  ;;  %v456_v51 = vld [vmem:[%s835_s0 + $0x30] sm:$0xf]  ;;  %v545_v52 = vld [vmem:[%s835_s0 + $0x34] sm:$0xf0] }
   0xe   :  { %213 = vmatpush.bf16.msra.mxu0 %v558_v7  ;;  %v469_v50 = vor.u32 %v546_v48, %v466_v49  ;;  %v488_v53 = vld [vmem:[%s835_s0 + $0x70] sm:$0xf]  ;;  %v553_v54 = vld [vmem:[%s835_s0 + $0x74] sm:$0xf0]  ;;  %v457_v55 = vor.u32 %v545_v52, %v456_v51  ;;  %v578_v28 = vmov 0.0  }
   0xf   :  { %566 = vmatpush.bf16.msra.mxu2 %v558_v7  ;;  %v489_v56 = vor.u32 %v553_v54, %v488_v53  ;;  %24 = vst [vmem:[%s837_s5] sm:$0x3] %v578_v28 }
  0x12   :  { %214 = vmatpush.bf16.msra.mxu0 %v557_v8 }
  0x13   :  { %567 = vmatpush.bf16.msra.mxu2 %v557_v8 }
  0x15   :  { %531 = vmatmul.msk.bf16.gmra.mxu1 %vm185_vm0, %v445_v12 }
  0x16   :  { %215 = vmatpush.bf16.msra.mxu0 %v556_v14 }
  0x17   :  { %568 = vmatpush.bf16.msra.mxu2 %v556_v14 }
  0x18   :  { %536 = vmatmul.msk.bf16.gmra.mxu3 %vm185_vm0, %v485_v29 }
  0x1a   :  { %216 = vmatpush.bf16.msra.mxu0 %v555_v16 }
  0x1b   :  { %569 = vmatpush.bf16.msra.mxu2 %v555_v16 }
  0x1e   :  { %217 = vmatpush.bf16.msra.mxu0 %v554_v17 }
  0x1f   :  { %570 = vmatpush.bf16.msra.mxu2 %v554_v17 }
  0x21   :  { %218 = vmatmul.bf16.vlgmr.msra.gmra.mxu0 %v433_v22 }
  0x22   :  { %238 = vmatmul.bf16.vlgmr.msra.gmra.mxu2 %v465_v23 }
  0x25   :  { %532 = vmatmul.msk.bf16.gmra.mxu1 %vm185_vm0, %v453_v27 }
  0x28   :  { %537 = vmatmul.msk.bf16.gmra.mxu3 %vm185_vm0, %v493_v41 }
  0x31   :  { %223 = vmatmul.bf16.gmra.mxu0 %v441_v34 }
  0x32   :  { %243 = vmatmul.bf16.gmra.mxu2 %v473_v35 }
  0x35   :  { %533 = vmatmul.msk.bf16.gmra.mxu1 %vm185_vm0, %v461_v39 }
  0x41   :  { %228 = vmatmul.bf16.gmra.mxu0 %v449_v46 }
  0x42   :  { %248 = vmatmul.bf16.gmra.mxu2 %v481_v47 }
  0x45   :  { %534 = vmatmul.msk.bf16.gmra.mxu1 %vm185_vm0, %v469_v50 }
  0x51   :  { %233 = vmatmul.bf16.gmra.mxu0 %v457_v55 }
  0x52   :  { %253 = vmatmul.bf16.gmra.mxu2 %v489_v56 }
  0x82   :  { %v268_v57 = vpop.f32.mrf.mxu1 }
  0x8a   :  { %v270_v58 = vpop.f32.mrf.mxu1 }
  0x8b   :  { %v293_v3 = vpop.f32.mrf.mxu3 }
  0x92   :  { %v273_v59 = vpop.f32.mrf.mxu1 }
  0x93   :  { %v295_v9 = vpop.f32.mrf.mxu3 }
  0x9a   :  { %v275_v60 = vpop.f32.mrf.mxu1 }
  0x9b   :  { %v298_v16 = vpop.f32.mrf.mxu3 }
  0x9e   :  { %v219_v61 = vpop.f32.mrf.mxu0 }
  0x9f   :  { %v269_v62 = vadd.f32 %v268_v57, %v219_v61 }
  0xa1   :  { %308 = vst [vmem:[%s836_s4] sm:$0xff] %v269_v62  ;;  %v349_v31 = vmul.f32 %v269_v62, %v269_v62 }
  0xa2   :  { %v278_v63 = vpop.f32.mrf.mxu1 }
  0xa3   :  { %v300_v26 = vpop.f32.mrf.mxu3 }
  0xa5   :  { %v239_v0 = vpop.f32.mrf.mxu2 }
  0xa6   :  { %v221_v1 = vpop.f32.mrf.mxu0 }
  0xa7   :  { %v271_v2 = vadd.f32 %v270_v58, %v221_v1 }
  0xa9   :  { %309 = vst [vmem:[%s836_s4 + $0x8] sm:$0xff] %v271_v2  ;;  %v350_v29 = vmul.f32 %v271_v2, %v271_v2  ;;  %v325_v32 = vadd.f32 %v271_v2, %v269_v62 }
  0xaa   :  { %v280_v4 = vpop.f32.mrf.mxu1 }
  0xab   :  { %v365_v37 = vadd.f32 %v350_v29, %v349_v31  ;;  %v303_v44 = vpop.f32.mrf.mxu3 }
  0xad   :  { %v241_v5 = vpop.f32.mrf.mxu2 }
  0xae   :  { %v224_v6 = vpop.f32.mrf.mxu0 }
  0xaf   :  { %v274_v7 = vadd.f32 %v273_v59, %v224_v6 }
  0xb1   :  { %310 = vst [vmem:[%s836_s4 + $0x10] sm:$0xff] %v274_v7  ;;  %v351_v33 = vmul.f32 %v274_v7, %v274_v7  ;;  %v326_v38 = vadd.f32 %v325_v32, %v274_v7 }
  0xb2   :  { %v283_v8 = vpop.f32.mrf.mxu1 }
  0xb3   :  { %v366_v41 = vadd.f32 %v365_v37, %v351_v33  ;;  %v324_v37 = vld [vmem:[%s837_s5] sm:$0x1] }
  0xb5   :  { %v244_v10 = vpop.f32.mrf.mxu2 }
  0xb6   :  { %v226_v11 = vpop.f32.mrf.mxu0  ;;  %v750_v12 = vadd.f32 %v293_v3, %v244_v10 }
  0xb7   :  { %v276_v13 = vadd.f32 %v275_v60, %v226_v11 }
  0xb8   :  { %318 = vst [vmem:[%s836_s4 + $0x50] sm:$0xff] %v750_v12 }
  0xb9   :  { %311 = vst [vmem:[%s836_s4 + $0x18] sm:$0xff] %v276_v13  ;;  %v352_v39 = vmul.f32 %v276_v13, %v276_v13  ;;  %v327_v42 = vadd.f32 %v326_v38, %v276_v13 }
  0xba   :  { %v285_v14 = vpop.f32.mrf.mxu1 }
  0xbb   :  { %v367_v45 = vadd.f32 %v366_v41, %v352_v39 }
  0xbd   :  { %v246_v15 = vpop.f32.mrf.mxu2 }
  0xbe   :  { %v229_v17 = vpop.f32.mrf.mxu0  ;;  %v759_v18 = vadd.f32 %v295_v9, %v246_v15 }
  0xbf   :  { %v279_v19 = vadd.f32 %v278_v63, %v229_v17  ;;  %v305_v63 = vpop.f32.mrf.mxu3 }
  0xc0   :  { %319 = vst [vmem:[%s836_s4 + $0x58] sm:$0xff] %v759_v18 }
  0xc1   :  { %312 = vst [vmem:[%s836_s4 + $0x20] sm:$0xff] %v279_v19  ;;  %v353_v43 = vmul.f32 %v279_v19, %v279_v19  ;;  %v328_v46 = vadd.f32 %v327_v42, %v279_v19  ;;  %v579_v19 = vmov 128.0  }
  0xc2   :  { %v288_v20 = vpop.f32.mrf.mxu1  ;;  %574 = vrcp.f32 %v579_v19 }
  0xc3   :  { %v289_v21 = vadd.f32 %v288_v20, %v239_v0  ;;  %v368_v48 = vadd.f32 %v367_v45, %v353_v43 }
  0xc5   :  { %316 = vst [vmem:[%s836_s4 + $0x40] sm:$0xff] %v289_v21  ;;  %v249_v22 = vpop.f32.mrf.mxu2  ;;  %v357_v60 = vmul.f32 %v289_v21, %v289_v21 }
  0xc6   :  { %v231_v23 = vpop.f32.mrf.mxu0  ;;  %v299_v24 = vadd.f32 %v298_v16, %v249_v22 }
  0xc7   :  { %v281_v25 = vadd.f32 %v280_v4, %v231_v23 }
  0xc8   :  { %320 = vst [vmem:[%s836_s4 + $0x60] sm:$0xff] %v299_v24  ;;  %v361_v11 = vmul.f32 %v299_v24, %v299_v24 }
  0xc9   :  { %313 = vst [vmem:[%s836_s4 + $0x28] sm:$0xff] %v281_v25  ;;  %v354_v47 = vmul.f32 %v281_v25, %v281_v25  ;;  %v329_v49 = vadd.f32 %v328_v46, %v281_v25 }
  0xca   :  { %v290_v27 = vpop.f32.mrf.mxu1 }
  0xcb   :  { %v291_v30 = vadd.f32 %v290_v27, %v241_v5  ;;  %v369_v54 = vadd.f32 %v368_v48, %v354_v47  ;;  %v359_v5 = vmul.f32 %v750_v12, %v750_v12 }
  0xcd   :  { %317 = vst [vmem:[%s836_s4 + $0x48] sm:$0xff] %v291_v30  ;;  %v251_v34 = vpop.f32.mrf.mxu2  ;;  %v358_v0 = vmul.f32 %v291_v30, %v291_v30 }
  0xce   :  { %v234_v35 = vpop.f32.mrf.mxu0  ;;  %v301_v36 = vadd.f32 %v300_v26, %v251_v34  ;;  %v575_v26 = vpop.eup %574 }
  0xcf   :  { %v284_v40 = vadd.f32 %v283_v8, %v234_v35  ;;  %v360_v8 = vmul.f32 %v759_v18, %v759_v18  ;;  %vm397_vm1 = vweird.f32 %v575_v26 }
  0xd0   :  { %321 = vst [vmem:[%s836_s4 + $0x68] sm:$0xff] %v301_v36  ;;  %v362_v15 = vmul.f32 %v301_v36, %v301_v36 }
  0xd1   :  { %314 = vst [vmem:[%s836_s4 + $0x30] sm:$0xff] %v284_v40  ;;  %v355_v50 = vmul.f32 %v284_v40, %v284_v40  ;;  %v330_v55 = vadd.f32 %v329_v49, %v284_v40  ;;  %v348_v40 = vld [vmem:[%s837_s5 + $0x1] sm:$0x1] }
  0xd3   :  { %v370_v57 = vadd.f32 %v369_v54, %v355_v50 }
  0xd5   :  { %v254_v51 = vpop.f32.mrf.mxu2 }
  0xd6   :  { %v236_v52 = vpop.f32.mrf.mxu0  ;;  %v304_v53 = vadd.f32 %v303_v44, %v254_v51 }
  0xd7   :  { %v286_v56 = vadd.f32 %v285_v14, %v236_v52 }
  0xd8   :  { %322 = vst [vmem:[%s836_s4 + $0x70] sm:$0xff] %v304_v53  ;;  %v363_v20 = vmul.f32 %v304_v53, %v304_v53 }
  0xd9   :  { %315 = vst [vmem:[%s836_s4 + $0x38] sm:$0xff] %v286_v56  ;;  %v331_v58 = vadd.f32 %v330_v55, %v286_v56  ;;  %v356_v59 = vmul.f32 %v286_v56, %v286_v56 }
  0xdb   :  { %v332_v61 = vadd.f32 %v331_v58, %v289_v21  ;;  %v371_v62 = vadd.f32 %v370_v57, %v356_v59 }
  0xdd   :  { %v333_v1 = vadd.f32 %v332_v61, %v291_v30  ;;  %v372_v2 = vadd.f32 %v371_v62, %v357_v60  ;;  %v256_v3 = vpop.f32.mrf.mxu2  ;;  %v415_v60 = vld [vmem:[%s838_s2] sm:$0x1] }
  0xde   :  { %v306_v4 = vadd.f32 %v305_v63, %v256_v3  ;;  %v417_v63 = vld [vmem:[%s839_s3] sm:$0x1] }
  0xdf   :  { %v334_v6 = vadd.f32 %v333_v1, %v750_v12  ;;  %v373_v7 = vadd.f32 %v372_v2, %v358_v0 }
  0xe0   :  { %323 = vst [vmem:[%s836_s4 + $0x78] sm:$0xff] %v306_v4  ;;  %v364_v25 = vmul.f32 %v306_v4, %v306_v4 }
  0xe1   :  { %v374_v9 = vadd.f32 %v373_v7, %v359_v5  ;;  %v335_v10 = vadd.f32 %v334_v6, %v759_v18  ;;  %v393_v18 = vmul.f32 128.0, %v575_v26 }
  0xe3   :  { %v336_v13 = vadd.f32 %v335_v10, %v299_v24  ;;  %v375_v14 = vadd.f32 %v374_v9, %v360_v8  ;;  %v394_v34 = vsub.f32 1.0, %v393_v18 }
  0xe5   :  { %v337_v16 = vadd.f32 %v336_v13, %v301_v36  ;;  %v376_v17 = vadd.f32 %v375_v14, %v361_v11  ;;  %v395_v41 = vmul.f32 %v575_v26, %v394_v34 }
  0xe7   :  { %v338_v12 = vadd.f32 %v337_v16, %v304_v53  ;;  %v377_v21 = vadd.f32 %v376_v17, %v362_v15  ;;  %v396_v45 = vadd.f32 %v575_v26, %v395_v41 }
  0xe9   :  { %v378_v22 = vadd.f32 %v377_v21, %v363_v20  ;;  %v339_v23 = vadd.f32 %v338_v12, %v306_v4  ;;  %v398_v46 = vsel %vm397_vm1, %v575_v26, %v396_v45 }
  0xeb   :  { %v340_v27 = vrot.slane %v339_v23, 4  ;;  %v379_v28 = vadd.f32 %v378_v22, %v364_v25 }
  0xed   :  { %v341_v29 = vadd.f32 %v340_v27, %v339_v23  ;;  %v380_v30 = vrot.slane %v379_v28, 4 }
  0xef   :  { %v342_v31 = vrot.slane %v341_v29, 2  ;;  %v381_v24 = vadd.f32 %v380_v30, %v379_v28 }
  0xf1   :  { %v343_v32 = vadd.f32 %v342_v31, %v341_v29  ;;  %v382_v33 = vrot.slane %v381_v24, 2 }
  0xf3   :  { %v344_v35 = vrot.slane %v343_v32, 1  ;;  %v383_v36 = vadd.f32 %v382_v33, %v381_v24 }
  0xf5   :  { %v345_v38 = vadd.f32 %v344_v35, %v343_v32  ;;  %v384_v39 = vrot.slane %v383_v36, 1 }
  0xf7   :  { %v346_v42 = vadd.f32 %v345_v38, %v324_v37  ;;  %v385_v43 = vadd.f32 %v384_v39, %v383_v36 }
  0xf9   :  { %347 = vst [vmem:[%s837_s5] sm:$0x1] %v346_v42  ;;  %v386_v44 = vadd.f32 %v385_v43, %v348_v40 }
  0xfb   :  { %387 = vst [vmem:[%s837_s5 + $0x1] sm:$0x1] %v386_v44 }
 0x100   :  { %v391_v47 = vld [vmem:[%s837_s5] sm:$0x1] }
 0x101   :  { %v399_v48 = vmul.f32 %v398_v46, %v391_v47 }
 0x102   :  { %v400_v49 = vld [vmem:[%s837_s5 + $0x1] sm:$0x1] }
 0x103   :  { %v401_v50 = vmul.f32 %v400_v49, %v398_v46  ;;  %v402_v51 = vmul.f32 %v399_v48, %v399_v48 }
 0x105   :  { %v403_v52 = vsub.f32 %v401_v50, %v402_v51 }
 0x107   :  { %v404_v53 = vadd.f32 1e-05, %v403_v52 }
 0x109   :  { %576 = vrsqrt.f32 %v404_v53  ;;  %vm411_vm3 = vweird.f32 %v404_v53 }
 0x10f   :  { %v577_v54 = vpop.eup %576 }
 0x110   :  { %v406_v55 = vmul.f32 %v577_v54, %v404_v53  ;;  %vm412_vm2 = vweird.f32 %v577_v54 }
 0x111   :  { %vm413_vm4 = vmor %vm411_vm3, %vm412_vm2 }
 0x112   :  { %v407_v56 = vmul.f32 %v577_v54, %v406_v55 }
 0x114   :  { %v408_v57 = vmul.f32 0.5, %v407_v56 }
 0x116   :  { %v409_v58 = vsub.f32 1.5, %v408_v57 }
 0x118   :  { %v410_v59 = vmul.f32 %v577_v54, %v409_v58 }
 0x11a   :  { %v414_v61 = vsel %vm413_vm4, %v577_v54, %v410_v59 }
 0x11b   :  { %v416_v62 = vmul.f32 %v415_v60, %v414_v61 }
 0x11d   :  { %v418_v0 = vmul.f32 %v416_v62, %v399_v48  ;;  %420 = vst [vmem:[%s837_s5] sm:$0x1] %v416_v62 }
 0x11f   :  { %v419_v1 = vsub.f32 %v417_v63, %v418_v0 }
 0x121   :  { %421 = vst [vmem:[%s837_s5 + $0x1] sm:$0x1] %v419_v1 }

// kernel: _lambda_.24
= control target key start
LH: loop header
LB: loop body
LE: loop exit
PB: predicated region body
PF: predicated region fallthrough
CT: control target
= control target key end

     0   :  { %s342_s0 = inlined_call_operand.vmem [shape: f32[128,128], index: 0, kind: input, shape index: {}]   ;;  %s343_s1 = inlined_call_operand.vmem [shape: f32[2,128], index: 1, kind: input, shape index: {}]   ;;  %s344_s2 = inlined_call_operand.vmem [shape: f32[128,128], index: 2, kind: input, shape index: {}]   ;;  %s345_s3 = inlined_call_operand.vmem [shape: f32[128,128], index: 3, kind: output, shape index: {}]  }
   0x1   :  { %v14_v0 = vld [vmem:[%s342_s0] sm:$0xff]  ;;  %v15_v4 = vld [vmem:[%s342_s0 + $0x8] sm:$0xff]  ;;  %v16_v5 = vld [vmem:[%s342_s0 + $0x10] sm:$0xff] }
   0x2   :  { %v162_v1 = vld [vmem:[%s343_s1] ss:$0 sm:$0xff]  ;;  %v167_v2 = vld [vmem:[%s343_s1 + $0x1] ss:$0 sm:$0xff]  ;;  %v67_v8 = vld [vmem:[%s344_s2 + $0x8] sm:$0xff] }
   0x3   :  { %v32_v3 = vmul.f32 %v162_v1, %v14_v0  ;;  %v66_v6 = vld [vmem:[%s344_s2] sm:$0xff]  ;;  %v33_v7 = vmul.f32 %v162_v1, %v15_v4  ;;  %v34_v9 = vmul.f32 %v162_v1, %v16_v5  ;;  %v17_v10 = vld [vmem:[%s342_s0 + $0x18] sm:$0xff]  ;;  %v68_v12 = vld [vmem:[%s344_s2 + $0x10] sm:$0xff] }
   0x4   :  { %v35_v13 = vmul.f32 %v162_v1, %v17_v10  ;;  %v18_v14 = vld [vmem:[%s342_s0 + $0x20] sm:$0xff]  ;;  %v19_v15 = vld [vmem:[%s342_s0 + $0x28] sm:$0xff]  ;;  %v69_v18 = vld [vmem:[%s344_s2 + $0x18] sm:$0xff] }
   0x5   :  { %v50_v11 = vadd.f32 %v167_v2, %v32_v3  ;;  %v51_v16 = vadd.f32 %v167_v2, %v33_v7  ;;  %v52_v17 = vadd.f32 %v167_v2, %v34_v9  ;;  %v36_v19 = vmul.f32 %v162_v1, %v18_v14  ;;  %v20_v21 = vld [vmem:[%s342_s0 + $0x30] sm:$0xff]  ;;  %v70_v24 = vld [vmem:[%s344_s2 + $0x20] sm:$0xff]  ;;  %v71_v25 = vld [vmem:[%s344_s2 + $0x28] sm:$0xff] }
   0x6   :  { %v37_v20 = vmul.f32 %v162_v1, %v19_v15  ;;  %v53_v23 = vadd.f32 %v167_v2, %v35_v13  ;;  %v38_v26 = vmul.f32 %v162_v1, %v20_v21  ;;  %v21_v27 = vld [vmem:[%s342_s0 + $0x38] sm:$0xff]  ;;  %v72_v32 = vld [vmem:[%s344_s2 + $0x30] sm:$0xff]  ;;  %v22_v33 = vld [vmem:[%s342_s0 + $0x40] sm:$0xff] }
   0x7   :  { %v82_v22 = vadd.f32 %v66_v6, %v50_v11  ;;  %v83_v28 = vadd.f32 %v67_v8, %v51_v16  ;;  %v84_v29 = vadd.f32 %v68_v12, %v52_v17  ;;  %v54_v30 = vadd.f32 %v167_v2, %v36_v19  ;;  %v23_v38 = vld [vmem:[%s342_s0 + $0x48] sm:$0xff]  ;;  %v24_v39 = vld [vmem:[%s342_s0 + $0x50] sm:$0xff]  ;;  %v73_v44 = vld [vmem:[%s344_s2 + $0x38] sm:$0xff] }
   0x8   :  { %v55_v31 = vadd.f32 %v167_v2, %v37_v20  ;;  %v85_v35 = vadd.f32 %v69_v18, %v53_v23  ;;  %v56_v36 = vadd.f32 %v167_v2, %v38_v26  ;;  %v39_v37 = vmul.f32 %v162_v1, %v21_v27  ;;  %v25_v45 = vld [vmem:[%s342_s0 + $0x58] sm:$0xff]  ;;  %v26_v50 = vld [vmem:[%s342_s0 + $0x60] sm:$0xff]  ;;  %v27_v51 = vld [vmem:[%s342_s0 + $0x68] sm:$0xff] }
   0x9   :  { %v98_v34 = vmax.f32 %v82_v22, 0.0  ;;  %v99_v40 = vmax.f32 %v83_v28, 0.0  ;;  %v100_v41 = vmax.f32 %v84_v29, 0.0  ;;  %v86_v42 = vadd.f32 %v70_v24, %v54_v30  ;;  %v74_v54 = vld [vmem:[%s344_s2 + $0x40] sm:$0xff]  ;;  %v28_v57 = vld [vmem:[%s342_s0 + $0x70] sm:$0xff]  ;;  %v75_v61 = vld [vmem:[%s344_s2 + $0x48] sm:$0xff] }
   0xa   :  { %v87_v43 = vadd.f32 %v71_v25, %v55_v31  ;;  %v101_v46 = vmax.f32 %v85_v35, 0.0  ;;  %v88_v47 = vadd.f32 %v72_v32, %v56_v36  ;;  %v57_v48 = vadd.f32 %v167_v2, %v39_v37  ;;  %v76_v62 = vld [vmem:[%s344_s2 + $0x50] sm:$0xff]  ;;  %v77_v4 = vld [vmem:[%s344_s2 + $0x58] sm:$0xff]  ;;  %v78_v11 = vld [vmem:[%s344_s2 + $0x60] sm:$0xff] }
   0xb   :  { %114 = vst [vmem:[%s345_s3] sm:$0xff] %v98_v34  ;;  %v40_v49 = vmul.f32 %v162_v1, %v22_v33  ;;  %v102_v52 = vmax.f32 %v86_v42, 0.0  ;;  %v41_v55 = vmul.f32 %v162_v1, %v23_v38  ;;  %v42_v56 = vmul.f32 %v162_v1, %v24_v39  ;;  %v29_v7 = vld [vmem:[%s342_s0 + $0x78] sm:$0xff]  ;;  %v79_v12 = vld [vmem:[%s344_s2 + $0x68] sm:$0xff]  ;;  %v80_v18 = vld [vmem:[%s344_s2 + $0x70] sm:$0xff] }
   0xc   :  { %115 = vst [vmem:[%s345_s3 + $0x8] sm:$0xff] %v99_v40  ;;  %v103_v53 = vmax.f32 %v87_v43, 0.0  ;;  %v104_v58 = vmax.f32 %v88_v47, 0.0  ;;  %v89_v59 = vadd.f32 %v73_v44, %v57_v48  ;;  %v43_v63 = vmul.f32 %v162_v1, %v25_v45  ;;  %v81_v27 = vld [vmem:[%s344_s2 + $0x78] sm:$0xff] }
   0xd   :  { %116 = vst [vmem:[%s345_s3 + $0x10] sm:$0xff] %v100_v41  ;;  %v58_v60 = vadd.f32 %v167_v2, %v40_v49  ;;  %v59_v0 = vadd.f32 %v167_v2, %v41_v55  ;;  %v60_v3 = vadd.f32 %v167_v2, %v42_v56  ;;  %v44_v5 = vmul.f32 %v162_v1, %v26_v50 }
   0xe   :  { %117 = vst [vmem:[%s345_s3 + $0x18] sm:$0xff] %v101_v46  ;;  %v45_v6 = vmul.f32 %v162_v1, %v27_v51  ;;  %v105_v8 = vmax.f32 %v89_v59, 0.0  ;;  %v61_v10 = vadd.f32 %v167_v2, %v43_v63  ;;  %v46_v13 = vmul.f32 %v162_v1, %v28_v57 }
   0xf   :  { %118 = vst [vmem:[%s345_s3 + $0x20] sm:$0xff] %v102_v52  ;;  %v90_v9 = vadd.f32 %v74_v54, %v58_v60  ;;  %v91_v14 = vadd.f32 %v75_v61, %v59_v0  ;;  %v92_v15 = vadd.f32 %v76_v62, %v60_v3  ;;  %v62_v16 = vadd.f32 %v167_v2, %v44_v5 }
  0x10   :  { %119 = vst [vmem:[%s345_s3 + $0x28] sm:$0xff] %v103_v53  ;;  %v63_v17 = vadd.f32 %v167_v2, %v45_v6  ;;  %v93_v20 = vadd.f32 %v77_v4, %v61_v10  ;;  %v64_v21 = vadd.f32 %v167_v2, %v46_v13  ;;  %v47_v22 = vmul.f32 %v162_v1, %v29_v7 }
  0x11   :  { %120 = vst [vmem:[%s345_s3 + $0x30] sm:$0xff] %v104_v58  ;;  %v106_v19 = vmax.f32 %v90_v9, 0.0  ;;  %v107_v23 = vmax.f32 %v91_v14, 0.0  ;;  %v108_v24 = vmax.f32 %v92_v15, 0.0  ;;  %v94_v25 = vadd.f32 %v78_v11, %v62_v16 }
  0x12   :  { %121 = vst [vmem:[%s345_s3 + $0x38] sm:$0xff] %v105_v8  ;;  %v95_v26 = vadd.f32 %v79_v12, %v63_v17  ;;  %v109_v28 = vmax.f32 %v93_v20, 0.0  ;;  %v96_v29 = vadd.f32 %v80_v18, %v64_v21  ;;  %v65_v1 = vadd.f32 %v167_v2, %v47_v22 }
  0x13   :  { %122 = vst [vmem:[%s345_s3 + $0x40] sm:$0xff] %v106_v19  ;;  %v110_v30 = vmax.f32 %v94_v25, 0.0 }
  0x14   :  { %123 = vst [vmem:[%s345_s3 + $0x48] sm:$0xff] %v107_v23  ;;  %v111_v31 = vmax.f32 %v95_v26, 0.0  ;;  %v112_v32 = vmax.f32 %v96_v29, 0.0  ;;  %v97_v33 = vadd.f32 %v81_v27, %v65_v1 }
  0x15   :  { %124 = vst [vmem:[%s345_s3 + $0x50] sm:$0xff] %v108_v24 }
  0x16   :  { %125 = vst [vmem:[%s345_s3 + $0x58] sm:$0xff] %v109_v28  ;;  %v113_v2 = vmax.f32 %v97_v33, 0.0 }
  0x17   :  { %126 = vst [vmem:[%s345_s3 + $0x60] sm:$0xff] %v110_v30 }
  0x18   :  { %127 = vst [vmem:[%s345_s3 + $0x68] sm:$0xff] %v111_v31 }
  0x19   :  { %128 = vst [vmem:[%s345_s3 + $0x70] sm:$0xff] %v112_v32 }
  0x1a   :  { %129 = vst [vmem:[%s345_s3 + $0x78] sm:$0xff] %v113_v2 }

// kernel: _lambda_.23
= control target key start
LH: loop header
LB: loop body
LE: loop exit
PB: predicated region body
PF: predicated region fallthrough
CT: control target
= control target key end

     0   :  { %vm321_vm0 = vcmask 261120   ;;  %s1180_s1 = inlined_call_operand.vmem [shape: bf16[288,128], index: 1, kind: input, shape index: {}]   ;;  %s1181_s0 = inlined_call_operand.vmem [shape: bf16[128,288], index: 0, kind: input, shape index: {}]   ;;  %s1182_s4 = inlined_call_operand.vmem [shape: f32[128,128], index: 4, kind: output, shape index: {0}]   ;;  %s1183_s5 = inlined_call_operand.vmem [shape: f32[2,128], index: 5, kind: output, shape index: {1}]   ;;  %s1184_s2 = inlined_call_operand.vmem [shape: f32[1,128], index: 2, kind: input, shape index: {}]   ;;  %s1185_s3 = inlined_call_operand.vmem [shape: f32[1,128], index: 3, kind: input, shape index: {}]  }
   0x1   :  { %v822_v0 = vld [vmem:[%s1180_s1 + $0x38] sm:$0xff]  ;;  %v832_v2 = vld [vmem:[%s1180_s1 + $0x88] sm:$0xff]  ;;  %v821_v3 = vld [vmem:[%s1180_s1 + $0x30] sm:$0xff] }
   0x2   :  { %v830_v1 = vld [vmem:[%s1180_s1 + $0x78] sm:$0xff]  ;;  %346 = vmatpush.bf16.msra.mxu0 %v822_v0  ;;  %833 = vmatpush.bf16.msra.mxu3 %v822_v0  ;;  %v829_v4 = vld [vmem:[%s1180_s1 + $0x70] sm:$0xff]  ;;  %v831_v5 = vld [vmem:[%s1180_s1 + $0x80] sm:$0xff] }
   0x3   :  { %395 = vmatpush.bf16.msra.mxu1 %v830_v1  ;;  %450 = vmatpush.bf16.msra.mxu2 %v832_v2  ;;  %v625_v6 = vld [vmem:[%s1181_s0 + $0x8] sm:$0xf]  ;;  %v793_v7 = vld [vmem:[%s1181_s0 + $0x10] sm:$0xf0]  ;;  %v819_v11 = vld [vmem:[%s1180_s1 + $0x20] sm:$0xff] }
   0x4   :  { %v626_v8 = vor.u32 %v793_v7, %v625_v6  ;;  %v820_v9 = vld [vmem:[%s1180_s1 + $0x28] sm:$0xff]  ;;  %v827_v12 = vld [vmem:[%s1180_s1 + $0x60] sm:$0xff]  ;;  %v818_v13 = vld [vmem:[%s1180_s1 + $0x18] sm:$0xff] }
   0x5   :  { %v828_v10 = vld [vmem:[%s1180_s1 + $0x68] sm:$0xff]  ;;  %v826_v14 = vld [vmem:[%s1180_s1 + $0x58] sm:$0xff]  ;;  %v817_v15 = vld [vmem:[%s1180_s1 + $0x10] sm:$0xff] }
   0x6   :  { %347 = vmatpush.bf16.msra.mxu0 %v821_v3  ;;  %834 = vmatpush.bf16.msra.mxu3 %v821_v3  ;;  %v825_v16 = vld [vmem:[%s1180_s1 + $0x50] sm:$0xff]  ;;  %v637_v17 = vld [vmem:[%s1181_s0 + $0x20] sm:$0xf]  ;;  %v796_v18 = vld [vmem:[%s1181_s0 + $0x28] sm:$0xf0] }
   0x7   :  { %396 = vmatpush.bf16.msra.mxu1 %v829_v4  ;;  %451 = vmatpush.bf16.msra.mxu2 %v831_v5  ;;  %v638_v19 = vor.u32 %v796_v18, %v637_v17  ;;  %v816_v20 = vld [vmem:[%s1180_s1 + $0x8] sm:$0xff]  ;;  %v815_v22 = vld [vmem:[%s1180_s1] sm:$0xff]  ;;  %v689_v26 = vld [vmem:[%s1181_s0 + $0x90] sm:$0xf] }
   0x8   :  { %v824_v21 = vld [vmem:[%s1180_s1 + $0x48] sm:$0xff]  ;;  %v823_v23 = vld [vmem:[%s1180_s1 + $0x40] sm:$0xff]  ;;  %v810_v27 = vld [vmem:[%s1181_s0 + $0x98] sm:$0xf0] }
   0x9   :  { %v617_v24 = vld [vmem:[%s1181_s0] sm:$0xf]  ;;  %v792_v25 = vld [vmem:[%s1181_s0 + $0x8] sm:$0xf0]  ;;  %v791_v28 = vld [vmem:[%s1181_s0 + $0x4] sm:$0xf]  ;;  %v690_v31 = vor.u32 %v810_v27, %v689_v26 }
   0xa   :  { %783 = vmatmul.msk.bf16.vlgmr.msra.gmra.mxu2 %vm321_vm0, %v626_v8  ;;  %348 = vmatpush.bf16.msra.mxu0 %v820_v9  ;;  %v619_v29 = vld [vmem:[%s1181_s0 + $0xc] sm:$0xf0]  ;;  %v618_v30 = vor.u32 %v792_v25, %v617_v24  ;;  %v649_v33 = vld [vmem:[%s1181_s0 + $0x38] sm:$0xf]  ;;  %v799_v34 = vld [vmem:[%s1181_s0 + $0x40] sm:$0xf0] }
   0xb   :  { %835 = vmatpush.bf16.msra.mxu3 %v820_v9  ;;  %397 = vmatpush.bf16.msra.mxu1 %v828_v10  ;;  %v622_v32 = vor.u32 %v791_v28, %v619_v29  ;;  %v650_v35 = vor.u32 %v799_v34, %v649_v33  ;;  %v629_v36 = vld [vmem:[%s1181_s0 + $0x18] sm:$0xf]  ;;  %v795_v37 = vld [vmem:[%s1181_s0 + $0x20] sm:$0xf0]  ;;  %v701_v38 = vld [vmem:[%s1181_s0 + $0xa8] sm:$0xf] }
   0xc   :  { %v813_v39 = vld [vmem:[%s1181_s0 + $0xb0] sm:$0xf0]  ;;  %v794_v40 = vld [vmem:[%s1181_s0 + $0x1c] sm:$0xf]  ;;  %v631_v41 = vld [vmem:[%s1181_s0 + $0x24] sm:$0xf0]  ;;  %v630_v42 = vor.u32 %v795_v37, %v629_v36 }
   0xd   :  { %v702_v43 = vor.u32 %v813_v39, %v701_v38  ;;  %v634_v44 = vor.u32 %v794_v40, %v631_v41  ;;  %v661_v45 = vld [vmem:[%s1181_s0 + $0x50] sm:$0xf]  ;;  %v802_v46 = vld [vmem:[%s1181_s0 + $0x58] sm:$0xf0]  ;;  %v797_v50 = vld [vmem:[%s1181_s0 + $0x34] sm:$0xf] }
   0xe   :  { %349 = vmatpush.bf16.msra.mxu0 %v819_v11  ;;  %v662_v47 = vor.u32 %v802_v46, %v661_v45  ;;  %v641_v48 = vld [vmem:[%s1181_s0 + $0x30] sm:$0xf]  ;;  %v798_v49 = vld [vmem:[%s1181_s0 + $0x38] sm:$0xf0]  ;;  %v643_v51 = vld [vmem:[%s1181_s0 + $0x3c] sm:$0xf0] }
   0xf   :  { %836 = vmatpush.bf16.msra.mxu3 %v819_v11  ;;  %398 = vmatpush.bf16.msra.mxu1 %v827_v12  ;;  %v809_v52 = vld [vmem:[%s1181_s0 + $0x94] sm:$0xf]  ;;  %v691_v53 = vld [vmem:[%s1181_s0 + $0x9c] sm:$0xf0]  ;;  %v642_v54 = vor.u32 %v798_v49, %v641_v48  ;;  %v646_v55 = vor.u32 %v797_v50, %v643_v51  ;;  %v673_v57 = vld [vmem:[%s1181_s0 + $0x68] sm:$0xf] }
  0x10   :  { %v694_v56 = vor.u32 %v809_v52, %v691_v53  ;;  %v805_v58 = vld [vmem:[%s1181_s0 + $0x70] sm:$0xf0]  ;;  %v653_v60 = vld [vmem:[%s1181_s0 + $0x48] sm:$0xf]  ;;  %v800_v62 = vld [vmem:[%s1181_s0 + $0x4c] sm:$0xf] }
  0x11   :  { %v674_v59 = vor.u32 %v805_v58, %v673_v57  ;;  %v801_v61 = vld [vmem:[%s1181_s0 + $0x50] sm:$0xf0]  ;;  %v655_v63 = vld [vmem:[%s1181_s0 + $0x54] sm:$0xf0]  ;;  %v812_v0 = vld [vmem:[%s1181_s0 + $0xac] sm:$0xf] }
  0x12   :  { %350 = vmatpush.bf16.msra.mxu0 %v818_v13  ;;  %v654_v2 = vor.u32 %v801_v61, %v653_v60  ;;  %v658_v3 = vor.u32 %v800_v62, %v655_v63  ;;  %v685_v5 = vld [vmem:[%s1181_s0 + $0x80] sm:$0xf]  ;;  %v808_v6 = vld [vmem:[%s1181_s0 + $0x88] sm:$0xf0]  ;;  %v667_v11 = vld [vmem:[%s1181_s0 + $0x6c] sm:$0xf0] }
  0x13   :  { %837 = vmatpush.bf16.msra.mxu3 %v818_v13  ;;  %399 = vmatpush.bf16.msra.mxu1 %v826_v14  ;;  %v686_v7 = vor.u32 %v808_v6, %v685_v5  ;;  %v665_v8 = vld [vmem:[%s1181_s0 + $0x60] sm:$0xf]  ;;  %v804_v9 = vld [vmem:[%s1181_s0 + $0x68] sm:$0xf0]  ;;  %v677_v17 = vld [vmem:[%s1181_s0 + $0x78] sm:$0xf] }
  0x14   :  { %v807_v18 = vld [vmem:[%s1181_s0 + $0x80] sm:$0xf0]  ;;  %v814_v24 = vld [vmem:[%s1181_s0 + $0xb8] sm:$0xf0] }
  0x16   :  { %351 = vmatpush.bf16.msra.mxu0 %v817_v15 }
  0x17   :  { %838 = vmatpush.bf16.msra.mxu3 %v817_v15  ;;  %400 = vmatpush.bf16.msra.mxu1 %v825_v16  ;;  %v811_v15 = vld [vmem:[%s1181_s0 + $0xa0] sm:$0xf0] }
  0x1a   :  { %784 = vmatmul.msk.bf16.gmra.mxu2 %vm321_vm0, %v638_v19  ;;  %352 = vmatpush.bf16.msra.mxu0 %v816_v20  ;;  %v806_v19 = vld [vmem:[%s1181_s0 + $0x7c] sm:$0xf] }
  0x1b   :  { %839 = vmatpush.bf16.msra.mxu3 %v816_v20  ;;  %401 = vmatpush.bf16.msra.mxu1 %v824_v21  ;;  %v679_v20 = vld [vmem:[%s1181_s0 + $0x84] sm:$0xf0] }
  0x1e   :  { %353 = vmatpush.bf16.msra.mxu0 %v815_v22 }
  0x1f   :  { %840 = vmatpush.bf16.msra.mxu3 %v815_v22  ;;  %402 = vmatpush.bf16.msra.mxu1 %v823_v23  ;;  %v682_v22 = vor.u32 %v806_v19, %v679_v20  ;;  %v855_v19 = vmov 0.0  }
  0x20   :  { %24 = vst [vmem:[%s1183_s5] sm:$0x3] %v855_v19 }
  0x21   :  { %354 = vmatmul.bf16.vlgmr.msra.gmra.mxu0 %v618_v30 }
  0x22   :  { %384 = vmatmul.bf16.vlgmr.msra.gmra.mxu3 %v690_v31  ;;  %403 = vmatmul.bf16.vlgmr.msra.gmra.mxu1 %v622_v32 }
  0x23   :  { %841 = vmatpush.bf16.msrb.mxu3 %v830_v1  ;;  %v703_v1 = vld [vmem:[%s1181_s0 + $0xb4] sm:$0xf0] }
  0x27   :  { %842 = vmatpush.bf16.msrb.mxu3 %v829_v4  ;;  %v706_v4 = vor.u32 %v812_v0, %v703_v1 }
  0x2a   :  { %785 = vmatmul.msk.bf16.gmra.mxu2 %vm321_vm0, %v650_v35 }
  0x2b   :  { %843 = vmatpush.bf16.msrb.mxu3 %v828_v10  ;;  %v803_v10 = vld [vmem:[%s1181_s0 + $0x64] sm:$0xf] }
  0x2c   :  { %v670_v13 = vor.u32 %v803_v10, %v667_v11 }
  0x2f   :  { %844 = vmatpush.bf16.msrb.mxu3 %v827_v12  ;;  %v666_v12 = vor.u32 %v804_v9, %v665_v8 }
  0x31   :  { %359 = vmatmul.bf16.gmra.mxu0 %v630_v42 }
  0x32   :  { %389 = vmatmul.bf16.gmra.mxu3 %v702_v43  ;;  %408 = vmatmul.bf16.gmra.mxu1 %v634_v44 }
  0x33   :  { %845 = vmatpush.bf16.msrb.mxu3 %v826_v14  ;;  %v697_v14 = vld [vmem:[%s1181_s0 + $0x98] sm:$0xf] }
  0x37   :  { %846 = vmatpush.bf16.msrb.mxu3 %v825_v16  ;;  %v698_v16 = vor.u32 %v811_v15, %v697_v14 }
  0x3a   :  { %786 = vmatmul.msk.bf16.gmra.mxu2 %vm321_vm0, %v662_v47 }
  0x3b   :  { %847 = vmatpush.bf16.msrb.mxu3 %v824_v21  ;;  %v678_v21 = vor.u32 %v807_v18, %v677_v17 }
  0x3f   :  { %848 = vmatpush.bf16.msrb.mxu3 %v823_v23  ;;  %v709_v23 = vld [vmem:[%s1181_s0 + $0xb0] sm:$0xf] }
  0x40   :  { %v710_v25 = vor.u32 %v814_v24, %v709_v23 }
  0x41   :  { %364 = vmatmul.bf16.gmra.mxu0 %v642_v54 }
  0x42   :  { %413 = vmatmul.bf16.gmra.mxu1 %v646_v55  ;;  %433 = vmatmul.bf16.vlgmr.msrb.gmra.mxu3 %v694_v56 }
  0x4a   :  { %787 = vmatmul.msk.bf16.gmra.mxu2 %vm321_vm0, %v674_v59 }
  0x51   :  { %369 = vmatmul.bf16.gmra.mxu0 %v654_v2 }
  0x52   :  { %418 = vmatmul.bf16.gmra.mxu1 %v658_v3  ;;  %438 = vmatmul.bf16.gmra.mxu3 %v706_v4 }
  0x5a   :  { %788 = vmatmul.msk.bf16.gmra.mxu2 %vm321_vm0, %v686_v7 }
  0x61   :  { %374 = vmatmul.bf16.gmra.mxu0 %v666_v12 }
  0x62   :  { %423 = vmatmul.bf16.gmra.mxu1 %v670_v13 }
  0x6a   :  { %789 = vmatmul.msk.bf16.gmra.mxu2 %vm321_vm0, %v698_v16 }
  0x71   :  { %379 = vmatmul.bf16.gmra.mxu0 %v678_v21 }
  0x72   :  { %428 = vmatmul.bf16.gmra.mxu1 %v682_v22 }
  0x7a   :  { %790 = vmatmul.msk.bf16.gmra.mxu2 %vm321_vm0, %v710_v25 }
  0x8d   :  { %v453_v26 = vpop.f32.mrf.mxu2 }
  0x95   :  { %v455_v27 = vpop.f32.mrf.mxu2 }
  0x9d   :  { %v458_v28 = vpop.f32.mrf.mxu2 }
  0x9e   :  { %v355_v29 = vpop.f32.mrf.mxu0 }
  0x9f   :  { %v404_v30 = vpop.f32.mrf.mxu1 }
  0xa0   :  { %v405_v31 = vadd.f32 %v404_v30, %v355_v29 }
  0xa2   :  { %v454_v32 = vadd.f32 %v453_v26, %v405_v31 }
  0xa4   :  { %493 = vst [vmem:[%s1182_s4] sm:$0xff] %v454_v32  ;;  %v534_v38 = vmul.f32 %v454_v32, %v454_v32 }
  0xa5   :  { %v460_v33 = vpop.f32.mrf.mxu2  ;;  %v385_v52 = vpop.f32.mrf.mxu3 }
  0xa6   :  { %v357_v34 = vpop.f32.mrf.mxu0 }
  0xa7   :  { %v406_v35 = vpop.f32.mrf.mxu1 }
  0xa8   :  { %v407_v36 = vadd.f32 %v406_v35, %v357_v34 }
  0xaa   :  { %v456_v37 = vadd.f32 %v455_v27, %v407_v36 }
  0xac   :  { %494 = vst [vmem:[%s1182_s4 + $0x8] sm:$0xff] %v456_v37  ;;  %v510_v39 = vadd.f32 %v456_v37, %v454_v32  ;;  %v535_v40 = vmul.f32 %v456_v37, %v456_v37 }
  0xad   :  { %v463_v41 = vpop.f32.mrf.mxu2  ;;  %v387_v58 = vpop.f32.mrf.mxu3 }
  0xae   :  { %v550_v42 = vadd.f32 %v535_v40, %v534_v38  ;;  %v360_v43 = vpop.f32.mrf.mxu0 }
  0xaf   :  { %v409_v44 = vpop.f32.mrf.mxu1 }
  0xb0   :  { %v410_v45 = vadd.f32 %v409_v44, %v360_v43 }
  0xb2   :  { %v459_v46 = vadd.f32 %v458_v28, %v410_v45 }
  0xb4   :  { %495 = vst [vmem:[%s1182_s4 + $0x10] sm:$0xff] %v459_v46  ;;  %v536_v22 = vmul.f32 %v459_v46, %v459_v46  ;;  %v511_v24 = vadd.f32 %v510_v39, %v459_v46 }
  0xb5   :  { %v465_v47 = vpop.f32.mrf.mxu2  ;;  %v1111_v2 = vpop.f32.mrf.mxu3 }
  0xb6   :  { %v362_v48 = vpop.f32.mrf.mxu0  ;;  %v551_v27 = vadd.f32 %v550_v42, %v536_v22 }
  0xb7   :  { %v411_v49 = vpop.f32.mrf.mxu1 }
  0xb8   :  { %v412_v50 = vadd.f32 %v411_v49, %v362_v48 }
  0xba   :  { %v461_v51 = vadd.f32 %v460_v33, %v412_v50 }
  0xbc   :  { %496 = vst [vmem:[%s1182_s4 + $0x18] sm:$0xff] %v461_v51  ;;  %v537_v25 = vmul.f32 %v461_v51, %v461_v51  ;;  %v512_v28 = vadd.f32 %v511_v24, %v461_v51 }
  0xbd   :  { %v468_v53 = vpop.f32.mrf.mxu2  ;;  %v1116_v10 = vpop.f32.mrf.mxu3 }
  0xbe   :  { %v365_v54 = vpop.f32.mrf.mxu0  ;;  %v552_v33 = vadd.f32 %v551_v27, %v537_v25 }
  0xbf   :  { %v414_v55 = vpop.f32.mrf.mxu1 }
  0xc0   :  { %v415_v56 = vadd.f32 %v414_v55, %v365_v54 }
  0xc2   :  { %v464_v57 = vadd.f32 %v463_v41, %v415_v56 }
  0xc4   :  { %497 = vst [vmem:[%s1182_s4 + $0x20] sm:$0xff] %v464_v57  ;;  %v538_v29 = vmul.f32 %v464_v57, %v464_v57  ;;  %v513_v34 = vadd.f32 %v512_v28, %v464_v57 }
  0xc5   :  { %v470_v59 = vpop.f32.mrf.mxu2  ;;  %v434_v17 = vpop.f32.mrf.mxu3 }
  0xc6   :  { %v367_v60 = vpop.f32.mrf.mxu0  ;;  %v435_v30 = vadd.f32 %v434_v17, %v385_v52  ;;  %v553_v40 = vadd.f32 %v552_v33, %v538_v29 }
  0xc7   :  { %v416_v61 = vpop.f32.mrf.mxu1 }
  0xc8   :  { %v417_v62 = vadd.f32 %v416_v61, %v367_v60 }
  0xca   :  { %v466_v63 = vadd.f32 %v465_v47, %v417_v62 }
  0xcc   :  { %498 = vst [vmem:[%s1182_s4 + $0x28] sm:$0xff] %v466_v63  ;;  %v539_v35 = vmul.f32 %v466_v63, %v466_v63  ;;  %v514_v39 = vadd.f32 %v513_v34, %v466_v63 }
  0xcd   :  { %v473_v0 = vpop.f32.mrf.mxu2  ;;  %v436_v31 = vpop.f32.mrf.mxu3 }
  0xce   :  { %v370_v1 = vpop.f32.mrf.mxu0  ;;  %v554_v43 = vadd.f32 %v553_v40, %v539_v35  ;;  %v437_v47 = vadd.f32 %v436_v31, %v387_v58 }
  0xcf   :  { %v419_v3 = vpop.f32.mrf.mxu1 }
  0xd0   :  { %v420_v4 = vadd.f32 %v419_v3, %v370_v1 }
  0xd2   :  { %v469_v5 = vadd.f32 %v468_v53, %v420_v4 }
  0xd4   :  { %499 = vst [vmem:[%s1182_s4 + $0x30] sm:$0xff] %v469_v5  ;;  %v540_v41 = vmul.f32 %v469_v5, %v469_v5  ;;  %v515_v44 = vadd.f32 %v514_v39, %v469_v5 }
  0xd5   :  { %v475_v6 = vpop.f32.mrf.mxu2  ;;  %v439_v57 = vpop.f32.mrf.mxu3 }
  0xd6   :  { %v372_v7 = vpop.f32.mrf.mxu0  ;;  %v555_v48 = vadd.f32 %v554_v43, %v540_v41  ;;  %v440_v3 = vadd.f32 %v439_v57, %v1111_v2  ;;  %v533_v41 = vld [vmem:[%s1183_s5 + $0x1] sm:$0x1] }
  0xd7   :  { %v421_v8 = vpop.f32.mrf.mxu1 }
  0xd8   :  { %v422_v9 = vadd.f32 %v421_v8, %v372_v7 }
  0xda   :  { %v471_v11 = vadd.f32 %v470_v59, %v422_v9 }
  0xdc   :  { %500 = vst [vmem:[%s1182_s4 + $0x38] sm:$0xff] %v471_v11  ;;  %v541_v45 = vmul.f32 %v471_v11, %v471_v11  ;;  %v516_v49 = vadd.f32 %v515_v44, %v471_v11 }
  0xdd   :  { %v478_v12 = vpop.f32.mrf.mxu2 }
  0xde   :  { %v375_v13 = vpop.f32.mrf.mxu0  ;;  %v556_v52 = vadd.f32 %v555_v48, %v541_v45 }
  0xdf   :  { %v424_v14 = vpop.f32.mrf.mxu1 }
  0xe0   :  { %v425_v15 = vadd.f32 %v424_v14, %v375_v13  ;;  %v441_v14 = vpop.f32.mrf.mxu3 }
  0xe2   :  { %v474_v16 = vadd.f32 %v473_v0, %v425_v15 }
  0xe4   :  { %501 = vst [vmem:[%s1182_s4 + $0x40] sm:$0xff] %v474_v16  ;;  %v542_v50 = vmul.f32 %v474_v16, %v474_v16  ;;  %v517_v53 = vadd.f32 %v516_v49, %v474_v16  ;;  %v442_v16 = vadd.f32 %v441_v14, %v1116_v10 }
  0xe5   :  { %v480_v18 = vpop.f32.mrf.mxu2 }
  0xe6   :  { %v377_v20 = vpop.f32.mrf.mxu0  ;;  %v557_v60 = vadd.f32 %v556_v52, %v542_v50 }
  0xe7   :  { %v426_v21 = vpop.f32.mrf.mxu1 }
  0xe8   :  { %v427_v23 = vadd.f32 %v426_v21, %v377_v20 }
  0xea   :  { %v476_v26 = vadd.f32 %v475_v6, %v427_v23 }
  0xec   :  { %502 = vst [vmem:[%s1182_s4 + $0x48] sm:$0xff] %v476_v26  ;;  %v543_v54 = vmul.f32 %v476_v26, %v476_v26  ;;  %v518_v61 = vadd.f32 %v517_v53, %v476_v26 }
  0xed   :  { %v483_v32 = vpop.f32.mrf.mxu2 }
  0xee   :  { %v484_v36 = vadd.f32 %v483_v32, %v435_v30  ;;  %v380_v37 = vpop.f32.mrf.mxu0  ;;  %v558_v63 = vadd.f32 %v557_v60, %v543_v54 }
  0xef   :  { %v429_v38 = vpop.f32.mrf.mxu1 }
  0xf0   :  { %505 = vst [vmem:[%s1182_s4 + $0x60] sm:$0xff] %v484_v36  ;;  %v430_v42 = vadd.f32 %v429_v38, %v380_v37  ;;  %v546_v8 = vmul.f32 %v484_v36, %v484_v36  ;;  %v509_v38 = vld [vmem:[%s1183_s5] sm:$0x1] }
  0xf2   :  { %v479_v46 = vadd.f32 %v478_v12, %v430_v42 }
  0xf4   :  { %503 = vst [vmem:[%s1182_s4 + $0x50] sm:$0xff] %v479_v46  ;;  %v544_v62 = vmul.f32 %v479_v46, %v479_v46  ;;  %v519_v0 = vadd.f32 %v518_v61, %v479_v46 }
  0xf5   :  { %v485_v51 = vpop.f32.mrf.mxu2 }
  0xf6   :  { %v486_v55 = vadd.f32 %v485_v51, %v437_v47  ;;  %v382_v56 = vpop.f32.mrf.mxu0  ;;  %v559_v4 = vadd.f32 %v558_v63, %v544_v62  ;;  %v600_v62 = vld [vmem:[%s1184_s2] sm:$0x1] }
  0xf7   :  { %v431_v59 = vpop.f32.mrf.mxu1 }
  0xf8   :  { %506 = vst [vmem:[%s1182_s4 + $0x68] sm:$0xff] %v486_v55  ;;  %v432_v58 = vadd.f32 %v431_v59, %v382_v56  ;;  %v547_v15 = vmul.f32 %v486_v55, %v486_v55 }
  0xfa   :  { %v481_v1 = vadd.f32 %v480_v18, %v432_v58  ;;  %v856_v18 = vmov 128.0  }
  0xfb   :  { %851 = vrcp.f32 %v856_v18 }
  0xfc   :  { %504 = vst [vmem:[%s1182_s4 + $0x58] sm:$0xff] %v481_v1  ;;  %v520_v5 = vadd.f32 %v519_v0, %v481_v1  ;;  %v545_v6 = vmul.f32 %v481_v1, %v481_v1  ;;  %v602_v0 = vld [vmem:[%s1185_s3] sm:$0x1] }
  0xfd   :  { %v488_v7 = vpop.f32.mrf.mxu2 }
  0xfe   :  { %v560_v9 = vadd.f32 %v559_v4, %v545_v6  ;;  %v489_v11 = vadd.f32 %v488_v7, %v440_v3  ;;  %v521_v12 = vadd.f32 %v520_v5, %v484_v36 }
 0x100   :  { %507 = vst [vmem:[%s1182_s4 + $0x70] sm:$0xff] %v489_v11  ;;  %v561_v13 = vadd.f32 %v560_v9, %v546_v8  ;;  %v522_v2 = vadd.f32 %v521_v12, %v486_v55  ;;  %v548_v21 = vmul.f32 %v489_v11, %v489_v11 }
 0x101   :  { %v852_v26 = vpop.eup %851 }
 0x102   :  { %v562_v17 = vadd.f32 %v561_v13, %v547_v15  ;;  %v523_v20 = vadd.f32 %v522_v2, %v489_v11  ;;  %v578_v10 = vmul.f32 128.0, %v852_v26  ;;  %vm582_vm1 = vweird.f32 %v852_v26 }
 0x104   :  { %v563_v23 = vadd.f32 %v562_v17, %v548_v21  ;;  %v579_v35 = vsub.f32 1.0, %v578_v10 }
 0x105   :  { %v490_v19 = vpop.f32.mrf.mxu2 }
 0x106   :  { %v491_v22 = vadd.f32 %v490_v19, %v442_v16  ;;  %v580_v42 = vmul.f32 %v852_v26, %v579_v35 }
 0x108   :  { %508 = vst [vmem:[%s1182_s4 + $0x78] sm:$0xff] %v491_v22  ;;  %v524_v24 = vadd.f32 %v523_v20, %v491_v22  ;;  %v549_v25 = vmul.f32 %v491_v22, %v491_v22  ;;  %v581_v46 = vadd.f32 %v852_v26, %v580_v42 }
 0x10a   :  { %v525_v27 = vrot.slane %v524_v24, 4  ;;  %v564_v28 = vadd.f32 %v563_v23, %v549_v25  ;;  %v583_v47 = vsel %vm582_vm1, %v852_v26, %v581_v46 }
 0x10c   :  { %v526_v29 = vadd.f32 %v525_v27, %v524_v24  ;;  %v565_v30 = vrot.slane %v564_v28, 4 }
 0x10e   :  { %v527_v31 = vrot.slane %v526_v29, 2  ;;  %v566_v32 = vadd.f32 %v565_v30, %v564_v28 }
 0x110   :  { %v528_v33 = vadd.f32 %v527_v31, %v526_v29  ;;  %v567_v34 = vrot.slane %v566_v32, 2 }
 0x112   :  { %v529_v36 = vrot.slane %v528_v33, 1  ;;  %v568_v37 = vadd.f32 %v567_v34, %v566_v32 }
 0x114   :  { %v530_v40 = vadd.f32 %v529_v36, %v528_v33  ;;  %v569_v39 = vrot.slane %v568_v37, 1 }
 0x116   :  { %v531_v43 = vadd.f32 %v530_v40, %v509_v38  ;;  %v570_v44 = vadd.f32 %v569_v39, %v568_v37 }
 0x118   :  { %532 = vst [vmem:[%s1183_s5] sm:$0x1] %v531_v43  ;;  %v571_v45 = vadd.f32 %v570_v44, %v533_v41 }
 0x11a   :  { %572 = vst [vmem:[%s1183_s5 + $0x1] sm:$0x1] %v571_v45 }
 0x11f   :  { %v576_v48 = vld [vmem:[%s1183_s5] sm:$0x1] }
 0x120   :  { %v584_v49 = vmul.f32 %v583_v47, %v576_v48 }
 0x121   :  { %v585_v50 = vld [vmem:[%s1183_s5 + $0x1] sm:$0x1] }
 0x122   :  { %v586_v51 = vmul.f32 %v585_v50, %v583_v47  ;;  %v587_v52 = vmul.f32 %v584_v49, %v584_v49 }
 0x124   :  { %v588_v53 = vsub.f32 %v586_v51, %v587_v52 }
 0x126   :  { %v589_v54 = vadd.f32 1e-05, %v588_v53 }
 0x128   :  { %853 = vrsqrt.f32 %v589_v54  ;;  %vm596_vm3 = vweird.f32 %v589_v54 }
 0x12e   :  { %v854_v55 = vpop.eup %853 }
 0x12f   :  { %v591_v56 = vmul.f32 %v854_v55, %v589_v54  ;;  %vm597_vm2 = vweird.f32 %v854_v55 }
 0x130   :  { %vm598_vm4 = vmor %vm596_vm3, %vm597_vm2 }
 0x131   :  { %v592_v57 = vmul.f32 %v854_v55, %v591_v56 }
 0x133   :  { %v593_v59 = vmul.f32 0.5, %v592_v57 }
 0x135   :  { %v594_v60 = vsub.f32 1.5, %v593_v59 }
 0x137   :  { %v595_v61 = vmul.f32 %v854_v55, %v594_v60 }
 0x139   :  { %v599_v58 = vsel %vm598_vm4, %v854_v55, %v595_v61 }
 0x13a   :  { %v601_v63 = vmul.f32 %v600_v62, %v599_v58 }
 0x13c   :  { %v603_v1 = vmul.f32 %v601_v63, %v584_v49  ;;  %605 = vst [vmem:[%s1183_s5] sm:$0x1] %v601_v63 }
 0x13e   :  { %v604_v3 = vsub.f32 %v602_v0, %v603_v1 }
 0x140   :  { %606 = vst [vmem:[%s1183_s5 + $0x1] sm:$0x1] %v604_v3 }

// kernel: _lambda_.26
= control target key start
LH: loop header
LB: loop body
LE: loop exit
PB: predicated region body
PF: predicated region fallthrough
CT: control target
= control target key end

     0   :  { %s86_s0 = inlined_call_operand.vmem [shape: f32[32,128], index: 0, kind: input, shape index: {}]   ;;  %s87_s1 = inlined_call_operand.vmem [shape: f32[2,128], index: 1, kind: input, shape index: {}]   ;;  %s88_s2 = inlined_call_operand.vmem [shape: f32[32,128], index: 2, kind: output, shape index: {}]  }
   0x1   :  { %v11_v0 = vld [vmem:[%s86_s0] sm:$0xff]  ;;  %v12_v3 = vld [vmem:[%s86_s0 + $0x8] sm:$0xff]  ;;  %v13_v6 = vld [vmem:[%s86_s0 + $0x10] sm:$0xff] }
   0x2   :  { %v39_v1 = vld [vmem:[%s87_s1] ss:$0 sm:$0xff]  ;;  %v40_v2 = vld [vmem:[%s87_s1 + $0x1] ss:$0 sm:$0xff]  ;;  %v14_v7 = vld [vmem:[%s86_s0 + $0x18] sm:$0xff] }
   0x3   :  { %v17_v4 = vmul.f32 %v39_v1, %v11_v0  ;;  %v18_v5 = vmul.f32 %v39_v1, %v12_v3  ;;  %v19_v8 = vmul.f32 %v39_v1, %v13_v6  ;;  %v20_v9 = vmul.f32 %v39_v1, %v14_v7 }
   0x5   :  { %v23_v10 = vadd.f32 %v40_v2, %v17_v4  ;;  %v24_v11 = vadd.f32 %v40_v2, %v18_v5  ;;  %v25_v12 = vadd.f32 %v40_v2, %v19_v8  ;;  %v26_v13 = vadd.f32 %v40_v2, %v20_v9 }
   0x7   :  { %v27_v14 = vmax.f32 %v23_v10, 0.0  ;;  %v28_v15 = vmax.f32 %v24_v11, 0.0  ;;  %v29_v16 = vmax.f32 %v25_v12, 0.0  ;;  %v30_v17 = vmax.f32 %v26_v13, 0.0 }
   0x9   :  { %31 = vst [vmem:[%s88_s2] sm:$0xff] %v27_v14 }
   0xa   :  { %32 = vst [vmem:[%s88_s2 + $0x8] sm:$0xff] %v28_v15 }
   0xb   :  { %33 = vst [vmem:[%s88_s2 + $0x10] sm:$0xff] %v29_v16 }
   0xc   :  { %34 = vst [vmem:[%s88_s2 + $0x18] sm:$0xff] %v30_v17 }

// kernel: _lambda_.28
= control target key start
LH: loop header
LB: loop body
LE: loop exit
PB: predicated region body
PF: predicated region fallthrough
CT: control target
= control target key end

     0   :  { %s114_s0 = inlined_call_operand.vmem [shape: f32[32,128], index: 0, kind: input, shape index: {}]   ;;  %s115_s1 = inlined_call_operand.vmem [shape: f32[2,128], index: 1, kind: input, shape index: {}]   ;;  %s116_s2 = inlined_call_operand.vmem [shape: f32[32,128], index: 2, kind: input, shape index: {}]   ;;  %s117_s3 = inlined_call_operand.vmem [shape: f32[32,128], index: 3, kind: output, shape index: {}]  }
   0x1   :  { %v14_v0 = vld [vmem:[%s114_s0] sm:$0xff]  ;;  %v15_v4 = vld [vmem:[%s114_s0 + $0x8] sm:$0xff]  ;;  %v16_v5 = vld [vmem:[%s114_s0 + $0x10] sm:$0xff] }
   0x2   :  { %v50_v1 = vld [vmem:[%s115_s1] ss:$0 sm:$0xff]  ;;  %v51_v2 = vld [vmem:[%s115_s1 + $0x1] ss:$0 sm:$0xff]  ;;  %v17_v9 = vld [vmem:[%s114_s0 + $0x18] sm:$0xff] }
   0x3   :  { %v20_v3 = vmul.f32 %v50_v1, %v14_v0  ;;  %v30_v6 = vld [vmem:[%s116_s2] sm:$0xff]  ;;  %v21_v7 = vmul.f32 %v50_v1, %v15_v4  ;;  %v22_v8 = vmul.f32 %v50_v1, %v16_v5  ;;  %v31_v11 = vld [vmem:[%s116_s2 + $0x8] sm:$0xff]  ;;  %v32_v12 = vld [vmem:[%s116_s2 + $0x10] sm:$0xff]  ;;  %v23_v13 = vmul.f32 %v50_v1, %v17_v9 }
   0x4   :  { %v33_v16 = vld [vmem:[%s116_s2 + $0x18] sm:$0xff] }
   0x5   :  { %v26_v10 = vadd.f32 %v51_v2, %v20_v3  ;;  %v27_v14 = vadd.f32 %v51_v2, %v21_v7  ;;  %v28_v15 = vadd.f32 %v51_v2, %v22_v8  ;;  %v29_v18 = vadd.f32 %v51_v2, %v23_v13 }
   0x7   :  { %v34_v17 = vadd.f32 %v30_v6, %v26_v10  ;;  %v35_v19 = vadd.f32 %v31_v11, %v27_v14  ;;  %v36_v20 = vadd.f32 %v32_v12, %v28_v15  ;;  %v37_v22 = vadd.f32 %v33_v16, %v29_v18 }
   0x9   :  { %v38_v21 = vmax.f32 %v34_v17, 0.0  ;;  %v39_v23 = vmax.f32 %v35_v19, 0.0  ;;  %v40_v24 = vmax.f32 %v36_v20, 0.0  ;;  %v41_v25 = vmax.f32 %v37_v22, 0.0 }
   0xb   :  { %42 = vst [vmem:[%s117_s3] sm:$0xff] %v38_v21 }
   0xc   :  { %43 = vst [vmem:[%s117_s3 + $0x8] sm:$0xff] %v39_v23 }
   0xd   :  { %44 = vst [vmem:[%s117_s3 + $0x10] sm:$0xff] %v40_v24 }
   0xe   :  { %45 = vst [vmem:[%s117_s3 + $0x18] sm:$0xff] %v41_v25 }

// kernel: _lambda_.25
= control target key start
LH: loop header
LB: loop body
LE: loop exit
PB: predicated region body
PF: predicated region fallthrough
CT: control target
= control target key end

     0   :  { %vm207_vm0 = vcmask 261120   ;;  %v481_v36 = vmov 0.0   ;;  %v482_v59 = vmov 32.0   ;;  %s650_s1 = inlined_call_operand.vmem [shape: bf16[288,128], index: 1, kind: input, shape index: {}]   ;;  %s651_s0 = inlined_call_operand.vmem [shape: bf16[32,288], index: 0, kind: input, shape index: {}]   ;;  %s652_s5 = inlined_call_operand.vmem [shape: f32[2,128], index: 5, kind: output, shape index: {1}]   ;;  %s653_s4 = inlined_call_operand.vmem [shape: f32[32,128], index: 4, kind: output, shape index: {0}]   ;;  %s654_s2 = inlined_call_operand.vmem [shape: f32[1,128], index: 2, kind: input, shape index: {}]   ;;  %s655_s3 = inlined_call_operand.vmem [shape: f32[1,128], index: 3, kind: input, shape index: {}]  }
   0x1   :  { %v456_v0 = vld [vmem:[%s650_s1 + $0x38] sm:$0xff]  ;;  %v455_v2 = vld [vmem:[%s650_s1 + $0x30] sm:$0xff]  ;;  %v466_v4 = vld [vmem:[%s650_s1 + $0x88] sm:$0xff]  ;;  %24 = vst [vmem:[%s652_s5] sm:$0x3] %v481_v36  ;;  %477 = vrcp.f32 %v482_v59 }
   0x2   :  { %v464_v1 = vld [vmem:[%s650_s1 + $0x78] sm:$0xff]  ;;  %214 = vmatpush.bf16.msra.mxu0 %v456_v0  ;;  %v463_v3 = vld [vmem:[%s650_s1 + $0x70] sm:$0xff]  ;;  %467 = vmatpush.bf16.msra.mxu3 %v456_v0  ;;  %v465_v5 = vld [vmem:[%s650_s1 + $0x80] sm:$0xff] }
   0x3   :  { %233 = vmatpush.bf16.msra.mxu1 %v464_v1  ;;  %258 = vmatpush.bf16.msra.mxu2 %v466_v4  ;;  %v355_v6 = vld [vmem:[%s651_s0 + $0x8] sm:$0xf]  ;;  %v445_v7 = vld [vmem:[%s651_s0 + $0x10] sm:$0xf0]  ;;  %v453_v11 = vld [vmem:[%s650_s1 + $0x20] sm:$0xff] }
   0x4   :  { %v454_v8 = vld [vmem:[%s650_s1 + $0x28] sm:$0xff]  ;;  %v356_v10 = vor.u32 %v445_v7, %v355_v6  ;;  %v461_v12 = vld [vmem:[%s650_s1 + $0x60] sm:$0xff]  ;;  %v452_v13 = vld [vmem:[%s650_s1 + $0x18] sm:$0xff] }
   0x5   :  { %v462_v9 = vld [vmem:[%s650_s1 + $0x68] sm:$0xff]  ;;  %v460_v14 = vld [vmem:[%s650_s1 + $0x58] sm:$0xff]  ;;  %v451_v15 = vld [vmem:[%s650_s1 + $0x10] sm:$0xff] }
   0x6   :  { %215 = vmatpush.bf16.msra.mxu0 %v455_v2  ;;  %468 = vmatpush.bf16.msra.mxu3 %v455_v2  ;;  %v459_v16 = vld [vmem:[%s650_s1 + $0x50] sm:$0xff]  ;;  %v367_v17 = vld [vmem:[%s651_s0 + $0x20] sm:$0xf]  ;;  %v448_v18 = vld [vmem:[%s651_s0 + $0x28] sm:$0xf0] }
   0x7   :  { %234 = vmatpush.bf16.msra.mxu1 %v463_v3  ;;  %259 = vmatpush.bf16.msra.mxu2 %v465_v5  ;;  %v450_v19 = vld [vmem:[%s650_s1 + $0x8] sm:$0xff]  ;;  %v368_v21 = vor.u32 %v448_v18, %v367_v17  ;;  %v449_v22 = vld [vmem:[%s650_s1] sm:$0xff]  ;;  %v349_v27 = vld [vmem:[%s651_s0 + $0xc] sm:$0xf0]  ;;  %v478_v3 = vpop.eup %477 }
   0x8   :  { %v458_v20 = vld [vmem:[%s650_s1 + $0x48] sm:$0xff]  ;;  %v457_v23 = vld [vmem:[%s650_s1 + $0x40] sm:$0xff]  ;;  %v359_v28 = vld [vmem:[%s651_s0 + $0x18] sm:$0xf]  ;;  %vm312_vm1 = vweird.f32 %v478_v3 }
   0x9   :  { %v347_v24 = vld [vmem:[%s651_s0] sm:$0xf]  ;;  %v444_v25 = vld [vmem:[%s651_s0 + $0x8] sm:$0xf0]  ;;  %v443_v26 = vld [vmem:[%s651_s0 + $0x4] sm:$0xf] }
   0xa   :  { %216 = vmatpush.bf16.msra.mxu0 %v454_v8  ;;  %469 = vmatpush.bf16.msra.mxu3 %v454_v8  ;;  %v447_v29 = vld [vmem:[%s651_s0 + $0x20] sm:$0xf0]  ;;  %v348_v30 = vor.u32 %v444_v25, %v347_v24  ;;  %v352_v31 = vor.u32 %v443_v26, %v349_v27  ;;  %v446_v33 = vld [vmem:[%s651_s0 + $0x1c] sm:$0xf]  ;;  %v361_v34 = vld [vmem:[%s651_s0 + $0x24] sm:$0xf0] }
   0xb   :  { %235 = vmatpush.bf16.msra.mxu1 %v462_v9  ;;  %441 = vmatmul.msk.bf16.vlgmr.msra.gmra.mxu2 %vm207_vm0, %v356_v10  ;;  %v360_v32 = vor.u32 %v447_v29, %v359_v28  ;;  %v364_v35 = vor.u32 %v446_v33, %v361_v34  ;;  %v308_v8 = vmul.f32 32.0, %v478_v3 }
   0xe   :  { %217 = vmatpush.bf16.msra.mxu0 %v453_v11  ;;  %470 = vmatpush.bf16.msra.mxu3 %v453_v11 }
   0xf   :  { %236 = vmatpush.bf16.msra.mxu1 %v461_v12 }
  0x12   :  { %218 = vmatpush.bf16.msra.mxu0 %v452_v13  ;;  %471 = vmatpush.bf16.msra.mxu3 %v452_v13  ;;  %v309_v13 = vsub.f32 1.0, %v308_v8 }
  0x13   :  { %237 = vmatpush.bf16.msra.mxu1 %v460_v14 }
  0x16   :  { %219 = vmatpush.bf16.msra.mxu0 %v451_v15  ;;  %472 = vmatpush.bf16.msra.mxu3 %v451_v15 }
  0x17   :  { %238 = vmatpush.bf16.msra.mxu1 %v459_v16  ;;  %v275_v16 = vld [vmem:[%s652_s5] sm:$0x1] }
  0x1a   :  { %220 = vmatpush.bf16.msra.mxu0 %v450_v19  ;;  %473 = vmatpush.bf16.msra.mxu3 %v450_v19  ;;  %v287_v19 = vld [vmem:[%s652_s5 + $0x1] sm:$0x1] }
  0x1b   :  { %239 = vmatpush.bf16.msra.mxu1 %v458_v20  ;;  %442 = vmatmul.msk.bf16.gmra.mxu2 %vm207_vm0, %v368_v21  ;;  %v310_v20 = vmul.f32 %v478_v3, %v309_v13 }
  0x1d   :  { %v311_v24 = vadd.f32 %v478_v3, %v310_v20 }
  0x1e   :  { %221 = vmatpush.bf16.msra.mxu0 %v449_v22  ;;  %474 = vmatpush.bf16.msra.mxu3 %v449_v22 }
  0x1f   :  { %240 = vmatpush.bf16.msra.mxu1 %v457_v23  ;;  %v313_v25 = vsel %vm312_vm1, %v478_v3, %v311_v24 }
  0x21   :  { %222 = vmatmul.bf16.vlgmr.msra.gmra.mxu0 %v348_v30  ;;  %227 = vmatmul.bf16.vlgmr.msra.gmra.mxu3 %v360_v32 }
  0x22   :  { %241 = vmatmul.bf16.vlgmr.msra.gmra.mxu1 %v352_v31 }
  0x32   :  { %246 = vmatmul.bf16.gmra.mxu1 %v364_v35 }
  0x8e   :  { %v261_v37 = vpop.f32.mrf.mxu2 }
  0x96   :  { %v263_v42 = vpop.f32.mrf.mxu2 }
  0x9e   :  { %v223_v38 = vpop.f32.mrf.mxu0  ;;  %v266_v48 = vpop.f32.mrf.mxu2 }
  0x9f   :  { %v242_v39 = vpop.f32.mrf.mxu1 }
  0xa0   :  { %v243_v40 = vadd.f32 %v242_v39, %v223_v38  ;;  %v330_v39 = vld [vmem:[%s654_s2] sm:$0x1] }
  0xa2   :  { %v262_v41 = vadd.f32 %v261_v37, %v243_v40 }
  0xa4   :  { %271 = vst [vmem:[%s653_s4] sm:$0xff] %v262_v41  ;;  %v228_v47 = vpop.f32.mrf.mxu3  ;;  %v288_v53 = vmul.f32 %v262_v41, %v262_v41 }
  0xa6   :  { %v225_v43 = vpop.f32.mrf.mxu0  ;;  %v268_v60 = vpop.f32.mrf.mxu2 }
  0xa7   :  { %v244_v44 = vpop.f32.mrf.mxu1 }
  0xa8   :  { %v245_v45 = vadd.f32 %v244_v44, %v225_v43 }
  0xaa   :  { %v264_v46 = vadd.f32 %v263_v42, %v245_v45  ;;  %v332_v42 = vld [vmem:[%s655_s3] sm:$0x1] }
  0xac   :  { %272 = vst [vmem:[%s653_s4 + $0x8] sm:$0xff] %v264_v46  ;;  %v289_v52 = vmul.f32 %v264_v46, %v264_v46  ;;  %v230_v54 = vpop.f32.mrf.mxu3  ;;  %v276_v56 = vadd.f32 %v264_v46, %v262_v41 }
  0xae   :  { %v292_v61 = vadd.f32 %v289_v52, %v288_v53 }
  0xaf   :  { %v247_v49 = vpop.f32.mrf.mxu1 }
  0xb0   :  { %v248_v50 = vadd.f32 %v247_v49, %v228_v47 }
  0xb2   :  { %v267_v51 = vadd.f32 %v266_v48, %v248_v50 }
  0xb4   :  { %273 = vst [vmem:[%s653_s4 + $0x10] sm:$0xff] %v267_v51  ;;  %v290_v57 = vmul.f32 %v267_v51, %v267_v51  ;;  %v277_v62 = vadd.f32 %v276_v56, %v267_v51 }
  0xb6   :  { %v293_v0 = vadd.f32 %v292_v61, %v290_v57 }
  0xb7   :  { %v249_v55 = vpop.f32.mrf.mxu1 }
  0xb8   :  { %v250_v58 = vadd.f32 %v249_v55, %v230_v54 }
  0xba   :  { %v269_v63 = vadd.f32 %v268_v60, %v250_v58 }
  0xbc   :  { %274 = vst [vmem:[%s653_s4 + $0x18] sm:$0xff] %v269_v63  ;;  %v278_v1 = vadd.f32 %v277_v62, %v269_v63  ;;  %v291_v2 = vmul.f32 %v269_v63, %v269_v63 }
  0xbe   :  { %v279_v4 = vrot.slane %v278_v1, 4  ;;  %v294_v5 = vadd.f32 %v293_v0, %v291_v2 }
  0xc0   :  { %v280_v6 = vadd.f32 %v279_v4, %v278_v1  ;;  %v295_v7 = vrot.slane %v294_v5, 4 }
  0xc2   :  { %v281_v9 = vrot.slane %v280_v6, 2  ;;  %v296_v10 = vadd.f32 %v295_v7, %v294_v5 }
  0xc4   :  { %v282_v11 = vadd.f32 %v281_v9, %v280_v6  ;;  %v297_v12 = vrot.slane %v296_v10, 2 }
  0xc6   :  { %v283_v14 = vrot.slane %v282_v11, 1  ;;  %v298_v15 = vadd.f32 %v297_v12, %v296_v10 }
  0xc8   :  { %v284_v17 = vadd.f32 %v283_v14, %v282_v11  ;;  %v299_v18 = vrot.slane %v298_v15, 1 }
  0xca   :  { %v285_v21 = vadd.f32 %v284_v17, %v275_v16  ;;  %v300_v22 = vadd.f32 %v299_v18, %v298_v15 }
  0xcc   :  { %286 = vst [vmem:[%s652_s5] sm:$0x1] %v285_v21  ;;  %v301_v23 = vadd.f32 %v300_v22, %v287_v19 }
  0xce   :  { %302 = vst [vmem:[%s652_s5 + $0x1] sm:$0x1] %v301_v23 }
  0xd3   :  { %v306_v26 = vld [vmem:[%s652_s5] sm:$0x1] }
  0xd4   :  { %v314_v27 = vmul.f32 %v313_v25, %v306_v26 }
  0xd5   :  { %v315_v28 = vld [vmem:[%s652_s5 + $0x1] sm:$0x1] }
  0xd6   :  { %v316_v29 = vmul.f32 %v315_v28, %v313_v25  ;;  %v317_v30 = vmul.f32 %v314_v27, %v314_v27 }
  0xd8   :  { %v318_v31 = vsub.f32 %v316_v29, %v317_v30 }
  0xda   :  { %v319_v32 = vadd.f32 1e-05, %v318_v31 }
  0xdc   :  { %479 = vrsqrt.f32 %v319_v32  ;;  %vm326_vm3 = vweird.f32 %v319_v32 }
  0xe2   :  { %v480_v33 = vpop.eup %479 }
  0xe3   :  { %v321_v34 = vmul.f32 %v480_v33, %v319_v32  ;;  %vm327_vm2 = vweird.f32 %v480_v33 }
  0xe4   :  { %vm328_vm4 = vmor %vm326_vm3, %vm327_vm2 }
  0xe5   :  { %v322_v35 = vmul.f32 %v480_v33, %v321_v34 }
  0xe7   :  { %v323_v36 = vmul.f32 0.5, %v322_v35 }
  0xe9   :  { %v324_v37 = vsub.f32 1.5, %v323_v36 }
  0xeb   :  { %v325_v38 = vmul.f32 %v480_v33, %v324_v37 }
  0xed   :  { %v329_v40 = vsel %vm328_vm4, %v480_v33, %v325_v38 }
  0xee   :  { %v331_v41 = vmul.f32 %v330_v39, %v329_v40 }
  0xf0   :  { %v333_v43 = vmul.f32 %v331_v41, %v314_v27  ;;  %335 = vst [vmem:[%s652_s5] sm:$0x1] %v331_v41 }
  0xf2   :  { %v334_v44 = vsub.f32 %v332_v42, %v333_v43 }
  0xf4   :  { %336 = vst [vmem:[%s652_s5 + $0x1] sm:$0x1] %v334_v44 }

// kernel: _lambda_.29
= control target key start
LH: loop header
LB: loop body
LE: loop exit
PB: predicated region body
PF: predicated region fallthrough
CT: control target
= control target key end

     0   :  { %10 = vsyncpa [#allocation3], 0  ;;  %vm22_vm0 = vcmask 523264   ;;  %v184_v2 = vmov 16.0   ;;  %s262_s0 = inlined_call_operand.vmem [shape: f32[2,16,64], index: 0, kind: input, shape index: {}]   ;;  %s263_s1 = inlined_call_operand.vmem [shape: f32[64,10], index: 1, kind: input, shape index: {}]   ;;  %s264_s2 = inlined_call_operand.vmem [shape: f32[1,10], index: 2, kind: input, shape index: {}]   ;;  %s265_s3 = inlined_call_operand.hbm [shape: f32[2,64], index: 3, kind: output, shape index: {0}]   ;;  %s266_s4 = inlined_call_operand.hbm [shape: f32[2,10], index: 4, kind: output, shape index: {1}]  }
   0x1   :  { %v64_v0 = vld [vmem:[%s263_s1 + $0x38] sm:$0xff]  ;;  %v63_v1 = vld [vmem:[%s263_s1 + $0x30] sm:$0xff]  ;;  %130 = vrcp.f32 %v184_v2  ;;  %v62_v3 = vld [vmem:[%s263_s1 + $0x28] sm:$0xff] }
   0x2   :  { %79 = vmatpush.msra.mxu0 %v64_v0  ;;  %v18_v4 = vld [vmem:[%s262_s0] sm:$0xff]  ;;  %v19_v5 = vld [vmem:[%s262_s0 + $0x8] sm:$0xff]  ;;  %v20_v6 = vld [vmem:[%s262_s0 + $0x10] sm:$0xff] }
   0x3   :  { %v21_v7 = vld [vmem:[%s262_s0 + $0x18] sm:$0xff]  ;;  %v23_v8 = vsel %vm22_vm0, %v18_v4, 0.0  ;;  %v61_v9 = vld [vmem:[%s263_s1 + $0x20] sm:$0xff]  ;;  %v24_v10 = vsel %vm22_vm0, %v19_v5, 0.0  ;;  %v32_v11 = vsel %vm22_vm0, %v20_v6, 0.0 }
   0x4   :  { %80 = vmatpush.msra.mxu0 %v63_v1  ;;  %v33_v12 = vsel %vm22_vm0, %v21_v7, 0.0  ;;  %v25_v13 = vadd.f32 %v24_v10, %v23_v8 }
   0x5   :  { %v34_v14 = vadd.f32 %v33_v12, %v32_v11 }
   0x6   :  { %81 = vmatpush.msra.mxu0 %v62_v3 }
   0x7   :  { %11 = vsyncpa [#allocation5], 0  ;;  %v60_v15 = vld [vmem:[%s263_s1 + $0x18] sm:$0xff]  ;;  %v131_v16 = vpop.eup %130  ;;  %v26_v17 = vrot.slane %v25_v13, 4  ;;  %v35_v18 = vrot.slane %v34_v14, 4  ;;  %v59_v19 = vld [vmem:[%s263_s1 + $0x10] sm:$0xff] }
   0x8   :  { %82 = vmatpush.msra.mxu0 %v61_v9  ;;  %v42_v20 = vmul.f32 16.0, %v131_v16  ;;  %v58_v23 = vld [vmem:[%s263_s1 + $0x8] sm:$0xff]  ;;  %v57_v27 = vld [vmem:[%s263_s1] sm:$0xff]  ;;  %vm46_vm1 = vweird.f32 %v131_v16  ;;  %vm52_vm2 = vcmask 1041409   ;;  %s185_s12 = smov [#allocation2]   ;;  %s100_s15 = sshll.u32 %s265_s3, 4  ;;  %s101_s15 = int_to_ptr.hbm [resolvable:$true] %s100_s15 }
   0x9   :  { %v27_v21 = vadd.f32 %v26_v17, %v25_v13  ;;  %v36_v22 = vadd.f32 %v35_v18, %v34_v14  ;;  %s98_s1 = sshll.u32 %s185_s12, 4  ;;  %vm55_vm3 = vcmask 517120   ;;  %v129_v40 = vld [vmem:[%s264_s2] ss:$0 sm:$0xff]  ;;  %s186_s18 = smov [#allocation4]   ;;  %vm91_vm4 = vcmask 74752   ;;  %s99_s1 = int_to_ptr.vmem [resolvable:$true] %s98_s1 }
   0xa   :  { %83 = vmatpush.msra.mxu0 %v60_v15  ;;  %v43_v24 = vsub.f32 1.0, %v42_v20  ;;  %s109_s19 = sshll.u32 %s186_s18, 4  ;;  %s111_s22 = sshll.u32 %s266_s4, 4  ;;  %s110_s19 = int_to_ptr.vmem [resolvable:$true] %s109_s19  ;;  %s112_s22 = int_to_ptr.hbm [resolvable:$true] %s111_s22 }
   0xb   :  { %v28_v25 = vrot.slane %v27_v21, 2  ;;  %v37_v26 = vrot.slane %v36_v22, 2 }
   0xc   :  { %84 = vmatpush.msra.mxu0 %v59_v19  ;;  %v44_v28 = vmul.f32 %v131_v16, %v43_v24 }
   0xd   :  { %v29_v29 = vadd.f32 %v28_v25, %v27_v21  ;;  %v38_v30 = vadd.f32 %v37_v26, %v36_v22 }
   0xe   :  { %85 = vmatpush.msra.mxu0 %v58_v23  ;;  %v45_v31 = vadd.f32 %v131_v16, %v44_v28 }
   0xf   :  { %v30_v32 = vrot.slane %v29_v29, 1  ;;  %v39_v33 = vrot.slane %v38_v30, 1 }
  0x10   :  { %86 = vmatpush.msra.mxu0 %v57_v27  ;;  %v47_v34 = vsel %vm46_vm1, %v131_v16, %v45_v31 }
  0x11   :  { %v31_v35 = vadd.f32 %v30_v32, %v29_v29  ;;  %v40_v36 = vadd.f32 %v39_v33, %v38_v30 }
  0x13   :  { %v48_v37 = vmul.f32 %v47_v34, %v31_v35  ;;  %v49_v38 = vmul.f32 %v47_v34, %v40_v36 }
  0x15   :  { %v53_v39 = vsel %vm52_vm2, %v49_v38, %v48_v37 }
  0x16   :  { %125 = vmatmul.msk.f32.vlgmr.msra.gmra.mxu0 %vm22_vm0, %v53_v39  ;;  %56 = vst.msk [vmem:[#allocation2] sm:$0x3] %vm55_vm3, %v53_v39 }
  0x17   :  { %103 = dma.vmem_to_hbm [thread:$0]  %s99_s1, 32, %s101_s15, [#allocation3]  }
  0x93   :  { %v88_v41 = vpop.f32.mrf.mxu0 }
  0x94   :  { %v89_v42 = vadd.f32 %v129_v40, %v88_v41 }
  0x96   :  { %92 = vst.msk [vmem:[#allocation4] sm:$0x3] %vm91_vm4, %v89_v42 }
  0x97   :  { %114 = dma.vmem_to_hbm [thread:$0]  %s110_s19, 32, %s112_s22, [#allocation5]  }
  0x98   :  { %180 = dma.done.wait [#allocation3], 32  }
  0x99   :  { %181 = vsyncadd [#allocation3], 4294967264 }
  0x9a   :  { %182 = dma.done.wait [#allocation5], 32  }
  0x9b   :  { %183 = vsyncadd [#allocation5], 4294967264 }
  0x9c   :  { %123 = vsyncpa [#allocation3], 1 }
  0x9d   :  { %124 = vsyncpa [#allocation5], 1 }

// kernel: _lambda_.27
= control target key start
LH: loop header
LB: loop body
LE: loop exit
PB: predicated region body
PF: predicated region fallthrough
CT: control target
= control target key end

     0   :  { %vm375_vm0 = vcmask 523264   ;;  %s1038_s1 = inlined_call_operand.vmem [shape: bf16[576,128], index: 1, kind: input, shape index: {}]   ;;  %s1039_s0 = inlined_call_operand.vmem [shape: bf16[32,576], index: 0, kind: input, shape index: {}]   ;;  %s1040_s5 = inlined_call_operand.vmem [shape: f32[2,128], index: 5, kind: output, shape index: {1}]   ;;  %s1041_s4 = inlined_call_operand.vmem [shape: f32[32,128], index: 4, kind: output, shape index: {0}]   ;;  %s1042_s2 = inlined_call_operand.vmem [shape: f32[1,128], index: 2, kind: input, shape index: {}]   ;;  %s1043_s3 = inlined_call_operand.vmem [shape: f32[1,128], index: 3, kind: input, shape index: {}]  }
   0x1   :  { %v754_v0 = vld [vmem:[%s1038_s1 + $0x38] sm:$0xff]  ;;  %v753_v4 = vld [vmem:[%s1038_s1 + $0x30] sm:$0xff]  ;;  %v752_v8 = vld [vmem:[%s1038_s1 + $0x28] sm:$0xff] }
   0x2   :  { %v762_v1 = vld [vmem:[%s1038_s1 + $0x78] sm:$0xff]  ;;  %382 = vmatpush.bf16.msra.mxu0 %v754_v0  ;;  %v761_v5 = vld [vmem:[%s1038_s1 + $0x70] sm:$0xff]  ;;  %v760_v9 = vld [vmem:[%s1038_s1 + $0x68] sm:$0xff] }
   0x3   :  { %v770_v2 = vld [vmem:[%s1038_s1 + $0xb8] sm:$0xff]  ;;  %401 = vmatpush.bf16.msra.mxu1 %v762_v1  ;;  %v769_v6 = vld [vmem:[%s1038_s1 + $0xb0] sm:$0xff]  ;;  %v768_v10 = vld [vmem:[%s1038_s1 + $0xa8] sm:$0xff] }
   0x4   :  { %v778_v3 = vld [vmem:[%s1038_s1 + $0xf8] sm:$0xff]  ;;  %420 = vmatpush.bf16.msra.mxu2 %v770_v2  ;;  %v777_v7 = vld [vmem:[%s1038_s1 + $0xf0] sm:$0xff]  ;;  %v776_v11 = vld [vmem:[%s1038_s1 + $0xe8] sm:$0xff] }
   0x5   :  { %439 = vmatpush.bf16.msra.mxu3 %v778_v3  ;;  %v751_v12 = vld [vmem:[%s1038_s1 + $0x20] sm:$0xff]  ;;  %v750_v16 = vld [vmem:[%s1038_s1 + $0x18] sm:$0xff]  ;;  %v749_v20 = vld [vmem:[%s1038_s1 + $0x10] sm:$0xff] }
   0x6   :  { %383 = vmatpush.bf16.msra.mxu0 %v753_v4  ;;  %v759_v13 = vld [vmem:[%s1038_s1 + $0x60] sm:$0xff]  ;;  %v758_v17 = vld [vmem:[%s1038_s1 + $0x58] sm:$0xff]  ;;  %v757_v21 = vld [vmem:[%s1038_s1 + $0x50] sm:$0xff] }
   0x7   :  { %402 = vmatpush.bf16.msra.mxu1 %v761_v5  ;;  %v767_v14 = vld [vmem:[%s1038_s1 + $0xa0] sm:$0xff]  ;;  %v766_v18 = vld [vmem:[%s1038_s1 + $0x98] sm:$0xff]  ;;  %v765_v22 = vld [vmem:[%s1038_s1 + $0x90] sm:$0xff] }
   0x8   :  { %421 = vmatpush.bf16.msra.mxu2 %v769_v6  ;;  %v775_v15 = vld [vmem:[%s1038_s1 + $0xe0] sm:$0xff]  ;;  %v774_v19 = vld [vmem:[%s1038_s1 + $0xd8] sm:$0xff]  ;;  %v773_v23 = vld [vmem:[%s1038_s1 + $0xd0] sm:$0xff] }
   0x9   :  { %440 = vmatpush.bf16.msra.mxu3 %v777_v7  ;;  %v748_v24 = vld [vmem:[%s1038_s1 + $0x8] sm:$0xff]  ;;  %v747_v28 = vld [vmem:[%s1038_s1] sm:$0xff]  ;;  %v739_v33 = vld [vmem:[%s1039_s0 + $0x10] sm:$0xf0] }
   0xa   :  { %384 = vmatpush.bf16.msra.mxu0 %v752_v8  ;;  %v756_v25 = vld [vmem:[%s1038_s1 + $0x48] sm:$0xff]  ;;  %v755_v29 = vld [vmem:[%s1038_s1 + $0x40] sm:$0xff]  ;;  %v555_v35 = vld [vmem:[%s1039_s0 + $0x14] sm:$0xf0]  ;;  %v793_v8 = vmov 0.0  }
   0xb   :  { %403 = vmatpush.bf16.msra.mxu1 %v760_v9  ;;  %v764_v26 = vld [vmem:[%s1038_s1 + $0x88] sm:$0xff]  ;;  %v763_v30 = vld [vmem:[%s1038_s1 + $0x80] sm:$0xff]  ;;  %v740_v37 = vld [vmem:[%s1039_s0 + $0x18] sm:$0xf0]  ;;  %24 = vst [vmem:[%s1040_s5] sm:$0x3] %v793_v8 }
   0xc   :  { %422 = vmatpush.bf16.msra.mxu2 %v768_v10  ;;  %v772_v27 = vld [vmem:[%s1038_s1 + $0xc8] sm:$0xff]  ;;  %v771_v31 = vld [vmem:[%s1038_s1 + $0xc0] sm:$0xff]  ;;  %v782_v40 = vld [vmem:[%s1038_s1 + $0x118] sm:$0xff] }
   0xd   :  { %441 = vmatpush.bf16.msra.mxu3 %v776_v11  ;;  %v553_v32 = vld [vmem:[%s1039_s0] sm:$0xf]  ;;  %v737_v34 = vld [vmem:[%s1039_s0 + $0x4] sm:$0xf]  ;;  %v561_v36 = vld [vmem:[%s1039_s0 + $0x8] sm:$0xf] }
   0xe   :  { %385 = vmatpush.bf16.msra.mxu0 %v751_v12  ;;  %v738_v38 = vld [vmem:[%s1039_s0 + $0xc] sm:$0xf]  ;;  %v563_v39 = vld [vmem:[%s1039_s0 + $0x1c] sm:$0xf0]  ;;  %v554_v41 = vor.u32 %v739_v33, %v553_v32  ;;  %v558_v42 = vor.u32 %v737_v34, %v555_v35  ;;  %v562_v43 = vor.u32 %v740_v37, %v561_v36  ;;  %v781_v45 = vld [vmem:[%s1038_s1 + $0x110] sm:$0xff] }
   0xf   :  { %404 = vmatpush.bf16.msra.mxu1 %v759_v13  ;;  %v566_v44 = vor.u32 %v738_v38, %v563_v39  ;;  %v780_v46 = vld [vmem:[%s1038_s1 + $0x108] sm:$0xff]  ;;  %v779_v47 = vld [vmem:[%s1038_s1 + $0x100] sm:$0xff]  ;;  %v744_v49 = vld [vmem:[%s1039_s0 + $0x38] sm:$0xf0] }
  0x10   :  { %423 = vmatpush.bf16.msra.mxu2 %v767_v14  ;;  %v573_v48 = vld [vmem:[%s1039_s0 + $0x28] sm:$0xf]  ;;  %v742_v50 = vld [vmem:[%s1039_s0 + $0x2c] sm:$0xf]  ;;  %v575_v51 = vld [vmem:[%s1039_s0 + $0x3c] sm:$0xf0] }
  0x11   :  { %442 = vmatpush.bf16.msra.mxu3 %v775_v15  ;;  %v581_v52 = vld [vmem:[%s1039_s0 + $0x30] sm:$0xf]  ;;  %v745_v53 = vld [vmem:[%s1039_s0 + $0x40] sm:$0xf0]  ;;  %v743_v54 = vld [vmem:[%s1039_s0 + $0x34] sm:$0xf]  ;;  %v574_v56 = vor.u32 %v744_v49, %v573_v48  ;;  %v578_v57 = vor.u32 %v742_v50, %v575_v51 }
  0x12   :  { %386 = vmatpush.bf16.msra.mxu0 %v750_v16  ;;  %v583_v55 = vld [vmem:[%s1039_s0 + $0x44] sm:$0xf0]  ;;  %v582_v58 = vor.u32 %v745_v53, %v581_v52  ;;  %v569_v60 = vld [vmem:[%s1039_s0 + $0x10] sm:$0xf]  ;;  %v741_v61 = vld [vmem:[%s1039_s0 + $0x20] sm:$0xf0] }
  0x13   :  { %405 = vmatpush.bf16.msra.mxu1 %v758_v17  ;;  %v586_v59 = vor.u32 %v743_v54, %v583_v55  ;;  %v589_v62 = vld [vmem:[%s1039_s0 + $0x38] sm:$0xf]  ;;  %v746_v63 = vld [vmem:[%s1039_s0 + $0x48] sm:$0xf0]  ;;  %v570_v0 = vor.u32 %v741_v61, %v569_v60 }
  0x14   :  { %424 = vmatpush.bf16.msra.mxu2 %v766_v18  ;;  %v590_v1 = vor.u32 %v746_v63, %v589_v62  ;;  %v481_v62 = vld [vmem:[%s1040_s5] sm:$0x1] }
  0x15   :  { %443 = vmatpush.bf16.msra.mxu3 %v774_v19 }
  0x16   :  { %387 = vmatpush.bf16.msra.mxu0 %v749_v20 }
  0x17   :  { %406 = vmatpush.bf16.msra.mxu1 %v757_v21 }
  0x18   :  { %425 = vmatpush.bf16.msra.mxu2 %v765_v22 }
  0x19   :  { %444 = vmatpush.bf16.msra.mxu3 %v773_v23 }
  0x1a   :  { %388 = vmatpush.bf16.msra.mxu0 %v748_v24 }
  0x1b   :  { %407 = vmatpush.bf16.msra.mxu1 %v756_v25 }
  0x1c   :  { %426 = vmatpush.bf16.msra.mxu2 %v764_v26 }
  0x1d   :  { %445 = vmatpush.bf16.msra.mxu3 %v772_v27 }
  0x1e   :  { %389 = vmatpush.bf16.msra.mxu0 %v747_v28 }
  0x1f   :  { %408 = vmatpush.bf16.msra.mxu1 %v755_v29 }
  0x20   :  { %427 = vmatpush.bf16.msra.mxu2 %v763_v30 }
  0x21   :  { %446 = vmatpush.bf16.msra.mxu3 %v771_v31  ;;  %390 = vmatmul.bf16.vlgmr.msra.gmra.mxu0 %v554_v41 }
  0x22   :  { %462 = vmatpush.bf16.msrb.mxu0 %v782_v40  ;;  %409 = vmatmul.bf16.vlgmr.msra.gmra.mxu1 %v558_v42  ;;  %v794_v42 = vmov 32.0  }
  0x23   :  { %783 = vmatpush.bf16.msrb.mxu1 %v782_v40  ;;  %428 = vmatmul.bf16.vlgmr.msra.gmra.mxu2 %v562_v43  ;;  %789 = vrcp.f32 %v794_v42 }
  0x24   :  { %447 = vmatmul.bf16.vlgmr.msra.gmra.mxu3 %v566_v44 }
  0x26   :  { %463 = vmatpush.bf16.msrb.mxu0 %v781_v45 }
  0x27   :  { %784 = vmatpush.bf16.msrb.mxu1 %v781_v45 }
  0x29   :  { %v790_v49 = vpop.eup %789 }
  0x2a   :  { %464 = vmatpush.bf16.msrb.mxu0 %v780_v46  ;;  %v514_v54 = vmul.f32 32.0, %v790_v49  ;;  %vm518_vm1 = vweird.f32 %v790_v49 }
  0x2b   :  { %785 = vmatpush.bf16.msrb.mxu1 %v780_v46 }
  0x2e   :  { %465 = vmatpush.bf16.msrb.mxu0 %v779_v47 }
  0x2f   :  { %786 = vmatpush.bf16.msrb.mxu1 %v779_v47 }
  0x31   :  { %395 = vmatmul.bf16.gmra.mxu0 %v574_v56 }
  0x32   :  { %414 = vmatmul.bf16.gmra.mxu1 %v578_v57 }
  0x33   :  { %433 = vmatmul.bf16.gmra.mxu2 %v582_v58 }
  0x34   :  { %452 = vmatmul.bf16.gmra.mxu3 %v586_v59  ;;  %v515_v59 = vsub.f32 1.0, %v514_v54 }
  0x41   :  { %735 = vmatmul.msk.bf16.vlgmr.msrb.gmra.mxu0 %vm375_vm0, %v570_v0 }
  0x42   :  { %736 = vmatmul.msk.bf16.vlgmr.msrb.gmra.mxu1 %vm375_vm0, %v590_v1  ;;  %v493_v1 = vld [vmem:[%s1040_s5 + $0x1] sm:$0x1] }
  0x9e   :  { %v391_v2 = vpop.f32.mrf.mxu0 }
  0x9f   :  { %v410_v3 = vpop.f32.mrf.mxu1 }
  0xa0   :  { %v411_v16 = vadd.f32 %v410_v3, %v391_v2  ;;  %v516_v2 = vmul.f32 %v790_v49, %v515_v59 }
  0xa6   :  { %v429_v4 = vpop.f32.mrf.mxu2  ;;  %v393_v6 = vpop.f32.mrf.mxu0 }
  0xa7   :  { %v448_v5 = vpop.f32.mrf.mxu3  ;;  %v412_v7 = vpop.f32.mrf.mxu1  ;;  %v430_v19 = vadd.f32 %v429_v4, %v411_v16 }
  0xa8   :  { %v413_v26 = vadd.f32 %v412_v7, %v393_v6  ;;  %v517_v6 = vadd.f32 %v790_v49, %v516_v2 }
  0xa9   :  { %v449_v21 = vadd.f32 %v448_v5, %v430_v19 }
  0xaa   :  { %v519_v7 = vsel %vm518_vm1, %v790_v49, %v517_v6 }
  0xae   :  { %v431_v9 = vpop.f32.mrf.mxu2  ;;  %v396_v11 = vpop.f32.mrf.mxu0 }
  0xaf   :  { %v450_v10 = vpop.f32.mrf.mxu3  ;;  %v415_v12 = vpop.f32.mrf.mxu1  ;;  %v432_v30 = vadd.f32 %v431_v9, %v413_v26 }
  0xb0   :  { %v416_v17 = vadd.f32 %v415_v12, %v396_v11 }
  0xb1   :  { %v451_v33 = vadd.f32 %v450_v10, %v432_v30 }
  0xb6   :  { %v434_v13 = vpop.f32.mrf.mxu2  ;;  %v398_v14 = vpop.f32.mrf.mxu0 }
  0xb7   :  { %v417_v15 = vpop.f32.mrf.mxu1  ;;  %v453_v18 = vpop.f32.mrf.mxu3  ;;  %v435_v20 = vadd.f32 %v434_v13, %v416_v17 }
  0xb8   :  { %v418_v27 = vadd.f32 %v417_v15, %v398_v14 }
  0xb9   :  { %v454_v22 = vadd.f32 %v453_v18, %v435_v20 }
  0xbe   :  { %v436_v23 = vpop.f32.mrf.mxu2  ;;  %v467_v24 = vpop.f32.mrf.mxu0 }
  0xbf   :  { %v472_v25 = vpop.f32.mrf.mxu1  ;;  %v468_v28 = vadd.f32 %v467_v24, %v449_v21  ;;  %v437_v31 = vadd.f32 %v436_v23, %v418_v27  ;;  %v455_v32 = vpop.f32.mrf.mxu3  ;;  %v536_v21 = vld [vmem:[%s1042_s2] sm:$0x1] }
  0xc0   :  { %v473_v29 = vadd.f32 %v472_v25, %v454_v22  ;;  %v538_v24 = vld [vmem:[%s1043_s3] sm:$0x1] }
  0xc1   :  { %477 = vst [vmem:[%s1041_s4] sm:$0xff] %v468_v28  ;;  %v456_v34 = vadd.f32 %v455_v32, %v437_v31  ;;  %v494_v39 = vmul.f32 %v468_v28, %v468_v28 }
  0xc2   :  { %479 = vst [vmem:[%s1041_s4 + $0x10] sm:$0xff] %v473_v29  ;;  %v496_v43 = vmul.f32 %v473_v29, %v473_v29 }
  0xc6   :  { %v469_v35 = vpop.f32.mrf.mxu0 }
  0xc7   :  { %v474_v36 = vpop.f32.mrf.mxu1  ;;  %v470_v37 = vadd.f32 %v469_v35, %v451_v33 }
  0xc8   :  { %v475_v38 = vadd.f32 %v474_v36, %v456_v34 }
  0xc9   :  { %478 = vst [vmem:[%s1041_s4 + $0x8] sm:$0xff] %v470_v37  ;;  %v482_v40 = vadd.f32 %v470_v37, %v468_v28  ;;  %v495_v41 = vmul.f32 %v470_v37, %v470_v37 }
  0xca   :  { %480 = vst [vmem:[%s1041_s4 + $0x18] sm:$0xff] %v475_v38  ;;  %v497_v47 = vmul.f32 %v475_v38, %v475_v38 }
  0xcb   :  { %v498_v44 = vadd.f32 %v495_v41, %v494_v39  ;;  %v483_v45 = vadd.f32 %v482_v40, %v473_v29 }
  0xcd   :  { %v484_v46 = vadd.f32 %v483_v45, %v475_v38  ;;  %v499_v48 = vadd.f32 %v498_v44, %v496_v43 }
  0xcf   :  { %v485_v50 = vrot.slane %v484_v46, 4  ;;  %v500_v51 = vadd.f32 %v499_v48, %v497_v47 }
  0xd1   :  { %v486_v52 = vadd.f32 %v485_v50, %v484_v46  ;;  %v501_v53 = vrot.slane %v500_v51, 4 }
  0xd3   :  { %v487_v55 = vrot.slane %v486_v52, 2  ;;  %v502_v56 = vadd.f32 %v501_v53, %v500_v51 }
  0xd5   :  { %v488_v57 = vadd.f32 %v487_v55, %v486_v52  ;;  %v503_v58 = vrot.slane %v502_v56, 2 }
  0xd7   :  { %v489_v60 = vrot.slane %v488_v57, 1  ;;  %v504_v61 = vadd.f32 %v503_v58, %v502_v56 }
  0xd9   :  { %v490_v63 = vadd.f32 %v489_v60, %v488_v57  ;;  %v505_v0 = vrot.slane %v504_v61, 1 }
  0xdb   :  { %v491_v3 = vadd.f32 %v490_v63, %v481_v62  ;;  %v506_v4 = vadd.f32 %v505_v0, %v504_v61 }
  0xdd   :  { %492 = vst [vmem:[%s1040_s5] sm:$0x1] %v491_v3  ;;  %v507_v5 = vadd.f32 %v506_v4, %v493_v1 }
  0xdf   :  { %508 = vst [vmem:[%s1040_s5 + $0x1] sm:$0x1] %v507_v5 }
  0xe4   :  { %v512_v8 = vld [vmem:[%s1040_s5] sm:$0x1] }
  0xe5   :  { %v520_v9 = vmul.f32 %v519_v7, %v512_v8 }
  0xe6   :  { %v521_v10 = vld [vmem:[%s1040_s5 + $0x1] sm:$0x1] }
  0xe7   :  { %v522_v11 = vmul.f32 %v521_v10, %v519_v7  ;;  %v523_v12 = vmul.f32 %v520_v9, %v520_v9 }
  0xe9   :  { %v524_v13 = vsub.f32 %v522_v11, %v523_v12 }
  0xeb   :  { %v525_v14 = vadd.f32 1e-05, %v524_v13 }
  0xed   :  { %791 = vrsqrt.f32 %v525_v14  ;;  %vm532_vm3 = vweird.f32 %v525_v14 }
  0xf3   :  { %v792_v15 = vpop.eup %791 }
  0xf4   :  { %v527_v16 = vmul.f32 %v792_v15, %v525_v14  ;;  %vm533_vm2 = vweird.f32 %v792_v15 }
  0xf5   :  { %vm534_vm4 = vmor %vm532_vm3, %vm533_vm2 }
  0xf6   :  { %v528_v17 = vmul.f32 %v792_v15, %v527_v16 }
  0xf8   :  { %v529_v18 = vmul.f32 0.5, %v528_v17 }
  0xfa   :  { %v530_v19 = vsub.f32 1.5, %v529_v18 }
  0xfc   :  { %v531_v20 = vmul.f32 %v792_v15, %v530_v19 }
  0xfe   :  { %v535_v22 = vsel %vm534_vm4, %v792_v15, %v531_v20 }
  0xff   :  { %v537_v23 = vmul.f32 %v536_v21, %v535_v22 }
 0x101   :  { %v539_v25 = vmul.f32 %v537_v23, %v520_v9  ;;  %541 = vst [vmem:[%s1040_s5] sm:$0x1] %v537_v23 }
 0x103   :  { %v540_v26 = vsub.f32 %v538_v24, %v539_v25 }
 0x105   :  { %542 = vst [vmem:[%s1040_s5 + $0x1] sm:$0x1] %v540_v26 }

</bundles_post_ra>
